<compile_context>
chip_gen: v7x
topology: tpu7x:2x2x1
jax: 0.10.0
libtpu: 0.0.40
codegen_flags: <defaults>
</compile_context>

<pallas_src>
import functools

import jax
import jax.numpy as jnp
from jax.experimental import pallas as pl
from jax.experimental.pallas import tpu as pltpu


# ---------------------------------------------------------------------------
# Fused double-conv kernel: (Conv3x3 -> bias -> ReLU) x 2, implicit GEMM
# (BN scale already folded into the weights in the wrapper)
# ---------------------------------------------------------------------------
def _fused_double_conv_kernel(x_ref, w1_ref, w2_ref, b1_ref, b2_ref,
                              o_ref, y_scr, acc1_ref, acc2_ref):
    # x_ref   : (TH+4, W+4, C1p)   bf16  input row-tile incl. 2-pixel halo / zero pad
    # w1_ref  : (3, 3, C1p, Cmp)   bf16  conv1 weights (HWIO, BN1 scale folded)
    # w2_ref  : (3, 3, Cmp, Cop)   bf16  conv2 weights (HWIO, BN2 scale folded)
    # b1/b2   : (1, Cmp)/(1, Cop)  f32   folded BatchNorm biases
    # o_ref   : (TH, W, Cop)       bf16  output row-tile (lane-dense Cop % 128 == 0)
    # y_scr   : (TH+2, W+2, Cmp)   bf16  conv1 output + conv2's zero-padding ring
    # acc1_ref: ((TH+2)*W, Cmp)    f32   conv1 MXU accumulator (VMEM)
    # acc2_ref: (TH*W, Cop)        f32   conv2 MXU accumulator (VMEM)
    TH, W, Cop = o_ref.shape
    C1p = x_ref.shape[-1]
    Cmp = y_scr.shape[-1]
    r1 = TH + 2                      # conv1 output rows incl. 1-row halo for conv2
    t = pl.program_id(1)

    taps = [(dy, dx) for dy in range(3) for dx in range(3)]

    # ---- conv1: 9-tap implicit GEMM, accumulate into f32 VMEM scratch -------
    # TODO(synk): fold the dx taps into the matmul K dimension (im2col slab /
    # pltpu.roll) to cut the per-tap re-layout copies and, for shallow layers,
    # the zero-padding of K to 128 per tap.
    for i, (dy, dx) in enumerate(taps):
        tap = x_ref[dy:dy + r1, dx + 1:dx + 1 + W, :]              # (r1, W, C1p) bf16
        contrib = jnp.dot(tap.reshape(r1 * W, C1p), w1_ref[dy, dx],
                          preferred_element_type=jnp.float32)
        if i == 0:
            acc1_ref[...] = contrib
        else:
            acc1_ref[...] += contrib
    y = jnp.maximum(acc1_ref[...] + b1_ref[...], 0.0)              # bias + ReLU (f32)
    y = y.reshape(r1, W, Cmp).astype(y_scr.dtype)

    # ---- stage conv1 output in VMEM with conv2's zero padding ---------------
    # Side columns are always zero pad; the halo rows above/below the image are
    # zeroed on the first / last row tile.
    y_scr[:, 1:W + 1, :] = y
    zcol = jnp.zeros((r1, 1, Cmp), y_scr.dtype)
    y_scr[:, 0:1, :] = zcol
    y_scr[:, W + 1:W + 2, :] = zcol
    zrow = jnp.zeros((1, W + 2, Cmp), y_scr.dtype)

    @pl.when(t == 0)
    def _():
        y_scr[0:1, :, :] = zrow

    @pl.when(t == pl.num_programs(1) - 1)
    def _():
        y_scr[r1 - 1:r1, :, :] = zrow

    # ---- conv2: 9-tap implicit GEMM + bias + ReLU ----------------------------
    for i, (dy, dx) in enumerate(taps):
        tap = y_scr[dy:dy + TH, dx:dx + W, :]                      # (TH, W, Cmp) bf16
        contrib = jnp.dot(tap.reshape(TH * W, Cmp), w2_ref[dy, dx],
                          preferred_element_type=jnp.float32)
        if i == 0:
            acc2_ref[...] = contrib
        else:
            acc2_ref[...] += contrib
    z = jnp.maximum(acc2_ref[...] + b2_ref[...], 0.0)
    o_ref[...] = z.reshape(TH, W, Cop).astype(o_ref.dtype)


# ---------------------------------------------------------------------------
# VMEM budgeting & tile selection
# ---------------------------------------------------------------------------
def _round_up(n, m):
    return (n + m - 1) // m * m


def _vmem_budget_bytes():
    """Per-chip scoped-VMEM budget, leaving headroom for compiler temporaries."""
    try:
        cap = int(pltpu.get_tpu_info().vmem_capacity_bytes)
    except Exception:
        cap = 64 << 20                       # conservative: v7x per-TC VMEM
    return min(int(cap * 0.85), 112 << 20)   # ~54 MiB on 64 MiB chips, ~108 MiB on 128 MiB


def _tile_cost_bytes(TH, W, C1p, Cmp, Cop):
    """Upper bound of VMEM used per grid step (2x-buffered blocks + scratch + temps)."""
    r1 = TH + 2
    blk_in = (TH + 4) * (W + 4) * C1p * 2 * 2        # bf16 input tile, double-buffered
    blk_out = TH * W * Cop * 2 * 2                   # bf16 output tile, double-buffered
    weights = 9 * (C1p * Cmp + Cmp * Cop) * 2 * 2    # bf16 weights, double-buffered
    bias = (Cmp + Cop) * 4 * 2
    scratch = (r1 * (W + 2) * Cmp * 2                # y_scr (bf16)
               + r1 * W * Cmp * 4                    # acc1 (f32)
               + TH * W * Cop * 4)                   # acc2 (f32)
    temps = (r1 * W * max(C1p, Cmp) * 2              # materialized tap slice (bf16)
             + r1 * W * Cmp * 4)                     # per-tap MXU result (f32)
    return blk_in + blk_out + weights + bias + scratch + temps + (2 << 20)


def _pick_row_tile(B, H, W, C1p, Cmp, Cop, budget):
    divisors = [d for d in range(H, 0, -1) if H % d == 0]
    # TODO(synk): add a column tile (with 2-col halo) for widths where even
    # TH=1 does not fit the VMEM budget.
    TH = next((d for d in divisors if _tile_cost_bytes(d, W, C1p, Cmp, Cop) <= budget),
              divisors[-1])
    # v7x megacore: keep at least 2 'parallel' grid iterations so both TCs are fed.
    if B * (H // TH) < 2:
        smaller = [d for d in divisors if d < TH]
        if smaller:
            TH = smaller[0]
    return TH


def _fold_bn(bn, eps):
    scale = bn["gamma"].astype(jnp.float32) / jnp.sqrt(bn["var"].astype(jnp.float32) + eps)
    bias = bn["beta"].astype(jnp.float32) - bn["mean"].astype(jnp.float32) * scale
    return scale, bias


# ---------------------------------------------------------------------------
# Wrapper: BN folding into weights, channel padding, halo row-tiling, BlockSpecs
# ---------------------------------------------------------------------------
def pallas_double_conv(x, conv1_w, bn1, conv2_w, bn2, *, eps=1e-5, row_tile=None):
    """Fused (Conv3x3 -> BN -> ReLU) x 2 on an NHWC f32 input (Pallas TPU).

    Returns a bf16 NHWC tensor of shape (B, H, W, Cout).
    """
    B, H, W, C1 = x.shape
    Cmid, Cout = conv1_w.shape[0], conv2_w.shape[0]
    assert conv1_w.shape[1] == C1 and conv2_w.shape[1] == Cmid
    assert W % 8 == 0, "image width must be a multiple of 8 (sublane tiling)"

    C1p = _round_up(C1, 128)     # lane-dense K for conv1
    Cmp = _round_up(Cmid, 128)   # lane-dense mid channels / K for conv2
    Cop = _round_up(Cout, 128)   # lane-dense output stores

    budget = _vmem_budget_bytes()
    TH = row_tile if row_tile is not None else _pick_row_tile(B, H, W, C1p, Cmp, Cop, budget)
    assert H % TH == 0, "row_tile must divide the image height"
    T = H // TH

    # Spatial zero pad of 2 (conv1 pad + conv2 pad) + channel pad + bf16 cast,
    # all in one pass over the input.
    xp = jnp.pad(x, ((0, 0), (2, 2), (2, 2), (0, C1p - C1))).astype(jnp.bfloat16)
    if T == 1:
        xt = xp                                            # no halo duplication
    else:
        # TODO(synk): replace this halo pre-cut with an overlapping-window DMA
        # (memory_space=pl.ANY + make_async_copy of pl.ds(t*TH, TH+4) rows) to
        # avoid the (TH+4)/TH HBM read amplification on very large images.
        xt = jnp.stack([xp[:, t * TH:t * TH + TH + 4] for t in range(T)], axis=1)
        xt = xt.reshape(B * T, TH + 4, W + 4, C1p)

    # Fold BN scale into the conv weights (f32, then bf16 cast); only the bias
    # add + ReLU remain in the kernel.
    s1, b1 = _fold_bn(bn1, eps)
    s2, b2 = _fold_bn(bn2, eps)
    w1 = jnp.transpose(conv1_w, (2, 3, 1, 0)).astype(jnp.float32) * s1     # HWIO
    w1 = jnp.pad(w1, ((0, 0), (0, 0), (0, C1p - C1), (0, Cmp - Cmid))).astype(jnp.bfloat16)
    w2 = jnp.transpose(conv2_w, (2, 3, 1, 0)).astype(jnp.float32) * s2
    w2 = jnp.pad(w2, ((0, 0), (0, 0), (0, Cmp - Cmid), (0, Cop - Cout))).astype(jnp.bfloat16)
    b1p = jnp.pad(b1, (0, Cmp - Cmid)).reshape(1, Cmp)
    b2p = jnp.pad(b2, (0, Cop - Cout)).reshape(1, Cop)

    vmem_limit = int(min(budget, max(32 << 20, _tile_cost_bytes(TH, W, C1p, Cmp, Cop))))

    out = pl.pallas_call(
        _fused_double_conv_kernel,
        out_shape=jax.ShapeDtypeStruct((B, H, W, Cop), jnp.bfloat16),
        grid_spec=pltpu.PrefetchScalarGridSpec(
            num_scalar_prefetch=0,
            grid=(B, T),
            in_specs=[
                pl.BlockSpec((None, TH + 4, W + 4, C1p),
                             lambda b, t: (b * T + t, 0, 0, 0)),
                pl.BlockSpec((3, 3, C1p, Cmp), lambda b, t: (0, 0, 0, 0)),
                pl.BlockSpec((3, 3, Cmp, Cop), lambda b, t: (0, 0, 0, 0)),
                pl.BlockSpec((1, Cmp), lambda b, t: (0, 0)),
                pl.BlockSpec((1, Cop), lambda b, t: (0, 0)),
            ],
            out_specs=pl.BlockSpec((None, TH, W, Cop), lambda b, t: (b, t, 0, 0)),
            scratch_shapes=[
                pltpu.VMEM((TH + 2, W + 2, Cmp), jnp.bfloat16),   # staged conv1 output
                pltpu.VMEM(((TH + 2) * W, Cmp), jnp.float32),     # conv1 accumulator
                pltpu.VMEM((TH * W, Cop), jnp.float32),           # conv2 accumulator
            ],
        ),
        compiler_params=pltpu.CompilerParams(
            dimension_semantics=("parallel", "parallel"),
            vmem_limit_bytes=vmem_limit),
    )(xt, w1, w2, b1p, b2p)

    return out[:, :, :, :Cout]      # no-op when Cout is already a 128-multiple


# ---------------------------------------------------------------------------
# Plain-JAX glue: bilinear upsample (align_corners=True), pad, concat
# ---------------------------------------------------------------------------
def _interp_matrix(n_in, n_out):
    if n_in == 1:
        return jnp.ones((n_out, 1), jnp.float32)
    src = jnp.arange(n_out, dtype=jnp.float32) * (n_in - 1) / (n_out - 1)
    i0 = jnp.clip(jnp.floor(src).astype(jnp.int32), 0, n_in - 2)
    frac = src - i0.astype(jnp.float32)
    m = jnp.zeros((n_out, n_in), jnp.float32)
    m = m.at[jnp.arange(n_out), i0].add(1.0 - frac)
    m = m.at[jnp.arange(n_out), i0 + 1].add(frac)
    return m


def upsample_bilinear_x2_align_corners(x):
    """x: (B, H, W, C) NHWC -> (B, 2H, 2W, C), torch Upsample(align_corners=True)."""
    B, H, W, C = x.shape
    My = _interp_matrix(H, 2 * H)
    Mx = _interp_matrix(W, 2 * W)
    y = jnp.einsum("oh,bhwc->bowc", My, x)
    y = jnp.einsum("pw,bowc->bopc", Mx, y)
    return y


# ---------------------------------------------------------------------------
# Pure-JAX reference (same bf16-operand / f32-accumulate / BN-folded numerics)
# ---------------------------------------------------------------------------
def reference_double_conv(x, conv1_w, bn1, conv2_w, bn2, *, eps=1e-5, row_tile=None):
    del row_tile

    def conv_bn_relu(h, w, bn):
        scale, bias = _fold_bn(bn, eps)
        w_hwio = (jnp.transpose(w, (2, 3, 1, 0)).astype(jnp.float32) * scale
                  ).astype(jnp.bfloat16)
        y = jax.lax.conv_general_dilated(
            h.astype(jnp.bfloat16), w_hwio, (1, 1), ((1, 1), (1, 1)),
            dimension_numbers=("NHWC", "HWIO", "NHWC"),
            preferred_element_type=jnp.float32)
        return jnp.maximum(y + bias, 0.0)

    return conv_bn_relu(conv_bn_relu(x, conv1_w, bn1), conv2_w, bn2)


# ---------------------------------------------------------------------------
# Up module (bilinear=True): parameters + forward
# ---------------------------------------------------------------------------
def init_up_params(key, in_channels, out_channels):
    """DoubleConv(in_channels, out_channels, mid=in_channels//2), BN in eval mode."""
    mid = in_channels // 2
    ks = jax.random.split(key, 10)

    def conv_w(k, cout, cin):
        fan_in = cin * 9
        return (jax.random.normal(k, (cout, cin, 3, 3), jnp.float32)
                / jnp.sqrt(jnp.float32(fan_in)))

    def bn(kg, kb, km, kv, c):
        return dict(
            gamma=1.0 + 0.1 * jax.random.normal(kg, (c,), jnp.float32),
            beta=0.1 * jax.random.normal(kb, (c,), jnp.float32),
            mean=0.1 * jax.random.normal(km, (c,), jnp.float32),
            var=1.0 + jnp.abs(0.1 * jax.random.normal(kv, (c,), jnp.float32)),
        )

    return dict(
        conv1_w=conv_w(ks[0], mid, in_channels),
        bn1=bn(ks[1], ks[2], ks[3], ks[4], mid),
        conv2_w=conv_w(ks[5], out_channels, mid),
        bn2=bn(ks[6], ks[7], ks[8], ks[9], out_channels),
    )


def up_forward(params, x1, x2, double_conv=pallas_double_conv, row_tile=None):
    """x1, x2 in PyTorch NCHW layout; returns NCHW float32."""
    x1 = jnp.transpose(x1, (0, 2, 3, 1)).astype(jnp.float32)
    x2 = jnp.transpose(x2, (0, 2, 3, 1)).astype(jnp.float32)

    # TODO(synk): fold the (linear) bilinear upsample + pad + concat of x1 into
    # the fused kernel's conv1 tap loads so x1 is read from HBM only once.
    x1 = upsample_bilinear_x2_align_corners(x1)
    dy = x2.shape[1] - x1.shape[1]
    dx = x2.shape[2] - x1.shape[2]
    x1 = jnp.pad(x1, ((0, 0), (dy // 2, dy - dy // 2), (dx // 2, dx - dx // 2), (0, 0)))
    x = jnp.concatenate([x2, x1], axis=-1)                 # torch.cat([x2, x1], dim=1)

    z = double_conv(x, params["conv1_w"], params["bn1"],
                    params["conv2_w"], params["bn2"], row_tile=row_tile)
    return jnp.transpose(z, (0, 3, 1, 2)).astype(jnp.float32)   # back to NCHW, f32


if __name__ == "__main__":
    key = jax.random.PRNGKey(0)
    k_p, k_x1, k_x2 = jax.random.split(key, 3)

    in_channels, out_channels = 8, 8              # Up(8, 8, bilinear=True) -> mid = 4
    B = 2
    # Standard U-Net usage: x1 and x2 each carry in_channels // 2 channels.
    x1 = jax.random.normal(k_x1, (B, in_channels // 2, 7, 7), jnp.float32)    # NCHW
    x2 = jax.random.normal(k_x2, (B, in_channels // 2, 16, 16), jnp.float32)  # NCHW

    params = init_up_params(k_p, in_channels, out_channels)

    ref = jax.block_until_ready(
        up_forward(params, x1, x2, double_conv=reference_double_conv))

    # 1) Auto tile size: whole image per grid step (T=1, no halo duplication).
    fwd_auto = jax.jit(functools.partial(up_forward, double_conv=pallas_double_conv))
    out_auto = jax.block_until_ready(fwd_auto(params, x1, x2))
    assert out_auto.shape == (B, out_channels, 16, 16), out_auto.shape
    err_auto = float(jnp.max(jnp.abs(out_auto - ref)))
    assert jnp.allclose(out_auto, ref, atol=5e-3, rtol=5e-3), err_auto

    # 2) row_tile=8 -> two row tiles per image: exercises the halo / zero-pad path.
    fwd_tiled = jax.jit(functools.partial(up_forward, double_conv=pallas_double_conv,
                                          row_tile=8))
    out_tiled = jax.block_until_ready(fwd_tiled(params, x1, x2))
    err_tiled = float(jnp.max(jnp.abs(out_tiled - ref)))
    assert jnp.allclose(out_tiled, ref, atol=5e-3, rtol=5e-3), err_tiled

    print("KERNEL_OK")
</pallas_src>

<mosaic_0001>
module attributes {stable_mosaic.version = 11 : i64} {
  func.func @_fused_double_conv_kernel(%arg0: i32, %arg1: i32, %arg2: memref<1x20x20x128xbf16, #tpu.memory_space<vmem>>, %arg3: memref<3x3x128x128xbf16, #tpu.memory_space<vmem>>, %arg4: memref<3x3x128x128xbf16, #tpu.memory_space<vmem>>, %arg5: memref<1x128xf32, #tpu.memory_space<vmem>>, %arg6: memref<1x128xf32, #tpu.memory_space<vmem>>, %arg7: memref<1x16x16x128xbf16, #tpu.memory_space<vmem>>, %arg8: memref<18x18x128xbf16, #tpu.memory_space<vmem>>, %arg9: memref<288x128xf32, #tpu.memory_space<vmem>>, %arg10: memref<256x128xf32, #tpu.memory_space<vmem>>) attributes {dimension_semantics = [#tpu.dimension_semantics<parallel>, #tpu.dimension_semantics<parallel>], iteration_bounds = array<i64: 2, 1>, scalar_prefetch = 0 : i64, scratch_operands = 3 : i64, tpu.core_type = #tpu.core_type<tc>, window_params = [{transform_indices = @transform_0, window_bounds = array<i64: 1, 20, 20, 128>}, {pipeline_mode = #tpu.pipeline_mode<synchronous>, transform_indices = @transform_1, window_bounds = array<i64: 3, 3, 128, 128>}, {pipeline_mode = #tpu.pipeline_mode<synchronous>, transform_indices = @transform_2, window_bounds = array<i64: 3, 3, 128, 128>}, {pipeline_mode = #tpu.pipeline_mode<synchronous>, transform_indices = @transform_3, window_bounds = array<i64: 1, 128>}, {pipeline_mode = #tpu.pipeline_mode<synchronous>, transform_indices = @transform_4, window_bounds = array<i64: 1, 128>}, {transform_indices = @transform_5, window_bounds = array<i64: 1, 16, 16, 128>}]} {
    %c0 = arith.constant 0 : index
    %c0_0 = arith.constant 0 : index
    %c1 = arith.constant 1 : index
    %c0_1 = arith.constant 0 : index
    %0 = vector.load %arg2[%c0, %c0_0, %c1, %c0_1] : memref<1x20x20x128xbf16, #tpu.memory_space<vmem>>, vector<1x18x16x128xbf16>
    %1 = vector.shape_cast %0 : vector<1x18x16x128xbf16> to vector<18x16x128xbf16>
    %2 = vector.shape_cast %1 : vector<18x16x128xbf16> to vector<288x128xbf16>
    %c0_2 = arith.constant 0 : index
    %c0_3 = arith.constant 0 : index
    %c0_4 = arith.constant 0 : index
    %c0_5 = arith.constant 0 : index
    %3 = vector.load %arg3[%c0_2, %c0_3, %c0_4, %c0_5] : memref<3x3x128x128xbf16, #tpu.memory_space<vmem>>, vector<1x1x128x128xbf16>
    %4 = vector.shape_cast %3 : vector<1x1x128x128xbf16> to vector<128x128xbf16>
    %cst = arith.constant dense<0.000000e+00> : vector<288x128xf32>
    %5 = tpu.matmul %2, %4, %cst {dimension_numbers = #tpu.dot_dimension_numbers<[1], [0], [0], [1], [0, 0, 1, 1], [], []>} : vector<288x128xbf16>, vector<128x128xbf16>, vector<288x128xf32> -> vector<288x128xf32>
    %c0_6 = arith.constant 0 : index
    %c0_7 = arith.constant 0 : index
    %6 = vector.load %arg9[%c0_6, %c0_7] : memref<288x128xf32, #tpu.memory_space<vmem>>, vector<288x128xf32>
    tpu.vector_store %arg9[%c0_6, %c0_7], %5 {strides = array<i32>} : memref<288x128xf32, #tpu.memory_space<vmem>>, vector<288x128xf32>,
    %c0_8 = arith.constant 0 : index
    %c0_9 = arith.constant 0 : index
    %c2 = arith.constant 2 : index
    %c0_10 = arith.constant 0 : index
    %7 = vector.load %arg2[%c0_8, %c0_9, %c2, %c0_10] : memref<1x20x20x128xbf16, #tpu.memory_space<vmem>>, vector<1x18x16x128xbf16>
    %8 = vector.shape_cast %7 : vector<1x18x16x128xbf16> to vector<18x16x128xbf16>
    %9 = vector.shape_cast %8 : vector<18x16x128xbf16> to vector<288x128xbf16>
    %c0_11 = arith.constant 0 : index
    %c1_12 = arith.constant 1 : index
    %c0_13 = arith.constant 0 : index
    %c0_14 = arith.constant 0 : index
    %10 = vector.load %arg3[%c0_11, %c1_12, %c0_13, %c0_14] : memref<3x3x128x128xbf16, #tpu.memory_space<vmem>>, vector<1x1x128x128xbf16>
    %11 = vector.shape_cast %10 : vector<1x1x128x128xbf16> to vector<128x128xbf16>
    %cst_15 = arith.constant dense<0.000000e+00> : vector<288x128xf32>
    %12 = tpu.matmul %9, %11, %cst_15 {dimension_numbers = #tpu.dot_dimension_numbers<[1], [0], [0], [1], [0, 0, 1, 1], [], []>} : vector<288x128xbf16>, vector<128x128xbf16>, vector<288x128xf32> -> vector<288x128xf32>
    %c0_16 = arith.constant 0 : index
    %c0_17 = arith.constant 0 : index
    %13 = vector.load %arg9[%c0_16, %c0_17] : memref<288x128xf32, #tpu.memory_space<vmem>>, vector<288x128xf32>
    %14 = arith.addf %13, %12 : vector<288x128xf32>
    %c0_18 = arith.constant 0 : index
    %c0_19 = arith.constant 0 : index
    %15 = vector.load %arg9[%c0_18, %c0_19] : memref<288x128xf32, #tpu.memory_space<vmem>>, vector<288x128xf32>
    tpu.vector_store %arg9[%c0_18, %c0_19], %14 {strides = array<i32>} : memref<288x128xf32, #tpu.memory_space<vmem>>, vector<288x128xf32>,
    %c0_20 = arith.constant 0 : index
    %c0_21 = arith.constant 0 : index
    %c3 = arith.constant 3 : index
    %c0_22 = arith.constant 0 : index
    %16 = vector.load %arg2[%c0_20, %c0_21, %c3, %c0_22] : memref<1x20x20x128xbf16, #tpu.memory_space<vmem>>, vector<1x18x16x128xbf16>
    %17 = vector.shape_cast %16 : vector<1x18x16x128xbf16> to vector<18x16x128xbf16>
    %18 = vector.shape_cast %17 : vector<18x16x128xbf16> to vector<288x128xbf16>
    %c0_23 = arith.constant 0 : index
    %c2_24 = arith.constant 2 : index
    %c0_25 = arith.constant 0 : index
    %c0_26 = arith.constant 0 : index
    %19 = vector.load %arg3[%c0_23, %c2_24, %c0_25, %c0_26] : memref<3x3x128x128xbf16, #tpu.memory_space<vmem>>, vector<1x1x128x128xbf16>
    %20 = vector.shape_cast %19 : vector<1x1x128x128xbf16> to vector<128x128xbf16>
    %cst_27 = arith.constant dense<0.000000e+00> : vector<288x128xf32>
    %21 = tpu.matmul %18, %20, %cst_27 {dimension_numbers = #tpu.dot_dimension_numbers<[1], [0], [0], [1], [0, 0, 1, 1], [], []>} : vector<288x128xbf16>, vector<128x128xbf16>, vector<288x128xf32> -> vector<288x128xf32>
    %c0_28 = arith.constant 0 : index
    %c0_29 = arith.constant 0 : index
    %22 = vector.load %arg9[%c0_28, %c0_29] : memref<288x128xf32, #tpu.memory_space<vmem>>, vector<288x128xf32>
    %23 = arith.addf %22, %21 : vector<288x128xf32>
    %c0_30 = arith.constant 0 : index
    %c0_31 = arith.constant 0 : index
    %24 = vector.load %arg9[%c0_30, %c0_31] : memref<288x128xf32, #tpu.memory_space<vmem>>, vector<288x128xf32>
    tpu.vector_store %arg9[%c0_30, %c0_31], %23 {strides = array<i32>} : memref<288x128xf32, #tpu.memory_space<vmem>>, vector<288x128xf32>,
    %c0_32 = arith.constant 0 : index
    %c1_33 = arith.constant 1 : index
    %c1_34 = arith.constant 1 : index
    %c0_35 = arith.constant 0 : index
    %25 = vector.load %arg2[%c0_32, %c1_33, %c1_34, %c0_35] : memref<1x20x20x128xbf16, #tpu.memory_space<vmem>>, vector<1x18x16x128xbf16>
    %26 = vector.shape_cast %25 : vector<1x18x16x128xbf16> to vector<18x16x128xbf16>
    %27 = vector.shape_cast %26 : vector<18x16x128xbf16> to vector<288x128xbf16>
    %c1_36 = arith.constant 1 : index
    %c0_37 = arith.constant 0 : index
    %c0_38 = arith.constant 0 : index
    %c0_39 = arith.constant 0 : index
    %28 = vector.load %arg3[%c1_36, %c0_37, %c0_38, %c0_39] : memref<3x3x128x128xbf16, #tpu.memory_space<vmem>>, vector<1x1x128x128xbf16>
    %29 = vector.shape_cast %28 : vector<1x1x128x128xbf16> to vector<128x128xbf16>
    %cst_40 = arith.constant dense<0.000000e+00> : vector<288x128xf32>
    %30 = tpu.matmul %27, %29, %cst_40 {dimension_numbers = #tpu.dot_dimension_numbers<[1], [0], [0], [1], [0, 0, 1, 1], [], []>} : vector<288x128xbf16>, vector<128x128xbf16>, vector<288x128xf32> -> vector<288x128xf32>
    %c0_41 = arith.constant 0 : index
    %c0_42 = arith.constant 0 : index
    %31 = vector.load %arg9[%c0_41, %c0_42] : memref<288x128xf32, #tpu.memory_space<vmem>>, vector<288x128xf32>
    %32 = arith.addf %31, %30 : vector<288x128xf32>
    %c0_43 = arith.constant 0 : index
    %c0_44 = arith.constant 0 : index
    %33 = vector.load %arg9[%c0_43, %c0_44] : memref<288x128xf32, #tpu.memory_space<vmem>>, vector<288x128xf32>
    tpu.vector_store %arg9[%c0_43, %c0_44], %32 {strides = array<i32>} : memref<288x128xf32, #tpu.memory_space<vmem>>, vector<288x128xf32>,
    %c0_45 = arith.constant 0 : index
    %c1_46 = arith.constant 1 : index
    %c2_47 = arith.constant 2 : index
    %c0_48 = arith.constant 0 : index
    %34 = vector.load %arg2[%c0_45, %c1_46, %c2_47, %c0_48] : memref<1x20x20x128xbf16, #tpu.memory_space<vmem>>, vector<1x18x16x128xbf16>
    %35 = vector.shape_cast %34 : vector<1x18x16x128xbf16> to vector<18x16x128xbf16>
    %36 = vector.shape_cast %35 : vector<18x16x128xbf16> to vector<288x128xbf16>
    %c1_49 = arith.constant 1 : index
    %c1_50 = arith.constant 1 : index
    %c0_51 = arith.constant 0 : index
    %c0_52 = arith.constant 0 : index
    %37 = vector.load %arg3[%c1_49, %c1_50, %c0_51, %c0_52] : memref<3x3x128x128xbf16, #tpu.memory_space<vmem>>, vector<1x1x128x128xbf16>
    %38 = vector.shape_cast %37 : vector<1x1x128x128xbf16> to vector<128x128xbf16>
    %cst_53 = arith.constant dense<0.000000e+00> : vector<288x128xf32>
    %39 = tpu.matmul %36, %38, %cst_53 {dimension_numbers = #tpu.dot_dimension_numbers<[1], [0], [0], [1], [0, 0, 1, 1], [], []>} : vector<288x128xbf16>, vector<128x128xbf16>, vector<288x128xf32> -> vector<288x128xf32>
    %c0_54 = arith.constant 0 : index
    %c0_55 = arith.constant 0 : index
    %40 = vector.load %arg9[%c0_54, %c0_55] : memref<288x128xf32, #tpu.memory_space<vmem>>, vector<288x128xf32>
    %41 = arith.addf %40, %39 : vector<288x128xf32>
    %c0_56 = arith.constant 0 : index
    %c0_57 = arith.constant 0 : index
    %42 = vector.load %arg9[%c0_56, %c0_57] : memref<288x128xf32, #tpu.memory_space<vmem>>, vector<288x128xf32>
    tpu.vector_store %arg9[%c0_56, %c0_57], %41 {strides = array<i32>} : memref<288x128xf32, #tpu.memory_space<vmem>>, vector<288x128xf32>,
    %c0_58 = arith.constant 0 : index
    %c1_59 = arith.constant 1 : index
    %c3_60 = arith.constant 3 : index
    %c0_61 = arith.constant 0 : index
    %43 = vector.load %arg2[%c0_58, %c1_59, %c3_60, %c0_61] : memref<1x20x20x128xbf16, #tpu.memory_space<vmem>>, vector<1x18x16x128xbf16>
    %44 = vector.shape_cast %43 : vector<1x18x16x128xbf16> to vector<18x16x128xbf16>
    %45 = vector.shape_cast %44 : vector<18x16x128xbf16> to vector<288x128xbf16>
    %c1_62 = arith.constant 1 : index
    %c2_63 = arith.constant 2 : index
    %c0_64 = arith.constant 0 : index
    %c0_65 = arith.constant 0 : index
    %46 = vector.load %arg3[%c1_62, %c2_63, %c0_64, %c0_65] : memref<3x3x128x128xbf16, #tpu.memory_space<vmem>>, vector<1x1x128x128xbf16>
    %47 = vector.shape_cast %46 : vector<1x1x128x128xbf16> to vector<128x128xbf16>
    %cst_66 = arith.constant dense<0.000000e+00> : vector<288x128xf32>
    %48 = tpu.matmul %45, %47, %cst_66 {dimension_numbers = #tpu.dot_dimension_numbers<[1], [0], [0], [1], [0, 0, 1, 1], [], []>} : vector<288x128xbf16>, vector<128x128xbf16>, vector<288x128xf32> -> vector<288x128xf32>
    %c0_67 = arith.constant 0 : index
    %c0_68 = arith.constant 0 : index
    %49 = vector.load %arg9[%c0_67, %c0_68] : memref<288x128xf32, #tpu.memory_space<vmem>>, vector<288x128xf32>
    %50 = arith.addf %49, %48 : vector<288x128xf32>
    %c0_69 = arith.constant 0 : index
    %c0_70 = arith.constant 0 : index
    %51 = vector.load %arg9[%c0_69, %c0_70] : memref<288x128xf32, #tpu.memory_space<vmem>>, vector<288x128xf32>
    tpu.vector_store %arg9[%c0_69, %c0_70], %50 {strides = array<i32>} : memref<288x128xf32, #tpu.memory_space<vmem>>, vector<288x128xf32>,
    %c0_71 = arith.constant 0 : index
    %c2_72 = arith.constant 2 : index
    %c1_73 = arith.constant 1 : index
    %c0_74 = arith.constant 0 : index
    %52 = vector.load %arg2[%c0_71, %c2_72, %c1_73, %c0_74] : memref<1x20x20x128xbf16, #tpu.memory_space<vmem>>, vector<1x18x16x128xbf16>
    %53 = vector.shape_cast %52 : vector<1x18x16x128xbf16> to vector<18x16x128xbf16>
    %54 = vector.shape_cast %53 : vector<18x16x128xbf16> to vector<288x128xbf16>
    %c2_75 = arith.constant 2 : index
    %c0_76 = arith.constant 0 : index
    %c0_77 = arith.constant 0 : index
    %c0_78 = arith.constant 0 : index
    %55 = vector.load %arg3[%c2_75, %c0_76, %c0_77, %c0_78] : memref<3x3x128x128xbf16, #tpu.memory_space<vmem>>, vector<1x1x128x128xbf16>
    %56 = vector.shape_cast %55 : vector<1x1x128x128xbf16> to vector<128x128xbf16>
    %cst_79 = arith.constant dense<0.000000e+00> : vector<288x128xf32>
    %57 = tpu.matmul %54, %56, %cst_79 {dimension_numbers = #tpu.dot_dimension_numbers<[1], [0], [0], [1], [0, 0, 1, 1], [], []>} : vector<288x128xbf16>, vector<128x128xbf16>, vector<288x128xf32> -> vector<288x128xf32>
    %c0_80 = arith.constant 0 : index
    %c0_81 = arith.constant 0 : index
    %58 = vector.load %arg9[%c0_80, %c0_81] : memref<288x128xf32, #tpu.memory_space<vmem>>, vector<288x128xf32>
    %59 = arith.addf %58, %57 : vector<288x128xf32>
    %c0_82 = arith.constant 0 : index
    %c0_83 = arith.constant 0 : index
    %60 = vector.load %arg9[%c0_82, %c0_83] : memref<288x128xf32, #tpu.memory_space<vmem>>, vector<288x128xf32>
    tpu.vector_store %arg9[%c0_82, %c0_83], %59 {strides = array<i32>} : memref<288x128xf32, #tpu.memory_space<vmem>>, vector<288x128xf32>,
    %c0_84 = arith.constant 0 : index
    %c2_85 = arith.constant 2 : index
    %c2_86 = arith.constant 2 : index
    %c0_87 = arith.constant 0 : index
    %61 = vector.load %arg2[%c0_84, %c2_85, %c2_86, %c0_87] : memref<1x20x20x128xbf16, #tpu.memory_space<vmem>>, vector<1x18x16x128xbf16>
    %62 = vector.shape_cast %61 : vector<1x18x16x128xbf16> to vector<18x16x128xbf16>
    %63 = vector.shape_cast %62 : vector<18x16x128xbf16> to vector<288x128xbf16>
    %c2_88 = arith.constant 2 : index
    %c1_89 = arith.constant 1 : index
    %c0_90 = arith.constant 0 : index
    %c0_91 = arith.constant 0 : index
    %64 = vector.load %arg3[%c2_88, %c1_89, %c0_90, %c0_91] : memref<3x3x128x128xbf16, #tpu.memory_space<vmem>>, vector<1x1x128x128xbf16>
    %65 = vector.shape_cast %64 : vector<1x1x128x128xbf16> to vector<128x128xbf16>
    %cst_92 = arith.constant dense<0.000000e+00> : vector<288x128xf32>
    %66 = tpu.matmul %63, %65, %cst_92 {dimension_numbers = #tpu.dot_dimension_numbers<[1], [0], [0], [1], [0, 0, 1, 1], [], []>} : vector<288x128xbf16>, vector<128x128xbf16>, vector<288x128xf32> -> vector<288x128xf32>
    %c0_93 = arith.constant 0 : index
    %c0_94 = arith.constant 0 : index
    %67 = vector.load %arg9[%c0_93, %c0_94] : memref<288x128xf32, #tpu.memory_space<vmem>>, vector<288x128xf32>
    %68 = arith.addf %67, %66 : vector<288x128xf32>
    %c0_95 = arith.constant 0 : index
    %c0_96 = arith.constant 0 : index
    %69 = vector.load %arg9[%c0_95, %c0_96] : memref<288x128xf32, #tpu.memory_space<vmem>>, vector<288x128xf32>
    tpu.vector_store %arg9[%c0_95, %c0_96], %68 {strides = array<i32>} : memref<288x128xf32, #tpu.memory_space<vmem>>, vector<288x128xf32>,
    %c0_97 = arith.constant 0 : index
    %c2_98 = arith.constant 2 : index
    %c3_99 = arith.constant 3 : index
    %c0_100 = arith.constant 0 : index
    %70 = vector.load %arg2[%c0_97, %c2_98, %c3_99, %c0_100] : memref<1x20x20x128xbf16, #tpu.memory_space<vmem>>, vector<1x18x16x128xbf16>
    %71 = vector.shape_cast %70 : vector<1x18x16x128xbf16> to vector<18x16x128xbf16>
    %72 = vector.shape_cast %71 : vector<18x16x128xbf16> to vector<288x128xbf16>
    %c2_101 = arith.constant 2 : index
    %c2_102 = arith.constant 2 : index
    %c0_103 = arith.constant 0 : index
    %c0_104 = arith.constant 0 : index
    %73 = vector.load %arg3[%c2_101, %c2_102, %c0_103, %c0_104] : memref<3x3x128x128xbf16, #tpu.memory_space<vmem>>, vector<1x1x128x128xbf16>
    %74 = vector.shape_cast %73 : vector<1x1x128x128xbf16> to vector<128x128xbf16>
    %cst_105 = arith.constant dense<0.000000e+00> : vector<288x128xf32>
    %75 = tpu.matmul %72, %74, %cst_105 {dimension_numbers = #tpu.dot_dimension_numbers<[1], [0], [0], [1], [0, 0, 1, 1], [], []>} : vector<288x128xbf16>, vector<128x128xbf16>, vector<288x128xf32> -> vector<288x128xf32>
    %c0_106 = arith.constant 0 : index
    %c0_107 = arith.constant 0 : index
    %76 = vector.load %arg9[%c0_106, %c0_107] : memref<288x128xf32, #tpu.memory_space<vmem>>, vector<288x128xf32>
    %77 = arith.addf %76, %75 : vector<288x128xf32>
    %c0_108 = arith.constant 0 : index
    %c0_109 = arith.constant 0 : index
    %78 = vector.load %arg9[%c0_108, %c0_109] : memref<288x128xf32, #tpu.memory_space<vmem>>, vector<288x128xf32>
    tpu.vector_store %arg9[%c0_108, %c0_109], %77 {strides = array<i32>} : memref<288x128xf32, #tpu.memory_space<vmem>>, vector<288x128xf32>,
    %c0_110 = arith.constant 0 : index
    %c0_111 = arith.constant 0 : index
    %79 = vector.load %arg9[%c0_110, %c0_111] : memref<288x128xf32, #tpu.memory_space<vmem>>, vector<288x128xf32>
    %c0_112 = arith.constant 0 : index
    %c0_113 = arith.constant 0 : index
    %80 = vector.load %arg5[%c0_112, %c0_113] : memref<1x128xf32, #tpu.memory_space<vmem>>, vector<1x128xf32>
    %81 = vector.broadcast %80 : vector<1x128xf32> to vector<288x128xf32>
    %82 = arith.addf %79, %81 : vector<288x128xf32>
    %cst_114 = arith.constant 0.000000e+00 : f32
    %83 = vector.broadcast %cst_114 : f32 to vector<288x128xf32>
    %84 = arith.maximumf %82, %83 : vector<288x128xf32>
    %85 = vector.shape_cast %84 : vector<288x128xf32> to vector<18x16x128xf32>
    %86 = arith.truncf %85 : vector<18x16x128xf32> to vector<18x16x128xbf16>
    %c0_115 = arith.constant 0 : index
    %c1_116 = arith.constant 1 : index
    %c0_117 = arith.constant 0 : index
    %87 = vector.load %arg8[%c0_115, %c1_116, %c0_117] : memref<18x18x128xbf16, #tpu.memory_space<vmem>>, vector<18x16x128xbf16>
    tpu.vector_store %arg8[%c0_115, %c1_116, %c0_117], %86 {strides = array<i32>} : memref<18x18x128xbf16, #tpu.memory_space<vmem>>, vector<18x16x128xbf16>,
    %cst_118 = arith.constant 0.000000e+00 : bf16
    %88 = vector.broadcast %cst_118 : bf16 to vector<18x1x128xbf16>
    %c0_119 = arith.constant 0 : index
    %c0_120 = arith.constant 0 : index
    %c0_121 = arith.constant 0 : index
    %89 = vector.load %arg8[%c0_119, %c0_120, %c0_121] : memref<18x18x128xbf16, #tpu.memory_space<vmem>>, vector<18x1x128xbf16>
    tpu.vector_store %arg8[%c0_119, %c0_120, %c0_121], %88 {strides = array<i32>} : memref<18x18x128xbf16, #tpu.memory_space<vmem>>, vector<18x1x128xbf16>,
    %c0_122 = arith.constant 0 : index
    %c17 = arith.constant 17 : index
    %c0_123 = arith.constant 0 : index
    %90 = vector.load %arg8[%c0_122, %c17, %c0_123] : memref<18x18x128xbf16, #tpu.memory_space<vmem>>, vector<18x1x128xbf16>
    tpu.vector_store %arg8[%c0_122, %c17, %c0_123], %88 {strides = array<i32>} : memref<18x18x128xbf16, #tpu.memory_space<vmem>>, vector<18x1x128xbf16>,
    %cst_124 = arith.constant 0.000000e+00 : bf16
    %91 = vector.broadcast %cst_124 : bf16 to vector<1x18x128xbf16>
    %c0_i32 = arith.constant 0 : i32
    %92 = arith.cmpi eq, %arg1, %c0_i32 : i32
    %93 = arith.extui %92 : i1 to i32
    %c0_i32_125 = arith.constant 0 : i32
    %94 = arith.cmpi ne, %93, %c0_i32_125 : i32
    scf.if %94 {
      %c0_243 = arith.constant 0 : index
      %c0_244 = arith.constant 0 : index
      %c0_245 = arith.constant 0 : index
      %179 = vector.load %arg8[%c0_243, %c0_244, %c0_245] : memref<18x18x128xbf16, #tpu.memory_space<vmem>>, vector<1x18x128xbf16>
      tpu.vector_store %arg8[%c0_243, %c0_244, %c0_245], %91 {strides = array<i32>} : memref<18x18x128xbf16, #tpu.memory_space<vmem>>, vector<1x18x128xbf16>,
    } else {
    }
    %c0_i32_126 = arith.constant 0 : i32
    %95 = arith.cmpi eq, %arg1, %c0_i32_126 : i32
    %96 = arith.extui %95 : i1 to i32
    %c0_i32_127 = arith.constant 0 : i32
    %97 = arith.cmpi ne, %96, %c0_i32_127 : i32
    scf.if %97 {
      %c17_243 = arith.constant 17 : index
      %c0_244 = arith.constant 0 : index
      %c0_245 = arith.constant 0 : index
      %179 = vector.load %arg8[%c17_243, %c0_244, %c0_245] : memref<18x18x128xbf16, #tpu.memory_space<vmem>>, vector<1x18x128xbf16>
      tpu.vector_store %arg8[%c17_243, %c0_244, %c0_245], %91 {strides = array<i32>} : memref<18x18x128xbf16, #tpu.memory_space<vmem>>, vector<1x18x128xbf16>,
    } else {
    }
    %c0_128 = arith.constant 0 : index
    %c0_129 = arith.constant 0 : index
    %c0_130 = arith.constant 0 : index
    %98 = vector.load %arg8[%c0_128, %c0_129, %c0_130] : memref<18x18x128xbf16, #tpu.memory_space<vmem>>, vector<16x16x128xbf16>
    %99 = vector.shape_cast %98 : vector<16x16x128xbf16> to vector<256x128xbf16>
    %c0_131 = arith.constant 0 : index
    %c0_132 = arith.constant 0 : index
    %c0_133 = arith.constant 0 : index
    %c0_134 = arith.constant 0 : index
    %100 = vector.load %arg4[%c0_131, %c0_132, %c0_133, %c0_134] : memref<3x3x128x128xbf16, #tpu.memory_space<vmem>>, vector<1x1x128x128xbf16>
    %101 = vector.shape_cast %100 : vector<1x1x128x128xbf16> to vector<128x128xbf16>
    %cst_135 = arith.constant dense<0.000000e+00> : vector<256x128xf32>
    %102 = tpu.matmul %99, %101, %cst_135 {dimension_numbers = #tpu.dot_dimension_numbers<[1], [0], [0], [1], [0, 0, 1, 1], [], []>} : vector<256x128xbf16>, vector<128x128xbf16>, vector<256x128xf32> -> vector<256x128xf32>
    %c0_136 = arith.constant 0 : index
    %c0_137 = arith.constant 0 : index
    %103 = vector.load %arg10[%c0_136, %c0_137] : memref<256x128xf32, #tpu.memory_space<vmem>>, vector<256x128xf32>
    tpu.vector_store %arg10[%c0_136, %c0_137], %102 {strides = array<i32>} : memref<256x128xf32, #tpu.memory_space<vmem>>, vector<256x128xf32>,
    %c0_138 = arith.constant 0 : index
    %c1_139 = arith.constant 1 : index
    %c0_140 = arith.constant 0 : index
    %104 = vector.load %arg8[%c0_138, %c1_139, %c0_140] : memref<18x18x128xbf16, #tpu.memory_space<vmem>>, vector<16x16x128xbf16>
    %105 = vector.shape_cast %104 : vector<16x16x128xbf16> to vector<256x128xbf16>
    %c0_141 = arith.constant 0 : index
    %c1_142 = arith.constant 1 : index
    %c0_143 = arith.constant 0 : index
    %c0_144 = arith.constant 0 : index
    %106 = vector.load %arg4[%c0_141, %c1_142, %c0_143, %c0_144] : memref<3x3x128x128xbf16, #tpu.memory_space<vmem>>, vector<1x1x128x128xbf16>
    %107 = vector.shape_cast %106 : vector<1x1x128x128xbf16> to vector<128x128xbf16>
    %cst_145 = arith.constant dense<0.000000e+00> : vector<256x128xf32>
    %108 = tpu.matmul %105, %107, %cst_145 {dimension_numbers = #tpu.dot_dimension_numbers<[1], [0], [0], [1], [0, 0, 1, 1], [], []>} : vector<256x128xbf16>, vector<128x128xbf16>, vector<256x128xf32> -> vector<256x128xf32>
    %c0_146 = arith.constant 0 : index
    %c0_147 = arith.constant 0 : index
    %109 = vector.load %arg10[%c0_146, %c0_147] : memref<256x128xf32, #tpu.memory_space<vmem>>, vector<256x128xf32>
    %110 = arith.addf %109, %108 : vector<256x128xf32>
    %c0_148 = arith.constant 0 : index
    %c0_149 = arith.constant 0 : index
    %111 = vector.load %arg10[%c0_148, %c0_149] : memref<256x128xf32, #tpu.memory_space<vmem>>, vector<256x128xf32>
    tpu.vector_store %arg10[%c0_148, %c0_149], %110 {strides = array<i32>} : memref<256x128xf32, #tpu.memory_space<vmem>>, vector<256x128xf32>,
    %c0_150 = arith.constant 0 : index
    %c2_151 = arith.constant 2 : index
    %c0_152 = arith.constant 0 : index
    %112 = vector.load %arg8[%c0_150, %c2_151, %c0_152] : memref<18x18x128xbf16, #tpu.memory_space<vmem>>, vector<16x16x128xbf16>
    %113 = vector.shape_cast %112 : vector<16x16x128xbf16> to vector<256x128xbf16>
    %c0_153 = arith.constant 0 : index
    %c2_154 = arith.constant 2 : index
    %c0_155 = arith.constant 0 : index
    %c0_156 = arith.constant 0 : index
    %114 = vector.load %arg4[%c0_153, %c2_154, %c0_155, %c0_156] : memref<3x3x128x128xbf16, #tpu.memory_space<vmem>>, vector<1x1x128x128xbf16>
    %115 = vector.shape_cast %114 : vector<1x1x128x128xbf16> to vector<128x128xbf16>
    %cst_157 = arith.constant dense<0.000000e+00> : vector<256x128xf32>
    %116 = tpu.matmul %113, %115, %cst_157 {dimension_numbers = #tpu.dot_dimension_numbers<[1], [0], [0], [1], [0, 0, 1, 1], [], []>} : vector<256x128xbf16>, vector<128x128xbf16>, vector<256x128xf32> -> vector<256x128xf32>
    %c0_158 = arith.constant 0 : index
    %c0_159 = arith.constant 0 : index
    %117 = vector.load %arg10[%c0_158, %c0_159] : memref<256x128xf32, #tpu.memory_space<vmem>>, vector<256x128xf32>
    %118 = arith.addf %117, %116 : vector<256x128xf32>
    %c0_160 = arith.constant 0 : index
    %c0_161 = arith.constant 0 : index
    %119 = vector.load %arg10[%c0_160, %c0_161] : memref<256x128xf32, #tpu.memory_space<vmem>>, vector<256x128xf32>
    tpu.vector_store %arg10[%c0_160, %c0_161], %118 {strides = array<i32>} : memref<256x128xf32, #tpu.memory_space<vmem>>, vector<256x128xf32>,
    %c1_162 = arith.constant 1 : index
    %c0_163 = arith.constant 0 : index
    %c0_164 = arith.constant 0 : index
    %120 = vector.load %arg8[%c1_162, %c0_163, %c0_164] : memref<18x18x128xbf16, #tpu.memory_space<vmem>>, vector<16x16x128xbf16>
    %121 = vector.shape_cast %120 : vector<16x16x128xbf16> to vector<256x128xbf16>
    %c1_165 = arith.constant 1 : index
    %c0_166 = arith.constant 0 : index
    %c0_167 = arith.constant 0 : index
    %c0_168 = arith.constant 0 : index
    %122 = vector.load %arg4[%c1_165, %c0_166, %c0_167, %c0_168] : memref<3x3x128x128xbf16, #tpu.memory_space<vmem>>, vector<1x1x128x128xbf16>
    %123 = vector.shape_cast %122 : vector<1x1x128x128xbf16> to vector<128x128xbf16>
    %cst_169 = arith.constant dense<0.000000e+00> : vector<256x128xf32>
    %124 = tpu.matmul %121, %123, %cst_169 {dimension_numbers = #tpu.dot_dimension_numbers<[1], [0], [0], [1], [0, 0, 1, 1], [], []>} : vector<256x128xbf16>, vector<128x128xbf16>, vector<256x128xf32> -> vector<256x128xf32>
    %c0_170 = arith.constant 0 : index
    %c0_171 = arith.constant 0 : index
    %125 = vector.load %arg10[%c0_170, %c0_171] : memref<256x128xf32, #tpu.memory_space<vmem>>, vector<256x128xf32>
    %126 = arith.addf %125, %124 : vector<256x128xf32>
    %c0_172 = arith.constant 0 : index
    %c0_173 = arith.constant 0 : index
    %127 = vector.load %arg10[%c0_172, %c0_173] : memref<256x128xf32, #tpu.memory_space<vmem>>, vector<256x128xf32>
    tpu.vector_store %arg10[%c0_172, %c0_173], %126 {strides = array<i32>} : memref<256x128xf32, #tpu.memory_space<vmem>>, vector<256x128xf32>,
    %c1_174 = arith.constant 1 : index
    %c1_175 = arith.constant 1 : index
    %c0_176 = arith.constant 0 : index
    %128 = vector.load %arg8[%c1_174, %c1_175, %c0_176] : memref<18x18x128xbf16, #tpu.memory_space<vmem>>, vector<16x16x128xbf16>
    %129 = vector.shape_cast %128 : vector<16x16x128xbf16> to vector<256x128xbf16>
    %c1_177 = arith.constant 1 : index
    %c1_178 = arith.constant 1 : index
    %c0_179 = arith.constant 0 : index
    %c0_180 = arith.constant 0 : index
    %130 = vector.load %arg4[%c1_177, %c1_178, %c0_179, %c0_180] : memref<3x3x128x128xbf16, #tpu.memory_space<vmem>>, vector<1x1x128x128xbf16>
    %131 = vector.shape_cast %130 : vector<1x1x128x128xbf16> to vector<128x128xbf16>
    %cst_181 = arith.constant dense<0.000000e+00> : vector<256x128xf32>
    %132 = tpu.matmul %129, %131, %cst_181 {dimension_numbers = #tpu.dot_dimension_numbers<[1], [0], [0], [1], [0, 0, 1, 1], [], []>} : vector<256x128xbf16>, vector<128x128xbf16>, vector<256x128xf32> -> vector<256x128xf32>
    %c0_182 = arith.constant 0 : index
    %c0_183 = arith.constant 0 : index
    %133 = vector.load %arg10[%c0_182, %c0_183] : memref<256x128xf32, #tpu.memory_space<vmem>>, vector<256x128xf32>
    %134 = arith.addf %133, %132 : vector<256x128xf32>
    %c0_184 = arith.constant 0 : index
    %c0_185 = arith.constant 0 : index
    %135 = vector.load %arg10[%c0_184, %c0_185] : memref<256x128xf32, #tpu.memory_space<vmem>>, vector<256x128xf32>
    tpu.vector_store %arg10[%c0_184, %c0_185], %134 {strides = array<i32>} : memref<256x128xf32, #tpu.memory_space<vmem>>, vector<256x128xf32>,
    %c1_186 = arith.constant 1 : index
    %c2_187 = arith.constant 2 : index
    %c0_188 = arith.constant 0 : index
    %136 = vector.load %arg8[%c1_186, %c2_187, %c0_188] : memref<18x18x128xbf16, #tpu.memory_space<vmem>>, vector<16x16x128xbf16>
    %137 = vector.shape_cast %136 : vector<16x16x128xbf16> to vector<256x128xbf16>
    %c1_189 = arith.constant 1 : index
    %c2_190 = arith.constant 2 : index
    %c0_191 = arith.constant 0 : index
    %c0_192 = arith.constant 0 : index
    %138 = vector.load %arg4[%c1_189, %c2_190, %c0_191, %c0_192] : memref<3x3x128x128xbf16, #tpu.memory_space<vmem>>, vector<1x1x128x128xbf16>
    %139 = vector.shape_cast %138 : vector<1x1x128x128xbf16> to vector<128x128xbf16>
    %cst_193 = arith.constant dense<0.000000e+00> : vector<256x128xf32>
    %140 = tpu.matmul %137, %139, %cst_193 {dimension_numbers = #tpu.dot_dimension_numbers<[1], [0], [0], [1], [0, 0, 1, 1], [], []>} : vector<256x128xbf16>, vector<128x128xbf16>, vector<256x128xf32> -> vector<256x128xf32>
    %c0_194 = arith.constant 0 : index
    %c0_195 = arith.constant 0 : index
    %141 = vector.load %arg10[%c0_194, %c0_195] : memref<256x128xf32, #tpu.memory_space<vmem>>, vector<256x128xf32>
    %142 = arith.addf %141, %140 : vector<256x128xf32>
    %c0_196 = arith.constant 0 : index
    %c0_197 = arith.constant 0 : index
    %143 = vector.load %arg10[%c0_196, %c0_197] : memref<256x128xf32, #tpu.memory_space<vmem>>, vector<256x128xf32>
    tpu.vector_store %arg10[%c0_196, %c0_197], %142 {strides = array<i32>} : memref<256x128xf32, #tpu.memory_space<vmem>>, vector<256x128xf32>,
    %c2_198 = arith.constant 2 : index
    %c0_199 = arith.constant 0 : index
    %c0_200 = arith.constant 0 : index
    %144 = vector.load %arg8[%c2_198, %c0_199, %c0_200] : memref<18x18x128xbf16, #tpu.memory_space<vmem>>, vector<16x16x128xbf16>
    %145 = vector.shape_cast %144 : vector<16x16x128xbf16> to vector<256x128xbf16>
    %c2_201 = arith.constant 2 : index
    %c0_202 = arith.constant 0 : index
    %c0_203 = arith.constant 0 : index
    %c0_204 = arith.constant 0 : index
    %146 = vector.load %arg4[%c2_201, %c0_202, %c0_203, %c0_204] : memref<3x3x128x128xbf16, #tpu.memory_space<vmem>>, vector<1x1x128x128xbf16>
    %147 = vector.shape_cast %146 : vector<1x1x128x128xbf16> to vector<128x128xbf16>
    %cst_205 = arith.constant dense<0.000000e+00> : vector<256x128xf32>
    %148 = tpu.matmul %145, %147, %cst_205 {dimension_numbers = #tpu.dot_dimension_numbers<[1], [0], [0], [1], [0, 0, 1, 1], [], []>} : vector<256x128xbf16>, vector<128x128xbf16>, vector<256x128xf32> -> vector<256x128xf32>
    %c0_206 = arith.constant 0 : index
    %c0_207 = arith.constant 0 : index
    %149 = vector.load %arg10[%c0_206, %c0_207] : memref<256x128xf32, #tpu.memory_space<vmem>>, vector<256x128xf32>
    %150 = arith.addf %149, %148 : vector<256x128xf32>
    %c0_208 = arith.constant 0 : index
    %c0_209 = arith.constant 0 : index
    %151 = vector.load %arg10[%c0_208, %c0_209] : memref<256x128xf32, #tpu.memory_space<vmem>>, vector<256x128xf32>
    tpu.vector_store %arg10[%c0_208, %c0_209], %150 {strides = array<i32>} : memref<256x128xf32, #tpu.memory_space<vmem>>, vector<256x128xf32>,
    %c2_210 = arith.constant 2 : index
    %c1_211 = arith.constant 1 : index
    %c0_212 = arith.constant 0 : index
    %152 = vector.load %arg8[%c2_210, %c1_211, %c0_212] : memref<18x18x128xbf16, #tpu.memory_space<vmem>>, vector<16x16x128xbf16>
    %153 = vector.shape_cast %152 : vector<16x16x128xbf16> to vector<256x128xbf16>
    %c2_213 = arith.constant 2 : index
    %c1_214 = arith.constant 1 : index
    %c0_215 = arith.constant 0 : index
    %c0_216 = arith.constant 0 : index
    %154 = vector.load %arg4[%c2_213, %c1_214, %c0_215, %c0_216] : memref<3x3x128x128xbf16, #tpu.memory_space<vmem>>, vector<1x1x128x128xbf16>
    %155 = vector.shape_cast %154 : vector<1x1x128x128xbf16> to vector<128x128xbf16>
    %cst_217 = arith.constant dense<0.000000e+00> : vector<256x128xf32>
    %156 = tpu.matmul %153, %155, %cst_217 {dimension_numbers = #tpu.dot_dimension_numbers<[1], [0], [0], [1], [0, 0, 1, 1], [], []>} : vector<256x128xbf16>, vector<128x128xbf16>, vector<256x128xf32> -> vector<256x128xf32>
    %c0_218 = arith.constant 0 : index
    %c0_219 = arith.constant 0 : index
    %157 = vector.load %arg10[%c0_218, %c0_219] : memref<256x128xf32, #tpu.memory_space<vmem>>, vector<256x128xf32>
    %158 = arith.addf %157, %156 : vector<256x128xf32>
    %c0_220 = arith.constant 0 : index
    %c0_221 = arith.constant 0 : index
    %159 = vector.load %arg10[%c0_220, %c0_221] : memref<256x128xf32, #tpu.memory_space<vmem>>, vector<256x128xf32>
    tpu.vector_store %arg10[%c0_220, %c0_221], %158 {strides = array<i32>} : memref<256x128xf32, #tpu.memory_space<vmem>>, vector<256x128xf32>,
    %c2_222 = arith.constant 2 : index
    %c2_223 = arith.constant 2 : index
    %c0_224 = arith.constant 0 : index
    %160 = vector.load %arg8[%c2_222, %c2_223, %c0_224] : memref<18x18x128xbf16, #tpu.memory_space<vmem>>, vector<16x16x128xbf16>
    %161 = vector.shape_cast %160 : vector<16x16x128xbf16> to vector<256x128xbf16>
    %c2_225 = arith.constant 2 : index
    %c2_226 = arith.constant 2 : index
    %c0_227 = arith.constant 0 : index
    %c0_228 = arith.constant 0 : index
    %162 = vector.load %arg4[%c2_225, %c2_226, %c0_227, %c0_228] : memref<3x3x128x128xbf16, #tpu.memory_space<vmem>>, vector<1x1x128x128xbf16>
    %163 = vector.shape_cast %162 : vector<1x1x128x128xbf16> to vector<128x128xbf16>
    %cst_229 = arith.constant dense<0.000000e+00> : vector<256x128xf32>
    %164 = tpu.matmul %161, %163, %cst_229 {dimension_numbers = #tpu.dot_dimension_numbers<[1], [0], [0], [1], [0, 0, 1, 1], [], []>} : vector<256x128xbf16>, vector<128x128xbf16>, vector<256x128xf32> -> vector<256x128xf32>
    %c0_230 = arith.constant 0 : index
    %c0_231 = arith.constant 0 : index
    %165 = vector.load %arg10[%c0_230, %c0_231] : memref<256x128xf32, #tpu.memory_space<vmem>>, vector<256x128xf32>
    %166 = arith.addf %165, %164 : vector<256x128xf32>
    %c0_232 = arith.constant 0 : index
    %c0_233 = arith.constant 0 : index
    %167 = vector.load %arg10[%c0_232, %c0_233] : memref<256x128xf32, #tpu.memory_space<vmem>>, vector<256x128xf32>
    tpu.vector_store %arg10[%c0_232, %c0_233], %166 {strides = array<i32>} : memref<256x128xf32, #tpu.memory_space<vmem>>, vector<256x128xf32>,
    %c0_234 = arith.constant 0 : index
    %c0_235 = arith.constant 0 : index
    %168 = vector.load %arg10[%c0_234, %c0_235] : memref<256x128xf32, #tpu.memory_space<vmem>>, vector<256x128xf32>
    %c0_236 = arith.constant 0 : index
    %c0_237 = arith.constant 0 : index
    %169 = vector.load %arg6[%c0_236, %c0_237] : memref<1x128xf32, #tpu.memory_space<vmem>>, vector<1x128xf32>
    %170 = vector.broadcast %169 : vector<1x128xf32> to vector<256x128xf32>
    %171 = arith.addf %168, %170 : vector<256x128xf32>
    %cst_238 = arith.constant 0.000000e+00 : f32
    %172 = vector.broadcast %cst_238 : f32 to vector<256x128xf32>
    %173 = arith.maximumf %171, %172 : vector<256x128xf32>
    %174 = vector.shape_cast %173 : vector<256x128xf32> to vector<16x16x128xf32>
    %175 = arith.truncf %174 : vector<16x16x128xf32> to vector<16x16x128xbf16>
    %c0_239 = arith.constant 0 : index
    %c0_240 = arith.constant 0 : index
    %c0_241 = arith.constant 0 : index
    %c0_242 = arith.constant 0 : index
    %176 = vector.load %arg7[%c0_239, %c0_240, %c0_241, %c0_242] : memref<1x16x16x128xbf16, #tpu.memory_space<vmem>>, vector<1x16x16x128xbf16>
    %177 = vector.shape_cast %176 : vector<1x16x16x128xbf16> to vector<16x16x128xbf16>
    %178 = vector.shape_cast %175 : vector<16x16x128xbf16> to vector<1x16x16x128xbf16>
    tpu.vector_store %arg7[%c0_239, %c0_240, %c0_241, %c0_242], %178 {strides = array<i32>} : memref<1x16x16x128xbf16, #tpu.memory_space<vmem>>, vector<1x16x16x128xbf16>,
    return
  }
  func.func @transform_0(%arg0: i32, %arg1: i32) -> (i32, i32, i32, i32) {
    %c1_i32 = arith.constant 1 : i32
    %0 = arith.muli %arg0, %c1_i32 : i32
    %1 = arith.addi %0, %arg1 : i32
    %c0_i32 = arith.constant 0 : i32
    %c0_i32_0 = arith.constant 0 : i32
    %c0_i32_1 = arith.constant 0 : i32
    %c0_i32_2 = arith.constant 0 : i32
    return %1, %c0_i32, %c0_i32_0, %c0_i32_1 : i32, i32, i32, i32
  }
  func.func @transform_1(%arg0: i32, %arg1: i32) -> (i32, i32, i32, i32) {
    %c0_i32 = arith.constant 0 : i32
    %c0_i32_0 = arith.constant 0 : i32
    %c0_i32_1 = arith.constant 0 : i32
    %c0_i32_2 = arith.constant 0 : i32
    %c0_i32_3 = arith.constant 0 : i32
    return %c0_i32, %c0_i32_0, %c0_i32_1, %c0_i32_2 : i32, i32, i32, i32
  }
  func.func @transform_2(%arg0: i32, %arg1: i32) -> (i32, i32, i32, i32) {
    %c0_i32 = arith.constant 0 : i32
    %c0_i32_0 = arith.constant 0 : i32
    %c0_i32_1 = arith.constant 0 : i32
    %c0_i32_2 = arith.constant 0 : i32
    %c0_i32_3 = arith.constant 0 : i32
    return %c0_i32, %c0_i32_0, %c0_i32_1, %c0_i32_2 : i32, i32, i32, i32
  }
  func.func @transform_3(%arg0: i32, %arg1: i32) -> (i32, i32) {
    %c0_i32 = arith.constant 0 : i32
    %c0_i32_0 = arith.constant 0 : i32
    %c0_i32_1 = arith.constant 0 : i32
    return %c0_i32, %c0_i32_0 : i32, i32
  }
  func.func @transform_4(%arg0: i32, %arg1: i32) -> (i32, i32) {
    %c0_i32 = arith.constant 0 : i32
    %c0_i32_0 = arith.constant 0 : i32
    %c0_i32_1 = arith.constant 0 : i32
    return %c0_i32, %c0_i32_0 : i32, i32
  }
  func.func @transform_5(%arg0: i32, %arg1: i32) -> (i32, i32, i32, i32) {
    %c0_i32 = arith.constant 0 : i32
    %c0_i32_0 = arith.constant 0 : i32
    %c0_i32_1 = arith.constant 0 : i32
    return %arg0, %arg1, %c0_i32, %c0_i32_0 : i32, i32, i32, i32
  }
}

</mosaic_0001>

<bundles_post_ra>
// kernel: up_forward.1
= control target key start
LH: loop header
LB: loop body
LE: loop exit
PB: predicated region body
PF: predicated region fallthrough
CT: control target
= control target key end

     0   :  { %s18098_s18 = smov 0   ;;  %s18100_s19 = smov 0   ;;  %s22290_s0 = inlined_call_operand.vmem [shape: bf16[2,20,20,128], index: 0, kind: input, shape index: {}]   ;;  %s22291_s1 = inlined_call_operand.vmem [shape: bf16[3,3,128,128], index: 1, kind: input, shape index: {}]   ;;  %s22292_s2 = inlined_call_operand.vmem [shape: bf16[3,3,128,128], index: 2, kind: input, shape index: {}]   ;;  %s22293_s3 = inlined_call_operand.vmem [shape: f32[1,128], index: 3, kind: input, shape index: {}]   ;;  %s22294_s4 = inlined_call_operand.vmem [shape: f32[1,128], index: 4, kind: input, shape index: {}]   ;;  %s22295_s5 = inlined_call_operand.vmem [shape: bf16[2,16,16,128], index: 5, kind: output, shape index: {}]  }
   0x1   :  { %s18102_s20 = smov 0  }
   0x2 LB: > { %s27_s21 = sadd.s32 1, %s18061_s19  ;;  %p14542_p0 = scmp.ge.s32.totalorder %s18065_s20, 1  ;;  %s18065_s20 = sphi %s18102_s20, %s15_s20   ;;  %s18061_s19 = sphi %s18100_s19, %s22385_s19   ;;  %s18057_s18 = sphi %s18098_s18, %s22384_s18  }
   0x3   : > { %p29_p1 = scmp.ge.s32.totalorder %s27_s21, 2  ;;  %p205_p2 = scmp.lt.s32.totalorder %s18065_s20, 3 }
   0x5   : > { %s22387_s21 = smov (%p29_p1, %s27_s21), 0  ;;  %p206_p3 = pnand %p14542_p0, %p205_p2 }
   0x7   : > { %209 = sbr.rel (%p206_p3) target bundleno = 1654 (0x676), region = 40 }
   0xe   : > { %v17850_v0 = vld [vmem:[%s22291_s1] sm:$0xff]   ;;  %p240_p4 = scmp.lt.s32.totalorder %s18057_s18, 1  ;;  %v17851_v1 = vld [vmem:[%s22291_s1 + $0x8] sm:$0xff]   ;;  %v17852_v2 = vld [vmem:[%s22291_s1 + $0x10] sm:$0xff]   ;;  %vm312_vm0 = vsmask.f32 3328 }
   0xf   : > { %16364 = vmatprep.subr.bf16.mxu0 %v17850_v0  ;;  %17264 = vmatprep.subr.bf16.mxu1 %v17850_v0  ;;  %v17853_v3 = vld [vmem:[%s22291_s1 + $0x18] sm:$0xff]   ;;  %vm313_vm1 = vsmask.f32 7440  ;;  %v17854_v9 = vld [vmem:[%s22291_s1 + $0x20] sm:$0xff]   ;;  %v22311_v26 = vmov 0  ;;  %v17855_v35 = vld [vmem:[%s22291_s1 + $0x28] sm:$0xff]  }
  0x10   : > { %s22389_s18 = smov (!%p240_p4, %s18057_s18), 1  ;;  %16365 = vmatpush3.bf16.msra.mxu0 %v17850_v0  ;;  %17272 = vmatpush3.bf16.msra.mxu1 %v17850_v0  ;;  %vm18147_vm2 = vmor %vm312_vm0, %vm313_vm1  ;;  %v17856_v50 = vld [vmem:[%s22291_s1 + $0x30] sm:$0xff]   ;;  %v17857_v63 = vld [vmem:[%s22291_s1 + $0x38] sm:$0xff]   ;;  %vm1204_vm3 = vcmask 1042432   ;;  %vm1205_vm4 = vcmask 1046532   ;;  %vm8414_vm10 = vcmask 1043456  }
  0x11   : > { %16366 = vmatprep.subr.bf16.mxu0 %v17851_v1  ;;  %s17824_s28 = smul.u32 240, %s22389_s18  ;;  %17265 = vmatprep.subr.bf16.mxu1 %v17851_v1  ;;  %v22312_v26 = vsel %vm18147_vm2, 4294967295, %v22311_v26  ;;  %vm18242_vm5 = vmor %vm1204_vm3, %vm1205_vm4  ;;  %vm1809_vm6 = vsmask.f32 2304  ;;  %vm1810_vm7 = vsmask.f32 6416 }
  0x12   : > { %22313 = vst [vmem:[#allocation5_spill] sm:$0xff] %v22312_v26  ;;  %vm18582_vm8 = vmor %vm1809_vm6, %vm1810_vm7  ;;  %vm8051_vm9 = vsmask.f32 256  ;;  %vm8415_vm11 = vsmask.f32 7938  ;;  %vm8421_vm12 = vcmask 1040384  }
  0x13   : > { %s18131_s6 = scalar_lea.vmem %s22290_s0, %s17824_s28  ;;  %vm8052_vm13 = vsmask.f32 4368  ;;  %vm21123_vm14 = vmand %vm8414_vm10, %vm8415_vm11  ;;  %s15750_s7 = sshll.u32 %s22389_s18, 7 }
  0x14   : > { %16367 = vmatpush3.bf16.msra.mxu0 %v17851_v1  ;;  %17273 = vmatpush3.bf16.msra.mxu1 %v17851_v1  ;;  %v258_v4 = vld [vmem:[%s18131_s6] sm:$0xf]  ;;  %v259_v5 = vld [vmem:[%s18131_s6 + $0x4] sm:$0xf]  ;;  %v260_v6 = vld [vmem:[%s18131_s6 + $0x8] sm:$0x1]  ;;  %s22235_s10 = scalar_lea.vmem %s22295_s5, %s15750_s7 }
  0x15   : > { %16368 = vmatprep.subr.bf16.mxu0 %v17852_v2  ;;  %17266 = vmatprep.subr.bf16.mxu1 %v17852_v2  ;;  %v316_v7 = vshrl.u32 %v258_v4, 16  ;;  %v319_v8 = vshll.u32 %v258_v4, 16  ;;  %v325_v10 = vshll.u32 %v259_v5, 16  ;;  %v329_v11 = vshrl.u32 %v259_v5, 16  ;;  %v261_v13 = vld [vmem:[%s18131_s6 + $0xc] sm:$0xf]  ;;  %vm21130_vm15 = vmand %vm8421_vm12, %vm8051_vm9 }
  0x16   : > { %v335_v12 = vshll.u32 %v260_v6, 16  ;;  %v262_v16 = vld [vmem:[%s18131_s6 + $0x10] sm:$0xf]  ;;  %v263_v17 = vld [vmem:[%s18131_s6 + $0x14] sm:$0x1]  ;;  %v340_v21 = vshrl.u32 %v261_v13, 16  ;;  %vm21136_vm0 = vmor %vm8051_vm9, %vm8052_vm13 }
  0x17   : > { %v318_v14 = vrot.slane %v316_v7, 4  ;;  %v321_v15 = vrot.slane %v319_v8, 5  ;;  %v327_v18 = vrot.slane %v325_v10, 5  ;;  %v331_v19 = vrot.slane %v329_v11, 4  ;;  %v264_v34 = vld [vmem:[%s18131_s6 + $0x18] sm:$0xf]  ;;  %vm21175_vm1 = vmand %vm8421_vm12, %vm8415_vm11 }
  0x18   : > { %16369 = vmatpush3.bf16.msra.mxu0 %v17852_v2  ;;  %17274 = vmatpush3.bf16.msra.mxu1 %v17852_v2  ;;  %v337_v20 = vrot.slane %v335_v12, 5  ;;  %v343_v23 = vshll.u32 %v261_v13, 16  ;;  %v349_v24 = vshll.u32 %v262_v16, 16  ;;  %v353_v25 = vshrl.u32 %v262_v16, 16  ;;  %v265_v38 = vld [vmem:[%s18131_s6 + $0x1c] sm:$0xf] }
  0x19   : > { %16370 = vmatprep.subr.bf16.mxu0 %v17853_v3  ;;  %17267 = vmatprep.subr.bf16.mxu1 %v17853_v3  ;;  %v322_v22 = vor.u32 %v321_v15, %v318_v14  ;;  %v332_v27 = vor.u32 %v331_v19, %v327_v18  ;;  %v342_v28 = vrot.slane %v340_v21, 4  ;;  %v359_v29 = vshll.u32 %v263_v17, 16  ;;  %v266_v42 = vld [vmem:[%s18131_s6 + $0x20] sm:$0x1]  ;;  %v267_v44 = vld [vmem:[%s18131_s6 + $0x24] sm:$0xf] }
  0x1a   : > { %v345_v31 = vrot.slane %v343_v23, 5  ;;  %v18151_v32 = vrot.slane %v349_v24, 5  ;;  %v355_v33 = vrot.slane %v353_v25, 4  ;;  %v364_v43 = vshrl.u32 %v264_v34, 16  ;;  %v268_v49 = vld [vmem:[%s18131_s6 + $0x28] sm:$0xf] }
  0x1b   : > { %v323_v30 = vrot.slane %v322_v22, 4  ;;  %v333_v36 = vrot.slane %v332_v27, 4  ;;  %v18157_v37 = vrot.slane %v359_v29, 5  ;;  %v367_v46 = vshll.u32 %v264_v34, 16  ;;  %v269_v55 = vld [vmem:[%s18131_s6 + $0x2c] sm:$0x1] }
  0x1c   : > { %16371 = vmatpush3.bf16.msra.mxu0 %v17853_v3  ;;  %17275 = vmatpush3.bf16.msra.mxu1 %v17853_v3  ;;  %v346_v40 = vor.u32 %v345_v31, %v342_v28  ;;  %v356_v41 = vor.u32 %v355_v33, %v18151_v32  ;;  %v373_v47 = vshll.u32 %v265_v38, 16  ;;  %v377_v48 = vshrl.u32 %v265_v38, 16  ;;  %v270_v4 = vld [vmem:[%s18131_s6 + $0x30] sm:$0xf]  ;;  %v272_v13 = vld [vmem:[%s18131_s6 + $0x38] sm:$0x1] }
  0x1d   : > { %16372 = vmatprep.subr.bf16.mxu0 %v17854_v9  ;;  %17268 = vmatprep.subr.bf16.mxu1 %v17854_v9  ;;  %v328_v39 = vsel %vm18147_vm2, %v323_v30, %v327_v18  ;;  %v338_v45 = vsel %vm18147_vm2, %v333_v36, %v337_v20  ;;  %v366_v54 = vrot.slane %v364_v43, 4  ;;  %v369_v56 = vrot.slane %v367_v46, 5  ;;  %v273_v19 = vld [vmem:[%s18131_s6 + $0x3c] sm:$0xf]  ;;  %v17858_v20 = vld [vmem:[%s22291_s1 + $0x40] sm:$0xff]  }
  0x1e   : > { %v14546_v51 = vcombine.low %v328_v39, %v338_v45  ;;  %v347_v52 = vrot.slane %v346_v40, 4  ;;  %v357_v53 = vrot.slane %v356_v41, 4  ;;  %v375_v57 = vrot.slane %v373_v47, 5  ;;  %v274_v25 = vld [vmem:[%s18131_s6 + $0x40] sm:$0xf] }
  0x1f   : > { %v379_v58 = vrot.slane %v377_v48, 4  ;;  %v383_v59 = vshll.u32 %v266_v42, 16  ;;  %v388_v61 = vshrl.u32 %v267_v44, 16  ;;  %v391_v62 = vshll.u32 %v267_v44, 16  ;;  %v275_v38 = vld [vmem:[%s18131_s6 + $0x44] sm:$0x1] }
  0x20   : > { %16373 = vmatpush3.bf16.msra.mxu0 %v17854_v9  ;;  %17276 = vmatpush3.bf16.msra.mxu1 %v17854_v9  ;;  %v352_v60 = vsel %vm18147_vm2, %v347_v52, %v18151_v32  ;;  %v362_v0 = vsel %vm18147_vm2, %v357_v53, %v18157_v37  ;;  %v370_v1 = vor.u32 %v369_v56, %v366_v54  ;;  %v397_v7 = vshll.u32 %v268_v49, 16  ;;  %v271_v9 = vld [vmem:[%s18131_s6 + $0x34] sm:$0xf]  ;;  %v276_v44 = vld [vmem:[%s18131_s6 + $0x48] sm:$0xf] }
  0x21   : > { %16374 = vmatprep.subr.bf16.mxu0 %v17855_v35  ;;  %17269 = vmatprep.subr.bf16.mxu1 %v17855_v35  ;;  %v380_v2 = vor.u32 %v379_v58, %v375_v57  ;;  %v385_v3 = vrot.slane %v383_v59, 5  ;;  %v390_v5 = vrot.slane %v388_v61, 4  ;;  %v393_v6 = vrot.slane %v391_v62, 5  ;;  %v279_v59 = vld [vmem:[%s18131_s6 + $0x54] sm:$0xf] }
  0x22   : > { %16380 = vmatprep.mubr.bf16.mxu0 %v14546_v51  ;;  %v401_v8 = vshrl.u32 %v268_v49, 16  ;;  %v371_v10 = vrot.slane %v370_v1, 4  ;;  %v407_v12 = vshll.u32 %v269_v55, 16  ;;  %v412_v14 = vshrl.u32 %v270_v4, 16  ;;  %v277_v49 = vld [vmem:[%s18131_s6 + $0x4c] sm:$0xf] }
  0x23   : > { %v381_v11 = vrot.slane %v380_v2, 4  ;;  %v394_v15 = vor.u32 %v393_v6, %v390_v5  ;;  %v399_v16 = vrot.slane %v397_v7, 5  ;;  %v415_v18 = vshll.u32 %v270_v4, 16  ;;  %v278_v55 = vld [vmem:[%s18131_s6 + $0x50] sm:$0x1] }
  0x24   : > { %16375 = vmatpush3.bf16.msra.mxu0 %v17855_v35  ;;  %17277 = vmatpush3.bf16.msra.mxu1 %v17855_v35  ;;  %v403_v17 = vrot.slane %v401_v8, 4  ;;  %v376_v21 = vsel %vm18147_vm2, %v371_v10, %v375_v57  ;;  %v409_v23 = vrot.slane %v407_v12, 5  ;;  %v414_v24 = vrot.slane %v412_v14, 4  ;;  %v17860_v4 = vld [vmem:[%s22291_s1 + $0x50] sm:$0xff]  }
  0x25   : > { %16376 = vmatprep.subr.bf16.mxu0 %v17856_v50  ;;  %17270 = vmatprep.subr.bf16.mxu1 %v17856_v50  ;;  %v386_v22 = vsel %vm18147_vm2, %v381_v11, %v385_v3  ;;  %v14547_v27 = vcombine.low %v352_v60, %v362_v0  ;;  %v395_v28 = vrot.slane %v394_v15, 4  ;;  %v417_v30 = vrot.slane %v415_v18, 5 }
  0x26   : > { %v404_v29 = vor.u32 %v403_v17, %v399_v16  ;;  %v421_v31 = vshll.u32 %v271_v9, 16  ;;  %v425_v32 = vshrl.u32 %v271_v9, 16  ;;  %v431_v33 = vshll.u32 %v272_v13, 16  ;;  %v280_v9 = vld [vmem:[%s18131_s6 + $0x58] sm:$0xf] }
  0x27   : > { %v436_v34 = vshrl.u32 %v273_v19, 16  ;;  %v14548_v35 = vcombine.low %v376_v21, %v386_v22  ;;  %v418_v37 = vor.u32 %v417_v30, %v414_v24  ;;  %v439_v39 = vshll.u32 %v273_v19, 16  ;;  %v281_v17 = vld [vmem:[%s18131_s6 + $0x5c] sm:$0x1] }
  0x28   : > { %16377 = vmatpush3.bf16.msra.mxu0 %v17856_v50  ;;  %17278 = vmatpush3.bf16.msra.mxu1 %v17856_v50  ;;  %v405_v36 = vrot.slane %v404_v29, 4  ;;  %v400_v40 = vsel %vm18147_vm2, %v395_v28, %v399_v16  ;;  %v423_v41 = vrot.slane %v421_v31, 5  ;;  %v427_v42 = vrot.slane %v425_v32, 4  ;;  %v17859_v50 = vld [vmem:[%s22291_s1 + $0x48] sm:$0xff]   ;;  %v17861_v24 = vld [vmem:[%s22291_s1 + $0x58] sm:$0xff]  }
  0x29   : > { %16378 = vmatprep.subr.bf16.mxu0 %v17857_v63  ;;  %17271 = vmatprep.subr.bf16.mxu1 %v17857_v63  ;;  %v438_v43 = vrot.slane %v436_v34, 4  ;;  %v419_v46 = vrot.slane %v418_v37, 4  ;;  %v441_v47 = vrot.slane %v439_v39, 5  ;;  %v445_v48 = vshll.u32 %v274_v25, 16  ;;  %v1096_v37 = vld [vmem:[%s18131_s6] sm:$0xe] }
  0x2a   : > { %v410_v45 = vsel %vm18147_vm2, %v405_v36, %v409_v23  ;;  %v428_v51 = vor.u32 %v427_v42, %v423_v41  ;;  %v433_v52 = vrot.slane %v431_v33, 5  ;;  %v449_v53 = vshrl.u32 %v274_v25, 16  ;;  %v1097_v23 = vld [vmem:[%s18131_s6 + $0x4] sm:$0xf] }
  0x2b   : > { %v455_v54 = vshll.u32 %v275_v38, 16  ;;  %v442_v56 = vor.u32 %v441_v47, %v438_v43  ;;  %v18204_v57 = vrot.slane %v445_v48, 5  ;;  %v460_v58 = vshrl.u32 %v276_v44, 16  ;;  %v1098_v38 = vld [vmem:[%s18131_s6 + $0x8] sm:$0x1] }
  0x2c   : > { %16379 = vmatpush3.bf16.msra.mxu0 %v17857_v63  ;;  %17279 = vmatpush3.bf16.msra.mxu1 %v17857_v63  ;;  %v14549_v60 = vcombine.low %v400_v40, %v410_v45  ;;  %v429_v61 = vrot.slane %v428_v51, 4  ;;  %v451_v62 = vrot.slane %v449_v53, 4  ;;  %v463_v63 = vshll.u32 %v276_v44, 16  ;;  %v17862_v40 = vld [vmem:[%s22291_s1 + $0x60] sm:$0xff]   ;;  %v18236_v44 = vld [vmem:[%s18131_s6 + $0xc] sm:$0xe] }
  0x2d   : > { %16416 = vmatprep.subr.bf16.mxu0 %v17858_v20  ;;  %v424_v0 = vsel %vm18147_vm2, %v419_v46, %v423_v41  ;;  %v462_v1 = vrot.slane %v460_v58, 4  ;;  %v469_v2 = vshll.u32 %v277_v49, 16  ;;  %v473_v3 = vshrl.u32 %v277_v49, 16  ;;  %v18239_v45 = vld [vmem:[%s18131_s6 + $0x10] sm:$0xf] }
  0x2e   : > { %v434_v5 = vsel %vm18147_vm2, %v429_v61, %v433_v52  ;;  %v452_v6 = vor.u32 %v451_v62, %v18204_v57  ;;  %v465_v7 = vrot.slane %v463_v63, 5  ;;  %v479_v8 = vshll.u32 %v278_v55, 16  ;;  %v17863_v55 = vld [vmem:[%s22291_s1 + $0x68] sm:$0xff]   ;;  %v18258_v63 = vld [vmem:[%s18131_s6 + $0x24] sm:$0xe] }
  0x2f   : > { %16381 = vmatmul.mubr.bf16.vlgmr.msra.gmra.mrb[0].mxu0 %v14547_v27  ;;  %v443_v10 = vrot.slane %v442_v56, 4  ;;  %v457_v11 = vrot.slane %v455_v54, 5  ;;  %v471_v12 = vrot.slane %v469_v2, 5  ;;  %v475_v13 = vrot.slane %v473_v3, 4  ;;  %v1101_v56 = vld [vmem:[%s18131_s6 + $0x14] sm:$0x1] }
  0x30   : > { %16417 = vmatpush3.bf16.msra.mxu0 %v17858_v20  ;;  %16384 = vmatprep.mubr.bf16.mxu0 %v14548_v35  ;;  %v14550_v14 = vcombine.low %v424_v0, %v434_v5  ;;  %v453_v15 = vrot.slane %v452_v6, 4  ;;  %v466_v16 = vor.u32 %v465_v7, %v462_v1  ;;  %v484_v18 = vshrl.u32 %v279_v59, 16  ;;  %v18261_v0 = vld [vmem:[%s18131_s6 + $0x28] sm:$0xf]  ;;  %v17864_v3 = vld [vmem:[%s22291_s1 + $0x70] sm:$0xff]  }
  0x31   : > { %16418 = vmatprep.subr.bf16.mxu0 %v17859_v50  ;;  %v476_v19 = vor.u32 %v475_v13, %v471_v12  ;;  %v487_v20 = vshll.u32 %v279_v59, 16  ;;  %v493_v21 = vshll.u32 %v280_v9, 16  ;;  %v497_v22 = vshrl.u32 %v280_v9, 16  ;;  %v1102_v59 = vld [vmem:[%s18131_s6 + $0x18] sm:$0xe] }
  0x32   : > { %v467_v25 = vrot.slane %v466_v16, 4  ;;  %v481_v27 = vrot.slane %v479_v8, 5  ;;  %v486_v28 = vrot.slane %v484_v18, 4  ;;  %v503_v33 = vshll.u32 %v281_v17, 16  ;;  %v18273_v6 = vld [vmem:[%s18131_s6 + $0x34] sm:$0xf] }
  0x33   : > { %v477_v29 = vrot.slane %v476_v19, 4  ;;  %v489_v30 = vrot.slane %v487_v20, 5  ;;  %v495_v31 = vrot.slane %v493_v21, 5  ;;  %v499_v32 = vrot.slane %v497_v22, 4  ;;  %v18276_v7 = vld [vmem:[%s18131_s6 + $0x2c] sm:$0x1] }
  0x34   : > { %16419 = vmatpush3.bf16.msra.mxu0 %v17859_v50  ;;  %v448_v34 = vsel %vm18147_vm2, %v443_v10, %v18204_v57  ;;  %v458_v35 = vsel %vm18147_vm2, %v453_v15, %v457_v11  ;;  %v1209_v39 = vrot.slane %v1097_v23, 5  ;;  %v472_v41 = vsel %vm18147_vm2, %v467_v25, %v471_v12  ;;  %v1103_v57 = vld [vmem:[%s18131_s6 + $0x1c] sm:$0xf]  ;;  %v18279_v8 = vld [vmem:[%s18131_s6 + $0x40] sm:$0xf] }
  0x35   : > { %16420 = vmatprep.subr.bf16.mxu0 %v17860_v4  ;;  %v490_v36 = vor.u32 %v489_v30, %v486_v28  ;;  %v482_v42 = vsel %vm18147_vm2, %v477_v29, %v481_v27  ;;  %v500_v43 = vor.u32 %v499_v32, %v495_v31  ;;  %v14551_v46 = vcombine.low %v448_v34, %v458_v35  ;;  %v1108_v13 = vld [vmem:[%s18131_s6 + $0x30] sm:$0xe]  ;;  %v17865_v15 = vld [vmem:[%s22291_s1 + $0x78] sm:$0xff]   ;;  %v18289_v20 = vld [vmem:[%s18131_s6 + $0x4c] sm:$0xf] }
  0x36   : > { %v505_v47 = vrot.slane %v503_v33, 5  ;;  %v14572_v48 = vrot.slane %v1096_v37, 9  ;;  %v1212_v49 = vrot.slane %v1098_v38, 5  ;;  %v14552_v50 = vcombine.low %v472_v41, %v482_v42  ;;  %v1110_v18 = vld [vmem:[%s18131_s6 + $0x38] sm:$0x1]  ;;  %v17866_v32 = vld [vmem:[%s22291_s1 + $0x80] sm:$0xff]  }
  0x37   : > { %16385 = vmatmul.mubr.bf16.gmra.mrb[4].mxu0 %v14549_v60  ;;  %v491_v51 = vrot.slane %v490_v36, 4  ;;  %v501_v52 = vrot.slane %v500_v43, 4  ;;  %v22314_v53 = vmov 0  ;;  %v1211_v54 = vrot.slane %v1209_v39, 4  ;;  %v1104_v60 = vld [vmem:[%s18131_s6 + $0x20] sm:$0x1] }
  0x38   : > { %16421 = vmatpush3.bf16.msra.mxu0 %v17860_v4  ;;  %16388 = vmatprep.mubr.bf16.mxu0 %v14550_v14  ;;  %v22315_v53 = vsel %vm18242_vm5, 4294967295, %v22314_v53  ;;  %v1216_v58 = vrot.slane %v18239_v45, 5  ;;  %v1210_v61 = vsel %vm18242_vm5, %v14572_v48, %v1209_v39  ;;  %v14573_v62 = vrot.slane %v18236_v44, 9  ;;  %v18298_v27 = vld [vmem:[%s18131_s6 + $0x44] sm:$0x1] }
  0x39   : > { %16422 = vmatprep.subr.bf16.mxu0 %v17861_v24  ;;  %22316 = vst [vmem:[#allocation6_spill] sm:$0xff] %v22315_v53  ;;  %v496_v1 = vsel %vm18147_vm2, %v491_v51, %v495_v31  ;;  %v506_v2 = vsel %vm18147_vm2, %v501_v52, %v505_v47  ;;  %v1213_v4 = vsel %vm18242_vm5, %v1211_v54, %v1212_v49  ;;  %v1223_v5 = vrot.slane %v1103_v57, 5  ;;  %v18301_v29 = vld [vmem:[%s18131_s6 + $0x48] sm:$0xe]  ;;  %v18304_v30 = vld [vmem:[%s18131_s6 + $0x50] sm:$0x1] }
  0x3a   : > { %v1218_v9 = vrot.slane %v1216_v58, 4  ;;  %v1219_v10 = vrot.slane %v1101_v56, 5  ;;  %v14574_v11 = vrot.slane %v1102_v59, 9  ;;  %v1226_v12 = vrot.slane %v1104_v60, 5  ;;  %v18312_v37 = vld [vmem:[%s18131_s6 + $0x54] sm:$0xe] }
  0x3b   : > { %v14553_v14 = vcombine.low %v496_v1, %v506_v2  ;;  %v14606_v16 = vcombine.low %v1210_v61, %v1213_v4  ;;  %v1230_v17 = vrot.slane %v18261_v0, 5  ;;  %v1237_v19 = vrot.slane %v18273_v6, 5  ;;  %v18322_v42 = vld [vmem:[%s18131_s6 + $0x58] sm:$0xf]  ;;  %v18325_v43 = vld [vmem:[%s18131_s6 + $0x64] sm:$0xf] }
  0x3c   : > { %16423 = vmatpush3.bf16.msra.mxu0 %v17861_v24  ;;  %v1225_v21 = vrot.slane %v1223_v5, 4  ;;  %v14575_v22 = vrot.slane %v18258_v63, 9  ;;  %v1233_v23 = vrot.slane %v18276_v7, 5  ;;  %v18294_v24 = vld [vmem:[%s18131_s6 + $0x3c] sm:$0xe]  ;;  %v1244_v25 = vrot.slane %v18279_v8, 5 }
  0x3d   : > { %16424 = vmatprep.subr.bf16.mxu0 %v17862_v40  ;;  %v14576_v28 = vrot.slane %v1108_v13, 9  ;;  %v1251_v31 = vrot.slane %v18289_v20, 5  ;;  %v1232_v33 = vrot.slane %v1230_v17, 4  ;;  %v1239_v34 = vrot.slane %v1237_v19, 4  ;;  %v1119_v48 = vld [vmem:[%s18131_s6 + $0x5c] sm:$0x1] }
  0x3e   : > { %v1240_v35 = vrot.slane %v1110_v18, 5  ;;  %v14577_v36 = vrot.slane %v18294_v24, 9  ;;  %v1217_v38 = vsel %vm18242_vm5, %v14573_v62, %v1216_v58  ;;  %v1220_v39 = vsel %vm18242_vm5, %v1218_v9, %v1219_v10  ;;  %v18335_v49 = vld [vmem:[%s18131_s6 + $0x70] sm:$0xf]  ;;  %v17867_v54 = vld [vmem:[%s22291_s1 + $0x88] sm:$0xff]  }
  0x3f   : > { %16389 = vmatmul.mubr.bf16.gmra.mrb[8].mxu0 %v14551_v46  ;;  %v1247_v41 = vrot.slane %v18298_v27, 5  ;;  %v1224_v44 = vsel %vm18242_vm5, %v14574_v11, %v1223_v5  ;;  %v1227_v45 = vsel %vm18242_vm5, %v1225_v21, %v1226_v12  ;;  %v14578_v46 = vrot.slane %v18301_v29, 9  ;;  %v1120_v56 = vld [vmem:[%s18131_s6 + $0x60] sm:$0xe]  ;;  %v18347_v58 = vld [vmem:[%s18131_s6 + $0x7c] sm:$0xf] }
  0x40   : > { %16425 = vmatpush3.bf16.msra.mxu0 %v17862_v40  ;;  %16392 = vmatprep.mubr.bf16.mxu0 %v14552_v50  ;;  %v1246_v40 = vrot.slane %v1244_v25, 4  ;;  %v1254_v47 = vrot.slane %v18304_v30, 5  ;;  %v1253_v50 = vrot.slane %v1251_v31, 4  ;;  %v14579_v51 = vrot.slane %v18312_v37, 9  ;;  %v1122_v61 = vld [vmem:[%s18131_s6 + $0x68] sm:$0x1] }
  0x41   : > { %16426 = vmatprep.subr.bf16.mxu0 %v17863_v55  ;;  %v14607_v52 = vcombine.low %v1217_v38, %v1220_v39  ;;  %v1265_v57 = vrot.slane %v18325_v43, 5  ;;  %v14608_v59 = vcombine.low %v1224_v44, %v1227_v45  ;;  %v1261_v60 = vrot.slane %v1119_v48, 5  ;;  %v1123_v62 = vld [vmem:[%s18131_s6 + $0x6c] sm:$0xe]  ;;  %v1125_v2 = vld [vmem:[%s18131_s6 + $0x74] sm:$0x1] }
  0x42   : > { %v1272_v63 = vrot.slane %v18335_v49, 5  ;;  %v1231_v0 = vsel %vm18242_vm5, %v14575_v22, %v1230_v17  ;;  %v1238_v1 = vsel %vm18242_vm5, %v14576_v28, %v1237_v19  ;;  %v18361_v4 = vld [vmem:[%s18131_s6 + $0x80] sm:$0x1]  ;;  %v1234_v5 = vsel %vm18242_vm5, %v1232_v33, %v1233_v23  ;;  %v17868_v10 = vld [vmem:[%s22291_s1 + $0x90] sm:$0xff]   ;;  %v1129_v21 = vld [vmem:[%s18131_s6 + $0x84] sm:$0xe] }
  0x43   : > { %v1241_v6 = vsel %vm18242_vm5, %v1239_v34, %v1240_v35  ;;  %v14580_v7 = vrot.slane %v1120_v56, 9  ;;  %v1279_v9 = vrot.slane %v18347_v58, 5  ;;  %v1267_v12 = vrot.slane %v1265_v57, 4  ;;  %v1131_v22 = vld [vmem:[%s18131_s6 + $0x8c] sm:$0x1] }
  0x44   : > { %16427 = vmatpush3.bf16.msra.mxu0 %v17863_v55  ;;  %v1258_v55 = vrot.slane %v18322_v42, 5  ;;  %v1268_v13 = vrot.slane %v1122_v61, 5  ;;  %v1275_v17 = vrot.slane %v1125_v2, 5  ;;  %v1282_v19 = vrot.slane %v18361_v4, 5  ;;  %v18379_v23 = vld [vmem:[%s18131_s6 + $0x94] sm:$0xf] }
  0x45   : > { %16428 = vmatprep.subr.bf16.mxu0 %v17864_v3  ;;  %v18382_v24 = vld [vmem:[%s18131_s6 + $0xa0] sm:$0xf]  ;;  %v14609_v27 = vcombine.low %v1231_v0, %v1234_v5  ;;  %v18388_v28 = vsel %vm18242_vm5, %v14577_v36, %v1244_v25  ;;  %v1281_v29 = vrot.slane %v1279_v9, 4  ;;  %v14610_v33 = vcombine.low %v1238_v1, %v1241_v6  ;;  %v1134_v25 = vld [vmem:[%s18131_s6 + $0x98] sm:$0x1] }
  0x46   : > { %v1260_v11 = vrot.slane %v1258_v55, 4  ;;  %v18394_v34 = vsel %vm18242_vm5, %v1246_v40, %v1247_v41  ;;  %v18400_v35 = vsel %vm18242_vm5, %v14578_v46, %v1251_v31  ;;  %v18404_v8 = vsel %vm18242_vm5, %v1253_v50, %v1254_v47  ;;  %v1135_v36 = vld [vmem:[%s18131_s6 + $0x9c] sm:$0xe]  ;;  %v1137_v31 = vld [vmem:[%s18131_s6 + $0xa4] sm:$0x1] }
  0x47   : > { %16393 = vmatmul.mubr.bf16.gmra.mrb[12].mxu0 %v14553_v14  ;;  %v14581_v14 = vrot.slane %v1123_v62, 9  ;;  %v18410_v37 = vsel %vm18242_vm5, %v14579_v51, %v1258_v55  ;;  %v1293_v20 = vrot.slane %v18379_v23, 5  ;;  %v1300_v39 = vrot.slane %v18382_v24, 5  ;;  %v1139_v40 = vld [vmem:[%s18131_s6 + $0xac] sm:$0xf]  ;;  %v17869_v41 = vld [vmem:[%s22291_s1 + $0x98] sm:$0xff]  }
  0x48   : > { %16429 = vmatpush3.bf16.msra.mxu0 %v17864_v3  ;;  %16432 = vmatprep.mubr.bf16.mxu0 %v14606_v16  ;;  %v18358_v3 = vld [vmem:[%s18131_s6 + $0x78] sm:$0xe]  ;;  %v1274_v16 = vrot.slane %v1272_v63, 4  ;;  %v18414_v38 = vsel %vm18242_vm5, %v1260_v11, %v1261_v60  ;;  %v18425_v42 = vsel %vm18242_vm5, %v14580_v7, %v1265_v57  ;;  %v14583_v44 = vrot.slane %v1129_v21, 9  ;;  %v1138_v50 = vld [vmem:[%s18131_s6 + $0xa8] sm:$0xe] }
  0x49   : > { %16430 = vmatprep.subr.bf16.mxu0 %v17865_v15  ;;  %v14582_v18 = vrot.slane %v18358_v3, 9  ;;  %v18429_v43 = vsel %vm18242_vm5, %v14581_v14, %v1272_v63  ;;  %v1289_v45 = vrot.slane %v1131_v22, 5  ;;  %v18433_v46 = vsel %vm18242_vm5, %v1267_v12, %v1268_v13  ;;  %v18441_v51 = vld [vmem:[%s18131_s6 + $0xb8] sm:$0xf]  ;;  %v1140_v62 = vld [vmem:[%s18131_s6 + $0xb0] sm:$0x1] }
  0x4a   : > { %v18437_v47 = vsel %vm18242_vm5, %v1274_v16, %v1275_v17  ;;  %v14585_v55 = vrot.slane %v1135_v36, 9  ;;  %v1303_v56 = vrot.slane %v1137_v31, 5  ;;  %v1307_v57 = vrot.slane %v1139_v40, 5  ;;  %v18461_v3 = vld [vmem:[%s18131_s6 + $0xc4] sm:$0xf]  ;;  %v17871_v17 = vld [vmem:[%s22291_s1 + $0xa8] sm:$0xff]  }
  0x4b   : > { %v18448_v58 = vsel %vm18242_vm5, %v14582_v18, %v1279_v9  ;;  %v1295_v60 = vrot.slane %v1293_v20, 4  ;;  %v1302_v61 = vrot.slane %v1300_v39, 4  ;;  %v14611_v63 = vcombine.low %v18388_v28, %v18394_v34  ;;  %v1141_v9 = vld [vmem:[%s18131_s6 + $0xb4] sm:$0xe]  ;;  %v1144_v11 = vld [vmem:[%s18131_s6 + $0xc0] sm:$0xe] }
  0x4c   : > { %16431 = vmatpush3.bf16.msra.mxu0 %v17865_v15  ;;  %v18372_v15 = vld [vmem:[%s18131_s6 + $0x88] sm:$0xf]  ;;  %v14612_v0 = vcombine.low %v18400_v35, %v18404_v8  ;;  %v14586_v1 = vrot.slane %v1138_v50, 9  ;;  %v1314_v2 = vrot.slane %v18441_v51, 5  ;;  %v14613_v4 = vcombine.low %v18410_v37, %v18414_v38  ;;  %v1755_v16 = vld [vmem:[%s18131_s6] sm:$0xe] }
  0x4d   : > { %16468 = vmatprep.subr.bf16.mxu0 %v17866_v32  ;;  %v1286_v30 = vrot.slane %v18372_v15, 5  ;;  %v14614_v5 = vcombine.low %v18425_v42, %v18433_v46  ;;  %v14615_v6 = vcombine.low %v18429_v43, %v18437_v47  ;;  %v1309_v14 = vrot.slane %v1307_v57, 4  ;;  %v1148_v23 = vld [vmem:[%s18131_s6 + $0xd0] sm:$0xf]  ;;  %v1756_v24 = vld [vmem:[%s18131_s6 + $0x4] sm:$0xf] }
  0x4e   : > { %v1310_v15 = vrot.slane %v1140_v62, 5  ;;  %v18496_v21 = vsel %vm18242_vm5, %v14585_v55, %v1300_v39  ;;  %v1321_v22 = vrot.slane %v18461_v3, 5  ;;  %v1316_v28 = vrot.slane %v1314_v2, 4  ;;  %v1147_v35 = vld [vmem:[%s18131_s6 + $0xcc] sm:$0xe]  ;;  %v18572_v38 = vld [vmem:[%s22291_s1 + $0xc0] sm:$0xff]  }
  0x4f   : > { %16433 = vmatmul.mubr.bf16.vlgmr.msra.gmra.mrb[0].mxu0 %v14607_v52  ;;  %v1288_v48 = vrot.slane %v1286_v30, 4  ;;  %v17870_v52 = vld [vmem:[%s22291_s1 + $0xa0] sm:$0xff]   ;;  %v18471_v7 = vsel %vm18242_vm5, %v14583_v44, %v1286_v30  ;;  %v1146_v30 = vld [vmem:[%s18131_s6 + $0xc8] sm:$0x1]  ;;  %v18508_v34 = vsel %vm18242_vm5, %v14586_v1, %v1307_v57  ;;  %v1149_v8 = vld [vmem:[%s18131_s6 + $0xd4] sm:$0x1] }
  0x50   : > { %16469 = vmatpush3.bf16.msra.mxu0 %v17866_v32  ;;  %16436 = vmatprep.mubr.bf16.mxu0 %v14608_v59  ;;  %v1132_v32 = vld [vmem:[%s18131_s6 + $0x90] sm:$0xe]  ;;  %v18452_v59 = vsel %vm18242_vm5, %v1281_v29, %v1282_v19  ;;  %v1816_v36 = vshll.u32 %v1755_v16, 16  ;;  %v18517_v31 = vsel %vm18242_vm5, %v1309_v14, %v1310_v15  ;;  %v1328_v39 = vrot.slane %v1148_v23, 5  ;;  %v1758_v50 = vld [vmem:[%s18131_s6 + $0xc] sm:$0xe] }
  0x51   : > { %16470 = vmatprep.subr.bf16.mxu0 %v17867_v54  ;;  %v14584_v49 = vrot.slane %v1132_v32, 9  ;;  %v14616_v12 = vcombine.low %v18448_v58, %v18452_v59  ;;  %v18480_v13 = vsel %vm18242_vm5, %v1288_v48, %v1289_v45  ;;  %v14588_v32 = vrot.slane %v1144_v11, 9  ;;  %v17873_v11 = vld [vmem:[%s22291_s1 + $0xb8] sm:$0xff]   ;;  %v1766_v43 = vld [vmem:[%s18131_s6 + $0x2c] sm:$0x3] }
  0x52   : > { %v1822_v40 = vshrl.u32 %v1756_v24, 16  ;;  %v14617_v44 = vcombine.low %v18471_v7, %v18480_v13  ;;  %v1323_v48 = vrot.slane %v1321_v22, 4  ;;  %v14589_v55 = vrot.slane %v1147_v35, 9 }
  0x53   : > { %v18488_v18 = vsel %vm18242_vm5, %v14584_v49, %v1293_v20  ;;  %v17872_v20 = vld [vmem:[%s22291_s1 + $0xb0] sm:$0xff]   ;;  %v1324_v49 = vrot.slane %v1146_v30, 5  ;;  %v14620_v57 = vcombine.low %v18508_v34, %v18517_v31  ;;  %v1330_v1 = vrot.slane %v1328_v39, 4 }
  0x54   : > { %16471 = vmatpush3.bf16.msra.mxu0 %v17867_v54  ;;  %v1296_v54 = vrot.slane %v1134_v25, 5  ;;  %v1813_v25 = vshrl.u32 %v1755_v16, 16  ;;  %v1824_v3 = vrot.slane %v1822_v40, 5  ;;  %v1844_v14 = vshll.u32 %v1758_v50, 16  ;;  %v1760_v30 = vld [vmem:[%s18131_s6 + $0x14] sm:$0x3] }
  0x55   : > { %16472 = vmatprep.subr.bf16.mxu0 %v17868_v10  ;;  %v18548_v23 = vsel %vm18242_vm5, %v1323_v48, %v1324_v49  ;;  %v1860_v37 = vshrl.u32 %v1760_v30, 16 }
  0x56   : > { %v18492_v19 = vsel %vm18242_vm5, %v1295_v60, %v1296_v54  ;;  %v1815_v62 = vrot.slane %v1813_v25, 5 }
  0x57   : > { %16437 = vmatmul.mubr.bf16.gmra.mrb[4].mxu0 %v14609_v27  ;;  %v14587_v27 = vrot.slane %v1141_v9, 9  ;;  %v14618_v45 = vcombine.low %v18488_v18, %v18492_v19 }
  0x58   : > { %16440 = vmatprep.mubr.bf16.mxu0 %v14610_v33  ;;  %16473 = vmatpush3.bf16.msra.mxu0 %v17868_v10  ;;  %v1143_v10 = vld [vmem:[%s18131_s6 + $0xbc] sm:$0x1]  ;;  %v18504_v33 = vsel %vm18242_vm5, %v1302_v61, %v1303_v56  ;;  %v1759_v56 = vld [vmem:[%s18131_s6 + $0x10] sm:$0xf]  ;;  %v1757_v61 = vld [vmem:[%s18131_s6 + $0x8] sm:$0x3] }
  0x59   : > { %16474 = vmatprep.subr.bf16.mxu0 %v17869_v41  ;;  %v1317_v29 = vrot.slane %v1143_v10, 5  ;;  %v14619_v51 = vcombine.low %v18496_v21, %v18504_v33  ;;  %v18528_v54 = vsel %vm18242_vm5, %v14587_v27, %v1314_v2  ;;  %v1841_v2 = vshrl.u32 %v1758_v50, 16  ;;  %v1762_v27 = vld [vmem:[%s18131_s6 + $0x1c] sm:$0xf] }
  0x5a   : > { %v18541_v10 = vsel %vm18242_vm5, %v14588_v32, %v1321_v22  ;;  %v1850_v15 = vshrl.u32 %v1759_v56, 16  ;;  %v1853_v16 = vshll.u32 %v1759_v56, 16  ;;  %v18553_v22 = vsel %vm18242_vm5, %v14589_v55, %v1328_v39  ;;  %v17926_v56 = vld [vmem:[%s22292_s2 + $0x20] sm:$0xff]  }
  0x5b   : > { %v18535_v60 = vsel %vm18242_vm5, %v1316_v28, %v1317_v29  ;;  %v1835_v29 = vshll.u32 %v1757_v61, 16  ;;  %v1843_v25 = vrot.slane %v1841_v2, 5  ;;  %v1878_v48 = vshrl.u32 %v1762_v27, 16  ;;  %v1765_v2 = vld [vmem:[%s18131_s6 + $0x28] sm:$0xf] }
  0x5c   : > { %16475 = vmatpush3.bf16.msra.mxu0 %v17869_v41  ;;  %v1825_v41 = vshll.u32 %v1756_v24, 16  ;;  %v1832_v24 = vshrl.u32 %v1757_v61, 16  ;;  %v1852_v39 = vrot.slane %v1850_v15, 5  ;;  %v1855_v40 = vrot.slane %v1853_v16, 6 }
  0x5d   : > { %16476 = vmatprep.subr.bf16.mxu0 %v17870_v52  ;;  %v1881_v50 = vshll.u32 %v1762_v27, 16  ;;  %v18593_v16 = vrot.slane %v1860_v37, 5  ;;  %v1909_v47 = vshll.u32 %v1765_v2, 16 }
  0x5e   : > { %v1827_v9 = vrot.slane %v1825_v41, 6  ;;  %v1763_v41 = vld [vmem:[%s18131_s6 + $0x20] sm:$0x3]  ;;  %v1834_v46 = vrot.slane %v1832_v24, 5 }
  0x5f   : > { %16441 = vmatmul.mubr.bf16.gmra.mrb[8].mxu0 %v14611_v63  ;;  %v1818_v63 = vrot.slane %v1816_v36, 6  ;;  %v1846_v36 = vrot.slane %v1844_v14, 6  ;;  %v1888_v61 = vshrl.u32 %v1763_v41, 16 }
  0x60   : > { %16444 = vmatprep.mubr.bf16.mxu0 %v14612_v0  ;;  %16477 = vmatpush3.bf16.msra.mxu0 %v17870_v52  ;;  %v1331_v52 = vrot.slane %v1149_v8, 5  ;;  %v1761_v0 = vld [vmem:[%s18131_s6 + $0x18] sm:$0xe]  ;;  %v18563_v8 = vor.u32 %v1827_v9, %v1824_v3  ;;  %v1880_v3 = vrot.slane %v1878_v48, 5  ;;  %v1883_v9 = vrot.slane %v1881_v50, 6 }
  0x61   : > { %16478 = vmatprep.subr.bf16.mxu0 %v17871_v17  ;;  %v1819_v28 = vor.u32 %v1818_v63, %v1815_v62  ;;  %v1872_v32 = vshll.u32 %v1761_v0, 16  ;;  %v1891_v62 = vshll.u32 %v1763_v41, 16  ;;  %v1764_v63 = vld [vmem:[%s18131_s6 + $0x24] sm:$0xe]  ;;  %v1770_v50 = vld [vmem:[%s18131_s6 + $0x3c] sm:$0xe] }
  0x62   : > { %v18561_v35 = vsel %vm18242_vm5, %v1330_v1, %v1331_v52  ;;  %v18587_v1 = vor.u32 %v1855_v40, %v1852_v39  ;;  %v1830_v15 = vrot.slane %v18563_v8, 4  ;;  %v1906_v39 = vshrl.u32 %v1765_v2, 16  ;;  %v1771_v2 = vld [vmem:[%s18131_s6 + $0x40] sm:$0xf] }
  0x63   : > { %v1874_v49 = vrot.slane %v1872_v32, 6  ;;  %v18574_v42 = vrot.slane %v1819_v28, 4  ;;  %v1897_v28 = vshrl.u32 %v1764_v63, 16  ;;  %v18607_v32 = vrot.slane %v1888_v61, 5 }
  0x64   : > { %16479 = vmatpush3.bf16.msra.mxu0 %v17871_v17  ;;  %v1869_v17 = vshrl.u32 %v1761_v0, 16  ;;  %v1847_v0 = vor.u32 %v1846_v36, %v1843_v25  ;;  %v18609_v25 = vrot.slane %v1891_v62, 6  ;;  %v1900_v36 = vshll.u32 %v1764_v63, 16  ;;  %v1769_v63 = vld [vmem:[%s18131_s6 + $0x38] sm:$0x3] }
  0x65   : > { %16480 = vmatprep.subr.bf16.mxu0 %v17872_v20  ;;  %v1858_v41 = vrot.slane %v18587_v1, 4  ;;  %v18617_v48 = vor.u32 %v1883_v9, %v1880_v3  ;;  %v1908_v61 = vrot.slane %v1906_v39, 5  ;;  %v1916_v62 = vshrl.u32 %v1766_v43, 16 }
  0x66   : > { %v18614_v40 = vrot.slane %v1847_v0, 4  ;;  %v1911_v3 = vrot.slane %v1909_v47, 6  ;;  %v1919_v9 = vshll.u32 %v1766_v43, 16  ;;  %v1947_v14 = vshll.u32 %v1769_v63, 16 }
  0x67   : > { %16445 = vmatmul.mubr.bf16.gmra.mrb[12].mxu0 %v14613_v4  ;;  %v1871_v4 = vrot.slane %v1869_v17, 5  ;;  %v1886_v0 = vrot.slane %v18617_v48, 4  ;;  %v1962_v47 = vshrl.u32 %v1771_v2, 16  ;;  %v1965_v43 = vshll.u32 %v1771_v2, 16 }
  0x68   : > { %16448 = vmatprep.mubr.bf16.mxu0 %v14614_v5  ;;  %16481 = vmatpush3.bf16.msra.mxu0 %v17872_v20  ;;  %v1837_v5 = vrot.slane %v1835_v29, 6  ;;  %v1863_v20 = vshll.u32 %v1760_v30, 16  ;;  %v1767_v29 = vld [vmem:[%s18131_s6 + $0x30] sm:$0xe]  ;;  %v1768_v30 = vld [vmem:[%s18131_s6 + $0x34] sm:$0xf]  ;;  %v1857_v18 = vsel %vm18582_vm8, %v18614_v40, %v18587_v1  ;;  %v22319_v21 = vsel %vm18582_vm8, %v18574_v42, %v18563_v8 }
  0x69   : > { %16482 = vmatprep.subr.bf16.mxu0 %v17873_v11  ;;  %v1875_v24 = vor.u32 %v1874_v49, %v1871_v4  ;;  %v1925_v37 = vshrl.u32 %v1767_v29, 16  ;;  %v1928_v4 = vshll.u32 %v1767_v29, 16  ;;  %v1934_v49 = vshrl.u32 %v1768_v30, 16  ;;  %v1777_v42 = vld [vmem:[%s18131_s6 + $0x58] sm:$0xf] }
  0x6a   : > { %v1838_v27 = vor.u32 %v1837_v5, %v1834_v46  ;;  %v18600_v17 = vrot.slane %v1863_v20, 6  ;;  %v1937_v46 = vshll.u32 %v1768_v30, 16  ;;  %v1894_v5 = vor.u32 %v18609_v25, %v18607_v32  ;;  %v1773_v25 = vld [vmem:[%s18131_s6 + $0x48] sm:$0xe] }
  0x6b   : > { %v1902_v20 = vrot.slane %v1900_v36, 6  ;;  %v1944_v30 = vshrl.u32 %v1769_v63, 16  ;;  %v1918_v36 = vrot.slane %v1916_v62, 5  ;;  %v1967_v52 = vrot.slane %v1965_v43, 6  ;;  %v1780_v43 = vld [vmem:[%s18131_s6 + $0x64] sm:$0xf] }
  0x6c   : > { %16483 = vmatpush3.bf16.msra.mxu0 %v17873_v11  ;;  %v18625_v58 = vsel %vm18582_vm8, %v1830_v15, %v1838_v27  ;;  %v1866_v59 = vor.u32 %v18600_v17, %v18593_v16  ;;  %v1953_v15 = vshrl.u32 %v1770_v50, 16  ;;  %v1930_v27 = vrot.slane %v1928_v4, 6  ;;  %v1772_v17 = vld [vmem:[%s18131_s6 + $0x44] sm:$0x3] }
  0x6d   : > { %16520 = vmatprep.subr.bf16.mxu0 %v18572_v38  ;;  %v1936_v16 = vrot.slane %v1934_v49, 5  ;;  %v1939_v29 = vrot.slane %v1937_v46, 6  ;;  %v1921_v4 = vrot.slane %v1919_v9, 6  ;;  %v1972_v49 = vshrl.u32 %v1772_v17, 16 }
  0x6e   : > { %v1955_v32 = vrot.slane %v1953_v15, 5  ;;  %v1912_v46 = vor.u32 %v1911_v3, %v1908_v61  ;;  %v1964_v15 = vrot.slane %v1962_v47, 5  ;;  %v1946_v7 = vrot.slane %v1944_v30, 5 }
  0x6f   : > { %16449 = vmatmul.mubr.bf16.gmra.mrb[16].mxu0 %v14615_v6  ;;  %v18620_v6 = vrot.slane %v1875_v24, 4  ;;  %v1927_v24 = vrot.slane %v1925_v37, 5  ;;  %v1940_v55 = vor.u32 %v1939_v29, %v1936_v16  ;;  %v1949_v13 = vrot.slane %v1947_v14, 6  ;;  %v1774_v14 = vld [vmem:[%s18131_s6 + $0x4c] sm:$0xf] }
  0x70   : > { %16452 = vmatprep.mubr.bf16.mxu0 %v14616_v12  ;;  %v1899_v12 = vrot.slane %v1897_v28, 5  ;;  %v1956_v28 = vshll.u32 %v1770_v50, 16  ;;  %v1975_v50 = vshll.u32 %v1772_v17, 16  ;;  %v1974_v62 = vrot.slane %v1972_v49, 5 }
  0x71   : > { %v1931_v63 = vor.u32 %v1930_v27, %v1927_v24  ;;  %v1984_v11 = vshll.u32 %v1773_v25, 16  ;;  %v1867_v19 = vsel %vm18582_vm8, %v1858_v41, %v1866_v59  ;;  %v1914_v3 = vrot.slane %v1912_v46, 4  ;;  %v1776_v24 = vld [vmem:[%s18131_s6 + $0x54] sm:$0xe] }
  0x72   : > { %v1958_v39 = vrot.slane %v1956_v28, 6  ;;  %v1903_v37 = vor.u32 %v1902_v20, %v1899_v12  ;;  %v1977_v2 = vrot.slane %v1975_v50, 6  ;;  %v1981_v28 = vshrl.u32 %v1773_v25, 16 }
  0x73   : > { %v1968_v12 = vor.u32 %v1967_v52, %v1964_v15  ;;  %v1895_v20 = vsel %vm18582_vm8, %v1886_v0, %v1894_v5  ;;  %v1922_v9 = vor.u32 %v1921_v4, %v1918_v36  ;;  %v1932_v27 = vrot.slane %v1931_v63, 4  ;;  %v1775_v5 = vld [vmem:[%s18131_s6 + $0x50] sm:$0x3] }
  0x74   : > { %v1904_v61 = vrot.slane %v1903_v37, 4  ;;  %v1942_v1 = vrot.slane %v1940_v55, 4  ;;  %v1950_v40 = vor.u32 %v1949_v13, %v1946_v7  ;;  %v1978_v41 = vor.u32 %v1977_v2, %v1974_v62 }
  0x75   : > { %v1986_v52 = vrot.slane %v1984_v11, 6  ;;  %v1970_v59 = vrot.slane %v1968_v12, 4  ;;  %v1993_v0 = vshll.u32 %v1774_v14, 16  ;;  %v2009_v17 = vshrl.u32 %v1776_v24, 16 }
  0x76   : > { %v2012_v29 = vshll.u32 %v1776_v24, 16  ;;  %v18669_v33 = vcombine.low %v22319_v21, %v18625_v58  ;;  %v1913_v31 = vsel %vm18582_vm8, %v1904_v61, %v1912_v46  ;;  %v1941_v11 = vsel %vm18582_vm8, %v1932_v27, %v1940_v55  ;;  %v1778_v58 = vld [vmem:[%s18131_s6 + $0x5c] sm:$0x3] }
  0x77   : > { %16453 = vmatmul.mubr.bf16.gmra.mrb[20].mxu0 %v14617_v44  ;;  %v1959_v44 = vor.u32 %v1958_v39, %v1955_v32  ;;  %v1951_v30 = vsel %vm18582_vm8, %v1942_v1, %v1950_v40  ;;  %v1779_v32 = vld [vmem:[%s18131_s6 + $0x60] sm:$0xe]  ;;  %v2000_v39 = vshrl.u32 %v1775_v5, 16  ;;  %v2003_v47 = vshll.u32 %v1775_v5, 16  ;;  %v1783_v40 = vld [vmem:[%s18131_s6 + $0x70] sm:$0xf] }
  0x78   : > { %16456 = vmatprep.mubr.bf16.mxu0 %v14618_v45  ;;  %v1885_v45 = vsel %vm18582_vm8, %v18620_v6, %v18617_v48  ;;  %v1983_v48 = vrot.slane %v1981_v28, 5  ;;  %v1990_v6 = vshrl.u32 %v1774_v14, 16  ;;  %v1979_v37 = vsel %vm18582_vm8, %v1970_v59, %v1978_v41 }
  0x79   : > { %v1960_v16 = vrot.slane %v1959_v44, 4  ;;  %v18673_v34 = vcombine.low %v1885_v45, %v1895_v20  ;;  %v1995_v4 = vrot.slane %v1993_v0, 6  ;;  %v2011_v55 = vrot.slane %v2009_v17, 5 }
  0x7a   : > { %v1987_v25 = vor.u32 %v1986_v52, %v1983_v48  ;;  %v1992_v36 = vrot.slane %v1990_v6, 5  ;;  %v2014_v49 = vrot.slane %v2012_v29, 6  ;;  %v2018_v50 = vshrl.u32 %v1777_v42, 16  ;;  %v1785_v48 = vld [vmem:[%s18131_s6 + $0x78] sm:$0xe] }
  0x7b   : > { %v1969_v8 = vsel %vm18582_vm8, %v1960_v16, %v1968_v12  ;;  %v2021_v46 = vshll.u32 %v1777_v42, 16  ;;  %v2028_v63 = vshrl.u32 %v1778_v58, 16  ;;  %v2031_v15 = vshll.u32 %v1778_v58, 16 }
  0x7c   : > { %v18693_v13 = vcombine.low %v1941_v11, %v1951_v30  ;;  %v2037_v44 = vshrl.u32 %v1779_v32, 16  ;;  %v2040_v62 = vshll.u32 %v1779_v32, 16  ;;  %v22320_v2 = vcombine.low %v18528_v54, %v18535_v60  ;;  %v1782_v60 = vld [vmem:[%s18131_s6 + $0x6c] sm:$0xe] }
  0x7d   : > { %v18698_v28 = vrot.slane %v2000_v39, 5  ;;  %v2046_v45 = vshrl.u32 %v1780_v43, 16  ;;  %v2049_v12 = vshll.u32 %v1780_v43, 16  ;;  %v22321_v14 = vcombine.low %v18541_v10, %v18548_v23 }
  0x7e   : > { %v18706_v20 = vcombine.low %v1969_v8, %v1979_v37  ;;  %v18708_v61 = vrot.slane %v1987_v25, 4  ;;  %v2015_v54 = vor.u32 %v2014_v49, %v2011_v55  ;;  %v2023_v24 = vrot.slane %v2021_v46, 6  ;;  %v1787_v55 = vld [vmem:[%s18131_s6 + $0x80] sm:$0x3] }
  0x7f   : > { %16457 = vmatmul.mubr.bf16.gmra.mrb[24].mxu0 %v14619_v51  ;;  %v18671_v51 = vcombine.low %v1857_v18, %v1867_v19  ;;  %v18700_v18 = vrot.slane %v2003_v47, 6  ;;  %v1781_v19 = vld [vmem:[%s18131_s6 + $0x68] sm:$0x3]  ;;  %v18713_v27 = vrot.slane %v2028_v63, 5  ;;  %v18715_v1 = vrot.slane %v2031_v15, 6 }
  0x80   : > { %16460 = vmatprep.mubr.bf16.mxu0 %v14620_v57  ;;  %v1923_v57 = vsel %vm18582_vm8, %v1914_v3, %v1922_v9  ;;  %v18710_v3 = vor.u32 %v1995_v4, %v1992_v36  ;;  %v2020_v9 = vrot.slane %v2018_v50, 5  ;;  %v2039_v10 = vrot.slane %v2037_v44, 5  ;;  %v1788_v15 = vld [vmem:[%s18131_s6 + $0x84] sm:$0xe] }
  0x81   : > { %v18691_v7 = vcombine.low %v1913_v31, %v1923_v57  ;;  %v2042_v23 = vrot.slane %v2040_v62, 6  ;;  %v2056_v16 = vshrl.u32 %v1781_v19, 16  ;;  %v2059_v41 = vshll.u32 %v1781_v19, 16  ;;  %v1784_v31 = vld [vmem:[%s18131_s6 + $0x74] sm:$0x3] }
  0x82   : > { %v2048_v52 = vrot.slane %v2046_v45, 5  ;;  %v2051_v6 = vrot.slane %v2049_v12, 6  ;;  %v2065_v59 = vshrl.u32 %v1782_v60, 16  ;;  %v2068_v5 = vshll.u32 %v1782_v60, 16  ;;  %v1786_v57 = vld [vmem:[%s18131_s6 + $0x7c] sm:$0xf] }
  0x83   : > { %v1997_v0 = vsel %vm18582_vm8, %v18708_v61, %v18710_v3  ;;  %v1998_v17 = vrot.slane %v18710_v3, 4  ;;  %v2006_v29 = vor.u32 %v18700_v18, %v18698_v28  ;;  %v18726_v21 = vrot.slane %v2015_v54, 4  ;;  %v17877_v61 = vld [vmem:[%s22291_s1 + $0xd8] sm:$0xff]  }
  0x84   : > { %v18730_v11 = vor.u32 %v2023_v24, %v2020_v9  ;;  %v2074_v30 = vshrl.u32 %v1783_v40, 16  ;;  %v2077_v8 = vshll.u32 %v1783_v40, 16  ;;  %v2093_v42 = vshrl.u32 %v1785_v48, 16 }
  0x85   : > { %v2034_v58 = vor.u32 %v18715_v1, %v18713_v27  ;;  %v2043_v32 = vor.u32 %v2042_v23, %v2039_v10  ;;  %v2058_v25 = vrot.slane %v2056_v16, 5  ;;  %v2096_v36 = vshll.u32 %v1785_v48, 16  ;;  %v17875_v27 = vld [vmem:[%s22291_s1 + $0xc8] sm:$0xff]  }
  0x86   : > { %v22322_v39 = vcombine.low %v18553_v22, %v18561_v35  ;;  %v18737_v47 = vor.u32 %v2051_v6, %v2048_v52  ;;  %v2061_v43 = vrot.slane %v2059_v41, 6  ;;  %v2067_v37 = vrot.slane %v2065_v59, 5  ;;  %v1789_v16 = vld [vmem:[%s18131_s6 + $0x88] sm:$0xf]  ;;  %v1790_v59 = vld [vmem:[%s18131_s6 + $0x8c] sm:$0x3] }
  0x87   : > { %16461 = vmatmul.mubr.bf16.gmra.mrb[28].mxu0 %v22320_v2  ;;  %v2070_v4 = vrot.slane %v2068_v5, 6  ;;  %v2084_v49 = vshrl.u32 %v1784_v31, 16  ;;  %v2087_v50 = vshll.u32 %v1784_v31, 16  ;;  %v2102_v46 = vshrl.u32 %v1786_v57, 16 }
  0x88   : > { %16464 = vmatprep.mubr.bf16.mxu0 %v22321_v14  ;;  %v2105_v63 = vshll.u32 %v1786_v57, 16  ;;  %v2076_v44 = vrot.slane %v2074_v30, 5  ;;  %v2079_v62 = vrot.slane %v2077_v8, 6  ;;  %v2095_v2 = vrot.slane %v2093_v42, 5  ;;  %v17876_v30 = vld [vmem:[%s22291_s1 + $0xd0] sm:$0xff]  }
  0x89   : > { %v2098_v28 = vrot.slane %v2096_v36, 6  ;;  %v2104_v18 = vrot.slane %v2102_v46, 5  ;;  %v2112_v35 = vshrl.u32 %v1787_v55, 16  ;;  %v2115_v19 = vshll.u32 %v1787_v55, 16  ;;  %v1794_v55 = vld [vmem:[%s18131_s6 + $0x9c] sm:$0xe] }
  0x8a   : > { %v2107_v22 = vrot.slane %v2105_v63, 6  ;;  %v2026_v45 = vrot.slane %v18730_v11, 4  ;;  %v2071_v12 = vor.u32 %v2070_v4, %v2067_v37  ;;  %v2121_v14 = vshrl.u32 %v1788_v15, 16  ;;  %v1793_v4 = vld [vmem:[%s18131_s6 + $0x98] sm:$0x3] }
  0x8b   : > { %v2007_v54 = vsel %vm18582_vm8, %v1998_v17, %v2006_v29  ;;  %v2044_v60 = vrot.slane %v2043_v32, 4  ;;  %v2054_v9 = vrot.slane %v18737_v47, 4  ;;  %v2062_v24 = vor.u32 %v2061_v43, %v2058_v25 }
  0x8c   : > { %v18749_v1 = vor.u32 %v2079_v62, %v2076_v44  ;;  %v2086_v40 = vrot.slane %v2084_v49, 5  ;;  %v2089_v10 = vrot.slane %v2087_v50, 6  ;;  %v2099_v23 = vor.u32 %v2098_v28, %v2095_v2 }
  0x8d   : > { %v2025_v41 = vsel %vm18582_vm8, %v18726_v21, %v18730_v11  ;;  %v18756_v48 = vor.u32 %v2107_v22, %v2104_v18  ;;  %v2114_v52 = vrot.slane %v2112_v35, 5  ;;  %v2117_v6 = vrot.slane %v2115_v19, 6  ;;  %v1797_v18 = vld [vmem:[%s18131_s6 + $0xa8] sm:$0xe] }
  0x8e   : > { %v2035_v5 = vsel %vm18582_vm8, %v2026_v45, %v2034_v58  ;;  %v18762_v17 = vrot.slane %v2071_v12, 4  ;;  %v2123_v29 = vrot.slane %v2121_v14, 5  ;;  %v2053_v21 = vsel %vm18582_vm8, %v2044_v60, %v18737_v47  ;;  %v1791_v58 = vld [vmem:[%s18131_s6 + $0x90] sm:$0xe]  ;;  %v1792_v47 = vld [vmem:[%s18131_s6 + $0x94] sm:$0xf] }
  0x8f   : > { %16465 = vmatmul.mubr.bf16.gmra.mrb[32].mxu0 %v22322_v39  ;;  %v2130_v57 = vshrl.u32 %v1789_v16, 16  ;;  %v2133_v11 = vshll.u32 %v1789_v16, 16  ;;  %v2090_v8 = vor.u32 %v2089_v10, %v2086_v40  ;;  %v18782_v42 = vrot.slane %v2099_v23, 4 }
  0x90   : > { %16484 = vmatprep.mubr.bf16.mxu0 %v18669_v33  ;;  %v2124_v33 = vshll.u32 %v1788_v15, 16  ;;  %v18785_v32 = vcombine.low %v2025_v41, %v2035_v5  ;;  %v2110_v25 = vrot.slane %v18756_v48, 4  ;;  %v2118_v36 = vor.u32 %v2117_v6, %v2114_v52  ;;  %v1795_v15 = vld [vmem:[%s18131_s6 + $0xa0] sm:$0xf]  ;;  %v1798_v41 = vld [vmem:[%s18131_s6 + $0xac] sm:$0xf] }
  0x91   : > { %v2140_v39 = vshrl.u32 %v1790_v59, 16  ;;  %v2143_v37 = vshll.u32 %v1790_v59, 16  ;;  %v2132_v49 = vrot.slane %v2130_v57, 5  ;;  %v2135_v50 = vrot.slane %v2133_v11, 6  ;;  %v1799_v5 = vld [vmem:[%s18131_s6 + $0xb0] sm:$0x3] }
  0x92   : > { %v2126_v31 = vrot.slane %v2124_v33, 6  ;;  %v2149_v46 = vshrl.u32 %v1791_v58, 16  ;;  %v2152_v63 = vshll.u32 %v1791_v58, 16  ;;  %v2109_v62 = vsel %vm18582_vm8, %v18782_v42, %v18756_v48  ;;  %v1796_v33 = vld [vmem:[%s18131_s6 + $0xa4] sm:$0x3]  ;;  %v17879_v11 = vld [vmem:[%s22291_s1 + $0xe8] sm:$0xff]  }
  0x93   : > { %v2158_v2 = vshrl.u32 %v1792_v47, 16  ;;  %v2161_v28 = vshll.u32 %v1792_v47, 16  ;;  %v18812_v22 = vsel %vm18582_vm8, %v2110_v25, %v2118_v36  ;;  %v18814_v35 = vrot.slane %v2140_v39, 5 }
  0x94   : > { %v2127_v43 = vor.u32 %v2126_v31, %v2123_v29  ;;  %v2177_v19 = vshrl.u32 %v1794_v55, 16  ;;  %v2180_v45 = vshll.u32 %v1794_v55, 16  ;;  %v18819_v14 = vrot.slane %v2143_v37, 6 }
  0x95   : > { %v2189_v60 = vshll.u32 %v1795_v15, 16  ;;  %v2168_v40 = vshrl.u32 %v1793_v4, 16  ;;  %v2160_v10 = vrot.slane %v2158_v2, 5  ;;  %v2163_v23 = vrot.slane %v2161_v28, 6 }
  0x96   : > { %v18817_v12 = vrot.slane %v2127_v43, 4  ;;  %v2171_v16 = vshll.u32 %v1793_v4, 16  ;;  %v2205_v52 = vshrl.u32 %v1797_v18, 16  ;;  %v2179_v6 = vrot.slane %v2177_v19, 5  ;;  %v1800_v43 = vld [vmem:[%s18131_s6 + $0xb4] sm:$0xe] }
  0x97   : > { %16485 = vmatmul.mubr.bf16.vlgmr.msra.gmra.mrb[0].mxu0 %v18671_v51  ;;  %v2063_v51 = vsel %vm18582_vm8, %v2054_v9, %v2062_v24  ;;  %v17878_v9 = vld [vmem:[%s22291_s1 + $0xe0] sm:$0xff]   ;;  %v18826_v24 = vor.u32 %v2135_v50, %v2132_v49  ;;  %v2182_v59 = vrot.slane %v2180_v45, 6  ;;  %v2208_v29 = vshll.u32 %v1797_v18, 16  ;;  %v1801_v49 = vld [vmem:[%s18131_s6 + $0xb8] sm:$0xf] }
  0x98   : > { %16521 = vmatpush3.bf16.msra.mxu0 %v18572_v38  ;;  %16488 = vmatprep.mubr.bf16.mxu0 %v18673_v34  ;;  %v18779_v38 = vcombine.low %v1997_v0, %v2007_v54  ;;  %v2082_v34 = vrot.slane %v18749_v1, 4  ;;  %v18792_v3 = vcombine.low %v2053_v21, %v2063_v51  ;;  %v2081_v0 = vsel %vm18582_vm8, %v18762_v17, %v18749_v1  ;;  %v1802_v18 = vld [vmem:[%s18131_s6 + $0xbc] sm:$0x3] }
  0x99   : > { %16522 = vmatprep.subr.bf16.mxu0 %v17875_v27  ;;  %v2186_v54 = vshrl.u32 %v1795_v15, 16  ;;  %v2191_v21 = vrot.slane %v2189_v60, 6  ;;  %v2199_v51 = vshll.u32 %v1796_v33, 16  ;;  %v2207_v57 = vrot.slane %v2205_v52, 5 }
  0x9a   : > { %v18803_v44 = vsel %vm18582_vm8, %v2082_v34, %v2090_v8  ;;  %v2210_v34 = vrot.slane %v2208_v29, 6  ;;  %v2214_v8 = vshrl.u32 %v1798_v41, 16  ;;  %v2217_v58 = vshll.u32 %v1798_v41, 16 }
  0x9b   : > { %v2188_v31 = vrot.slane %v2186_v54, 5  ;;  %v2170_v25 = vrot.slane %v2168_v40, 5  ;;  %v2173_v36 = vrot.slane %v2171_v16, 6  ;;  %v2224_v39 = vshrl.u32 %v1799_v5, 16 }
  0x9c   : > { %16523 = vmatpush3.bf16.msra.mxu0 %v17875_v27  ;;  %v2151_v27 = vrot.slane %v2149_v46, 5  ;;  %v2227_v47 = vshll.u32 %v1799_v5, 16  ;;  %v18834_v37 = vor.u32 %v2163_v23, %v2160_v10  ;;  %v2183_v4 = vor.u32 %v2182_v59, %v2179_v6 }
  0x9d   : > { %16524 = vmatprep.subr.bf16.mxu0 %v17876_v30  ;;  %v2219_v55 = vrot.slane %v2217_v58, 6  ;;  %v18838_v50 = vor.u32 %v2191_v21, %v2188_v31  ;;  %v2211_v15 = vor.u32 %v2210_v34, %v2207_v57  ;;  %v2146_v2 = vor.u32 %v18819_v14, %v18814_v35  ;;  %v17881_v21 = vld [vmem:[%s22291_s1 + $0xf8] sm:$0xff]   ;;  %v1805_v58 = vld [vmem:[%s18131_s6 + $0xc8] sm:$0x3] }
  0x9e   : > { %v2226_v28 = vrot.slane %v2224_v39, 5  ;;  %v2233_v19 = vshrl.u32 %v1800_v43, 16  ;;  %v2236_v45 = vshll.u32 %v1800_v43, 16  ;;  %v2229_v54 = vrot.slane %v2227_v47, 6 }
  0x9f   : > { %16489 = vmatmul.mubr.bf16.gmra.mrb[4].mxu0 %v18691_v7  ;;  %v2154_v7 = vrot.slane %v2152_v63, 6  ;;  %v2201_v63 = vrot.slane %v2199_v51, 6  ;;  %v2242_v60 = vshrl.u32 %v1801_v49, 16  ;;  %v2166_v40 = vrot.slane %v18834_v37, 4 }
  0xa0   : > { %16492 = vmatprep.mubr.bf16.mxu0 %v18693_v13  ;;  %16525 = vmatpush3.bf16.msra.mxu0 %v17876_v30  ;;  %v2196_v13 = vshrl.u32 %v1796_v33, 16  ;;  %v2174_v35 = vor.u32 %v2173_v36, %v2170_v25  ;;  %v2184_v14 = vrot.slane %v2183_v4, 4  ;;  %v2194_v10 = vrot.slane %v18838_v50, 4  ;;  %v18900_v25 = vld [vmem:[%s22291_s1 + $0x100] sm:$0xff]  }
  0xa1   : > { %16526 = vmatprep.subr.bf16.mxu0 %v17877_v61  ;;  %v2155_v30 = vor.u32 %v2154_v7, %v2151_v27  ;;  %v2245_v27 = vshll.u32 %v1801_v49, 16  ;;  %v1803_v7 = vld [vmem:[%s18131_s6 + $0xc0] sm:$0xe]  ;;  %v2212_v16 = vrot.slane %v2211_v15, 4  ;;  %v2235_v41 = vrot.slane %v2233_v19, 5 }
  0xa2   : > { %v2198_v46 = vrot.slane %v2196_v13, 5  ;;  %v2238_v52 = vrot.slane %v2236_v45, 6  ;;  %v2252_v6 = vshrl.u32 %v1802_v18, 16  ;;  %v2255_v59 = vshll.u32 %v1802_v18, 16  ;;  %v14675_v18 = vld [vmem:[%s18131_s6 + $0x10] sm:$0xf] }
  0xa3   : > { %v2230_v5 = vor.u32 %v2229_v54, %v2226_v28  ;;  %v2244_v29 = vrot.slane %v2242_v60, 5  ;;  %v2247_v31 = vrot.slane %v2245_v27, 6  ;;  %v14657_v51 = vcombine.low %v2081_v0, %v18803_v44  ;;  %v1808_v28 = vld [vmem:[%s18131_s6 + $0xd4] sm:$0x3]  ;;  %v14677_v54 = vld [vmem:[%s18131_s6 + $0x18] sm:$0xf] }
  0xa4   : > { %16527 = vmatpush3.bf16.msra.mxu0 %v17877_v61  ;;  %v2216_v61 = vrot.slane %v2214_v8, 5  ;;  %v2202_v23 = vor.u32 %v2201_v63, %v2198_v46  ;;  %v14658_v57 = vcombine.low %v2109_v62, %v18812_v22  ;;  %v2137_v34 = vsel %vm18582_vm8, %v18817_v12, %v18826_v24  ;;  %v1804_v62 = vld [vmem:[%s18131_s6 + $0xc4] sm:$0xf]  ;;  %v1806_v22 = vld [vmem:[%s18131_s6 + $0xcc] sm:$0xe] }
  0xa5   : > { %16528 = vmatprep.subr.bf16.mxu0 %v17878_v9  ;;  %v2175_v48 = vsel %vm18582_vm8, %v2166_v40, %v2174_v35  ;;  %v2193_v42 = vsel %vm18582_vm8, %v2184_v14, %v18838_v50  ;;  %v18882_v0 = vrot.slane %v2252_v6, 5  ;;  %v18884_v44 = vrot.slane %v2255_v59, 6  ;;  %v14674_v50 = vld [vmem:[%s18131_s6 + $0xc] sm:$0xf] }
  0xa6   : > { %v2220_v33 = vor.u32 %v2219_v55, %v2216_v61  ;;  %v2203_v12 = vsel %vm18582_vm8, %v2194_v10, %v2202_v23  ;;  %v18894_v8 = vor.u32 %v2247_v31, %v2244_v29  ;;  %v2270_v4 = vshrl.u32 %v1804_v62, 16 }
  0xa7   : > { %16493 = vmatmul.mubr.bf16.gmra.mrb[8].mxu0 %v18706_v20  ;;  %v17880_v20 = vld [vmem:[%s22291_s1 + $0xf0] sm:$0xff]   ;;  %v2273_v61 = vshll.u32 %v1804_v62, 16  ;;  %v2289_v55 = vshrl.u32 %v1806_v22, 16  ;;  %v2292_v49 = vshll.u32 %v1806_v22, 16  ;;  %v18908_v46 = vcombine.low %v2193_v42, %v2203_v12  ;;  %v14679_v22 = vld [vmem:[%s18131_s6 + $0x20] sm:$0x1] }
  0xa8   : > { %16496 = vmatprep.mubr.bf16.mxu0 %v18779_v38  ;;  %16529 = vmatpush3.bf16.msra.mxu0 %v17878_v9  ;;  %v2138_v38 = vrot.slane %v18826_v24, 4  ;;  %v2156_v9 = vrot.slane %v2155_v30, 4  ;;  %v2222_v13 = vrot.slane %v2220_v33, 4  ;;  %v2264_v30 = vshll.u32 %v1803_v7, 16  ;;  %v14676_v62 = vld [vmem:[%s18131_s6 + $0x14] sm:$0x1] }
  0xa9   : > { %16530 = vmatprep.subr.bf16.mxu0 %v17879_v11  ;;  %v2250_v19 = vrot.slane %v18894_v8, 4  ;;  %v2280_v45 = vshrl.u32 %v1805_v58, 16  ;;  %v2272_v40 = vrot.slane %v2270_v4, 5  ;;  %v2275_v35 = vrot.slane %v2273_v61, 6 }
  0xaa   : > { %v2147_v1 = vsel %vm18582_vm8, %v2138_v38, %v2146_v2  ;;  %v2165_v17 = vsel %vm18582_vm8, %v2156_v9, %v18834_v37  ;;  %v2231_v24 = vsel %vm18582_vm8, %v2222_v13, %v2230_v5  ;;  %v2266_v43 = vrot.slane %v2264_v30, 6  ;;  %v1807_v37 = vld [vmem:[%s18131_s6 + $0xd0] sm:$0xf]  ;;  %v14678_v9 = vld [vmem:[%s18131_s6 + $0x1c] sm:$0xf] }
  0xab   : > { %v18902_v36 = vcombine.low %v2137_v34, %v2147_v1  ;;  %v18904_v39 = vcombine.low %v2165_v17, %v2175_v48  ;;  %v2258_v2 = vor.u32 %v18884_v44, %v18882_v0  ;;  %v2301_v27 = vshll.u32 %v1807_v37, 16  ;;  %v14680_v1 = vld [vmem:[%s18131_s6 + $0x24] sm:$0xf]  ;;  %v14684_v0 = vld [vmem:[%s18131_s6 + $0x34] sm:$0xf] }
  0xac   : > { %16531 = vmatpush3.bf16.msra.mxu0 %v17879_v11  ;;  %v2261_v11 = vshrl.u32 %v1803_v7, 16  ;;  %v2794_v7 = vshrl.u32 %v14674_v50, 16  ;;  %v2797_v38 = vshll.u32 %v14674_v50, 16  ;;  %v2291_v14 = vrot.slane %v2289_v55, 5 }
  0xad   : > { %16532 = vmatprep.subr.bf16.mxu0 %v17880_v20  ;;  %v2294_v10 = vrot.slane %v2292_v49, 6  ;;  %v2308_v23 = vshrl.u32 %v1808_v28, 16  ;;  %v2282_v6 = vrot.slane %v2280_v45, 5  ;;  %v2818_v5 = vshrl.u32 %v14677_v54, 16 }
  0xae   : > { %v2263_v47 = vrot.slane %v2261_v11, 5  ;;  %v2303_v29 = vrot.slane %v2301_v27, 6  ;;  %v2796_v31 = vrot.slane %v2794_v7, 4  ;;  %v2827_v34 = vshll.u32 %v14678_v9, 16 }
  0xaf   : > { %16497 = vmatmul.mubr.bf16.gmra.mrb[12].mxu0 %v18785_v32  ;;  %v2239_v32 = vor.u32 %v2238_v52, %v2235_v41  ;;  %v2803_v41 = vshll.u32 %v14675_v18, 16  ;;  %v2807_v52 = vshrl.u32 %v14675_v18, 16  ;;  %v2276_v17 = vor.u32 %v2275_v35, %v2272_v40 }
  0xb0   : > { %16500 = vmatprep.mubr.bf16.mxu0 %v18792_v3  ;;  %16533 = vmatpush3.bf16.msra.mxu0 %v17880_v20  ;;  %v2221_v3 = vsel %vm18582_vm8, %v2212_v16, %v2220_v33  ;;  %v2283_v20 = vshll.u32 %v1805_v58, 16  ;;  %v2298_v33 = vshrl.u32 %v1807_v37, 16  ;;  %v2267_v60 = vor.u32 %v2266_v43, %v2263_v47  ;;  %v14681_v47 = vld [vmem:[%s18131_s6 + $0x28] sm:$0xf] }
  0xb1   : > { %16534 = vmatprep.subr.bf16.mxu0 %v17881_v21  ;;  %v18910_v63 = vcombine.low %v2221_v3, %v2231_v24  ;;  %v18912_v15 = vrot.slane %v2239_v32, 4  ;;  %v2311_v16 = vshll.u32 %v1808_v28, 16  ;;  %v18924_v30 = vrot.slane %v2803_v41, 5 }
  0xb2   : > { %v2285_v59 = vrot.slane %v2283_v20, 6  ;;  %v2300_v13 = vrot.slane %v2298_v33, 5  ;;  %v18922_v11 = vrot.slane %v2267_v60, 4  ;;  %v2295_v48 = vor.u32 %v2294_v10, %v2291_v14 }
  0xb3   : > { %v2310_v42 = vrot.slane %v2308_v23, 5  ;;  %v2313_v32 = vrot.slane %v2311_v16, 6  ;;  %v2820_v12 = vrot.slane %v2818_v5, 4  ;;  %v18929_v24 = vrot.slane %v2827_v34, 5  ;;  %v14682_v23 = vld [vmem:[%s18131_s6 + $0x2c] sm:$0x1] }
  0xb4   : > { %16535 = vmatpush3.bf16.msra.mxu0 %v17881_v21  ;;  %v2799_v21 = vrot.slane %v2797_v38, 5  ;;  %v2831_v58 = vshrl.u32 %v14678_v9, 16  ;;  %v2304_v43 = vor.u32 %v2303_v29, %v2300_v13  ;;  %v2842_v4 = vshrl.u32 %v14680_v1, 16 }
  0xb5   : > { %16572 = vmatprep.subr.bf16.mxu0 %v18900_v25  ;;  %v2845_v61 = vshll.u32 %v14680_v1, 16  ;;  %v2286_v55 = vor.u32 %v2285_v59, %v2282_v6  ;;  %v2813_v50 = vshll.u32 %v14676_v62, 16  ;;  %v2278_v18 = vrot.slane %v2276_v17, 4  ;;  %v14683_v6 = vld [vmem:[%s18131_s6 + $0x30] sm:$0xf] }
  0xb6   : > { %v2800_v37 = vor.u32 %v2799_v21, %v2796_v31  ;;  %v2833_v28 = vrot.slane %v2831_v58, 4  ;;  %v2296_v45 = vrot.slane %v2295_v48, 4  ;;  %v2851_v20 = vshll.u32 %v14681_v47, 16  ;;  %v14686_v48 = vld [vmem:[%s18131_s6 + $0x3c] sm:$0xf] }
  0xb7   : > { %16501 = vmatmul.mubr.bf16.gmra.mrb[16].mxu0 %v14657_v51  ;;  %v2821_v51 = vshll.u32 %v14677_v54, 16  ;;  %v2855_v33 = vshrl.u32 %v14681_v47, 16  ;;  %v2314_v54 = vor.u32 %v2313_v32, %v2310_v42  ;;  %v2837_v7 = vshll.u32 %v14679_v22, 16  ;;  %v14687_v42 = vld [vmem:[%s18131_s6 + $0x40] sm:$0xf] }
  0xb8   : > { %16504 = vmatprep.mubr.bf16.mxu0 %v14658_v57  ;;  %v2809_v57 = vrot.slane %v2807_v52, 4  ;;  %v2834_v27 = vor.u32 %v2833_v28, %v18929_v24  ;;  %v2801_v38 = vrot.slane %v2800_v37, 4  ;;  %v2844_v9 = vrot.slane %v2842_v4, 4  ;;  %v14692_v37 = vld [vmem:[%s18131_s6 + $0x54] sm:$0xf] }
  0xb9   : > { %v2823_v3 = vrot.slane %v2821_v51, 5  ;;  %v2847_v40 = vrot.slane %v2845_v61, 5  ;;  %v2259_v35 = vsel %vm18582_vm8, %v2250_v19, %v2258_v2  ;;  %v2815_v10 = vrot.slane %v2813_v50, 5  ;;  %v14693_v50 = vld [vmem:[%s18131_s6 + $0x58] sm:$0xf] }
  0xba   : > { %v2810_v49 = vor.u32 %v2809_v57, %v18924_v30  ;;  %v2277_v16 = vsel %vm18582_vm8, %v18922_v11, %v2276_v17  ;;  %v2287_v41 = vsel %vm18582_vm8, %v2278_v18, %v2286_v55  ;;  %v18953_v52 = vrot.slane %v2851_v20, 5  ;;  %v14685_v17 = vld [vmem:[%s18131_s6 + $0x38] sm:$0x1] }
  0xbb   : > { %v2824_v60 = vor.u32 %v2823_v3, %v2820_v12  ;;  %v2305_v44 = vsel %vm18582_vm8, %v2296_v45, %v2304_v43  ;;  %v2835_v2 = vrot.slane %v2834_v27, 4  ;;  %v2839_v19 = vrot.slane %v2837_v7, 5  ;;  %v14689_v12 = vld [vmem:[%s18131_s6 + $0x48] sm:$0xf]  ;;  %v14690_v3 = vld [vmem:[%s18131_s6 + $0x4c] sm:$0xf] }
  0xbc   : > { %v2811_v14 = vrot.slane %v2810_v49, 4  ;;  %v2806_v13 = vsel %vm18147_vm2, %v2801_v38, %v18924_v30  ;;  %v2848_v5 = vor.u32 %v2847_v40, %v2844_v9  ;;  %v2861_v29 = vshll.u32 %v14682_v23, 16  ;;  %v14688_v38 = vld [vmem:[%s18131_s6 + $0x44] sm:$0x1]  ;;  %v14695_v23 = vld [vmem:[%s18131_s6 + $0x60] sm:$0xf] }
  0xbd   : > { %v2866_v21 = vshrl.u32 %v14683_v6, 16  ;;  %v2869_v51 = vshll.u32 %v14683_v6, 16  ;;  %v2875_v11 = vshll.u32 %v14684_v0, 16  ;;  %v14664_v1 = vcombine.low %v2277_v16, %v2287_v41 }
  0xbe   : > { %v2816_v31 = vsel %vm18147_vm2, %v2811_v14, %v2815_v10  ;;  %v2863_v22 = vrot.slane %v2861_v29, 5  ;;  %v2885_v55 = vshll.u32 %v14685_v17, 16  ;;  %v2890_v49 = vshrl.u32 %v14686_v48, 16 }
  0xbf   : > { %16505 = vmatmul.mubr.bf16.gmra.mrb[20].mxu0 %v18902_v36  ;;  %v2306_v36 = vrot.slane %v2304_v43, 4  ;;  %v18979_v62 = vcombine.low %v2806_v13, %v2816_v31  ;;  %v2868_v58 = vrot.slane %v2866_v21, 4  ;;  %v2871_v47 = vrot.slane %v2869_v51, 5 }
  0xc0   : > { %16508 = vmatprep.mubr.bf16.mxu0 %v18904_v39  ;;  %v2249_v39 = vsel %vm18582_vm8, %v18912_v15, %v18894_v8  ;;  %v2857_v15 = vrot.slane %v2855_v33, 4  ;;  %v2825_v8 = vrot.slane %v2824_v60, 4  ;;  %v18983_v43 = vrot.slane %v2875_v11, 5 }
  0xc1   : > { %v2315_v59 = vsel %vm18582_vm8, %v2306_v36, %v2314_v54  ;;  %v14663_v34 = vcombine.low %v2249_v39, %v2259_v35  ;;  %v2893_v28 = vshll.u32 %v14686_v48, 16  ;;  %v2899_v18 = vshll.u32 %v14687_v42, 16 }
  0xc2   : > { %v2858_v57 = vor.u32 %v2857_v15, %v18953_v52  ;;  %v2830_v30 = vsel %vm18147_vm2, %v2825_v8, %v18929_v24  ;;  %v18977_v32 = vcombine.low %v2305_v44, %v2315_v59  ;;  %v2879_v24 = vshrl.u32 %v14684_v0, 16  ;;  %v14691_v15 = vld [vmem:[%s18131_s6 + $0x50] sm:$0x1] }
  0xc3   : > { %v2903_v45 = vshrl.u32 %v14687_v42, 16  ;;  %v2914_v20 = vshrl.u32 %v14689_v12, 16  ;;  %v2917_v54 = vshll.u32 %v14689_v12, 16  ;;  %v2923_v60 = vshll.u32 %v14690_v3, 16 }
  0xc4   : > { %v2859_v61 = vrot.slane %v2858_v57, 4  ;;  %v2927_v27 = vshrl.u32 %v14690_v3, 16  ;;  %v2872_v7 = vor.u32 %v2871_v47, %v2868_v58  ;;  %v2881_v36 = vrot.slane %v2879_v24, 4  ;;  %v14697_v58 = vld [vmem:[%s18131_s6 + $0x68] sm:$0x1] }
  0xc5   : > { %v2938_v9 = vshrl.u32 %v14692_v37, 16  ;;  %v2941_v40 = vshll.u32 %v14692_v37, 16  ;;  %v18995_v35 = vrot.slane %v2885_v55, 5  ;;  %v2892_v14 = vrot.slane %v2890_v49, 4 }
  0xc6   : > { %v2864_v39 = vsel %vm18147_vm2, %v2859_v61, %v2863_v22  ;;  %v2947_v10 = vshll.u32 %v14693_v50, 16  ;;  %v2895_v16 = vrot.slane %v2893_v28, 5  ;;  %v18998_v41 = vrot.slane %v2899_v18, 5  ;;  %v14698_v22 = vld [vmem:[%s18131_s6 + $0x6c] sm:$0xf] }
  0xc7   : > { %16509 = vmatmul.mubr.bf16.gmra.mrb[24].mxu0 %v18908_v46  ;;  %v2840_v46 = vsel %vm18147_vm2, %v2835_v2, %v2839_v19  ;;  %v2916_v6 = vrot.slane %v2914_v20, 4  ;;  %v2919_v0 = vrot.slane %v2917_v54, 5  ;;  %v19001_v44 = vrot.slane %v2923_v60, 5  ;;  %v14696_v19 = vld [vmem:[%s18131_s6 + $0x64] sm:$0xf] }
  0xc8   : > { %16512 = vmatprep.mubr.bf16.mxu0 %v18910_v63  ;;  %v2849_v63 = vrot.slane %v2848_v5, 4  ;;  %v18986_v4 = vcombine.low %v2830_v30, %v2840_v46  ;;  %v2929_v8 = vrot.slane %v2927_v27, 4  ;;  %v2951_v2 = vshrl.u32 %v14693_v50, 16  ;;  %v14699_v50 = vld [vmem:[%s18131_s6 + $0x70] sm:$0xf] }
  0xc9   : > { %v2940_v59 = vrot.slane %v2938_v9, 4  ;;  %v2943_v13 = vrot.slane %v2941_v40, 5  ;;  %v2962_v5 = vshrl.u32 %v14695_v23, 16  ;;  %v2965_v29 = vshll.u32 %v14695_v23, 16 }
  0xca   : > { %v2854_v33 = vsel %vm18147_vm2, %v2849_v63, %v18953_v52  ;;  %v2905_v52 = vrot.slane %v2903_v45, 4  ;;  %v2882_v31 = vor.u32 %v2881_v36, %v18983_v43  ;;  %v2909_v21 = vshll.u32 %v14688_v38, 16 }
  0xcb   : > { %v19005_v51 = vrot.slane %v2947_v10, 5  ;;  %v2953_v11 = vrot.slane %v2951_v2, 4  ;;  %v14746_v57 = vcombine.low %v2854_v33, %v2864_v39  ;;  %v2971_v30 = vshll.u32 %v14696_v19, 16  ;;  %v17883_v10 = vld [vmem:[%s22291_s1 + $0x108] sm:$0xff]   ;;  %v14701_v2 = vld [vmem:[%s18131_s6 + $0x78] sm:$0xf] }
  0xcc   : > { %v2975_v46 = vshrl.u32 %v14696_v19, 16  ;;  %v2896_v17 = vor.u32 %v2895_v16, %v2892_v14  ;;  %v2906_v48 = vor.u32 %v2905_v52, %v18998_v41  ;;  %v2920_v42 = vor.u32 %v2919_v0, %v2916_v6  ;;  %v14700_v16 = vld [vmem:[%s18131_s6 + $0x74] sm:$0x1] }
  0xcd   : > { %v2933_v63 = vshll.u32 %v14691_v15, 16  ;;  %v2930_v12 = vor.u32 %v2929_v8, %v19001_v44  ;;  %v2944_v3 = vor.u32 %v2943_v13, %v2940_v59  ;;  %v2964_v47 = vrot.slane %v2962_v5, 4  ;;  %v14702_v13 = vld [vmem:[%s18131_s6 + $0x7c] sm:$0xf] }
  0xce   : > { %v2967_v24 = vrot.slane %v2965_v29, 5  ;;  %v2883_v37 = vrot.slane %v2882_v31, 4  ;;  %v2911_v61 = vrot.slane %v2909_v21, 5  ;;  %v2954_v55 = vor.u32 %v2953_v11, %v19005_v51  ;;  %v17884_v31 = vld [vmem:[%s22291_s1 + $0x110] sm:$0xff]  }
  0xcf   : > { %16513 = vmatmul.mubr.bf16.gmra.mrb[28].mxu0 %v14663_v34  ;;  %v19007_v34 = vrot.slane %v2872_v7, 4  ;;  %v19018_v28 = vrot.slane %v2971_v30, 5  ;;  %v2977_v18 = vrot.slane %v2975_v46, 4  ;;  %v2986_v45 = vshrl.u32 %v14698_v22, 16 }
  0xd0   : > { %16516 = vmatprep.mubr.bf16.mxu0 %v14664_v1  ;;  %v14694_v1 = vld [vmem:[%s18131_s6 + $0x5c] sm:$0x1]  ;;  %v2989_v20 = vshll.u32 %v14698_v22, 16  ;;  %v2907_v33 = vrot.slane %v2906_v48, 4  ;;  %v2921_v54 = vrot.slane %v2920_v42, 4  ;;  %v2935_v60 = vrot.slane %v2933_v63, 5 }
  0xd1   : > { %v2957_v49 = vshll.u32 %v14694_v1, 16  ;;  %v2931_v27 = vrot.slane %v2930_v12, 4  ;;  %v2945_v7 = vrot.slane %v2944_v3, 4  ;;  %v2968_v36 = vor.u32 %v2967_v24, %v2964_v47  ;;  %v14704_v1 = vld [vmem:[%s18131_s6 + $0x84] sm:$0xf] }
  0xd2   : > { %v2955_v38 = vrot.slane %v2954_v55, 4  ;;  %v2995_v40 = vshll.u32 %v14699_v50, 16  ;;  %v2999_v39 = vshrl.u32 %v14699_v50, 16  ;;  %v2878_v14 = vsel %vm18147_vm2, %v19007_v34, %v18983_v43  ;;  %v14703_v48 = vld [vmem:[%s18131_s6 + $0x80] sm:$0x1]  ;;  %v17885_v55 = vld [vmem:[%s22291_s1 + $0x118] sm:$0xff]  }
  0xd3   : > { %v2959_v9 = vrot.slane %v2957_v49, 5  ;;  %v2978_v23 = vor.u32 %v2977_v18, %v19018_v28  ;;  %v2988_v52 = vrot.slane %v2986_v45, 4  ;;  %v2991_v15 = vrot.slane %v2989_v20, 5  ;;  %v14705_v42 = vld [vmem:[%s18131_s6 + $0x88] sm:$0xf] }
  0xd4   : > { %v2888_v6 = vsel %vm18147_vm2, %v2883_v37, %v18995_v35  ;;  %v2912_v43 = vsel %vm18147_vm2, %v2907_v33, %v2911_v61  ;;  %v2926_v8 = vsel %vm18147_vm2, %v2921_v54, %v19001_v44  ;;  %v2936_v19 = vsel %vm18147_vm2, %v2931_v27, %v2935_v60  ;;  %v14707_v63 = vld [vmem:[%s18131_s6 + $0x90] sm:$0xf]  ;;  %v14708_v22 = vld [vmem:[%s18131_s6 + $0x94] sm:$0xf]  ;;  %v14710_v24 = vld [vmem:[%s18131_s6 + $0x9c] sm:$0xf] }
  0xd5   : > { %v2950_v35 = vsel %vm18147_vm2, %v2945_v7, %v19005_v51  ;;  %v19047_v59 = vrot.slane %v2968_v36, 4  ;;  %v2960_v44 = vsel %vm18147_vm2, %v2955_v38, %v2959_v9  ;;  %v3001_v5 = vrot.slane %v2999_v39, 4  ;;  %v14711_v37 = vld [vmem:[%s18131_s6 + $0xa0] sm:$0xf] }
  0xd6   : > { %v3005_v29 = vshll.u32 %v14700_v16, 16  ;;  %v19060_v21 = vrot.slane %v2978_v23, 4  ;;  %v3010_v51 = vshrl.u32 %v14701_v2, 16  ;;  %v3013_v11 = vshll.u32 %v14701_v2, 16  ;;  %v17886_v39 = vld [vmem:[%s22291_s1 + $0x120] sm:$0xff]  }
  0xd7   : > { %16517 = vmatmul.mubr.bf16.gmra.mrb[32].mxu0 %v18977_v32  ;;  %v2897_v32 = vrot.slane %v2896_v17, 4  ;;  %v3023_v34 = vshrl.u32 %v14702_v13, 16  ;;  %v14747_v30 = vcombine.low %v2878_v14, %v2888_v6  ;;  %v19063_v17 = vcombine.low %v2926_v8, %v2936_v19 }
  0xd8   : > { %16536 = vmatprep.mubr.bf16.mxu0 %v18979_v62  ;;  %v2981_v62 = vshll.u32 %v14697_v58, 16  ;;  %v19069_v12 = vcombine.low %v2950_v35, %v2960_v44  ;;  %v2974_v3 = vsel %vm18147_vm2, %v19047_v59, %v19018_v28  ;;  %v19076_v47 = vrot.slane %v3005_v29, 5  ;;  %v17887_v29 = vld [vmem:[%s22291_s1 + $0x128] sm:$0xff]  }
  0xd9   : > { %v2902_v0 = vsel %vm18147_vm2, %v2897_v32, %v18998_v41  ;;  %v3012_v50 = vrot.slane %v3010_v51, 4  ;;  %v3015_v18 = vrot.slane %v3013_v11, 5  ;;  %v3025_v20 = vrot.slane %v3023_v34, 4 }
  0xda   : > { %v19049_v41 = vrot.slane %v2981_v62, 5  ;;  %v14748_v46 = vcombine.low %v2902_v0, %v2912_v43  ;;  %v3034_v32 = vshrl.u32 %v14704_v1, 16  ;;  %v3037_v33 = vshll.u32 %v14704_v1, 16  ;;  %v14709_v0 = vld [vmem:[%s18131_s6 + $0x98] sm:$0x1] }
  0xdb   : > { %v3043_v54 = vshll.u32 %v14705_v42, 16  ;;  %v3047_v60 = vshrl.u32 %v14705_v42, 16  ;;  %v3058_v27 = vshrl.u32 %v14707_v63, 16  ;;  %v3061_v7 = vshll.u32 %v14707_v63, 16  ;;  %v14712_v1 = vld [vmem:[%s18131_s6 + $0xa4] sm:$0x1] }
  0xdc   : > { %v2984_v61 = vsel %vm18147_vm2, %v19060_v21, %v19049_v41  ;;  %v3029_v62 = vshll.u32 %v14703_v48, 16  ;;  %v3067_v38 = vshll.u32 %v14708_v22, 16  ;;  %v3071_v9 = vshrl.u32 %v14708_v22, 16  ;;  %v14713_v22 = vld [vmem:[%s18131_s6 + $0xa8] sm:$0xf] }
  0xdd   : > { %v3082_v14 = vshrl.u32 %v14710_v24, 16  ;;  %v3091_v23 = vshll.u32 %v14711_v37, 16  ;;  %v3039_v6 = vrot.slane %v3037_v33, 5  ;;  %v3095_v43 = vshrl.u32 %v14711_v37, 16  ;;  %v14714_v37 = vld [vmem:[%s18131_s6 + $0xac] sm:$0xf] }
  0xde   : > { %v19097_v8 = vrot.slane %v3043_v54, 5  ;;  %v3049_v2 = vrot.slane %v3047_v60, 4  ;;  %v3060_v19 = vrot.slane %v3058_v27, 4  ;;  %v3063_v35 = vrot.slane %v3061_v7, 5 }
  0xdf   : > { %16537 = vmatmul.mubr.bf16.vlgmr.msra.gmra.mrb[0].mxu0 %v18986_v4  ;;  %v19055_v4 = vrot.slane %v2995_v40, 5  ;;  %v3016_v40 = vor.u32 %v3015_v18, %v3012_v50  ;;  %v19103_v44 = vrot.slane %v3067_v38, 5  ;;  %v3097_v51 = vrot.slane %v3095_v43, 4  ;;  %v17889_v38 = vld [vmem:[%s22291_s1 + $0x138] sm:$0xff]  }
  0xe0   : > { %16573 = vmatpush3.bf16.msra.mxu0 %v18900_v25  ;;  %16540 = vmatprep.mubr.bf16.mxu0 %v14746_v57  ;;  %v2992_v25 = vor.u32 %v2991_v15, %v2988_v52  ;;  %v3019_v57 = vshll.u32 %v14702_v13, 16  ;;  %v14706_v52 = vld [vmem:[%s18131_s6 + $0x8c] sm:$0x1]  ;;  %v3036_v15 = vrot.slane %v3034_v32, 4  ;;  %v3031_v13 = vrot.slane %v3029_v62, 5 }
  0xe1   : > { %16574 = vmatprep.subr.bf16.mxu0 %v17883_v10  ;;  %v3002_v58 = vor.u32 %v3001_v5, %v19055_v4  ;;  %v3073_v5 = vrot.slane %v3071_v9, 4  ;;  %v3064_v48 = vor.u32 %v3063_v35, %v3060_v19  ;;  %v3077_v42 = vshll.u32 %v14709_v0, 16  ;;  %v14717_v32 = vld [vmem:[%s18131_s6 + $0xb8] sm:$0xf] }
  0xe2   : > { %v19087_v49 = vrot.slane %v2992_v25, 4  ;;  %v19089_v45 = vrot.slane %v3019_v57, 5  ;;  %v19108_v25 = vrot.slane %v3091_v23, 5  ;;  %v3040_v34 = vor.u32 %v3039_v6, %v3036_v15  ;;  %v14719_v6 = vld [vmem:[%s18131_s6 + $0xc0] sm:$0xf] }
  0xe3   : > { %v3003_v36 = vrot.slane %v3002_v58, 4  ;;  %v3074_v63 = vor.u32 %v3073_v5, %v19103_v44  ;;  %v14751_v58 = vcombine.low %v2974_v3, %v2984_v61  ;;  %v14716_v3 = vld [vmem:[%s18131_s6 + $0xb4] sm:$0xf]  ;;  %v3065_v18 = vrot.slane %v3064_v48, 4  ;;  %v14718_v5 = vld [vmem:[%s18131_s6 + $0xbc] sm:$0x1] }
  0xe4   : > { %16575 = vmatpush3.bf16.msra.mxu0 %v17883_v10  ;;  %v3085_v10 = vshll.u32 %v14710_v24, 16  ;;  %v3026_v16 = vor.u32 %v3025_v20, %v19089_v45  ;;  %v2998_v41 = vsel %vm18147_vm2, %v19087_v49, %v19055_v4  ;;  %v3017_v4 = vrot.slane %v3016_v40, 4  ;;  %v14715_v40 = vld [vmem:[%s18131_s6 + $0xb0] sm:$0x1] }
  0xe5   : > { %16576 = vmatprep.subr.bf16.mxu0 %v17884_v31  ;;  %v3008_v11 = vsel %vm18147_vm2, %v3003_v36, %v19076_v47  ;;  %v3098_v47 = vor.u32 %v3097_v51, %v19108_v25  ;;  %v3101_v24 = vshll.u32 %v14712_v1, 16  ;;  %v3041_v59 = vrot.slane %v3040_v34, 4 }
  0xe6   : > { %v3087_v21 = vrot.slane %v3085_v10, 5  ;;  %v3027_v57 = vrot.slane %v3026_v16, 4  ;;  %v3022_v49 = vsel %vm18147_vm2, %v3017_v4, %v19089_v45  ;;  %v3079_v20 = vrot.slane %v3077_v42, 5 }
  0xe7   : > { %16541 = vmatmul.mubr.bf16.gmra.mrb[4].mxu0 %v14747_v30  ;;  %v3050_v30 = vor.u32 %v3049_v2, %v19097_v8  ;;  %v3075_v33 = vrot.slane %v3074_v63, 4  ;;  %v3106_v54 = vshrl.u32 %v14713_v22, 16  ;;  %v3109_v60 = vshll.u32 %v14713_v22, 16  ;;  %v14722_v63 = vld [vmem:[%s18131_s6 + $0xcc] sm:$0xf] }
  0xe8   : > { %16544 = vmatprep.mubr.bf16.mxu0 %v14748_v46  ;;  %16577 = vmatpush3.bf16.msra.mxu0 %v17884_v31  ;;  %v3084_v31 = vrot.slane %v3082_v14, 4  ;;  %v3053_v46 = vshll.u32 %v14706_v52, 16  ;;  %v3032_v28 = vsel %vm18147_vm2, %v3027_v57, %v3031_v13  ;;  %v3115_v27 = vshll.u32 %v14714_v37, 16  ;;  %v14723_v22 = vld [vmem:[%s18131_s6 + $0xd0] sm:$0xf] }
  0xe9   : > { %16578 = vmatprep.subr.bf16.mxu0 %v17885_v55  ;;  %v3051_v61 = vrot.slane %v3050_v30, 4  ;;  %v3099_v36 = vrot.slane %v3098_v47, 4  ;;  %v3103_v45 = vrot.slane %v3101_v24, 5  ;;  %v3119_v62 = vshrl.u32 %v14714_v37, 16  ;;  %v14725_v37 = vld [vmem:[%s18131_s6 + $0xd8] sm:$0xf] }
  0xea   : > { %v3055_v50 = vrot.slane %v3053_v46, 5  ;;  %v14753_v9 = vcombine.low %v3022_v49, %v3032_v28  ;;  %v3133_v14 = vshll.u32 %v14716_v3, 16  ;;  %v3139_v10 = vshll.u32 %v14717_v32, 16 }
  0xeb   : > { %v3046_v23 = vsel %vm18147_vm2, %v3041_v59, %v19097_v8  ;;  %v3070_v52 = vsel %vm18147_vm2, %v3065_v18, %v19103_v44  ;;  %v3143_v15 = vshrl.u32 %v14717_v32, 16  ;;  %v3080_v0 = vsel %vm18147_vm2, %v3075_v33, %v3079_v20  ;;  %v14720_v8 = vld [vmem:[%s18131_s6 + $0xc4] sm:$0xf]  ;;  %v14726_v59 = vld [vmem:[%s18131_s6 + $0xdc] sm:$0xf] }
  0xec   : > { %16579 = vmatpush3.bf16.msra.mxu0 %v17885_v55  ;;  %v14752_v55 = vcombine.low %v2998_v41, %v3008_v11  ;;  %v3056_v16 = vsel %vm18147_vm2, %v3051_v61, %v3055_v50  ;;  %v3108_v43 = vrot.slane %v3106_v54, 4  ;;  %v3111_v2 = vrot.slane %v3109_v60, 5 }
  0xed   : > { %16580 = vmatprep.subr.bf16.mxu0 %v17886_v39  ;;  %v19151_v19 = vrot.slane %v3115_v27, 5  ;;  %v3104_v41 = vsel %vm18147_vm2, %v3099_v36, %v3103_v45  ;;  %v3121_v13 = vrot.slane %v3119_v62, 4  ;;  %v3125_v44 = vshll.u32 %v14715_v40, 16 }
  0xee   : > { %v19165_v51 = vrot.slane %v3139_v10, 5  ;;  %v3154_v11 = vshrl.u32 %v14719_v6, 16  ;;  %v3157_v4 = vshll.u32 %v14719_v6, 16  ;;  %v3163_v57 = vshll.u32 %v14720_v8, 16 }
  0xef   : > { %16545 = vmatmul.mubr.bf16.gmra.mrb[8].mxu0 %v19063_v17  ;;  %v3088_v17 = vor.u32 %v3087_v21, %v3084_v31  ;;  %v3135_v21 = vrot.slane %v3133_v14, 5  ;;  %v3167_v34 = vshrl.u32 %v14720_v8, 16  ;;  %v14754_v1 = vcombine.low %v3046_v23, %v3056_v16  ;;  %v14724_v16 = vld [vmem:[%s18131_s6 + $0xd4] sm:$0x1] }
  0xf0   : > { %16548 = vmatprep.mubr.bf16.mxu0 %v19069_v12  ;;  %16581 = vmatpush3.bf16.msra.mxu0 %v17886_v39  ;;  %v17888_v12 = vld [vmem:[%s22291_s1 + $0x130] sm:$0xff]   ;;  %v3130_v39 = vshrl.u32 %v14716_v3, 16  ;;  %v14755_v30 = vcombine.low %v3070_v52, %v3080_v0  ;;  %v3112_v46 = vor.u32 %v3111_v2, %v3108_v43  ;;  %v3122_v48 = vor.u32 %v3121_v13, %v19151_v19  ;;  %v14721_v3 = vld [vmem:[%s18131_s6 + $0xc8] sm:$0x1]  ;;  %v14727_v43 = vld [vmem:[%s18131_s6 + $0xe0] sm:$0x1] }
  0xf1   : > { %16582 = vmatprep.subr.bf16.mxu0 %v17887_v29  ;;  %v3089_v7 = vrot.slane %v3088_v17, 4  ;;  %v19168_v42 = vrot.slane %v3125_v44, 5  ;;  %v3149_v47 = vshll.u32 %v14718_v5, 16  ;;  %v3156_v24 = vrot.slane %v3154_v11, 4  ;;  %v14770_v5 = vld [vmem:[%s18131_s6 + $0xc] sm:$0xe] }
  0xf2   : > { %v3132_v31 = vrot.slane %v3130_v39, 4  ;;  %v19175_v49 = vrot.slane %v3163_v57, 5  ;;  %v3169_v28 = vrot.slane %v3167_v34, 4  ;;  %v3178_v61 = vshrl.u32 %v14722_v63, 16  ;;  %v14772_v34 = vld [vmem:[%s18131_s6 + $0x14] sm:$0x1] }
  0xf3   : > { %v3094_v35 = vsel %vm18147_vm2, %v3089_v7, %v19108_v25  ;;  %v3145_v25 = vrot.slane %v3143_v15, 4  ;;  %v3181_v50 = vshll.u32 %v14722_v63, 16  ;;  %v3187_v18 = vshll.u32 %v14723_v22, 16  ;;  %v14777_v63 = vld [vmem:[%s18131_s6 + $0x28] sm:$0xf] }
  0xf4   : > { %16583 = vmatpush3.bf16.msra.mxu0 %v17887_v29  ;;  %v19163_v29 = vld [vmem:[%s22291_s1 + $0x140] sm:$0xff]   ;;  %v3136_v17 = vor.u32 %v3135_v21, %v3132_v31  ;;  %v3191_v20 = vshrl.u32 %v14723_v22, 16  ;;  %v3113_v32 = vrot.slane %v3112_v46, 4  ;;  %v3123_v33 = vrot.slane %v3122_v48, 4 }
  0xf5   : > { %16584 = vmatprep.subr.bf16.mxu0 %v17888_v12  ;;  %v3202_v54 = vshrl.u32 %v14725_v37, 16  ;;  %v3205_v60 = vshll.u32 %v14725_v37, 16  ;;  %v3151_v7 = vrot.slane %v3149_v47, 5  ;;  %v3211_v36 = vshll.u32 %v14726_v59, 16  ;;  %v19215_v37 = vld [vmem:[%s18131_s6 + $0x40] sm:$0xf] }
  0xf6   : > { %v3137_v27 = vrot.slane %v3136_v17, 4  ;;  %v3215_v45 = vshrl.u32 %v14726_v59, 16  ;;  %v3173_v40 = vshll.u32 %v14721_v3, 16  ;;  %v3180_v39 = vrot.slane %v3178_v61, 4  ;;  %v14776_v3 = vld [vmem:[%s18131_s6 + $0x24] sm:$0xe] }
  0xf7   : > { %16549 = vmatmul.mubr.bf16.gmra.mrb[12].mxu0 %v14751_v58  ;;  %v14756_v58 = vcombine.low %v3094_v35, %v3104_v41  ;;  %v3183_v14 = vrot.slane %v3181_v50, 5  ;;  %v19180_v10 = vrot.slane %v3187_v18, 5  ;;  %v3193_v23 = vrot.slane %v3191_v20, 4  ;;  %v14771_v35 = vld [vmem:[%s18131_s6 + $0x10] sm:$0xf] }
  0xf8   : > { %16552 = vmatprep.mubr.bf16.mxu0 %v14752_v55  ;;  %16585 = vmatpush3.bf16.msra.mxu0 %v17888_v12  ;;  %v3146_v12 = vor.u32 %v3145_v25, %v19165_v51  ;;  %v3159_v55 = vrot.slane %v3157_v4, 5  ;;  %v3204_v52 = vrot.slane %v3202_v54, 4  ;;  %v3207_v15 = vrot.slane %v3205_v60, 5  ;;  %v14774_v4 = vld [vmem:[%s18131_s6 + $0x1c] sm:$0xf] }
  0xf9   : > { %16586 = vmatprep.subr.bf16.mxu0 %v17889_v38  ;;  %v3118_v6 = vsel %vm18147_vm2, %v3113_v32, %v19151_v19  ;;  %v3128_v0 = vsel %vm18147_vm2, %v3123_v33, %v19168_v42  ;;  %v19190_v2 = vrot.slane %v3211_v36, 5  ;;  %v3217_v8 = vrot.slane %v3215_v45, 4  ;;  %v14775_v42 = vld [vmem:[%s18131_s6 + $0x20] sm:$0x1]  ;;  %v14778_v20 = vld [vmem:[%s18131_s6 + $0x2c] sm:$0x1] }
  0xfa   : > { %v3147_v62 = vrot.slane %v3146_v12, 4  ;;  %v3142_v41 = vsel %vm18147_vm2, %v3137_v27, %v19165_v51  ;;  %v3175_v19 = vrot.slane %v3173_v40, 5  ;;  %v3184_v21 = vor.u32 %v3183_v14, %v3180_v39  ;;  %v14779_v60 = vld [vmem:[%s18131_s6 + $0x30] sm:$0xe]  ;;  %v14781_v45 = vld [vmem:[%s18131_s6 + $0x38] sm:$0x1] }
  0xfb   : > { %v3194_v11 = vor.u32 %v3193_v23, %v19180_v10  ;;  %v3197_v25 = vshll.u32 %v14724_v16, 16  ;;  %v3208_v57 = vor.u32 %v3207_v15, %v3204_v52  ;;  %v3757_v51 = vrot.slane %v14771_v35, 5  ;;  %v14782_v39 = vld [vmem:[%s18131_s6 + $0x3c] sm:$0xe]  ;;  %v14784_v14 = vld [vmem:[%s18131_s6 + $0x44] sm:$0x1] }
  0xfc   : > { %16587 = vmatpush3.bf16.msra.mxu0 %v17889_v38  ;;  %v3160_v38 = vor.u32 %v3159_v55, %v3156_v24  ;;  %v3152_v31 = vsel %vm18147_vm2, %v3147_v62, %v3151_v7  ;;  %v3218_v46 = vor.u32 %v3217_v8, %v19190_v2  ;;  %v3221_v48 = vshll.u32 %v14727_v43, 16  ;;  %v19212_v24 = vld [vmem:[%s18131_s6 + $0x34] sm:$0xf] }
  0xfd   : > { %16624 = vmatprep.subr.bf16.mxu0 %v19163_v29  ;;  %v14758_v22 = vcombine.low %v3142_v41, %v3152_v31  ;;  %v3764_v47 = vrot.slane %v14774_v4, 5  ;;  %v3185_v12 = vrot.slane %v3184_v21, 4  ;;  %v3195_v55 = vrot.slane %v3194_v11, 4  ;;  %v14785_v41 = vld [vmem:[%s18131_s6 + $0x48] sm:$0xe] }
  0xfe   : > { %v3161_v13 = vrot.slane %v3160_v38, 4  ;;  %v14824_v59 = vrot.slane %v14770_v5, 9  ;;  %v3209_v61 = vrot.slane %v3208_v57, 4  ;;  %v3759_v50 = vrot.slane %v3757_v51, 4  ;;  %v14787_v31 = vld [vmem:[%s18131_s6 + $0x50] sm:$0x1] }
  0xff   : > { %16553 = vmatmul.mubr.bf16.gmra.mrb[16].mxu0 %v14753_v9  ;;  %v3170_v9 = vor.u32 %v3169_v28, %v19175_v49  ;;  %v3199_v28 = vrot.slane %v3197_v25, 5  ;;  %v3760_v18 = vrot.slane %v14772_v34, 5  ;;  %v3219_v32 = vrot.slane %v3218_v46, 4  ;;  %v14788_v21 = vld [vmem:[%s18131_s6 + $0x54] sm:$0xe] }
 0x100   : > { %16556 = vmatprep.mubr.bf16.mxu0 %v14754_v1  ;;  %v14773_v1 = vld [vmem:[%s18131_s6 + $0x18] sm:$0xe]  ;;  %v3223_v33 = vrot.slane %v3221_v48, 5  ;;  %v3766_v7 = vrot.slane %v3764_v47, 4  ;;  %v3767_v36 = vrot.slane %v14775_v42, 5  ;;  %v3778_v62 = vrot.slane %v19212_v24, 5 }
 0x101   : > { %v3171_v44 = vrot.slane %v3170_v9, 4  ;;  %v14825_v54 = vrot.slane %v14773_v1, 9  ;;  %v3190_v38 = vsel %vm18147_vm2, %v3185_v12, %v19180_v10  ;;  %v3200_v9 = vsel %vm18147_vm2, %v3195_v55, %v3199_v28  ;;  %v14792_v11 = vld [vmem:[%s18131_s6 + $0x64] sm:$0xf]  ;;  %v14795_v1 = vld [vmem:[%s18131_s6 + $0x70] sm:$0xf] }
 0x102   : > { %v19229_v40 = vsel %vm18242_vm5, %v14824_v59, %v3757_v51  ;;  %v3785_v23 = vrot.slane %v19215_v37, 5  ;;  %v3214_v16 = vsel %vm18147_vm2, %v3209_v61, %v19190_v2  ;;  %v19239_v10 = vsel %vm18242_vm5, %v3759_v50, %v3760_v18  ;;  %v14790_v51 = vld [vmem:[%s18131_s6 + $0x5c] sm:$0x1]  ;;  %v14794_v37 = vld [vmem:[%s18131_s6 + $0x6c] sm:$0xe] }
 0x103   : > { %v3176_v17 = vsel %vm18147_vm2, %v3171_v44, %v3175_v19  ;;  %v14826_v52 = vrot.slane %v14776_v3, 9  ;;  %v3224_v43 = vsel %vm18147_vm2, %v3219_v32, %v3223_v33  ;;  %v19249_v8 = vsel %vm18242_vm5, %v14825_v54, %v3764_v47  ;;  %v14796_v59 = vld [vmem:[%s18131_s6 + $0x74] sm:$0x1] }
 0x104   : > { %v3774_v2 = vrot.slane %v14778_v20, 5  ;;  %v14827_v35 = vrot.slane %v14779_v60, 9  ;;  %v3780_v44 = vrot.slane %v3778_v62, 4  ;;  %v3781_v19 = vrot.slane %v14781_v45, 5 }
 0x105   : > { %v14828_v5 = vrot.slane %v14782_v39, 9  ;;  %v14760_v25 = vcombine.low %v3190_v38, %v3200_v9  ;;  %v3787_v4 = vrot.slane %v3785_v23, 4  ;;  %v3788_v57 = vrot.slane %v14784_v14, 5  ;;  %v14800_v39 = vld [vmem:[%s18131_s6 + $0x84] sm:$0xe] }
 0x106   : > { %v14858_v46 = vcombine.low %v19229_v40, %v19239_v10  ;;  %v19278_v47 = vsel %vm18242_vm5, %v14827_v35, %v3778_v62  ;;  %v3806_v24 = vrot.slane %v14792_v11, 5  ;;  %v19283_v12 = vsel %vm18242_vm5, %v3780_v44, %v3781_v19  ;;  %v14802_v14 = vld [vmem:[%s18131_s6 + $0x8c] sm:$0x1] }
 0x107   : > { %16557 = vmatmul.mubr.bf16.gmra.mrb[20].mxu0 %v14755_v30  ;;  %v14757_v30 = vcombine.low %v3118_v6, %v3128_v0  ;;  %v14786_v6 = vld [vmem:[%s18131_s6 + $0x4c] sm:$0xf]  ;;  %v19243_v0 = vld [vmem:[%s18131_s6 + $0x58] sm:$0xf]  ;;  %v19287_v55 = vsel %vm18242_vm5, %v14828_v5, %v3785_v23  ;;  %v14829_v28 = vrot.slane %v14785_v41, 9  ;;  %v3813_v3 = vrot.slane %v14795_v1, 5 }
 0x108   : > { %16560 = vmatprep.mubr.bf16.mxu0 %v14756_v58  ;;  %v3166_v58 = vsel %vm18147_vm2, %v3161_v13, %v19175_v49  ;;  %v3771_v49 = vrot.slane %v14777_v63, 5  ;;  %v19254_v13 = vsel %vm18242_vm5, %v3766_v7, %v3767_v36  ;;  %v3792_v34 = vrot.slane %v14786_v6, 5  ;;  %v14791_v63 = vld [vmem:[%s18131_s6 + $0x60] sm:$0xe]  ;;  %v14799_v7 = vld [vmem:[%s18131_s6 + $0x80] sm:$0x1] }
 0x109   : > { %v14759_v27 = vcombine.low %v3166_v58, %v3176_v17  ;;  %v3799_v42 = vrot.slane %v19243_v0, 5  ;;  %v14859_v58 = vcombine.low %v19249_v8, %v19254_v13  ;;  %v19292_v61 = vsel %vm18242_vm5, %v3787_v4, %v3788_v57  ;;  %v14801_v36 = vld [vmem:[%s18131_s6 + $0x88] sm:$0xf]  ;;  %v14804_v23 = vld [vmem:[%s18131_s6 + $0x94] sm:$0xf] }
 0x10a   : > { %v3773_v15 = vrot.slane %v3771_v49, 4  ;;  %v19265_v48 = vsel %vm18242_vm5, %v14826_v52, %v3771_v49  ;;  %v3794_v50 = vrot.slane %v3792_v34, 4  ;;  %v3795_v18 = vrot.slane %v14787_v31, 5  ;;  %v19295_v49 = vld [vmem:[%s18131_s6 + $0x7c] sm:$0xf]  ;;  %v17892_v8 = vld [vmem:[%s22291_s1 + $0x150] sm:$0xff]  }
 0x10b   : > { %v14830_v20 = vrot.slane %v14788_v21, 9  ;;  %v3801_v32 = vrot.slane %v3799_v42, 4  ;;  %v3802_v33 = vrot.slane %v14790_v51, 5  ;;  %v14831_v54 = vrot.slane %v14791_v63, 9  ;;  %v14803_v0 = vld [vmem:[%s18131_s6 + $0x90] sm:$0xe] }
 0x10c   : > { %v19274_v17 = vsel %vm18242_vm5, %v3773_v15, %v3774_v2  ;;  %v14832_v60 = vrot.slane %v14794_v37, 9  ;;  %v14861_v62 = vcombine.low %v19278_v47, %v19283_v12  ;;  %v3808_v38 = vrot.slane %v3806_v24, 4  ;;  %v14807_v2 = vld [vmem:[%s18131_s6 + $0xa0] sm:$0xf]  ;;  %v14810_v35 = vld [vmem:[%s18131_s6 + $0xac] sm:$0xf] }
 0x10d   : > { %v14860_v45 = vcombine.low %v19265_v48, %v19274_v17  ;;  %v19311_v52 = vsel %vm18242_vm5, %v14829_v28, %v3792_v34  ;;  %v3815_v15 = vrot.slane %v3813_v3, 4  ;;  %v3816_v6 = vrot.slane %v14796_v59, 5  ;;  %v14806_v4 = vld [vmem:[%s18131_s6 + $0x9c] sm:$0xe]  ;;  %v14808_v57 = vld [vmem:[%s18131_s6 + $0xa4] sm:$0x1] }
 0x10e   : > { %v19319_v41 = vsel %vm18242_vm5, %v3794_v50, %v3795_v18  ;;  %v19323_v44 = vsel %vm18242_vm5, %v14830_v20, %v3799_v42  ;;  %v3820_v19 = vrot.slane %v19295_v49, 5  ;;  %v3827_v5 = vrot.slane %v14801_v36, 5  ;;  %v14809_v63 = vld [vmem:[%s18131_s6 + $0xa8] sm:$0xe]  ;;  %v14811_v28 = vld [vmem:[%s18131_s6 + $0xb0] sm:$0x1] }
 0x10f   : > { %16561 = vmatmul.mubr.bf16.gmra.mrb[24].mxu0 %v14757_v30  ;;  %v14761_v30 = vcombine.low %v3214_v16, %v3224_v43  ;;  %v14862_v16 = vcombine.low %v19287_v55, %v19292_v61  ;;  %v14805_v43 = vld [vmem:[%s18131_s6 + $0x98] sm:$0x1]  ;;  %v19328_v31 = vsel %vm18242_vm5, %v3801_v32, %v3802_v33  ;;  %v19332_v21 = vsel %vm18242_vm5, %v14831_v54, %v3806_v24  ;;  %v14812_v49 = vld [vmem:[%s18131_s6 + $0xb4] sm:$0xe] }
 0x110   : > { %16564 = vmatprep.mubr.bf16.mxu0 %v14758_v22  ;;  %v14793_v22 = vld [vmem:[%s18131_s6 + $0x68] sm:$0x1]  ;;  %v19336_v11 = vsel %vm18242_vm5, %v14832_v60, %v3813_v3  ;;  %v3823_v1 = vrot.slane %v14799_v7, 5  ;;  %v3841_v42 = vrot.slane %v14807_v2, 5  ;;  %v14834_v24 = vrot.slane %v14800_v39, 9 }
 0x111   : > { %v3809_v9 = vrot.slane %v14793_v22, 5  ;;  %v19347_v22 = vsel %vm18242_vm5, %v3815_v15, %v3816_v6  ;;  %v3830_v37 = vrot.slane %v14802_v14, 5  ;;  %v3848_v59 = vrot.slane %v14810_v35, 5  ;;  %v14814_v7 = vld [vmem:[%s18131_s6 + $0xbc] sm:$0x1]  ;;  %v17891_v35 = vld [vmem:[%s22291_s1 + $0x148] sm:$0xff]  }
 0x112   : > { %v3822_v3 = vrot.slane %v3820_v19, 4  ;;  %v3829_v50 = vrot.slane %v3827_v5, 4  ;;  %v14835_v18 = vrot.slane %v14803_v0, 9  ;;  %v3837_v20 = vrot.slane %v14805_v43, 5  ;;  %v14815_v14 = vld [vmem:[%s18131_s6 + $0xc0] sm:$0xe] }
 0x113   : > { %v19342_v34 = vsel %vm18242_vm5, %v3808_v38, %v3809_v9  ;;  %v14836_v60 = vrot.slane %v14806_v4, 9  ;;  %v3843_v10 = vrot.slane %v3841_v42, 4  ;;  %v3850_v38 = vrot.slane %v3848_v59, 4  ;;  %v14816_v43 = vld [vmem:[%s18131_s6 + $0xc4] sm:$0xf] }
 0x114   : > { %v3851_v9 = vrot.slane %v14811_v28, 5  ;;  %v19371_v15 = vsel %vm18242_vm5, %v3822_v3, %v3823_v1  ;;  %v19375_v6 = vsel %vm18242_vm5, %v14834_v24, %v3827_v5  ;;  %v19379_v0 = vsel %vm18242_vm5, %v3829_v50, %v3830_v37  ;;  %v14818_v2 = vld [vmem:[%s18131_s6 + $0xcc] sm:$0xe]  ;;  %v14819_v1 = vld [vmem:[%s18131_s6 + $0xd0] sm:$0xf] }
 0x115   : > { %v19396_v5 = vsel %vm18242_vm5, %v14836_v60, %v3841_v42  ;;  %v3858_v24 = vrot.slane %v14814_v7, 5  ;;  %v14839_v37 = vrot.slane %v14815_v14, 9  ;;  %v19411_v28 = vld [vmem:[%s18131_s6 + $0xd4] sm:$0x1]  ;;  %v14884_v3 = vld [vmem:[%s18131_s6 + $0xc] sm:$0xe] }
 0x116   : > { %v19419_v42 = vsel %vm18242_vm5, %v3850_v38, %v3851_v9  ;;  %v4358_v60 = vshrl.u32 %v14884_v3, 16  ;;  %v14887_v9 = vld [vmem:[%s18131_s6 + $0x18] sm:$0xe]  ;;  %v14894_v61 = vld [vmem:[%s18131_s6 + $0x34] sm:$0xf] }
 0x117   : > { %16565 = vmatmul.mubr.bf16.gmra.mrb[28].mxu0 %v14759_v27  ;;  %v14797_v27 = vld [vmem:[%s18131_s6 + $0x78] sm:$0xe]  ;;  %22325 = vst [vmem:[#allocation9_spill] sm:$0xff] %v19419_v42 }
 0x118   : > { %16568 = vmatprep.mubr.bf16.mxu0 %v14760_v25  ;;  %v3834_v25 = vrot.slane %v14804_v23, 5  ;;  %v14833_v51 = vrot.slane %v14797_v27, 9  ;;  %v14837_v27 = vrot.slane %v14809_v63, 9 }
 0x11a   : > { %v3836_v54 = vrot.slane %v3834_v25, 4  ;;  %v19367_v23 = vsel %vm18242_vm5, %v14833_v51, %v3820_v19  ;;  %v19388_v19 = vsel %vm18242_vm5, %v14835_v18, %v3834_v25  ;;  %v19399_v51 = vld [vmem:[%s18131_s6 + $0xc8] sm:$0x1]  ;;  %v19408_v25 = vsel %vm18242_vm5, %v14837_v27, %v3848_v59 }
 0x11b   : > { %22324 = vst [vmem:[#allocation8_spill] sm:$0xff] %v19408_v25  ;;  %v3862_v18 = vrot.slane %v14816_v43, 5  ;;  %v14840_v59 = vrot.slane %v14818_v2, 9  ;;  %v3865_v27 = vrot.slane %v19399_v51, 5  ;;  %v14888_v51 = vld [vmem:[%s18131_s6 + $0x1c] sm:$0xf] }
 0x11c   : > { %v19392_v4 = vsel %vm18242_vm5, %v3836_v54, %v3837_v20  ;;  %v19422_v20 = vld [vmem:[%s18131_s6 + $0xdc] sm:$0xf]  ;;  %v14885_v54 = vld [vmem:[%s18131_s6 + $0x10] sm:$0xf]  ;;  %v4395_v36 = vshrl.u32 %v14888_v51, 16  ;;  %v4398_v40 = vshll.u32 %v14888_v51, 16 }
 0x11d   : > { %v22296_v38 = vrot.slane %v19422_v20, 5  ;;  %v19465_v43 = vsel %vm18242_vm5, %v14839_v37, %v3862_v18  ;;  %v3864_v2 = vrot.slane %v3862_v18, 4  ;;  %v4367_v48 = vshrl.u32 %v14885_v54, 16  ;;  %v14886_v37 = vld [vmem:[%s18131_s6 + $0x14] sm:$0x3] }
 0x11e   : > { %v4377_v47 = vshrl.u32 %v14886_v37, 16  ;;  %v4380_v12 = vshll.u32 %v14886_v37, 16  ;;  %v4397_v32 = vrot.slane %v4395_v36, 5  ;;  %v4400_v26 = vrot.slane %v4398_v40, 6 }
 0x11f   : > { %16569 = vmatmul.mubr.bf16.gmra.mrb[32].mxu0 %v14761_v30  ;;  %v14813_v30 = vld [vmem:[%s18131_s6 + $0xb8] sm:$0xf]  ;;  %v19480_v13 = vrot.slane %v22296_v38, 4  ;;  %v14893_v38 = vld [vmem:[%s18131_s6 + $0x30] sm:$0xe]  ;;  %v4369_v51 = vrot.slane %v4367_v48, 5 }
 0x120   : > { %16588 = vmatprep.mubr.bf16.mxu0 %v14858_v46  ;;  %v3844_v46 = vrot.slane %v14808_v57, 5  ;;  %v3855_v39 = vrot.slane %v14813_v30, 5  ;;  %v14838_v57 = vrot.slane %v14812_v49, 9  ;;  %v3869_v30 = vrot.slane %v14819_v1, 5  ;;  %v14890_v1 = vld [vmem:[%s18131_s6 + $0x24] sm:$0xe] }
 0x121   : > { %v4360_v49 = vrot.slane %v4358_v60, 5  ;;  %v14892_v60 = vld [vmem:[%s18131_s6 + $0x2c] sm:$0x3]  ;;  %v4382_v40 = vrot.slane %v4380_v12, 6 }
 0x122   : > { %v19404_v63 = vsel %vm18242_vm5, %v3843_v10, %v3844_v46  ;;  %v3857_v50 = vrot.slane %v3855_v39, 4  ;;  %v19444_v17 = vsel %vm18242_vm5, %v14838_v57, %v3855_v39  ;;  %v4361_v10 = vshll.u32 %v14884_v3, 16  ;;  %v17893_v39 = vld [vmem:[%s22291_s1 + $0x158] sm:$0xff]  }
 0x123   : > { %22323 = vst [vmem:[#allocation7_spill] sm:$0xff] %v19404_v63  ;;  %v19469_v57 = vsel %vm18242_vm5, %v14840_v59, %v3869_v30  ;;  %v19473_v3 = vrot.slane %v3869_v30, 4  ;;  %v4389_v59 = vshll.u32 %v14887_v9, 16  ;;  %v14889_v30 = vld [vmem:[%s18131_s6 + $0x20] sm:$0x3]  ;;  %v4436_v36 = vshll.u32 %v14892_v60, 16 }
 0x124   : > { %v19461_v14 = vsel %vm18242_vm5, %v3857_v50, %v3858_v24  ;;  %v4370_v24 = vshll.u32 %v14885_v54, 16  ;;  %v14891_v50 = vld [vmem:[%s18131_s6 + $0x28] sm:$0xf]  ;;  %v4363_v18 = vrot.slane %v4361_v10, 6  ;;  %v17894_v54 = vld [vmem:[%s22291_s1 + $0x160] sm:$0xff]   ;;  %v4414_v10 = vshrl.u32 %v14890_v1, 16 }
 0x125   : > { %v4423_v46 = vshrl.u32 %v14891_v50, 16  ;;  %v4426_v7 = vshll.u32 %v14891_v50, 16  ;;  %v4391_v50 = vrot.slane %v4389_v59, 6  ;;  %v4405_v42 = vshrl.u32 %v14889_v30, 16 }
 0x126   : > { %v4364_v33 = vor.u32 %v4363_v18, %v4360_v49  ;;  %v4408_v55 = vshll.u32 %v14889_v30, 16  ;;  %v14895_v49 = vld [vmem:[%s18131_s6 + $0x38] sm:$0x3]  ;;  %v4442_v18 = vshrl.u32 %v14893_v38, 16  ;;  %v4451_v59 = vshrl.u32 %v14894_v61, 16 }
 0x127   : > { %16589 = vmatmul.mubr.bf16.vlgmr.msra.gmra.mrb[0].mxu0 %v14859_v58  ;;  %v4386_v58 = vshrl.u32 %v14887_v9, 16  ;;  %v4417_v9 = vshll.u32 %v14890_v1, 16  ;;  %v4428_v37 = vrot.slane %v4426_v7, 6  ;;  %v4454_v30 = vshll.u32 %v14894_v61, 16  ;;  %v17896_v7 = vld [vmem:[%s22291_s1 + $0x170] sm:$0xff]  }
 0x128   : > { %16625 = vmatpush3.bf16.msra.mxu0 %v19163_v29  ;;  %16592 = vmatprep.mubr.bf16.mxu0 %v14860_v45  ;;  %v19438_v29 = vld [vmem:[%s18131_s6 + $0xd8] sm:$0xe]  ;;  %v19447_v45 = vld [vmem:[%s18131_s6 + $0xe0] sm:$0x1] }
 0x129   : > { %16626 = vmatprep.subr.bf16.mxu0 %v17891_v35  ;;  %v4388_v1 = vrot.slane %v4386_v58, 5  ;;  %v4419_v48 = vrot.slane %v4417_v9, 6  ;;  %v4445_v58 = vshll.u32 %v14893_v38, 16  ;;  %v4410_v9 = vrot.slane %v4408_v55, 6 }
 0x12a   : > { %v19512_v38 = vrot.slane %v4364_v33, 4  ;;  %v4453_v33 = vrot.slane %v4451_v59, 5  ;;  %v4456_v55 = vrot.slane %v4454_v30, 6  ;;  %v22328_v59 = vrot.slane %v19411_v28, 5 }
 0x12b   : > { %v4392_v63 = vor.u32 %v4391_v50, %v4388_v1  ;;  %v4447_v12 = vrot.slane %v4445_v58, 6  ;;  %v4461_v1 = vshrl.u32 %v14895_v49, 16  ;;  %v4438_v50 = vrot.slane %v4436_v36, 6 }
 0x12c   : > { %16627 = vmatpush3.bf16.msra.mxu0 %v17891_v35  ;;  %v4372_v35 = vrot.slane %v4370_v24, 6  ;;  %v4425_v24 = vrot.slane %v4423_v46, 5  ;;  %v22326_v46 = vcombine.low %v19311_v52, %v19319_v41  ;;  %v4444_v41 = vrot.slane %v4442_v18, 5 }
 0x12d   : > { %16628 = vmatprep.subr.bf16.mxu0 %v17892_v8  ;;  %v22329_v30 = vrot.slane %v19422_v20, 5  ;;  %v22332_v20 = vcombine.low %v19332_v21, %v19342_v34  ;;  %v19573_v34 = vld [vmem:[%s22291_s1 + $0x180] sm:$0xff]  }
 0x12e   : > { %v19504_v25 = vor.u32 %v4372_v35, %v4369_v51  ;;  %v14896_v35 = vld [vmem:[%s18131_s6 + $0x3c] sm:$0xe]  ;;  %v14897_v51 = vld [vmem:[%s18131_s6 + $0x40] sm:$0xf]  ;;  %v4448_v18 = vor.u32 %v4447_v12, %v4444_v41  ;;  %v14872_v41 = vcombine.low %v19444_v17, %v19461_v14 }
 0x12f   : > { %16593 = vmatmul.mubr.bf16.gmra.mrb[4].mxu0 %v14861_v62  ;;  %v19497_v62 = vsel %vm18242_vm5, %v3864_v2, %v3865_v27  ;;  %v4379_v27 = vrot.slane %v4377_v47, 5  ;;  %v4433_v2 = vshrl.u32 %v14892_v60, 16  ;;  %v19516_v47 = vor.u32 %v4428_v37, %v4425_v24 }
 0x130   : > { %16596 = vmatprep.mubr.bf16.mxu0 %v14862_v16  ;;  %16629 = vmatpush3.bf16.msra.mxu0 %v17892_v8  ;;  %v17895_v16 = vld [vmem:[%s22291_s1 + $0x168] sm:$0xff]   ;;  %v4416_v8 = vrot.slane %v4414_v10, 5  ;;  %v4407_v10 = vrot.slane %v4405_v42, 5  ;;  %v22327_v42 = vcombine.low %v19323_v44, %v19328_v31  ;;  %v4470_v44 = vshrl.u32 %v14896_v35, 16 }
 0x131   : > { %16630 = vmatprep.subr.bf16.mxu0 %v17893_v39  ;;  %v4435_v52 = vrot.slane %v4433_v2, 5  ;;  %v4383_v61 = vor.u32 %v4382_v40, %v4379_v27  ;;  %v4473_v31 = vshll.u32 %v14896_v35, 16  ;;  %v4431_v2 = vrot.slane %v19516_v47, 4 }
 0x132   : > { %v4420_v60 = vor.u32 %v4419_v48, %v4416_v8  ;;  %v4393_v8 = vrot.slane %v4392_v63, 4  ;;  %v4411_v48 = vor.u32 %v4410_v9, %v4407_v10  ;;  %v4479_v58 = vshrl.u32 %v14897_v51, 16 }
 0x133   : > { %v4439_v63 = vor.u32 %v4438_v50, %v4435_v52  ;;  %v4457_v27 = vor.u32 %v4456_v55, %v4453_v33  ;;  %v4482_v36 = vshll.u32 %v14897_v51, 16  ;;  %v22330_v10 = vrot.slane %v19438_v29, 9  ;;  %v14899_v51 = vld [vmem:[%s18131_s6 + $0x48] sm:$0xe]  ;;  %v14900_v50 = vld [vmem:[%s18131_s6 + $0x4c] sm:$0xf] }
 0x134   : > { %16631 = vmatpush3.bf16.msra.mxu0 %v17893_v39  ;;  %v19514_v39 = vor.u32 %v4400_v26, %v4397_v32  ;;  %v4464_v26 = vshll.u32 %v14895_v49, 16  ;;  %v4375_v32 = vrot.slane %v19504_v25, 4  ;;  %v4421_v37 = vrot.slane %v4420_v60, 4 }
 0x135   : > { %16632 = vmatprep.subr.bf16.mxu0 %v17894_v54  ;;  %v4463_v49 = vrot.slane %v4461_v1, 5  ;;  %v19542_v9 = vsel %vm18242_vm5, %v22330_v10, %v22329_v30  ;;  %v4374_v28 = vsel %vm18582_vm8, %v19512_v38, %v19504_v25  ;;  %v4472_v35 = vrot.slane %v4470_v44, 5  ;;  %v14903_v44 = vld [vmem:[%s18131_s6 + $0x58] sm:$0xf] }
 0x136   : > { %v4403_v24 = vrot.slane %v19514_v39, 4  ;;  %v4466_v40 = vrot.slane %v4464_v26, 6  ;;  %v4384_v29 = vsel %vm18582_vm8, %v4375_v32, %v4383_v61  ;;  %v4430_v25 = vsel %vm18582_vm8, %v4421_v37, %v19516_v47  ;;  %v14902_v37 = vld [vmem:[%s18131_s6 + $0x54] sm:$0xe] }
 0x137   : > { %16597 = vmatmul.mubr.bf16.gmra.mrb[8].mxu0 %v22326_v46  ;;  %v22331_v46 = vrot.slane %v19447_v45, 5  ;;  %v4402_v45 = vsel %vm18582_vm8, %v4393_v8, %v19514_v39  ;;  %v4449_v38 = vrot.slane %v4448_v18, 4  ;;  %v4481_v39 = vrot.slane %v4479_v58, 5 }
 0x138   : > { %16600 = vmatprep.mubr.bf16.mxu0 %v22327_v42  ;;  %16633 = vmatpush3.bf16.msra.mxu0 %v17894_v54  ;;  %v17897_v54 = vld [vmem:[%s22291_s1 + $0x178] sm:$0xff]   ;;  %v22333_v42 = vcombine.low %v19336_v11, %v19347_v22  ;;  %v4412_v21 = vsel %vm18582_vm8, %v4403_v24, %v4411_v48  ;;  %v4440_v11 = vsel %vm18582_vm8, %v4431_v2, %v4439_v63  ;;  %v4459_v22 = vrot.slane %v4457_v27, 4  ;;  %v14906_v63 = vld [vmem:[%s18131_s6 + $0x64] sm:$0xf] }
 0x139   : > { %16634 = vmatprep.subr.bf16.mxu0 %v17895_v16  ;;  %v19549_v60 = vsel %vm18242_vm5, %v19480_v13, %v22331_v46  ;;  %v4475_v13 = vrot.slane %v4473_v31, 6  ;;  %v4484_v52 = vrot.slane %v4482_v36, 6  ;;  %v4498_v33 = vshrl.u32 %v14899_v51, 16  ;;  %v14905_v31 = vld [vmem:[%s18131_s6 + $0x60] sm:$0xe] }
 0x13a   : > { %v14873_v47 = vcombine.low %v19465_v43, %v19497_v62  ;;  %v14875_v26 = vcombine.low %v19542_v9, %v19549_v60  ;;  %v19589_v61 = vcombine.low %v4374_v28, %v4384_v29  ;;  %v19591_v8 = vcombine.low %v4402_v45, %v4412_v21  ;;  %v14904_v46 = vld [vmem:[%s18131_s6 + $0x5c] sm:$0x3] }
 0x13b   : > { %v4476_v32 = vor.u32 %v4475_v13, %v4472_v35  ;;  %v19593_v48 = vcombine.low %v4430_v25, %v4440_v11  ;;  %v4458_v24 = vsel %vm18582_vm8, %v4449_v38, %v4457_v27  ;;  %v19603_v18 = vor.u32 %v4484_v52, %v4481_v39  ;;  %v14907_v11 = vld [vmem:[%s18131_s6 + $0x68] sm:$0x3] }
 0x13c   : > { %16635 = vmatpush3.bf16.msra.mxu0 %v17895_v16  ;;  %v19534_v16 = vsel %vm18242_vm5, %v19473_v3, %v22328_v59  ;;  %v14898_v3 = vld [vmem:[%s18131_s6 + $0x44] sm:$0x3]  ;;  %v4507_v58 = vshrl.u32 %v14900_v50, 16  ;;  %v19611_v27 = vrot.slane %v4498_v33, 5  ;;  %v4510_v59 = vshll.u32 %v14900_v50, 16 }
 0x13d   : > { %16636 = vmatprep.subr.bf16.mxu0 %v17896_v7  ;;  %v4489_v12 = vshrl.u32 %v14898_v3, 16  ;;  %v4492_v1 = vshll.u32 %v14898_v3, 16  ;;  %v14874_v55 = vcombine.low %v19469_v57, %v19534_v16  ;;  %v22334_v30 = vcombine.low %v19367_v23, %v19371_v15 }
 0x13e   : > { %v19616_v10 = vrot.slane %v4476_v32, 4  ;;  %v4526_v28 = vshrl.u32 %v14902_v37, 16  ;;  %v4535_v29 = vshrl.u32 %v14903_v44, 16  ;;  %v22335_v45 = vcombine.low %v19375_v6, %v19379_v0 }
 0x13f   : > { %16601 = vmatmul.mubr.bf16.gmra.mrb[12].mxu0 %v22332_v20  ;;  %v19609_v36 = vrot.slane %v4492_v1, 6  ;;  %v4529_v20 = vshll.u32 %v14902_v37, 16  ;;  %v4538_v35 = vshll.u32 %v14903_v44, 16  ;;  %v4554_v13 = vshrl.u32 %v14905_v31, 16 }
 0x140   : > { %16604 = vmatprep.mubr.bf16.mxu0 %v22333_v42  ;;  %16637 = vmatpush3.bf16.msra.mxu0 %v17896_v7  ;;  %v4467_v7 = vor.u32 %v4466_v40, %v4463_v49  ;;  %v4501_v49 = vshll.u32 %v14899_v51, 16  ;;  %v19607_v40 = vrot.slane %v4489_v12, 5  ;;  %v4557_v51 = vshll.u32 %v14905_v31, 16  ;;  %v14908_v12 = vld [vmem:[%s18131_s6 + $0x6c] sm:$0xe] }
 0x141   : > { %16638 = vmatprep.subr.bf16.mxu0 %v17897_v54  ;;  %v4487_v23 = vrot.slane %v19603_v18, 4  ;;  %v4509_v42 = vrot.slane %v4507_v58, 5  ;;  %v4563_v21 = vshrl.u32 %v14906_v63, 16  ;;  %v4512_v25 = vrot.slane %v4510_v59, 6 }
 0x142   : > { %v4468_v2 = vsel %vm18582_vm8, %v4459_v22, %v4467_v7  ;;  %v4503_v15 = vrot.slane %v4501_v49, 6  ;;  %v4566_v22 = vshll.u32 %v14906_v63, 16  ;;  %v4528_v7 = vrot.slane %v4526_v28, 5  ;;  %v14910_v28 = vld [vmem:[%s18131_s6 + $0x74] sm:$0x3] }
 0x143   : > { %v19622_v3 = vcombine.low %v4458_v24, %v4468_v2  ;;  %v4531_v6 = vrot.slane %v4529_v20, 6  ;;  %v4537_v0 = vrot.slane %v4535_v29, 5  ;;  %v4545_v52 = vshrl.u32 %v14904_v46, 16  ;;  %v14909_v24 = vld [vmem:[%s18131_s6 + $0x70] sm:$0xf] }
 0x144   : > { %16639 = vmatpush3.bf16.msra.mxu0 %v17897_v54  ;;  %v14901_v54 = vld [vmem:[%s18131_s6 + $0x50] sm:$0x3]  ;;  %v4540_v1 = vrot.slane %v4538_v35, 6  ;;  %v4548_v50 = vshll.u32 %v14904_v46, 16  ;;  %v4556_v33 = vrot.slane %v4554_v13, 5  ;;  %v4559_v32 = vrot.slane %v4557_v51, 6 }
 0x145   : > { %16676 = vmatprep.subr.bf16.mxu0 %v19573_v34  ;;  %v4517_v38 = vshrl.u32 %v14901_v54, 16  ;;  %v4520_v39 = vshll.u32 %v14901_v54, 16  ;;  %v4486_v37 = vsel %vm18582_vm8, %v19616_v10, %v19603_v18  ;;  %v4495_v44 = vor.u32 %v19609_v36, %v19607_v40  ;;  %v22337_v18 = vld [vmem:[#allocation7_spill] sm:$0xff] }
 0x146   : > { %v4565_v31 = vrot.slane %v4563_v21, 5  ;;  %v4573_v2 = vshrl.u32 %v14907_v11, 16  ;;  %v4568_v54 = vrot.slane %v4566_v22, 6  ;;  %v4576_v49 = vshll.u32 %v14907_v11, 16 }
 0x147   : > { %16605 = vmatmul.mubr.bf16.gmra.mrb[16].mxu0 %v22334_v30  ;;  %v4582_v58 = vshrl.u32 %v14908_v12, 16  ;;  %v4585_v63 = vshll.u32 %v14908_v12, 16  ;;  %v22336_v59 = vcombine.low %v19388_v19, %v19392_v4  ;;  %v4504_v30 = vor.u32 %v4503_v15, %v19611_v27 }
 0x148   : > { %16608 = vmatprep.mubr.bf16.mxu0 %v22335_v45  ;;  %v4519_v46 = vrot.slane %v4517_v38, 5  ;;  %v4591_v20 = vshrl.u32 %v14909_v24, 16  ;;  %v4594_v29 = vshll.u32 %v14909_v24, 16  ;;  %v22338_v10 = vcombine.low %v19396_v5, %v22337_v18  ;;  %v14911_v24 = vld [vmem:[%s18131_s6 + $0x78] sm:$0xe] }
 0x149   : > { %v4513_v40 = vor.u32 %v4512_v25, %v4509_v42  ;;  %v4522_v36 = vrot.slane %v4520_v39, 6  ;;  %v4532_v45 = vor.u32 %v4531_v6, %v4528_v7  ;;  %v4547_v35 = vrot.slane %v4545_v52, 5  ;;  %v14912_v6 = vld [vmem:[%s18131_s6 + $0x7c] sm:$0xf] }
 0x14a   : > { %v4541_v13 = vor.u32 %v4540_v1, %v4537_v0  ;;  %v4550_v51 = vrot.slane %v4548_v50, 6  ;;  %v4560_v19 = vor.u32 %v4559_v32, %v4556_v33  ;;  %v4575_v4 = vrot.slane %v4573_v2, 5 }
 0x14b   : > { %v4569_v21 = vor.u32 %v4568_v54, %v4565_v31  ;;  %v4578_v27 = vrot.slane %v4576_v49, 6  ;;  %v4584_v15 = vrot.slane %v4582_v58, 5  ;;  %v4587_v38 = vrot.slane %v4585_v63, 6  ;;  %v14914_v54 = vld [vmem:[%s18131_s6 + $0x84] sm:$0xe]  ;;  %v22339_v49 = vld [vmem:[#allocation8_spill] sm:$0xff] }
 0x14c   : > { %v4593_v11 = vrot.slane %v4591_v20, 5  ;;  %v4596_v22 = vrot.slane %v4594_v29, 6  ;;  %v4601_v12 = vshrl.u32 %v14910_v28, 16  ;;  %v4604_v5 = vshll.u32 %v14910_v28, 16  ;;  %v22340_v58 = vld [vmem:[#allocation9_spill] sm:$0xff] }
 0x14d   : > { %v4505_v42 = vrot.slane %v4504_v30, 4  ;;  %v4515_v25 = vrot.slane %v4513_v40, 4  ;;  %v4523_v39 = vor.u32 %v4522_v36, %v4519_v46  ;;  %v4533_v7 = vrot.slane %v4532_v45, 4  ;;  %v14913_v29 = vld [vmem:[%s18131_s6 + $0x80] sm:$0x3] }
 0x14e   : > { %v4496_v0 = vsel %vm18582_vm8, %v4487_v23, %v4495_v44  ;;  %v4543_v52 = vrot.slane %v4541_v13, 4  ;;  %v4551_v1 = vor.u32 %v4550_v51, %v4547_v35  ;;  %v4561_v50 = vrot.slane %v4560_v19, 4  ;;  %v14917_v51 = vld [vmem:[%s18131_s6 + $0x90] sm:$0xe] }
 0x14f   : > { %16609 = vmatmul.mubr.bf16.gmra.mrb[20].mxu0 %v22336_v59  ;;  %v4571_v33 = vrot.slane %v4569_v21, 4  ;;  %v4579_v32 = vor.u32 %v4578_v27, %v4575_v4  ;;  %v4588_v31 = vor.u32 %v4587_v38, %v4584_v15  ;;  %v4610_v2 = vshrl.u32 %v14911_v24, 16  ;;  %v14918_v15 = vld [vmem:[%s18131_s6 + $0x94] sm:$0xf] }
 0x150   : > { %16612 = vmatprep.mubr.bf16.mxu0 %v22338_v10  ;;  %v22341_v63 = vcombine.low %v22339_v49, %v22340_v58  ;;  %v19650_v59 = vor.u32 %v4596_v22, %v4593_v11  ;;  %v4603_v30 = vrot.slane %v4601_v12, 5  ;;  %v4606_v46 = vrot.slane %v4604_v5, 6 }
 0x151   : > { %v4613_v28 = vshll.u32 %v14911_v24, 16  ;;  %v19655_v23 = vcombine.low %v4486_v37, %v4496_v0  ;;  %v4514_v44 = vsel %vm18582_vm8, %v4505_v42, %v4513_v40  ;;  %v4524_v20 = vsel %vm18582_vm8, %v4515_v25, %v4523_v39  ;;  %v14915_v40 = vld [vmem:[%s18131_s6 + $0x88] sm:$0xf] }
 0x152   : > { %v4619_v18 = vshrl.u32 %v14912_v6, 16  ;;  %v4542_v10 = vsel %vm18582_vm8, %v4533_v7, %v4541_v13  ;;  %v4622_v36 = vshll.u32 %v14912_v6, 16  ;;  %v4638_v45 = vshrl.u32 %v14914_v54, 16  ;;  %v14916_v6 = vld [vmem:[%s18131_s6 + $0x8c] sm:$0x3] }
 0x153   : > { %v4641_v35 = vshll.u32 %v14914_v54, 16  ;;  %v4552_v17 = vsel %vm18582_vm8, %v4543_v52, %v4551_v1  ;;  %v4570_v14 = vsel %vm18582_vm8, %v4561_v50, %v4569_v21  ;;  %v4589_v37 = vrot.slane %v4588_v31, 4  ;;  %v14921_v31 = vld [vmem:[%s18131_s6 + $0xa0] sm:$0xf] }
 0x154   : > { %v4599_v19 = vrot.slane %v19650_v59, 4  ;;  %v4607_v4 = vor.u32 %v4606_v46, %v4603_v30  ;;  %v4612_v13 = vrot.slane %v4610_v2, 5  ;;  %v4615_v27 = vrot.slane %v4613_v28, 6 }
 0x155   : > { %v19674_v38 = vcombine.low %v4514_v44, %v4524_v20  ;;  %v4621_v11 = vrot.slane %v4619_v18, 5  ;;  %v4629_v22 = vshrl.u32 %v14913_v29, 16  ;;  %v4632_v12 = vshll.u32 %v14913_v29, 16  ;;  %v14919_v44 = vld [vmem:[%s18131_s6 + $0x98] sm:$0x3] }
 0x156   : > { %v4624_v21 = vrot.slane %v4622_v36, 6  ;;  %v4640_v5 = vrot.slane %v4638_v45, 5  ;;  %v4643_v24 = vrot.slane %v4641_v35, 6  ;;  %v4647_v42 = vshrl.u32 %v14915_v40, 16  ;;  %v14922_v45 = vld [vmem:[%s18131_s6 + $0xa4] sm:$0x3] }
 0x157   : > { %16613 = vmatmul.mubr.bf16.gmra.mrb[24].mxu0 %v22341_v63  ;;  %v19676_v25 = vcombine.low %v4542_v10, %v4552_v17  ;;  %v4598_v7 = vsel %vm18582_vm8, %v4589_v37, %v19650_v59  ;;  %v4650_v0 = vshll.u32 %v14915_v40, 16  ;;  %v4608_v52 = vsel %vm18582_vm8, %v4599_v19, %v4607_v4  ;;  %v14923_v35 = vld [vmem:[%s18131_s6 + $0xa8] sm:$0xe] }
 0x158   : > { %16616 = vmatprep.mubr.bf16.mxu0 %v14872_v41  ;;  %v4580_v41 = vsel %vm18582_vm8, %v4571_v33, %v4579_v32  ;;  %v4616_v1 = vor.u32 %v4615_v27, %v4612_v13  ;;  %v4666_v50 = vshrl.u32 %v14917_v51, 16  ;;  %v4669_v33 = vshll.u32 %v14917_v51, 16  ;;  %v14920_v32 = vld [vmem:[%s18131_s6 + $0x9c] sm:$0xe] }
 0x159   : > { %v19678_v39 = vcombine.low %v4570_v14, %v4580_v41  ;;  %v4631_v2 = vrot.slane %v4629_v22, 5  ;;  %v4634_v54 = vrot.slane %v4632_v12, 6  ;;  %v4675_v49 = vshrl.u32 %v14918_v15, 16  ;;  %v14924_v22 = vld [vmem:[%s18131_s6 + $0xac] sm:$0xf] }
 0x15a   : > { %v4678_v58 = vshll.u32 %v14918_v15, 16  ;;  %v19694_v63 = vor.u32 %v4624_v21, %v4621_v11  ;;  %v4644_v43 = vor.u32 %v4643_v24, %v4640_v5  ;;  %v4649_v62 = vrot.slane %v4647_v42, 5 }
 0x15b   : > { %v4652_v59 = vrot.slane %v4650_v0, 6  ;;  %v4660_v30 = vshll.u32 %v14916_v6, 16  ;;  %v4694_v46 = vshrl.u32 %v14920_v32, 16  ;;  %v4697_v28 = vshll.u32 %v14920_v32, 16 }
 0x15c   : > { %v4668_v20 = vrot.slane %v4666_v50, 5  ;;  %v4671_v29 = vrot.slane %v4669_v33, 6  ;;  %v4703_v57 = vshrl.u32 %v14921_v31, 16  ;;  %v4706_v16 = vshll.u32 %v14921_v31, 16  ;;  %v17899_v50 = vld [vmem:[%s22291_s1 + $0x188] sm:$0xff]  }
 0x15d   : > { %v19699_v18 = vrot.slane %v4616_v1, 4  ;;  %v4677_v10 = vrot.slane %v4675_v49, 5  ;;  %v4680_v36 = vrot.slane %v4678_v58, 6  ;;  %v4627_v17 = vrot.slane %v19694_v63, 4  ;;  %v14927_v1 = vld [vmem:[%s18131_s6 + $0xb8] sm:$0xf] }
 0x15e   : > { %v4635_v14 = vor.u32 %v4634_v54, %v4631_v2  ;;  %v19704_v41 = vrot.slane %v4644_v43, 4  ;;  %v19708_v40 = vor.u32 %v4652_v59, %v4649_v62  ;;  %v19710_v51 = vrot.slane %v4660_v30, 6  ;;  %v14925_v2 = vld [vmem:[%s18131_s6 + $0xb0] sm:$0x3]  ;;  %v14929_v49 = vld [vmem:[%s18131_s6 + $0xc0] sm:$0xe] }
 0x15f   : > { %16617 = vmatmul.mubr.bf16.gmra.mrb[28].mxu0 %v14873_v47  ;;  %v4657_v47 = vshrl.u32 %v14916_v6, 16  ;;  %v4696_v19 = vrot.slane %v4694_v46, 5  ;;  %v4699_v4 = vrot.slane %v4697_v28, 6  ;;  %v4672_v13 = vor.u32 %v4671_v29, %v4668_v20  ;;  %v14930_v59 = vld [vmem:[%s18131_s6 + $0xc4] sm:$0xf] }
 0x160   : > { %16620 = vmatprep.mubr.bf16.mxu0 %v14874_v55  ;;  %v19697_v55 = vcombine.low %v4598_v7, %v4608_v52  ;;  %v4685_v27 = vshrl.u32 %v14919_v44, 16  ;;  %v4705_v15 = vrot.slane %v4703_v57, 5  ;;  %v4708_v11 = vrot.slane %v4706_v16, 6  ;;  %v14926_v52 = vld [vmem:[%s18131_s6 + $0xb4] sm:$0xe] }
 0x161   : > { %v19706_v37 = vrot.slane %v4657_v47, 5  ;;  %v19717_v12 = vor.u32 %v4680_v36, %v4677_v10  ;;  %v4688_v21 = vshll.u32 %v14919_v44, 16  ;;  %v4722_v5 = vshrl.u32 %v14923_v35, 16  ;;  %v14928_v28 = vld [vmem:[%s18131_s6 + $0xbc] sm:$0x3] }
 0x162   : > { %v4725_v24 = vshll.u32 %v14923_v35, 16  ;;  %v4626_v9 = vsel %vm18582_vm8, %v19699_v18, %v19694_v63  ;;  %v19725_v60 = vsel %vm18582_vm8, %v4627_v17, %v4635_v14  ;;  %v4655_v42 = vrot.slane %v19708_v40, 4  ;;  %v14931_v35 = vld [vmem:[%s18131_s6 + $0xc8] sm:$0x3] }
 0x163   : > { %v4663_v7 = vor.u32 %v19710_v51, %v19706_v37  ;;  %v4700_v6 = vor.u32 %v4699_v4, %v4696_v19  ;;  %v4716_v0 = vshll.u32 %v14922_v45, 16  ;;  %v19739_v33 = vrot.slane %v4672_v13, 4  ;;  %v17900_v37 = vld [vmem:[%s22291_s1 + $0x190] sm:$0xff]  }
 0x164   : > { %v19741_v32 = vrot.slane %v4685_v27, 5  ;;  %v19743_v31 = vor.u32 %v4708_v11, %v4705_v15  ;;  %v4731_v54 = vshrl.u32 %v14924_v22, 16  ;;  %v4683_v58 = vrot.slane %v19717_v12, 4 }
 0x165   : > { %v19748_v43 = vrot.slane %v4688_v21, 6  ;;  %v4724_v62 = vrot.slane %v4722_v5, 5  ;;  %v4727_v47 = vrot.slane %v4725_v24, 6  ;;  %v4734_v46 = vshll.u32 %v14924_v22, 16  ;;  %v14933_v21 = vld [vmem:[%s18131_s6 + $0xd0] sm:$0xf] }
 0x166   : > { %v4750_v44 = vshrl.u32 %v14926_v52, 16  ;;  %v4753_v20 = vshll.u32 %v14926_v52, 16  ;;  %v19754_v29 = vrot.slane %v4700_v6, 4  ;;  %v19756_v57 = vrot.slane %v4716_v0, 6 }
 0x167   : > { %16621 = vmatmul.mubr.bf16.gmra.mrb[32].mxu0 %v14875_v26  ;;  %v4654_v26 = vsel %vm18582_vm8, %v19704_v41, %v19708_v40  ;;  %v4759_v16 = vshrl.u32 %v14927_v1, 16  ;;  %v4762_v10 = vshll.u32 %v14927_v1, 16  ;;  %v4711_v36 = vrot.slane %v19743_v31, 4 }
 0x168   : > { %16640 = vmatprep.mubr.bf16.mxu0 %v19589_v61  ;;  %v4713_v61 = vshrl.u32 %v14922_v45, 16  ;;  %v4733_v45 = vrot.slane %v4731_v54, 5  ;;  %v4778_v17 = vshrl.u32 %v14929_v49, 16  ;;  %v4781_v14 = vshll.u32 %v14929_v49, 16 }
 0x169   : > { %v4728_v51 = vor.u32 %v4727_v47, %v4724_v62  ;;  %v4741_v19 = vshrl.u32 %v14925_v2, 16  ;;  %v4787_v4 = vshrl.u32 %v14930_v59, 16  ;;  %v4790_v13 = vshll.u32 %v14930_v59, 16 }
 0x16a   : > { %v19751_v30 = vrot.slane %v4713_v61, 5  ;;  %v4736_v27 = vrot.slane %v4734_v46, 6  ;;  %v4744_v15 = vshll.u32 %v14925_v2, 16  ;;  %v4752_v11 = vrot.slane %v4750_v44, 5 }
 0x16b   : > { %v4755_v22 = vrot.slane %v4753_v20, 6  ;;  %v4761_v5 = vrot.slane %v4759_v16, 5  ;;  %v4764_v24 = vrot.slane %v4762_v10, 6  ;;  %v4772_v61 = vshll.u32 %v14928_v28, 16 }
 0x16c   : > { %v19773_v6 = vsel %vm18582_vm8, %v4655_v42, %v4663_v7  ;;  %v4682_v0 = vsel %vm18582_vm8, %v19739_v33, %v19717_v12  ;;  %v4780_v52 = vrot.slane %v4778_v17, 5  ;;  %v4783_v1 = vrot.slane %v4781_v14, 6  ;;  %v14935_v14 = vld [vmem:[%s18131_s6 + $0xd8] sm:$0xe]  ;;  %v14982_v12 = vld [vmem:[%s18131_s6 + $0x20] sm:$0x1] }
 0x16d   : > { %v4789_v2 = vrot.slane %v4787_v4, 5  ;;  %v4792_v54 = vrot.slane %v4790_v13, 6  ;;  %v4797_v49 = vshrl.u32 %v14931_v35, 16  ;;  %v4800_v62 = vshll.u32 %v14931_v35, 16  ;;  %v14936_v13 = vld [vmem:[%s18131_s6 + $0xdc] sm:$0xf] }
 0x16e   : > { %v4691_v47 = vor.u32 %v19748_v43, %v19741_v32  ;;  %v4719_v42 = vor.u32 %v19756_v57, %v19751_v30  ;;  %v19783_v46 = vrot.slane %v4728_v51, 4  ;;  %v4815_v44 = vshrl.u32 %v14933_v21, 16  ;;  %v14934_v32 = vld [vmem:[%s18131_s6 + $0xd4] sm:$0x3]  ;;  %v14986_v33 = vld [vmem:[%s18131_s6 + $0x30] sm:$0xf] }
 0x16f   : > { %16641 = vmatmul.mubr.bf16.vlgmr.msra.gmra.mrb[0].mxu0 %v19591_v8  ;;  %v14932_v8 = vld [vmem:[%s18131_s6 + $0xcc] sm:$0xe]  ;;  %v19786_v20 = vor.u32 %v4736_v27, %v4733_v45  ;;  %v4746_v16 = vrot.slane %v4744_v15, 6  ;;  %v4756_v10 = vor.u32 %v4755_v22, %v4752_v11  ;;  %v19790_v43 = vor.u32 %v4764_v24, %v4761_v5 }
 0x170   : > { %16677 = vmatpush3.bf16.msra.mxu0 %v19573_v34  ;;  %16644 = vmatprep.mubr.bf16.mxu0 %v19593_v48  ;;  %v4769_v34 = vshrl.u32 %v14928_v28, 16  ;;  %v17901_v48 = vld [vmem:[%s22291_s1 + $0x198] sm:$0xff]   ;;  %v4806_v7 = vshrl.u32 %v14932_v8, 16  ;;  %v4809_v59 = vshll.u32 %v14932_v8, 16  ;;  %v4743_v28 = vrot.slane %v4741_v19, 5  ;;  %v17903_v15 = vld [vmem:[%s22291_s1 + $0x1a8] sm:$0xff]  }
 0x171   : > { %16678 = vmatprep.subr.bf16.mxu0 %v17899_v50  ;;  %v4774_v30 = vrot.slane %v4772_v61, 6  ;;  %v4784_v57 = vor.u32 %v4783_v1, %v4780_v52  ;;  %v4799_v17 = vrot.slane %v4797_v49, 5  ;;  %v19796_v45 = vor.u32 %v4792_v54, %v4789_v2 }
 0x172   : > { %v4771_v35 = vrot.slane %v4769_v34, 5  ;;  %v4802_v51 = vrot.slane %v4800_v62, 6  ;;  %v4808_v19 = vrot.slane %v4806_v7, 5  ;;  %v4811_v4 = vrot.slane %v4809_v59, 6 }
 0x173   : > { %v4817_v8 = vrot.slane %v4815_v44, 5  ;;  %v4828_v27 = vshll.u32 %v14934_v32, 16  ;;  %v4739_v11 = vrot.slane %v19786_v20, 4  ;;  %v4747_v22 = vor.u32 %v4746_v16, %v4743_v28 }
 0x174   : > { %16679 = vmatpush3.bf16.msra.mxu0 %v17899_v50  ;;  %v4818_v50 = vshll.u32 %v14933_v21, 16  ;;  %v4834_v21 = vshrl.u32 %v14935_v14, 16  ;;  %v4837_v5 = vshll.u32 %v14935_v14, 16  ;;  %v4757_v24 = vrot.slane %v4756_v10, 4 }
 0x175   : > { %16680 = vmatprep.subr.bf16.mxu0 %v17900_v37  ;;  %v4767_v34 = vrot.slane %v19790_v43, 4  ;;  %v4843_v61 = vshrl.u32 %v14936_v13, 16  ;;  %v4846_v52 = vshll.u32 %v14936_v13, 16  ;;  %v4775_v1 = vor.u32 %v4774_v30, %v4771_v35 }
 0x176   : > { %v4785_v2 = vrot.slane %v4784_v57, 4  ;;  %v4795_v54 = vrot.slane %v19796_v45, 4  ;;  %v4803_v49 = vor.u32 %v4802_v51, %v4799_v17  ;;  %v4812_v62 = vor.u32 %v4811_v4, %v4808_v19  ;;  %v17905_v19 = vld [vmem:[%s22291_s1 + $0x1b8] sm:$0xff]  }
 0x177   : > { %16645 = vmatmul.mubr.bf16.gmra.mrb[4].mxu0 %v19622_v3  ;;  %v17902_v3 = vld [vmem:[%s22291_s1 + $0x1a0] sm:$0xff]   ;;  %v4830_v28 = vrot.slane %v4828_v27, 6  ;;  %v4710_v44 = vsel %vm18582_vm8, %v19754_v29, %v19743_v31  ;;  %v4839_v16 = vrot.slane %v4837_v5, 6  ;;  %v4845_v10 = vrot.slane %v4843_v61, 5  ;;  %v14980_v29 = vld [vmem:[%s18131_s6 + $0x18] sm:$0xf] }
 0x178   : > { %16648 = vmatprep.mubr.bf16.mxu0 %v19655_v23  ;;  %16681 = vmatpush3.bf16.msra.mxu0 %v17900_v37  ;;  %v4820_v23 = vrot.slane %v4818_v50, 6  ;;  %v4825_v37 = vshrl.u32 %v14934_v32, 16  ;;  %v4836_v50 = vrot.slane %v4834_v21, 5  ;;  %v4848_v35 = vrot.slane %v4846_v52, 6  ;;  %v14989_v21 = vld [vmem:[%s18131_s6 + $0x3c] sm:$0xf] }
 0x179   : > { %16682 = vmatprep.subr.bf16.mxu0 %v17901_v48  ;;  %v4748_v32 = vsel %vm18582_vm8, %v4739_v11, %v4747_v22  ;;  %v4766_v31 = vsel %vm18582_vm8, %v4757_v24, %v19790_v43  ;;  %v19843_v30 = vrot.slane %v4812_v62, 4  ;;  %v5339_v51 = vshrl.u32 %v14980_v29, 16  ;;  %v14990_v52 = vld [vmem:[%s18131_s6 + $0x40] sm:$0xf] }
 0x17a   : > { %v19805_v7 = vor.u32 %v4820_v23, %v4817_v8  ;;  %v4827_v59 = vrot.slane %v4825_v37, 5  ;;  %v4840_v14 = vor.u32 %v4839_v16, %v4836_v50  ;;  %v19855_v4 = vor.u32 %v4848_v35, %v4845_v10  ;;  %v14983_v23 = vld [vmem:[%s18131_s6 + $0x24] sm:$0xf] }
 0x17b   : > { %v5342_v13 = vshll.u32 %v14980_v29, 16  ;;  %v14964_v63 = vcombine.low %v4654_v26, %v19773_v6  ;;  %v14984_v26 = vld [vmem:[%s18131_s6 + $0x28] sm:$0xf]  ;;  %v14987_v6 = vld [vmem:[%s18131_s6 + $0x34] sm:$0xf]  ;;  %v5341_v22 = vrot.slane %v5339_v51, 4 }
 0x17c   : > { %16683 = vmatpush3.bf16.msra.mxu0 %v17901_v48  ;;  %v4692_v48 = vsel %vm18582_vm8, %v4683_v58, %v4691_v47  ;;  %v4738_v58 = vsel %vm18582_vm8, %v19783_v46, %v19786_v20  ;;  %v14937_v47 = vld [vmem:[%s18131_s6 + $0xe0] sm:$0x3]  ;;  %v14981_v46 = vld [vmem:[%s18131_s6 + $0x1c] sm:$0xf]  ;;  %v4804_v20 = vsel %vm18582_vm8, %v4795_v54, %v4803_v49  ;;  %v4823_v57 = vrot.slane %v19805_v7, 4 }
 0x17d   : > { %16684 = vmatprep.subr.bf16.mxu0 %v17902_v3  ;;  %v4831_v17 = vor.u32 %v4830_v28, %v4827_v59  ;;  %v4856_v43 = vshll.u32 %v14937_v47, 16  ;;  %v5348_v8 = vshll.u32 %v14981_v46, 16  ;;  %v19868_v18 = vcombine.low %v4682_v0, %v4692_v48  ;;  %v19901_v49 = vld [vmem:[%s22291_s1 + $0x1c0] sm:$0xff]  }
 0x17e   : > { %v4822_v41 = vsel %vm18582_vm8, %v19843_v30, %v19805_v7  ;;  %v19890_v0 = vrot.slane %v4840_v14, 4  ;;  %v4851_v5 = vrot.slane %v19855_v4, 4  ;;  %v5344_v24 = vrot.slane %v5342_v13, 5  ;;  %v14991_v51 = vld [vmem:[%s18131_s6 + $0x44] sm:$0x1] }
 0x17f   : > { %16649 = vmatmul.mubr.bf16.gmra.mrb[8].mxu0 %v19674_v38  ;;  %v4720_v38 = vsel %vm18582_vm8, %v4711_v36, %v4719_v42  ;;  %v4776_v36 = vsel %vm18582_vm8, %v4767_v34, %v4775_v1  ;;  %v4794_v42 = vsel %vm18582_vm8, %v4785_v2, %v19796_v45  ;;  %v14963_v45 = vcombine.low %v4626_v9, %v19725_v60  ;;  %v14992_v13 = vld [vmem:[%s18131_s6 + $0x48] sm:$0xf] }
 0x180   : > { %16652 = vmatprep.mubr.bf16.mxu0 %v19676_v25  ;;  %16685 = vmatpush3.bf16.msra.mxu0 %v17902_v3  ;;  %v17904_v25 = vld [vmem:[%s22291_s1 + $0x1b0] sm:$0xff]   ;;  %v4853_v3 = vshrl.u32 %v14937_v47, 16  ;;  %v19870_v9 = vcombine.low %v4710_v44, %v4720_v38  ;;  %v19872_v60 = vcombine.low %v4738_v58, %v4748_v32  ;;  %v19875_v37 = vcombine.low %v4766_v31, %v4776_v36 }
 0x181   : > { %16686 = vmatprep.subr.bf16.mxu0 %v17903_v15  ;;  %v19877_v27 = vcombine.low %v4794_v42, %v4804_v20  ;;  %v4832_v40 = vsel %vm18582_vm8, %v4823_v57, %v4831_v17  ;;  %v4858_v11 = vrot.slane %v4856_v43, 6  ;;  %v19895_v34 = vrot.slane %v5348_v8, 5  ;;  %v14988_v57 = vld [vmem:[%s18131_s6 + $0x38] sm:$0x1] }
 0x182   : > { %v5352_v61 = vshrl.u32 %v14981_v46, 16  ;;  %v5363_v1 = vshrl.u32 %v14983_v23, 16  ;;  %v5366_v2 = vshll.u32 %v14983_v23, 16  ;;  %v5376_v54 = vshrl.u32 %v14984_v26, 16 }
 0x183   : > { %v5387_v62 = vshrl.u32 %v14986_v33, 16  ;;  %v5396_v7 = vshll.u32 %v14987_v6, 16  ;;  %v5400_v59 = vshrl.u32 %v14987_v6, 16  ;;  %v5358_v48 = vshll.u32 %v14982_v12, 16 }
 0x184   : > { %16687 = vmatpush3.bf16.msra.mxu0 %v17903_v15  ;;  %v4855_v15 = vrot.slane %v4853_v3, 5  ;;  %v5411_v44 = vshrl.u32 %v14989_v21, 16  ;;  %v5414_v50 = vshll.u32 %v14989_v21, 16  ;;  %v5345_v16 = vor.u32 %v5344_v24, %v5341_v22  ;;  %v14995_v22 = vld [vmem:[%s18131_s6 + $0x54] sm:$0xf] }
 0x185   : > { %16688 = vmatprep.subr.bf16.mxu0 %v17904_v25  ;;  %v5354_v38 = vrot.slane %v5352_v61, 4  ;;  %v5420_v58 = vshll.u32 %v14990_v52, 16  ;;  %v5424_v47 = vshrl.u32 %v14990_v52, 16  ;;  %v5365_v10 = vrot.slane %v5363_v1, 4 }
 0x186   : > { %v4859_v28 = vor.u32 %v4858_v11, %v4855_v15  ;;  %v5368_v35 = vrot.slane %v5366_v2, 5  ;;  %v5378_v32 = vrot.slane %v5376_v54, 4  ;;  %v5389_v31 = vrot.slane %v5387_v62, 4 }
 0x187   : > { %16653 = vmatmul.mubr.bf16.gmra.mrb[12].mxu0 %v19678_v39  ;;  %v5372_v39 = vshll.u32 %v14984_v26, 16  ;;  %v19907_v42 = vrot.slane %v5396_v7, 5  ;;  %v5402_v46 = vrot.slane %v5400_v59, 4  ;;  %v19909_v20 = vcombine.low %v4822_v41, %v4832_v40 }
 0x188   : > { %16656 = vmatprep.mubr.bf16.mxu0 %v19697_v55  ;;  %16689 = vmatpush3.bf16.msra.mxu0 %v17904_v25  ;;  %v5390_v55 = vshll.u32 %v14986_v33, 16  ;;  %v14985_v25 = vld [vmem:[%s18131_s6 + $0x2c] sm:$0x1]  ;;  %v4850_v30 = vsel %vm18582_vm8, %v19890_v0, %v19855_v4  ;;  %v5413_v17 = vrot.slane %v5411_v44, 4  ;;  %v5416_v14 = vrot.slane %v5414_v50, 5 }
 0x189   : > { %16690 = vmatprep.subr.bf16.mxu0 %v17905_v19  ;;  %v19903_v29 = vrot.slane %v5372_v39, 5  ;;  %v4860_v3 = vsel %vm18582_vm8, %v4851_v5, %v4859_v28  ;;  %v5355_v43 = vor.u32 %v5354_v38, %v19895_v34  ;;  %v5346_v8 = vrot.slane %v5345_v16, 4  ;;  %v14993_v4 = vld [vmem:[%s18131_s6 + $0x4c] sm:$0xf]  ;;  %v14996_v28 = vld [vmem:[%s18131_s6 + $0x58] sm:$0xf] }
 0x18a   : > { %v5392_v36 = vrot.slane %v5390_v55, 5  ;;  %v5360_v23 = vrot.slane %v5358_v48, 5  ;;  %v5369_v41 = vor.u32 %v5368_v35, %v5365_v10  ;;  %v5382_v40 = vshll.u32 %v14985_v25, 16  ;;  %v14998_v38 = vld [vmem:[%s18131_s6 + $0x60] sm:$0xf] }
 0x18b   : > { %v5379_v12 = vor.u32 %v5378_v32, %v19903_v29  ;;  %v5406_v33 = vshll.u32 %v14988_v57, 16  ;;  %v5417_v6 = vor.u32 %v5416_v14, %v5413_v17  ;;  %v5430_v0 = vshll.u32 %v14991_v51, 16 }
 0x18c   : > { %16691 = vmatpush3.bf16.msra.mxu0 %v17905_v19  ;;  %v19920_v19 = vrot.slane %v5420_v58, 5  ;;  %v5393_v26 = vor.u32 %v5392_v36, %v5389_v31  ;;  %v5435_v15 = vshrl.u32 %v14992_v13, 16  ;;  %v5438_v11 = vshll.u32 %v14992_v13, 16 }
 0x18d   : > { %16728 = vmatprep.subr.bf16.mxu0 %v19901_v49  ;;  %v5356_v21 = vrot.slane %v5355_v43, 4  ;;  %v5444_v24 = vshll.u32 %v14993_v4, 16  ;;  %v5448_v61 = vshrl.u32 %v14993_v4, 16  ;;  %v19928_v52 = vcombine.low %v4850_v30, %v4860_v3 }
 0x18e   : > { %v5351_v2 = vsel %vm18147_vm2, %v5346_v8, %v19895_v34  ;;  %v5370_v39 = vrot.slane %v5369_v41, 4  ;;  %v5384_v54 = vrot.slane %v5382_v40, 5  ;;  %v5380_v62 = vrot.slane %v5379_v12, 4  ;;  %v14994_v34 = vld [vmem:[%s18131_s6 + $0x50] sm:$0x1] }
 0x18f   : > { %16657 = vmatmul.mubr.bf16.gmra.mrb[16].mxu0 %v14963_v45  ;;  %v5426_v45 = vrot.slane %v5424_v47, 4  ;;  %v5394_v55 = vrot.slane %v5393_v26, 4  ;;  %v5408_v59 = vrot.slane %v5406_v33, 5  ;;  %v5418_v48 = vrot.slane %v5417_v6, 4  ;;  %v14997_v12 = vld [vmem:[%s18131_s6 + $0x5c] sm:$0x1] }
 0x190   : > { %16660 = vmatprep.mubr.bf16.mxu0 %v14964_v63  ;;  %v5403_v63 = vor.u32 %v5402_v46, %v19907_v42  ;;  %v5432_v44 = vrot.slane %v5430_v0, 5  ;;  %v5437_v50 = vrot.slane %v5435_v15, 4  ;;  %v5440_v16 = vrot.slane %v5438_v11, 5  ;;  %v14999_v46 = vld [vmem:[%s18131_s6 + $0x64] sm:$0xf] }
 0x191   : > { %v5427_v5 = vor.u32 %v5426_v45, %v19920_v19  ;;  %v19938_v47 = vrot.slane %v5444_v24, 5  ;;  %v5450_v10 = vrot.slane %v5448_v61, 4  ;;  %v5459_v35 = vshrl.u32 %v14995_v22, 16  ;;  %v15002_v0 = vld [vmem:[%s18131_s6 + $0x70] sm:$0xf] }
 0x192   : > { %v5404_v7 = vrot.slane %v5403_v63, 4  ;;  %v5361_v32 = vsel %vm18147_vm2, %v5356_v21, %v5360_v23  ;;  %v5462_v25 = vshll.u32 %v14995_v22, 16  ;;  %v5472_v31 = vshrl.u32 %v14996_v28, 16  ;;  %v15004_v61 = vld [vmem:[%s18131_s6 + $0x78] sm:$0xf] }
 0x193   : > { %v5428_v58 = vrot.slane %v5427_v5, 4  ;;  %v5375_v36 = vsel %vm18147_vm2, %v5370_v39, %v19903_v29  ;;  %v5483_v30 = vshrl.u32 %v14998_v38, 16  ;;  %v5486_v57 = vshll.u32 %v14998_v38, 16  ;;  %v15001_v29 = vld [vmem:[%s18131_s6 + $0x6c] sm:$0xf] }
 0x194   : > { %v5399_v17 = vsel %vm18147_vm2, %v5394_v55, %v19907_v42  ;;  %v5409_v14 = vsel %vm18147_vm2, %v5404_v7, %v5408_v59  ;;  %v5423_v3 = vsel %vm18147_vm2, %v5418_v48, %v19920_v19  ;;  %v5454_v43 = vshll.u32 %v14994_v34, 16  ;;  %v15005_v55 = vld [vmem:[%s18131_s6 + $0x7c] sm:$0xf] }
 0x195   : > { %v5433_v51 = vsel %vm18147_vm2, %v5428_v58, %v5432_v44  ;;  %v5441_v45 = vor.u32 %v5440_v16, %v5437_v50  ;;  %v5451_v13 = vor.u32 %v5450_v10, %v19938_v47  ;;  %v5461_v8 = vrot.slane %v5459_v35, 4  ;;  %v15007_v58 = vld [vmem:[%s18131_s6 + $0x84] sm:$0xf] }
 0x196   : > { %v5464_v23 = vrot.slane %v5462_v25, 5  ;;  %v5474_v42 = vrot.slane %v5472_v31, 4  ;;  %v5492_v40 = vshll.u32 %v14999_v46, 16  ;;  %v19962_v4 = vcombine.low %v5351_v2, %v5361_v32 }
 0x197   : > { %16661 = vmatmul.mubr.bf16.gmra.mrb[20].mxu0 %v19868_v18  ;;  %v5468_v18 = vshll.u32 %v14996_v28, 16  ;;  %v5485_v19 = vrot.slane %v5483_v30, 4  ;;  %v5488_v26 = vrot.slane %v5486_v57, 5  ;;  %v5496_v63 = vshrl.u32 %v14999_v46, 16  ;;  %v15003_v28 = vld [vmem:[%s18131_s6 + $0x74] sm:$0x1] }
 0x198   : > { %16664 = vmatprep.mubr.bf16.mxu0 %v19870_v9  ;;  %v5385_v9 = vsel %vm18147_vm2, %v5380_v62, %v5384_v54  ;;  %v19968_v6 = vcombine.low %v5399_v17, %v5409_v14  ;;  %v5507_v15 = vshrl.u32 %v15001_v29, 16  ;;  %v5510_v11 = vshll.u32 %v15001_v29, 16  ;;  %v15000_v54 = vld [vmem:[%s18131_s6 + $0x68] sm:$0x1]  ;;  %v15006_v29 = vld [vmem:[%s18131_s6 + $0x80] sm:$0x1] }
 0x199   : > { %v19960_v41 = vrot.slane %v5468_v18, 5  ;;  %v19966_v33 = vcombine.low %v5375_v36, %v5385_v9  ;;  %v19972_v22 = vcombine.low %v5423_v3, %v5433_v51  ;;  %v5442_v21 = vrot.slane %v5441_v45, 4  ;;  %v15008_v57 = vld [vmem:[%s18131_s6 + $0x88] sm:$0xf] }
 0x19a   : > { %v5452_v5 = vrot.slane %v5451_v13, 4  ;;  %v5456_v24 = vrot.slane %v5454_v43, 5  ;;  %v5465_v2 = vor.u32 %v5464_v23, %v5461_v8  ;;  %v5478_v39 = vshll.u32 %v14997_v12, 16  ;;  %v15010_v12 = vld [vmem:[%s18131_s6 + $0x90] sm:$0xf] }
 0x19b   : > { %v19977_v62 = vrot.slane %v5492_v40, 5  ;;  %v5489_v7 = vor.u32 %v5488_v26, %v5485_v19  ;;  %v5498_v59 = vrot.slane %v5496_v63, 4  ;;  %v5516_v48 = vshll.u32 %v15002_v0, 16 }
 0x19c   : > { %v5509_v44 = vrot.slane %v5507_v15, 4  ;;  %v5512_v50 = vrot.slane %v5510_v11, 5  ;;  %v5531_v16 = vshrl.u32 %v15004_v61, 16  ;;  %v5534_v38 = vshll.u32 %v15004_v61, 16  ;;  %v15013_v15 = vld [vmem:[%s18131_s6 + $0x9c] sm:$0xf] }
 0x19d   : > { %v5447_v34 = vsel %vm18147_vm2, %v5442_v21, %v19938_v47  ;;  %v5457_v10 = vsel %vm18147_vm2, %v5452_v5, %v5456_v24  ;;  %v5540_v35 = vshll.u32 %v15005_v55, 16  ;;  %v5544_v32 = vshrl.u32 %v15005_v55, 16  ;;  %v15009_v24 = vld [vmem:[%s18131_s6 + $0x8c] sm:$0x1]  ;;  %v15014_v61 = vld [vmem:[%s18131_s6 + $0xa0] sm:$0xf] }
 0x19e   : > { %v19987_v25 = vrot.slane %v5465_v2, 4  ;;  %v19991_v31 = vrot.slane %v5478_v39, 5  ;;  %v5502_v36 = vshll.u32 %v15000_v54, 16  ;;  %v19993_v9 = vrot.slane %v5489_v7, 4 }
 0x19f   : > { %16665 = vmatmul.mubr.bf16.gmra.mrb[24].mxu0 %v19872_v60  ;;  %v5475_v60 = vor.u32 %v5474_v42, %v19960_v41  ;;  %v5499_v46 = vor.u32 %v5498_v59, %v19977_v62  ;;  %v19996_v30 = vrot.slane %v5516_v48, 5  ;;  %v5513_v17 = vor.u32 %v5512_v50, %v5509_v44 }
 0x1a0   : > { %16668 = vmatprep.mubr.bf16.mxu0 %v19875_v37  ;;  %v5520_v37 = vshrl.u32 %v15002_v0, 16  ;;  %v5526_v14 = vshll.u32 %v15003_v28, 16  ;;  %v5533_v3 = vrot.slane %v5531_v16, 4  ;;  %v5536_v43 = vrot.slane %v5534_v38, 5  ;;  %v15011_v0 = vld [vmem:[%s18131_s6 + $0x94] sm:$0xf] }
 0x1a1   : > { %v19989_v18 = vrot.slane %v5475_v60, 4  ;;  %v20002_v51 = vrot.slane %v5540_v35, 5  ;;  %v5546_v45 = vrot.slane %v5544_v32, 4  ;;  %v5555_v13 = vshrl.u32 %v15007_v58, 16 }
 0x1a2   : > { %v5522_v47 = vrot.slane %v5520_v37, 4  ;;  %v5558_v8 = vshll.u32 %v15007_v58, 16  ;;  %v20004_v23 = vcombine.low %v5447_v34, %v5457_v10  ;;  %v5564_v42 = vshll.u32 %v15008_v57, 16 }
 0x1a3   : > { %v5568_v40 = vshrl.u32 %v15008_v57, 16  ;;  %v5500_v19 = vrot.slane %v5499_v46, 4  ;;  %v5504_v26 = vrot.slane %v5502_v36, 5  ;;  %v20018_v11 = vrot.slane %v5513_v17, 4  ;;  %v15015_v46 = vld [vmem:[%s18131_s6 + $0xa4] sm:$0x1] }
 0x1a4   : > { %v5523_v63 = vor.u32 %v5522_v47, %v19996_v30  ;;  %v20020_v21 = vrot.slane %v5526_v14, 5  ;;  %v5537_v5 = vor.u32 %v5536_v43, %v5533_v3  ;;  %v5495_v2 = vsel %vm18147_vm2, %v19993_v9, %v19977_v62  ;;  %v15017_v14 = vld [vmem:[%s18131_s6 + $0xac] sm:$0xf] }
 0x1a5   : > { %v5547_v60 = vor.u32 %v5546_v45, %v20002_v51  ;;  %v5557_v39 = vrot.slane %v5555_v13, 4  ;;  %v5560_v54 = vrot.slane %v5558_v8, 5  ;;  %v20029_v55 = vrot.slane %v5564_v42, 5  ;;  %v17907_v13 = vld [vmem:[%s22291_s1 + $0x1c8] sm:$0xff]  }
 0x1a6   : > { %v5570_v7 = vrot.slane %v5568_v40, 4  ;;  %v5579_v59 = vshrl.u32 %v15010_v12, 16  ;;  %v5582_v28 = vshll.u32 %v15010_v12, 16  ;;  %v5505_v48 = vsel %vm18147_vm2, %v5500_v19, %v5504_v26  ;;  %v15019_v26 = vld [vmem:[%s18131_s6 + $0xb4] sm:$0xf] }
 0x1a7   : > { %16669 = vmatmul.mubr.bf16.gmra.mrb[28].mxu0 %v19877_v27  ;;  %v5471_v27 = vsel %vm18147_vm2, %v19987_v25, %v19960_v41  ;;  %v5550_v41 = vshll.u32 %v15006_v29, 16  ;;  %v5524_v37 = vrot.slane %v5523_v63, 4  ;;  %v5588_v44 = vshll.u32 %v15011_v0, 16 }
 0x1a8   : > { %16672 = vmatprep.mubr.bf16.mxu0 %v19909_v20  ;;  %v5481_v20 = vsel %vm18147_vm2, %v19989_v18, %v19991_v31  ;;  %v5592_v50 = vshrl.u32 %v15011_v0, 16  ;;  %v5538_v62 = vrot.slane %v5537_v5, 4  ;;  %v5603_v38 = vshrl.u32 %v15013_v15, 16  ;;  %v15012_v31 = vld [vmem:[%s18131_s6 + $0x98] sm:$0x1] }
 0x1a9   : > { %v5552_v16 = vrot.slane %v5550_v41, 5  ;;  %v5606_v58 = vshll.u32 %v15013_v15, 16  ;;  %v5548_v34 = vrot.slane %v5547_v60, 4  ;;  %v5574_v10 = vshll.u32 %v15009_v24, 16  ;;  %v17908_v24 = vld [vmem:[%s22291_s1 + $0x1d0] sm:$0xff]  }
 0x1aa   : > { %v5612_v35 = vshll.u32 %v15014_v61, 16  ;;  %v5616_v32 = vshrl.u32 %v15014_v61, 16  ;;  %v5561_v25 = vor.u32 %v5560_v54, %v5557_v39  ;;  %v5571_v18 = vor.u32 %v5570_v7, %v20029_v55  ;;  %v15018_v54 = vld [vmem:[%s18131_s6 + $0xb0] sm:$0x1]  ;;  %v15020_v7 = vld [vmem:[%s18131_s6 + $0xb8] sm:$0xf] }
 0x1ab   : > { %v5581_v36 = vrot.slane %v5579_v59, 4  ;;  %v5584_v9 = vrot.slane %v5582_v28, 5  ;;  %v20040_v47 = vcombine.low %v5495_v2, %v5505_v48  ;;  %v20042_v57 = vrot.slane %v5588_v44, 5 }
 0x1ac   : > { %v5594_v17 = vrot.slane %v5592_v50, 4  ;;  %v5519_v3 = vsel %vm18147_vm2, %v20018_v11, %v19996_v30  ;;  %v5529_v43 = vsel %vm18147_vm2, %v5524_v37, %v20020_v21  ;;  %v5605_v29 = vrot.slane %v5603_v38, 4  ;;  %v15022_v50 = vld [vmem:[%s18131_s6 + $0xc0] sm:$0xf] }
 0x1ad   : > { %v5608_v45 = vrot.slane %v5606_v58, 5  ;;  %v5543_v8 = vsel %vm18147_vm2, %v5538_v62, %v20002_v51  ;;  %v20059_v42 = vrot.slane %v5612_v35, 5  ;;  %v5618_v40 = vrot.slane %v5616_v32, 4  ;;  %v15023_v58 = vld [vmem:[%s18131_s6 + $0xc4] sm:$0xf] }
 0x1ae   : > { %v5553_v30 = vsel %vm18147_vm2, %v5548_v34, %v5552_v16  ;;  %v5562_v12 = vrot.slane %v5561_v25, 4  ;;  %v5585_v19 = vor.u32 %v5584_v9, %v5581_v36  ;;  %v5595_v63 = vor.u32 %v5594_v17, %v20042_v57  ;;  %v17909_v34 = vld [vmem:[%s22291_s1 + $0x1d8] sm:$0xff]  }
 0x1af   : > { %16673 = vmatmul.mubr.bf16.gmra.mrb[32].mxu0 %v19928_v52  ;;  %v20038_v52 = vcombine.low %v5471_v27, %v5481_v20  ;;  %v5576_v27 = vrot.slane %v5574_v10, 5  ;;  %v5572_v20 = vrot.slane %v5571_v18, 4  ;;  %v5598_v0 = vshll.u32 %v15012_v31, 16  ;;  %v15021_v18 = vld [vmem:[%s18131_s6 + $0xbc] sm:$0x1] }
 0x1b0   : > { %16692 = vmatprep.mubr.bf16.mxu0 %v19962_v4  ;;  %v15016_v4 = vld [vmem:[%s18131_s6 + $0xa8] sm:$0xf]  ;;  %v5622_v15 = vshll.u32 %v15015_v46, 16  ;;  %v5609_v51 = vor.u32 %v5608_v45, %v5605_v29  ;;  %v5636_v5 = vshll.u32 %v15017_v14, 16  ;;  %v5640_v41 = vshrl.u32 %v15017_v14, 16 }
 0x1b1   : > { %v5627_v11 = vshrl.u32 %v15016_v4, 16  ;;  %v5630_v21 = vshll.u32 %v15016_v4, 16  ;;  %v20071_v61 = vcombine.low %v5519_v3, %v5529_v43  ;;  %v20073_v2 = vcombine.low %v5543_v8, %v5553_v30  ;;  %v15025_v43 = vld [vmem:[%s18131_s6 + $0xcc] sm:$0xf]  ;;  %v15026_v29 = vld [vmem:[%s18131_s6 + $0xd0] sm:$0xf] }
 0x1b2   : > { %v5651_v60 = vshrl.u32 %v15019_v26, 16  ;;  %v20081_v39 = vrot.slane %v5585_v19, 4  ;;  %v5654_v59 = vshll.u32 %v15019_v26, 16  ;;  %v20085_v28 = vrot.slane %v5595_v63, 4  ;;  %v15029_v30 = vld [vmem:[%s18131_s6 + $0xdc] sm:$0xf] }
 0x1b3   : > { %v20087_v48 = vrot.slane %v5598_v0, 5  ;;  %v20089_v37 = vrot.slane %v5622_v15, 5  ;;  %v5629_v44 = vrot.slane %v5627_v11, 4  ;;  %v20092_v62 = vrot.slane %v5609_v51, 4  ;;  %v15024_v15 = vld [vmem:[%s18131_s6 + $0xc8] sm:$0x1] }
 0x1b4   : > { %v20094_v16 = vrot.slane %v5636_v5, 5  ;;  %v5642_v38 = vrot.slane %v5640_v41, 4  ;;  %v5646_v35 = vshll.u32 %v15018_v54, 16  ;;  %v5653_v32 = vrot.slane %v5651_v60, 4 }
 0x1b5   : > { %v5660_v25 = vshll.u32 %v15020_v7, 16  ;;  %v5656_v31 = vrot.slane %v5654_v59, 5  ;;  %v5664_v36 = vshrl.u32 %v15020_v7, 16  ;;  %v5675_v9 = vshrl.u32 %v15022_v50, 16  ;;  %v17911_v59 = vld [vmem:[%s22291_s1 + $0x1e8] sm:$0xff]  }
 0x1b6   : > { %v5678_v46 = vshll.u32 %v15022_v50, 16  ;;  %v5591_v4 = vsel %vm18147_vm2, %v20081_v39, %v20042_v57  ;;  %v5684_v14 = vshll.u32 %v15023_v58, 16  ;;  %v5688_v3 = vshrl.u32 %v15023_v58, 16  ;;  %v15031_v50 = vld [vmem:[%s18131_s6 + $0xe4] sm:$0xf] }
 0x1b7   : > { %16693 = vmatmul.mubr.bf16.vlgmr.msra.gmra.mrb[0].mxu0 %v19966_v33  ;;  %v5619_v33 = vor.u32 %v5618_v40, %v20059_v42  ;;  %v5601_v45 = vsel %vm18147_vm2, %v20085_v28, %v20087_v48  ;;  %v15028_v40 = vld [vmem:[%s18131_s6 + $0xd8] sm:$0xf]  ;;  %v5670_v19 = vshll.u32 %v15021_v18, 16  ;;  %v5657_v26 = vor.u32 %v5656_v31, %v5653_v32  ;;  %v15030_v18 = vld [vmem:[%s18131_s6 + $0xe0] sm:$0x1] }
 0x1b8   : > { %16729 = vmatpush3.bf16.msra.mxu0 %v19901_v49  ;;  %16696 = vmatprep.mubr.bf16.mxu0 %v19968_v6  ;;  %v5567_v49 = vsel %vm18147_vm2, %v5562_v12, %v20029_v55  ;;  %v5577_v6 = vsel %vm18147_vm2, %v5572_v20, %v5576_v27  ;;  %v5632_v55 = vrot.slane %v5630_v21, 5  ;;  %v5643_v27 = vor.u32 %v5642_v38, %v20094_v16  ;;  %v15027_v38 = vld [vmem:[%s18131_s6 + $0xd4] sm:$0x1] }
 0x1b9   : > { %16730 = vmatprep.subr.bf16.mxu0 %v17907_v13  ;;  %v20100_v10 = vrot.slane %v5619_v33, 4  ;;  %v20103_v17 = vcombine.low %v5567_v49, %v5577_v6  ;;  %v20128_v12 = vrot.slane %v5646_v35, 5  ;;  %v20130_v20 = vrot.slane %v5660_v25, 5  ;;  %v17912_v35 = vld [vmem:[%s22291_s1 + $0x1f0] sm:$0xff]  }
 0x1ba   : > { %v5633_v8 = vor.u32 %v5632_v55, %v5629_v44  ;;  %v5666_v63 = vrot.slane %v5664_v36, 4  ;;  %v5677_v0 = vrot.slane %v5675_v9, 4  ;;  %v20136_v11 = vrot.slane %v5684_v14, 5 }
 0x1bb   : > { %v5690_v51 = vrot.slane %v5688_v3, 4  ;;  %v5699_v21 = vshrl.u32 %v15025_v43, 16  ;;  %v5702_v5 = vshll.u32 %v15025_v43, 16  ;;  %v5708_v41 = vshll.u32 %v15026_v29, 16 }
 0x1bc   : > { %16731 = vmatpush3.bf16.msra.mxu0 %v17907_v13  ;;  %v5615_v13 = vsel %vm18147_vm2, %v20092_v62, %v20059_v42  ;;  %v17910_v42 = vld [vmem:[%s22291_s1 + $0x1e0] sm:$0xff]   ;;  %v5723_v33 = vshrl.u32 %v15028_v40, 16  ;;  %v5726_v60 = vshll.u32 %v15028_v40, 16  ;;  %v20138_v49 = vrot.slane %v5633_v8, 4 }
 0x1bd   : > { %16732 = vmatprep.subr.bf16.mxu0 %v17908_v24  ;;  %v20140_v6 = vrot.slane %v5643_v27, 4  ;;  %v5732_v54 = vshll.u32 %v15029_v30, 16  ;;  %v5736_v7 = vshrl.u32 %v15029_v30, 16  ;;  %v20145_v28 = vrot.slane %v5657_v26, 4 }
 0x1be   : > { %v5667_v48 = vor.u32 %v5666_v63, %v20130_v20  ;;  %v5694_v44 = vshll.u32 %v15024_v15, 16  ;;  %v5691_v55 = vor.u32 %v5690_v51, %v20136_v11  ;;  %v5701_v58 = vrot.slane %v5699_v21, 4  ;;  %v15033_v63 = vld [vmem:[%s18131_s6 + $0xec] sm:$0x1]  ;;  %v20193_v51 = vld [vmem:[%s18131_s6 + $0x28] sm:$0xf] }
 0x1bf   : > { %16697 = vmatmul.mubr.bf16.gmra.mrb[4].mxu0 %v19972_v22  ;;  %v5625_v22 = vsel %vm18147_vm2, %v20100_v10, %v20089_v37  ;;  %v20148_v37 = vrot.slane %v5670_v19, 5  ;;  %v15032_v10 = vld [vmem:[%s18131_s6 + $0xe8] sm:$0xf]  ;;  %v20158_v32 = vrot.slane %v5708_v41, 5  ;;  %v5725_v31 = vrot.slane %v5723_v33, 4 }
 0x1c0   : > { %16700 = vmatprep.mubr.bf16.mxu0 %v20004_v23  ;;  %16733 = vmatpush3.bf16.msra.mxu0 %v17908_v24  ;;  %v5680_v23 = vrot.slane %v5678_v46, 5  ;;  %v5712_v24 = vshrl.u32 %v15026_v29, 16  ;;  %v5728_v36 = vrot.slane %v5726_v60, 5  ;;  %v20162_v9 = vrot.slane %v5732_v54, 5  ;;  %v20196_v21 = vld [vmem:[%s18131_s6 + $0x34] sm:$0xf] }
 0x1c1   : > { %16734 = vmatprep.subr.bf16.mxu0 %v17909_v34  ;;  %v5738_v46 = vrot.slane %v5736_v7, 4  ;;  %v5747_v14 = vshrl.u32 %v15031_v50, 16  ;;  %v5750_v3 = vshll.u32 %v15031_v50, 16  ;;  %v20171_v43 = vcombine.low %v5615_v13, %v5625_v22  ;;  %v17913_v22 = vld [vmem:[%s22291_s1 + $0x1f8] sm:$0xff]  }
 0x1c2   : > { %v5681_v62 = vor.u32 %v5680_v23, %v5677_v0  ;;  %v5714_v25 = vrot.slane %v5712_v24, 4  ;;  %v5756_v29 = vshll.u32 %v15032_v10, 16  ;;  %v5760_v8 = vshrl.u32 %v15032_v10, 16  ;;  %v20188_v0 = vld [vmem:[%s18131_s6 + $0x1c] sm:$0xf] }
 0x1c3   : > { %v5696_v40 = vrot.slane %v5694_v44, 5  ;;  %v5692_v19 = vrot.slane %v5691_v55, 4  ;;  %v5718_v26 = vshll.u32 %v15027_v38, 16  ;;  %v5729_v57 = vor.u32 %v5728_v36, %v5725_v31  ;;  %v20209_v60 = vld [vmem:[%s18131_s6 + $0x18] sm:$0xe] }
 0x1c4   : > { %16735 = vmatpush3.bf16.msra.mxu0 %v17909_v34  ;;  %v5704_v34 = vrot.slane %v5702_v5, 5  ;;  %v5682_v27 = vrot.slane %v5681_v62, 4  ;;  %v5639_v39 = vsel %vm18147_vm2, %v20138_v49, %v20094_v16  ;;  %v5742_v13 = vshll.u32 %v15030_v18, 16  ;;  %v20212_v49 = vld [vmem:[%s18131_s6 + $0x40] sm:$0xf] }
 0x1c5   : > { %16736 = vmatprep.subr.bf16.mxu0 %v17910_v42  ;;  %v5749_v23 = vrot.slane %v5747_v14, 4  ;;  %v5752_v16 = vrot.slane %v5750_v3, 5  ;;  %v20190_v15 = vrot.slane %v5756_v29, 5  ;;  %v5663_v5 = vsel %vm18147_vm2, %v20145_v28, %v20130_v20  ;;  %v20219_v28 = vld [vmem:[%s18131_s6 + $0x4c] sm:$0xf] }
 0x1c6   : > { %v5705_v30 = vor.u32 %v5704_v34, %v5701_v58  ;;  %v5687_v24 = vsel %vm18147_vm2, %v5682_v27, %v20136_v11  ;;  %v5720_v54 = vrot.slane %v5718_v26, 5  ;;  %v5730_v7 = vrot.slane %v5729_v57, 4  ;;  %v15079_v44 = vld [vmem:[%s18131_s6 + $0x24] sm:$0xe]  ;;  %v15082_v34 = vld [vmem:[%s18131_s6 + $0x30] sm:$0xe] }
 0x1c7   : > { %16701 = vmatmul.mubr.bf16.gmra.mrb[8].mxu0 %v20038_v52  ;;  %v20169_v52 = vcombine.low %v5591_v4, %v5601_v45  ;;  %v5649_v4 = vsel %vm18147_vm2, %v20140_v6, %v20128_v12  ;;  %v5739_v45 = vor.u32 %v5738_v46, %v20162_v9  ;;  %v5762_v12 = vrot.slane %v5760_v8, 4  ;;  %v20233_v58 = vld [vmem:[%s22291_s1 + $0x200] sm:$0xff]   ;;  %v15084_v18 = vld [vmem:[%s18131_s6 + $0x38] sm:$0x1]  ;;  %v15085_v36 = vld [vmem:[%s18131_s6 + $0x3c] sm:$0xe] }
 0x1c8   : > { %16704 = vmatprep.mubr.bf16.mxu0 %v20040_v47  ;;  %16737 = vmatpush3.bf16.msra.mxu0 %v17910_v42  ;;  %v5668_v47 = vrot.slane %v5667_v48, 4  ;;  %v5715_v42 = vor.u32 %v5714_v25, %v20158_v32  ;;  %v5706_v33 = vrot.slane %v5705_v30, 4  ;;  %v5697_v6 = vsel %vm18147_vm2, %v5692_v19, %v5696_v40  ;;  %v15087_v29 = vld [vmem:[%s18131_s6 + $0x44] sm:$0x1]  ;;  %v15090_v30 = vld [vmem:[%s18131_s6 + $0x50] sm:$0x1] }
 0x1c9   : > { %16738 = vmatprep.subr.bf16.mxu0 %v17911_v59  ;;  %v20222_v11 = vcombine.low %v5639_v39, %v5649_v4  ;;  %v5740_v48 = vrot.slane %v5739_v45, 4  ;;  %v5753_v62 = vor.u32 %v5752_v16, %v5749_v23  ;;  %v5763_v55 = vor.u32 %v5762_v12, %v20190_v15  ;;  %v15092_v16 = vld [vmem:[%s18131_s6 + $0x58] sm:$0xf] }
 0x1ca   : > { %v5673_v41 = vsel %vm18147_vm2, %v5668_v47, %v20148_v37  ;;  %v5716_v20 = vrot.slane %v5715_v42, 4  ;;  %v5744_v37 = vrot.slane %v5742_v13, 5  ;;  %v6302_v38 = vrot.slane %v20188_v0, 5  ;;  %v15088_v47 = vld [vmem:[%s18131_s6 + $0x48] sm:$0xe] }
 0x1cb   : > { %v20225_v50 = vcombine.low %v5663_v5, %v5673_v41  ;;  %v20236_v10 = vcombine.low %v5687_v24, %v5697_v6  ;;  %v6309_v25 = vrot.slane %v20193_v51, 5  ;;  %v6316_v31 = vrot.slane %v20196_v21, 5 }
 0x1cc   : > { %16739 = vmatpush3.bf16.msra.mxu0 %v17911_v59  ;;  %v15078_v59 = vld [vmem:[%s18131_s6 + $0x20] sm:$0x1]  ;;  %v5721_v46 = vsel %vm18147_vm2, %v5716_v20, %v5720_v54  ;;  %v5735_v14 = vsel %vm18147_vm2, %v5730_v7, %v20162_v9  ;;  %v15130_v3 = vrot.slane %v20209_v60, 9  ;;  %v6323_v8 = vrot.slane %v20212_v49, 5  ;;  %v15093_v60 = vld [vmem:[%s18131_s6 + $0x5c] sm:$0x1] }
 0x1cd   : > { %16740 = vmatprep.subr.bf16.mxu0 %v17912_v35  ;;  %v6305_v40 = vrot.slane %v15078_v59, 5  ;;  %v6330_v19 = vrot.slane %v20219_v28, 5  ;;  %v5754_v42 = vrot.slane %v5753_v62, 4  ;;  %v5764_v26 = vrot.slane %v5763_v55, 4  ;;  %v15094_v54 = vld [vmem:[%s18131_s6 + $0x60] sm:$0xe] }
 0x1ce   : > { %v6304_v57 = vrot.slane %v6302_v38, 4  ;;  %v15131_v9 = vrot.slane %v15079_v44, 9  ;;  %v6311_v39 = vrot.slane %v6309_v25, 4  ;;  %v15132_v45 = vrot.slane %v15082_v34, 9  ;;  %v15095_v7 = vld [vmem:[%s18131_s6 + $0x64] sm:$0xf] }
 0x1cf   : > { %16705 = vmatmul.mubr.bf16.gmra.mrb[12].mxu0 %v20071_v61  ;;  %v5766_v61 = vshll.u32 %v15033_v63, 16  ;;  %v6318_v13 = vrot.slane %v6316_v31, 4  ;;  %v15133_v63 = vrot.slane %v15085_v36, 9  ;;  %v6325_v0 = vrot.slane %v6323_v8, 4  ;;  %v20311_v44 = vld [vmem:[%s18131_s6 + $0x6c] sm:$0xe] }
 0x1d0   : > { %16708 = vmatprep.mubr.bf16.mxu0 %v20073_v2  ;;  %16741 = vmatpush3.bf16.msra.mxu0 %v17912_v35  ;;  %v15081_v2 = vld [vmem:[%s18131_s6 + $0x2c] sm:$0x1]  ;;  %v5711_v35 = vsel %vm18147_vm2, %v5706_v33, %v20158_v32  ;;  %v5745_v32 = vsel %vm18147_vm2, %v5740_v48, %v5744_v37  ;;  %v6326_v23 = vrot.slane %v15087_v29, 5  ;;  %v15134_v51 = vrot.slane %v15088_v47, 9  ;;  %v15091_v33 = vld [vmem:[%s18131_s6 + $0x54] sm:$0xe] }
 0x1d1   : > { %16742 = vmatprep.subr.bf16.mxu0 %v17913_v22  ;;  %v5768_v27 = vrot.slane %v5766_v61, 5  ;;  %v6312_v4 = vrot.slane %v15081_v2, 5  ;;  %v20262_v12 = vcombine.low %v5711_v35, %v5721_v46  ;;  %v6332_v21 = vrot.slane %v6330_v19, 4  ;;  %v20308_v61 = vld [vmem:[%s18131_s6 + $0x68] sm:$0x1] }
 0x1d2   : > { %v6333_v5 = vrot.slane %v15090_v30, 5  ;;  %v20264_v41 = vcombine.low %v5735_v14, %v5745_v32  ;;  %v20271_v24 = vsel %vm18242_vm5, %v15130_v3, %v6302_v38  ;;  %v20283_v6 = vsel %vm18242_vm5, %v15131_v9, %v6309_v25  ;;  %v20314_v62 = vld [vmem:[%s18131_s6 + $0x70] sm:$0xf]  ;;  %v20327_v35 = vld [vmem:[%s18131_s6 + $0x74] sm:$0x1] }
 0x1d3   : > { %v5769_v49 = vsel %vm18147_vm2, %v5764_v26, %v5768_v27  ;;  %v6337_v20 = vrot.slane %v15092_v16, 5  ;;  %v20293_v59 = vsel %vm18242_vm5, %v15132_v45, %v6316_v31  ;;  %v20301_v48 = vsel %vm18242_vm5, %v15133_v63, %v6323_v8  ;;  %v20330_v25 = vld [vmem:[%s18131_s6 + $0x7c] sm:$0xf]  ;;  %v15100_v14 = vld [vmem:[%s18131_s6 + $0x78] sm:$0xe] }
 0x1d4   : > { %16743 = vmatpush3.bf16.msra.mxu0 %v17913_v22  ;;  %v6319_v22 = vrot.slane %v15084_v18, 5  ;;  %v20305_v37 = vsel %vm18242_vm5, %v6325_v0, %v6326_v23  ;;  %v20320_v38 = vsel %vm18242_vm5, %v15134_v51, %v6330_v19  ;;  %v20324_v2 = vsel %vm18242_vm5, %v6332_v21, %v6333_v5  ;;  %v15102_v3 = vld [vmem:[%s18131_s6 + $0x80] sm:$0x1]  ;;  %v15104_v29 = vld [vmem:[%s18131_s6 + $0x88] sm:$0xf] }
 0x1d5   : > { %16780 = vmatprep.subr.bf16.mxu0 %v20233_v58  ;;  %v15135_v34 = vrot.slane %v15091_v33, 9  ;;  %v15136_v36 = vrot.slane %v15094_v54, 9  ;;  %v6344_v46 = vrot.slane %v15095_v7, 5  ;;  %v20340_v8 = vld [vmem:[%s18131_s6 + $0x94] sm:$0xf]  ;;  %v6339_v27 = vrot.slane %v6337_v20, 4 }
 0x1d6   : > { %v20297_v28 = vsel %vm18242_vm5, %v6318_v13, %v6319_v22  ;;  %v15103_v30 = vld [vmem:[%s18131_s6 + $0x84] sm:$0xe]  ;;  %v15105_v19 = vld [vmem:[%s18131_s6 + $0x8c] sm:$0x1]  ;;  %v6351_v9 = vrot.slane %v20314_v62, 5  ;;  %v6365_v63 = vrot.slane %v15104_v29, 5 }
 0x1d7   : > { %16709 = vmatmul.mubr.bf16.gmra.mrb[16].mxu0 %v20103_v17  ;;  %v5759_v17 = vsel %vm18147_vm2, %v5754_v42, %v20190_v15  ;;  %v20287_v15 = vsel %vm18242_vm5, %v6311_v39, %v6312_v4  ;;  %v15110_v42 = vld [vmem:[%s18131_s6 + $0xa0] sm:$0xf]  ;;  %v6358_v39 = vrot.slane %v20330_v25, 5  ;;  %v15106_v4 = vld [vmem:[%s18131_s6 + $0x90] sm:$0xe]  ;;  %v20361_v22 = vsel %vm18242_vm5, %v15135_v34, %v6337_v20 }
 0x1d8   : > { %16712 = vmatprep.mubr.bf16.mxu0 %v20169_v52  ;;  %v20275_v52 = vsel %vm18242_vm5, %v6304_v57, %v6305_v40  ;;  %v20332_v18 = vcombine.low %v5759_v17, %v5769_v49  ;;  %v6340_v40 = vrot.slane %v15093_v60, 5  ;;  %v6347_v57 = vrot.slane %v20308_v61, 5  ;;  %v15108_v45 = vld [vmem:[%s18131_s6 + $0x98] sm:$0x1]  ;;  %v15113_v13 = vld [vmem:[%s18131_s6 + $0xac] sm:$0xf] }
 0x1d9   : > { %v6372_v0 = vrot.slane %v20340_v8, 5  ;;  %v15109_v23 = vld [vmem:[%s18131_s6 + $0x9c] sm:$0xe]  ;;  %v15111_v16 = vld [vmem:[%s18131_s6 + $0xa4] sm:$0x1]  ;;  %v20369_v51 = vsel %vm18242_vm5, %v15136_v36, %v6344_v46  ;;  %v6346_v21 = vrot.slane %v6344_v46, 4 }
 0x1da   : > { %v6354_v5 = vrot.slane %v20327_v35, 5  ;;  %v15112_v17 = vld [vmem:[%s18131_s6 + $0xa8] sm:$0xe]  ;;  %v20375_v33 = vsel %vm18242_vm5, %v6339_v27, %v6340_v40  ;;  %v15138_v60 = vrot.slane %v15100_v14, 9  ;;  %v6361_v49 = vrot.slane %v15102_v3, 5 }
 0x1db   : > { %v15114_v20 = vld [vmem:[%s18131_s6 + $0xb0] sm:$0x1]  ;;  %v6386_v54 = vrot.slane %v15113_v13, 5  ;;  %v6353_v7 = vrot.slane %v6351_v9, 4  ;;  %v6360_v61 = vrot.slane %v6358_v39, 4  ;;  %v6368_v62 = vrot.slane %v15105_v19, 5 }
 0x1dc   : > { %v15116_v34 = vld [vmem:[%s18131_s6 + $0xb8] sm:$0xf]  ;;  %v6367_v25 = vrot.slane %v6365_v63, 4  ;;  %v15140_v36 = vrot.slane %v15106_v4, 9  ;;  %v6374_v46 = vrot.slane %v6372_v0, 4  ;;  %v6375_v35 = vrot.slane %v15108_v45, 5 }
 0x1dd   : > { %v15141_v29 = vrot.slane %v15109_v23, 9  ;;  %v6382_v27 = vrot.slane %v15111_v16, 5  ;;  %v15142_v40 = vrot.slane %v15112_v17, 9  ;;  %v20381_v14 = vsel %vm18242_vm5, %v6346_v21, %v6347_v57  ;;  %v15117_v23 = vld [vmem:[%s18131_s6 + $0xbc] sm:$0x1] }
 0x1de   : > { %v6388_v3 = vrot.slane %v6386_v54, 4  ;;  %v6393_v19 = vrot.slane %v15116_v34, 5  ;;  %v20391_v45 = vsel %vm18242_vm5, %v6353_v7, %v6354_v5  ;;  %v20395_v57 = vsel %vm18242_vm5, %v15138_v60, %v6358_v39  ;;  %v15119_v16 = vld [vmem:[%s18131_s6 + $0xc4] sm:$0xf]  ;;  %v15118_v21 = vld [vmem:[%s18131_s6 + $0xc0] sm:$0xe] }
 0x1df   : > { %16713 = vmatmul.mubr.bf16.gmra.mrb[20].mxu0 %v20171_v43  ;;  %v15137_v43 = vrot.slane %v20311_v44, 9  ;;  %v15139_v44 = vrot.slane %v15103_v30, 9  ;;  %v15115_v30 = vld [vmem:[%s18131_s6 + $0xb4] sm:$0xe]  ;;  %v20399_v13 = vsel %vm18242_vm5, %v6360_v61, %v6361_v49  ;;  %v20414_v39 = vsel %vm18242_vm5, %v15140_v36, %v6372_v0  ;;  %v20435_v60 = vld [vmem:[%s18131_s6 + $0xcc] sm:$0xe] }
 0x1e0   : > { %16716 = vmatprep.mubr.bf16.mxu0 %v20222_v11  ;;  %v6379_v11 = vrot.slane %v15110_v42, 5  ;;  %v6389_v42 = vrot.slane %v15114_v20, 5  ;;  %v20432_v0 = vsel %vm18242_vm5, %v15142_v40, %v6386_v54  ;;  %v15143_v17 = vrot.slane %v15115_v30, 9  ;;  %v20442_v61 = vld [vmem:[%s18131_s6 + $0xd0] sm:$0xf] }
 0x1e1   : > { %v20387_v4 = vsel %vm18242_vm5, %v15137_v43, %v6351_v9  ;;  %v20410_v9 = vsel %vm18242_vm5, %v6367_v25, %v6368_v62  ;;  %v20418_v43 = vsel %vm18242_vm5, %v6374_v46, %v6375_v35  ;;  %22345 = vst [vmem:[#allocation9_spill] sm:$0xff] %v20432_v0  ;;  %v6395_v20 = vrot.slane %v6393_v19, 4  ;;  %v15123_v25 = vld [vmem:[%s18131_s6 + $0xd4] sm:$0x1]  ;;  %v15125_v36 = vld [vmem:[%s18131_s6 + $0xdc] sm:$0xf] }
 0x1e2   : > { %v6381_v8 = vrot.slane %v6379_v11, 4  ;;  %v20439_v49 = vsel %vm18242_vm5, %v6388_v3, %v6389_v42  ;;  %v6400_v7 = vrot.slane %v15119_v16, 5  ;;  %v15144_v34 = vrot.slane %v15118_v21, 9  ;;  %v15126_v40 = vld [vmem:[%s18131_s6 + $0xe0] sm:$0x1] }
 0x1e3   : > { %22346 = vst [vmem:[#allocation5_spill] sm:$0xff] %v20439_v49  ;;  %v15128_v3 = vld [vmem:[%s18131_s6 + $0xe8] sm:$0xf]  ;;  %v20467_v30 = vsel %vm18242_vm5, %v15143_v17, %v6393_v19  ;;  %v15145_v16 = vrot.slane %v20435_v60, 9  ;;  %v15127_v21 = vld [vmem:[%s18131_s6 + $0xe4] sm:$0xe] }
 0x1e4   : > { %v20428_v5 = vsel %vm18242_vm5, %v6381_v8, %v6382_v27  ;;  %v15124_v27 = vld [vmem:[%s18131_s6 + $0xd8] sm:$0xe]  ;;  %22347 = vst [vmem:[#allocation10_spill] sm:$0xff] %v20467_v30  ;;  %v15191_v35 = vld [vmem:[%s18131_s6 + $0x1c] sm:$0xf]  ;;  %v6402_v46 = vrot.slane %v6400_v7, 4  ;;  %v20482_v19 = vsel %vm18242_vm5, %v15144_v34, %v6400_v7 }
 0x1e5   : > { %22344 = vst [vmem:[#allocation8_spill] sm:$0xff] %v20428_v5  ;;  %v6407_v62 = vrot.slane %v20442_v61, 5  ;;  %v6414_v42 = vrot.slane %v15125_v36, 5  ;;  %v15193_v54 = vld [vmem:[%s18131_s6 + $0x24] sm:$0xe]  ;;  %v15146_v17 = vrot.slane %v15124_v27, 9 }
 0x1e6   : > { %v15129_v60 = vld [vmem:[%s18131_s6 + $0xec] sm:$0x1]  ;;  %v6912_v61 = vshrl.u32 %v15191_v35, 16  ;;  %v15194_v32 = vld [vmem:[%s18131_s6 + $0x28] sm:$0xf]  ;;  %v6915_v47 = vshll.u32 %v15191_v35, 16 }
 0x1e7   : > { %16717 = vmatmul.mubr.bf16.gmra.mrb[24].mxu0 %v20225_v50  ;;  %v20406_v50 = vsel %vm18242_vm5, %v15139_v44, %v6365_v63  ;;  %v20424_v63 = vsel %vm18242_vm5, %v15141_v29, %v6379_v11  ;;  %v6396_v11 = vrot.slane %v15117_v23, 5  ;;  %v15190_v29 = vld [vmem:[%s18131_s6 + $0x18] sm:$0xe]  ;;  %v6421_v44 = vrot.slane %v15128_v3, 5  ;;  %v15195_v55 = vld [vmem:[%s18131_s6 + $0x2c] sm:$0x3] }
 0x1e8   : > { %16720 = vmatprep.mubr.bf16.mxu0 %v20236_v10  ;;  %v15120_v10 = vld [vmem:[%s18131_s6 + $0xc8] sm:$0x1]  ;;  %22343 = vst [vmem:[#allocation7_spill] sm:$0xff] %v20424_v63  ;;  %v6906_v26 = vshll.u32 %v15190_v29, 16  ;;  %v6931_v31 = vshrl.u32 %v15193_v54, 16  ;;  %v6934_v7 = vshll.u32 %v15193_v54, 16 }
 0x1e9   : > { %v6403_v23 = vrot.slane %v15120_v10, 5  ;;  %v20475_v8 = vsel %vm18242_vm5, %v6395_v20, %v6396_v11  ;;  %v6410_v10 = vrot.slane %v15123_v25, 5  ;;  %v6417_v20 = vrot.slane %v15126_v40, 5 }
 0x1ea   : > { %22348 = vst [vmem:[#allocation11_spill] sm:$0xff] %v20475_v8  ;;  %v6903_v11 = vshrl.u32 %v15190_v29, 16  ;;  %v6409_v25 = vrot.slane %v6407_v62, 4  ;;  %v6416_v27 = vrot.slane %v6414_v42, 4  ;;  %v6423_v40 = vrot.slane %v6421_v44, 4 }
 0x1eb   : > { %v20492_v34 = vsel %vm18242_vm5, %v6402_v46, %v6403_v23  ;;  %v6424_v3 = vrot.slane %v15129_v60, 5  ;;  %v6940_v29 = vshrl.u32 %v15194_v32, 16  ;;  %v6943_v49 = vshll.u32 %v15194_v32, 16 }
 0x1ec   : > { %v6905_v0 = vrot.slane %v6903_v11, 5  ;;  %v6908_v5 = vrot.slane %v6906_v26, 6  ;;  %v6914_v36 = vrot.slane %v6912_v61, 5  ;;  %v6917_v35 = vrot.slane %v6915_v47, 6  ;;  %v15196_v11 = vld [vmem:[%s18131_s6 + $0x30] sm:$0xe] }
 0x1ed   : > { %v6933_v54 = vrot.slane %v6931_v31, 5  ;;  %v6936_v63 = vrot.slane %v6934_v7, 6  ;;  %v20499_v23 = vsel %vm18242_vm5, %v15145_v16, %v6407_v62  ;;  %v6953_v60 = vshll.u32 %v15195_v55, 16  ;;  %v15199_v61 = vld [vmem:[%s18131_s6 + $0x3c] sm:$0xe] }
 0x1ee   : > { %v20504_v32 = vsel %vm18242_vm5, %v6409_v25, %v6410_v10  ;;  %v20508_v31 = vsel %vm18242_vm5, %v15146_v17, %v6414_v42  ;;  %v6942_v47 = vrot.slane %v6940_v29, 5  ;;  %v6945_v26 = vrot.slane %v6943_v49, 6  ;;  %v15197_v49 = vld [vmem:[%s18131_s6 + $0x34] sm:$0xf] }
 0x1ef   : > { %16721 = vmatmul.mubr.bf16.gmra.mrb[28].mxu0 %v20262_v12  ;;  %v15192_v12 = vld [vmem:[%s18131_s6 + $0x20] sm:$0x3]  ;;  %v22349_v62 = vcombine.low %v20271_v24, %v20275_v52  ;;  %v20524_v16 = vsel %vm18242_vm5, %v6423_v40, %v6424_v3  ;;  %v6909_v42 = vor.u32 %v6908_v5, %v6905_v0  ;;  %v20527_v10 = vor.u32 %v6917_v35, %v6914_v36  ;;  %v17915_v3 = vld [vmem:[%s22291_s1 + $0x208] sm:$0xff]  }
 0x1f0   : > { %16724 = vmatprep.mubr.bf16.mxu0 %v20264_v41  ;;  %v15147_v41 = vrot.slane %v15127_v21, 9  ;;  %v6922_v8 = vshrl.u32 %v15192_v12, 16  ;;  %v6925_v30 = vshll.u32 %v15192_v12, 16  ;;  %v6950_v21 = vshrl.u32 %v15195_v55, 16  ;;  %22350 = vst [vmem:[#allocation12_spill] sm:$0xff] %v20524_v16 }
 0x1f1   : > { %v20516_v55 = vsel %vm18242_vm5, %v6416_v27, %v6417_v20  ;;  %v6937_v17 = vor.u32 %v6936_v63, %v6933_v54  ;;  %v6959_v7 = vshrl.u32 %v15196_v11, 16  ;;  %v20532_v25 = vor.u32 %v6945_v26, %v6942_v47  ;;  %v15200_v0 = vld [vmem:[%s18131_s6 + $0x40] sm:$0xf] }
 0x1f2   : > { %v6924_v24 = vrot.slane %v6922_v8, 5  ;;  %v6927_v52 = vrot.slane %v6925_v30, 6  ;;  %v6952_v12 = vrot.slane %v6950_v21, 5  ;;  %v6962_v27 = vshll.u32 %v15196_v11, 16  ;;  %v15198_v30 = vld [vmem:[%s18131_s6 + $0x38] sm:$0x3] }
 0x1f3   : > { %v6971_v5 = vshll.u32 %v15197_v49, 16  ;;  %v6987_v36 = vshrl.u32 %v15199_v61, 16  ;;  %v6990_v40 = vshll.u32 %v15199_v61, 16  ;;  %v6910_v29 = vrot.slane %v6909_v42, 4  ;;  %v15201_v42 = vld [vmem:[%s18131_s6 + $0x44] sm:$0x3] }
 0x1f4   : > { %v6920_v35 = vrot.slane %v20527_v10, 4  ;;  %v6928_v54 = vor.u32 %v6927_v52, %v6924_v24  ;;  %v6938_v21 = vrot.slane %v6937_v17, 4  ;;  %v6961_v26 = vrot.slane %v6959_v7, 5  ;;  %v15208_v16 = vld [vmem:[%s18131_s6 + $0x60] sm:$0xe] }
 0x1f5   : > { %v6996_v11 = vshrl.u32 %v15200_v0, 16  ;;  %v22351_v63 = vcombine.low %v20283_v6, %v20287_v15  ;;  %v6948_v61 = vrot.slane %v20532_v25, 4  ;;  %v6964_v8 = vrot.slane %v6962_v27, 6  ;;  %v17916_v6 = vld [vmem:[%s22291_s1 + $0x210] sm:$0xff]  }
 0x1f6   : > { %v6973_v46 = vrot.slane %v6971_v5, 6  ;;  %v22352_v24 = vcombine.low %v20293_v59, %v20297_v28  ;;  %v6978_v52 = vshrl.u32 %v15198_v30, 16  ;;  %v6981_v17 = vshll.u32 %v15198_v30, 16 }
 0x1f7   : > { %16725 = vmatmul.mubr.bf16.gmra.mrb[32].mxu0 %v20332_v18  ;;  %v20520_v18 = vsel %vm18242_vm5, %v15147_v41, %v6421_v44  ;;  %v6955_v44 = vrot.slane %v6953_v60, 6  ;;  %v6968_v41 = vshrl.u32 %v15197_v49, 16  ;;  %v15202_v60 = vld [vmem:[%s18131_s6 + $0x48] sm:$0xe]  ;;  %v15203_v49 = vld [vmem:[%s18131_s6 + $0x4c] sm:$0xf]  ;;  %v6929_v30 = vsel %vm18582_vm8, %v6920_v35, %v6928_v54 }
 0x1f8   : > { %16744 = vmatprep.mubr.bf16.mxu0 %v22349_v62  ;;  %v6999_v62 = vshll.u32 %v15200_v0, 16  ;;  %v7015_v15 = vshrl.u32 %v15202_v60, 16  ;;  %v7018_v7 = vshll.u32 %v15202_v60, 16  ;;  %v7024_v27 = vshrl.u32 %v15203_v49, 16  ;;  %v17917_v0 = vld [vmem:[%s22291_s1 + $0x218] sm:$0xff]  }
 0x1f9   : > { %v6956_v47 = vor.u32 %v6955_v44, %v6952_v12  ;;  %v6970_v20 = vrot.slane %v6968_v41, 5  ;;  %v6989_v12 = vrot.slane %v6987_v36, 5  ;;  %v6992_v44 = vrot.slane %v6990_v40, 6  ;;  %v15204_v60 = vld [vmem:[%s18131_s6 + $0x50] sm:$0x3] }
 0x1fa   : > { %v7027_v41 = vshll.u32 %v15203_v49, 16  ;;  %v7001_v5 = vrot.slane %v6999_v62, 6  ;;  %v7006_v59 = vshrl.u32 %v15201_v42, 16  ;;  %v7009_v28 = vshll.u32 %v15201_v42, 16 }
 0x1fb   : > { %v6947_v36 = vsel %vm18582_vm8, %v6938_v21, %v20532_v25  ;;  %v6965_v40 = vor.u32 %v6964_v8, %v6961_v26  ;;  %v6957_v62 = vsel %vm18582_vm8, %v6948_v61, %v6956_v47  ;;  %v20573_v49 = vor.u32 %v6973_v46, %v6970_v20 }
 0x1fc   : > { %v6980_v42 = vrot.slane %v6978_v52, 5  ;;  %v7017_v35 = vrot.slane %v7015_v15, 5  ;;  %v7020_v54 = vrot.slane %v7018_v7, 6  ;;  %v7029_v53 = vrot.slane %v7027_v41, 6 }
 0x1fd   : > { %v6993_v25 = vor.u32 %v6992_v44, %v6989_v12  ;;  %v7008_v21 = vrot.slane %v7006_v59, 5  ;;  %v7011_v26 = vrot.slane %v7009_v28, 6  ;;  %v22353_v46 = vcombine.low %v20301_v48, %v20305_v37  ;;  %v17918_v48 = vld [vmem:[%s22291_s1 + $0x220] sm:$0xff]  }
 0x1fe   : > { %v20587_v47 = vcombine.low %v6947_v36, %v6957_v62  ;;  %v7034_v61 = vshrl.u32 %v15204_v60, 16  ;;  %v7037_v52 = vshll.u32 %v15204_v60, 16  ;;  %v22354_v12 = vcombine.low %v20320_v38, %v20324_v2  ;;  %v20606_v28 = vld [vmem:[%s18131_s6 + $0x64] sm:$0xf] }
 0x1ff   : > { %16745 = vmatmul.mubr.bf16.vlgmr.msra.gmra.mrb[0].mxu0 %v22351_v63  ;;  %v6919_v63 = vsel %vm18582_vm8, %v6910_v29, %v20527_v10  ;;  %v6983_v10 = vrot.slane %v6981_v17, 6  ;;  %v15206_v29 = vld [vmem:[%s18131_s6 + $0x58] sm:$0xf]  ;;  %v20592_v17 = vld [vmem:[%s22292_s2] sm:$0xff]   ;;  %v6966_v37 = vrot.slane %v6965_v40, 4  ;;  %v6976_v44 = vrot.slane %v20573_v49, 4 }
 0x200   : > { %16781 = vmatpush3.bf16.msra.mxu0 %v20233_v58  ;;  %16748 = vmatprep.mubr.bf16.mxu0 %v22352_v24  ;;  %v6998_v58 = vrot.slane %v6996_v11, 5  ;;  %v15205_v11 = vld [vmem:[%s18131_s6 + $0x54] sm:$0xe]  ;;  %v7026_v24 = vrot.slane %v7024_v27, 5  ;;  %v20585_v20 = vcombine.low %v6919_v63, %v6929_v30  ;;  %v7021_v27 = vor.u32 %v7020_v54, %v7017_v35  ;;  %v282_v63 = vld [vmem:[%s18131_s6 + $0x60] sm:$0xf] }
 0x201   : > { %16782 = vmatprep.subr.bf16.mxu0 %v17915_v3  ;;  %v6984_v15 = vor.u32 %v6983_v10, %v6980_v42  ;;  %v7043_v7 = vshrl.u32 %v15205_v11, 16  ;;  %v7052_v38 = vshrl.u32 %v15206_v29, 16  ;;  %16832 = vmatprep.subr.bf16.mxu1 %v20592_v17  ;;  %v6994_v2 = vrot.slane %v6993_v25, 4  ;;  %v17919_v30 = vld [vmem:[%s22291_s1 + $0x228] sm:$0xff]  }
 0x202   : > { %v20576_v8 = vor.u32 %v7001_v5, %v6998_v58  ;;  %v20601_v41 = vor.u32 %v7029_v53, %v7026_v24  ;;  %v7046_v58 = vshll.u32 %v15205_v11, 16  ;;  %v7012_v5 = vor.u32 %v7011_v26, %v7008_v21  ;;  %v283_v11 = vld [vmem:[%s18131_s6 + $0x64] sm:$0xf]  ;;  %v20626_v35 = vld [vmem:[%s18131_s6 + $0x6c] sm:$0xe] }
 0x203   : > { %v7055_v59 = vshll.u32 %v15206_v29, 16  ;;  %v20612_v36 = vrot.slane %v7034_v61, 5  ;;  %v20614_v53 = vrot.slane %v7037_v52, 6  ;;  %v7071_v60 = vshrl.u32 %v15208_v16, 16  ;;  %v284_v61 = vld [vmem:[%s18131_s6 + $0x68] sm:$0x1] }
 0x204   : > { %16783 = vmatpush3.bf16.msra.mxu0 %v17915_v3  ;;  %v20579_v3 = vld [vmem:[%s18131_s6 + $0x5c] sm:$0x3]  ;;  %v6975_v62 = vsel %vm18582_vm8, %v6966_v37, %v20573_v49  ;;  %v6985_v42 = vsel %vm18582_vm8, %v6976_v44, %v6984_v15  ;;  %v20623_v10 = vrot.slane %v7043_v7, 5  ;;  %v7074_v29 = vshll.u32 %v15208_v16, 16 }
 0x205   : > { %16784 = vmatprep.subr.bf16.mxu0 %v17916_v6  ;;  %v7062_v40 = vshrl.u32 %v20579_v3, 16  ;;  %v20628_v54 = vrot.slane %v7021_v27, 4  ;;  %v7032_v24 = vrot.slane %v20601_v41, 4  ;;  %v7054_v25 = vrot.slane %v7052_v38, 5  ;;  %v286_v38 = vld [vmem:[%s18131_s6 + $0x70] sm:$0xf] }
 0x206   : > { %v7003_v49 = vsel %vm18582_vm8, %v6994_v2, %v20576_v8  ;;  %v7057_v26 = vrot.slane %v7055_v59, 6  ;;  %v7065_v16 = vshll.u32 %v20579_v3, 16  ;;  %v22355_v52 = vcombine.low %v20361_v22, %v20375_v33  ;;  %v285_v3 = vld [vmem:[%s18131_s6 + $0x6c] sm:$0xf] }
 0x207   : > { %16749 = vmatmul.mubr.bf16.gmra.mrb[4].mxu0 %v22353_v46  ;;  %v20640_v46 = vld [vmem:[%s18131_s6 + $0x70] sm:$0xf]  ;;  %v20649_v37 = vrot.slane %v7062_v40, 5  ;;  %v7080_v44 = vshrl.u32 %v20606_v28, 16  ;;  %v508_v15 = vshrl.u32 %v282_v63, 16  ;;  %v22356_v7 = vcombine.low %v20369_v51, %v20381_v14 }
 0x208   : > { %16752 = vmatprep.mubr.bf16.mxu0 %v22354_v12  ;;  %16785 = vmatpush3.bf16.msra.mxu0 %v17916_v6  ;;  %v7004_v6 = vrot.slane %v20576_v8, 4  ;;  %v17920_v12 = vld [vmem:[%s22291_s1 + $0x230] sm:$0xff]   ;;  %v20651_v8 = vrot.slane %v7071_v60, 5  ;;  %v20658_v22 = vrot.slane %v7074_v29, 6  ;;  %v7083_v33 = vshll.u32 %v20606_v28, 16  ;;  %v17921_v29 = vld [vmem:[%s22291_s1 + $0x238] sm:$0xff]  }
 0x209   : > { %16786 = vmatprep.subr.bf16.mxu0 %v17917_v0  ;;  %v511_v27 = vshll.u32 %v282_v63, 16  ;;  %v20662_v2 = vcombine.low %v6975_v62, %v6985_v42  ;;  %v7102_v59 = vshll.u32 %v20626_v35, 16  ;;  %v510_v51 = vrot.slane %v508_v15, 4  ;;  %v287_v60 = vld [vmem:[%s18131_s6 + $0x74] sm:$0x1] }
 0x20a   : > { %v7013_v21 = vsel %vm18582_vm8, %v7004_v6, %v7012_v5  ;;  %v7099_v5 = vshrl.u32 %v20626_v35, 16  ;;  %v7040_v28 = vor.u32 %v20614_v53, %v20612_v36  ;;  %v7108_v62 = vshrl.u32 %v20640_v46, 16 }
 0x20b   : > { %v20664_v6 = vcombine.low %v7003_v49, %v7013_v21  ;;  %v513_v14 = vrot.slane %v511_v27, 5  ;;  %v527_v42 = vshll.u32 %v284_v61, 16  ;;  %v532_v21 = vshrl.u32 %v285_v3, 16  ;;  %v15210_v27 = vld [vmem:[%s18131_s6 + $0x68] sm:$0x3] }
 0x20c   : > { %16787 = vmatpush3.bf16.msra.mxu0 %v17917_v0  ;;  %v20631_v0 = vrot.slane %v7046_v58, 6  ;;  %v517_v58 = vshll.u32 %v283_v11, 16  ;;  %v541_v53 = vshll.u32 %v286_v38, 16 }
 0x20d   : > { %16788 = vmatprep.subr.bf16.mxu0 %v17918_v48  ;;  %v514_v35 = vor.u32 %v513_v14, %v510_v51  ;;  %v529_v36 = vrot.slane %v527_v42, 5  ;;  %v534_v15 = vrot.slane %v532_v21, 4  ;;  %v551_v14 = vshll.u32 %v287_v60, 16 }
 0x20e   : > { %v519_v40 = vrot.slane %v517_v58, 5  ;;  %v7049_v63 = vor.u32 %v20631_v0, %v20623_v10  ;;  %v545_v10 = vshrl.u32 %v286_v38, 16  ;;  %v20678_v0 = vor.u32 %v7057_v26, %v7054_v25  ;;  %v15213_v26 = vld [vmem:[%s18131_s6 + $0x74] sm:$0x3] }
 0x20f   : > { %16753 = vmatmul.mubr.bf16.gmra.mrb[8].mxu0 %v22355_v52  ;;  %v7111_v52 = vshll.u32 %v20640_v46, 16  ;;  %v515_v61 = vrot.slane %v514_v35, 4  ;;  %v543_v51 = vrot.slane %v541_v53, 5  ;;  %v22358_v46 = vcombine.low %v20395_v57, %v20399_v13 }
 0x210   : > { %16756 = vmatprep.mubr.bf16.mxu0 %v22356_v7  ;;  %16789 = vmatpush3.bf16.msra.mxu0 %v17918_v48  ;;  %v521_v48 = vshrl.u32 %v283_v11, 16  ;;  %v535_v11 = vshll.u32 %v285_v3, 16  ;;  %v22357_v7 = vcombine.low %v20387_v4, %v20391_v45  ;;  %v547_v3 = vrot.slane %v545_v10, 4 }
 0x211   : > { %16790 = vmatprep.subr.bf16.mxu0 %v17919_v30  ;;  %v7082_v38 = vrot.slane %v7080_v44, 5  ;;  %v7085_v25 = vrot.slane %v7083_v33, 6  ;;  %v7067_v4 = vrot.slane %v7065_v16, 6  ;;  %v7101_v21 = vrot.slane %v7099_v5, 5  ;;  %v15214_v5 = vld [vmem:[%s18131_s6 + $0x78] sm:$0xe] }
 0x212   : > { %v523_v49 = vrot.slane %v521_v48, 4  ;;  %v537_v58 = vrot.slane %v535_v11, 5  ;;  %v520_v48 = vsel %vm18147_vm2, %v515_v61, %v519_v40  ;;  %v548_v35 = vor.u32 %v547_v3, %v543_v51  ;;  %v20712_v61 = vld [vmem:[%s18131_s6 + $0x7c] sm:$0xf]  ;;  %v290_v3 = vld [vmem:[%s18131_s6 + $0x80] sm:$0x1] }
 0x213   : > { %v7104_v60 = vrot.slane %v7102_v59, 6  ;;  %v7110_v11 = vrot.slane %v7108_v62, 5  ;;  %v7113_v13 = vrot.slane %v7111_v52, 6  ;;  %v7077_v16 = vor.u32 %v20658_v22, %v20651_v8 }
 0x214   : > { %16791 = vmatpush3.bf16.msra.mxu0 %v17919_v30  ;;  %v524_v30 = vor.u32 %v523_v49, %v519_v40  ;;  %v538_v45 = vor.u32 %v537_v58, %v534_v15  ;;  %v553_v49 = vrot.slane %v551_v14, 5  ;;  %v549_v33 = vrot.slane %v548_v35, 4  ;;  %v289_v58 = vld [vmem:[%s18131_s6 + $0x7c] sm:$0xf] }
 0x215   : > { %16792 = vmatprep.subr.bf16.mxu0 %v17920_v12  ;;  %v20694_v40 = vor.u32 %v7085_v25, %v7082_v38  ;;  %v7090_v53 = vshrl.u32 %v15210_v27, 16  ;;  %v7093_v10 = vshll.u32 %v15210_v27, 16  ;;  %v20697_v59 = vrot.slane %v7049_v63, 4 }
 0x216   : > { %v525_v42 = vrot.slane %v524_v30, 4  ;;  %v539_v44 = vrot.slane %v538_v45, 4  ;;  %v7118_v62 = vshrl.u32 %v15213_v26, 16  ;;  %v7031_v8 = vsel %vm18582_vm8, %v20628_v54, %v20601_v41  ;;  %v288_v30 = vld [vmem:[%s18131_s6 + $0x78] sm:$0xf] }
 0x217   : > { %16757 = vmatmul.mubr.bf16.gmra.mrb[12].mxu0 %v22357_v7  ;;  %v7041_v22 = vsel %vm18582_vm8, %v7032_v24, %v7040_v28  ;;  %v7105_v63 = vor.u32 %v7104_v60, %v7101_v21  ;;  %v22359_v15 = vcombine.low %v20406_v50, %v20410_v9  ;;  %v7060_v7 = vrot.slane %v20678_v0, 4 }
 0x218   : > { %16760 = vmatprep.mubr.bf16.mxu0 %v22358_v46  ;;  %16793 = vmatpush3.bf16.msra.mxu0 %v17920_v12  ;;  %v530_v57 = vsel %vm18147_vm2, %v525_v42, %v529_v36  ;;  %v544_v52 = vsel %vm18147_vm2, %v539_v44, %v543_v51  ;;  %v7068_v54 = vor.u32 %v7067_v4, %v20649_v37  ;;  %v7121_v41 = vshll.u32 %v15213_v26, 16  ;;  %v292_v42 = vld [vmem:[%s18131_s6 + $0x88] sm:$0xf] }
 0x219   : > { %16794 = vmatprep.subr.bf16.mxu0 %v17921_v29  ;;  %v14554_v12 = vcombine.low %v520_v48, %v530_v57  ;;  %v20720_v27 = vor.u32 %v7113_v13, %v7110_v11  ;;  %v22360_v24 = vcombine.low %v20414_v39, %v20418_v43  ;;  %v20726_v28 = vrot.slane %v7077_v16, 4  ;;  %v291_v43 = vld [vmem:[%s18131_s6 + $0x84] sm:$0xf] }
 0x21a   : > { %v7088_v51 = vrot.slane %v20694_v40, 4  ;;  %v7092_v50 = vrot.slane %v7090_v53, 5  ;;  %v7095_v9 = vrot.slane %v7093_v10, 6  ;;  %v20730_v14 = vcombine.low %v7031_v8, %v7041_v22  ;;  %v20758_v8 = vld [vmem:[%s18131_s6 + $0x80] sm:$0x3] }
 0x21b   : > { %16396 = vmatprep.mubr.bf16.mxu1 %v14554_v12  ;;  %v7059_v37 = vsel %vm18582_vm8, %v20697_v59, %v20678_v0  ;;  %v20736_v46 = vrot.slane %v7118_v62, 5  ;;  %v7127_v39 = vshrl.u32 %v15214_v5, 16  ;;  %v20740_v38 = vrot.slane %v7105_v63, 4  ;;  %v22361_v62 = vld [vmem:[#allocation7_spill] sm:$0xff] }
 0x21c   : > { %16795 = vmatpush3.bf16.msra.mxu0 %v17921_v29  ;;  %v554_v29 = vsel %vm18147_vm2, %v549_v33, %v553_v49  ;;  %v7130_v25 = vshll.u32 %v15214_v5, 16  ;;  %v556_v26 = vshrl.u32 %v288_v30, 16  ;;  %v559_v48 = vshll.u32 %v288_v30, 16  ;;  %v293_v33 = vld [vmem:[%s18131_s6 + $0x8c] sm:$0x1] }
 0x21d   : > { %v14555_v36 = vcombine.low %v544_v52, %v554_v29  ;;  %v7116_v4 = vrot.slane %v20720_v27, 4  ;;  %v20744_v45 = vrot.slane %v7121_v41, 6  ;;  %v7136_v35 = vshrl.u32 %v20712_v61, 16  ;;  %v22362_v52 = vld [vmem:[#allocation8_spill] sm:$0xff] }
 0x21e   : > { %v565_v49 = vshll.u32 %v289_v58, 16  ;;  %v7069_v21 = vsel %vm18582_vm8, %v7060_v7, %v7068_v54  ;;  %v7096_v60 = vor.u32 %v7095_v9, %v7092_v50  ;;  %v561_v11 = vrot.slane %v559_v48, 5  ;;  %v22365_v7 = vld [vmem:[#allocation5_spill] sm:$0xff]  ;;  %v15218_v9 = vld [vmem:[%s18131_s6 + $0x88] sm:$0xf] }
 0x21f   : > { %16761 = vmatmul.mubr.bf16.gmra.mrb[16].mxu0 %v22359_v15  ;;  %16397 = vmatmul.mubr.bf16.vlgmr.msra.gmra.mrb[0].mxu1 %v14555_v36  ;;  %v7129_v57 = vrot.slane %v7127_v39, 5  ;;  %v569_v12 = vshrl.u32 %v289_v58, 16  ;;  %v575_v44 = vshll.u32 %v290_v3, 16  ;;  %v7087_v16 = vsel %vm18582_vm8, %v20726_v28, %v20694_v40  ;;  %v22364_v15 = vld [vmem:[#allocation9_spill] sm:$0xff]  ;;  %v15217_v40 = vld [vmem:[%s18131_s6 + $0x84] sm:$0xe] }
 0x220   : > { %16764 = vmatprep.mubr.bf16.mxu0 %v22360_v24  ;;  %16833 = vmatpush3.bf16.msra.mxu1 %v20592_v17  ;;  %v558_v17 = vrot.slane %v556_v26, 4  ;;  %v567_v13 = vrot.slane %v565_v49, 5  ;;  %v7132_v53 = vrot.slane %v7130_v25, 6  ;;  %v580_v5 = vshrl.u32 %v291_v43, 16 }
 0x221   : > { %v22363_v29 = vcombine.low %v22361_v62, %v22362_v52  ;;  %v7139_v22 = vshll.u32 %v20712_v61, 16  ;;  %v571_v63 = vrot.slane %v569_v12, 4  ;;  %v583_v36 = vshll.u32 %v291_v43, 16  ;;  %v15221_v62 = vld [vmem:[%s18131_s6 + $0x94] sm:$0xf] }
 0x222   : > { %v562_v10 = vor.u32 %v561_v11, %v558_v17  ;;  %v589_v30 = vshll.u32 %v292_v42, 16  ;;  %v22366_v54 = vcombine.low %v22364_v15, %v22365_v7  ;;  %v577_v58 = vrot.slane %v575_v44, 5  ;;  %v15219_v17 = vld [vmem:[%s18131_s6 + $0x8c] sm:$0x3] }
 0x223   : > { %v582_v24 = vrot.slane %v580_v5, 4  ;;  %v593_v28 = vshrl.u32 %v292_v42, 16  ;;  %v7097_v50 = vsel %vm18582_vm8, %v7088_v51, %v7096_v60  ;;  %v572_v3 = vor.u32 %v571_v63, %v567_v13  ;;  %v15220_v42 = vld [vmem:[%s18131_s6 + $0x90] sm:$0xe]  ;;  %v22367_v63 = vld [vmem:[#allocation10_spill] sm:$0xff] }
 0x224   : > { %v563_v41 = vrot.slane %v562_v10, 4  ;;  %v585_v61 = vrot.slane %v583_v36, 5  ;;  %v591_v39 = vrot.slane %v589_v30, 5  ;;  %v7133_v43 = vor.u32 %v7132_v53, %v7129_v57  ;;  %v22368_v36 = vld [vmem:[#allocation11_spill] sm:$0xff] }
 0x225   : > { %v7138_v25 = vrot.slane %v7136_v35, 5  ;;  %v595_v26 = vrot.slane %v593_v28, 4  ;;  %v599_v48 = vshll.u32 %v293_v33, 16  ;;  %v7141_v49 = vrot.slane %v7139_v22, 6 }
 0x226   : > { %v568_v11 = vsel %vm18147_vm2, %v563_v41, %v567_v13  ;;  %v573_v12 = vrot.slane %v572_v3, 4  ;;  %v586_v44 = vor.u32 %v585_v61, %v582_v24  ;;  %v7146_v10 = vshrl.u32 %v20758_v8, 16  ;;  %v295_v61 = vld [vmem:[%s18131_s6 + $0x94] sm:$0xf] }
 0x227   : > { %16765 = vmatmul.mubr.bf16.gmra.mrb[20].mxu0 %v22363_v29  ;;  %v7149_v51 = vshll.u32 %v20758_v8, 16  ;;  %v596_v60 = vor.u32 %v595_v26, %v591_v39  ;;  %v601_v5 = vrot.slane %v599_v48, 5  ;;  %v7155_v57 = vshrl.u32 %v15217_v40, 16 }
 0x228   : > { %16768 = vmatprep.mubr.bf16.mxu0 %v22366_v54  ;;  %v7158_v35 = vshll.u32 %v15217_v40, 16  ;;  %v578_v33 = vsel %vm18147_vm2, %v573_v12, %v577_v58  ;;  %v587_v53 = vrot.slane %v586_v44, 4  ;;  %v7164_v52 = vshrl.u32 %v15218_v9, 16  ;;  %v294_v40 = vld [vmem:[%s18131_s6 + $0x90] sm:$0xf] }
 0x229   : > { %v7167_v29 = vshll.u32 %v15218_v9, 16  ;;  %v14556_v13 = vcombine.low %v568_v11, %v578_v33  ;;  %v597_v22 = vrot.slane %v596_v60, 4  ;;  %v22369_v30 = vcombine.low %v22367_v63, %v22368_v36  ;;  %v296_v11 = vld [vmem:[%s18131_s6 + $0x98] sm:$0x1]  ;;  %v297_v12 = vld [vmem:[%s18131_s6 + $0x9c] sm:$0xf] }
 0x22a   : > { %v20785_v8 = vcombine.low %v7059_v37, %v7069_v21  ;;  %v592_v15 = vsel %vm18147_vm2, %v587_v53, %v591_v39  ;;  %v7183_v7 = vshrl.u32 %v15220_v42, 16  ;;  %v7186_v54 = vshll.u32 %v15220_v42, 16  ;;  %v15222_v21 = vld [vmem:[%s18131_s6 + $0x98] sm:$0x3]  ;;  %v299_v36 = vld [vmem:[%s18131_s6 + $0xa4] sm:$0x1] }
 0x22b   : > { %v22370_v41 = vcombine.low %v20482_v19, %v20492_v34  ;;  %v20793_v58 = vcombine.low %v7087_v16, %v7097_v50  ;;  %v20795_v24 = vrot.slane %v7133_v43, 4  ;;  %v7174_v28 = vshrl.u32 %v15219_v17, 16  ;;  %16400 = vmatprep.mubr.bf16.mxu1 %v14556_v13 }
 0x22c   : > { %v602_v0 = vsel %vm18147_vm2, %v597_v22, %v601_v5  ;;  %v7177_v59 = vshll.u32 %v15219_v17, 16  ;;  %v7192_v9 = vshrl.u32 %v15221_v62, 16  ;;  %v7195_v3 = vshll.u32 %v15221_v62, 16  ;;  %v15223_v17 = vld [vmem:[%s18131_s6 + $0x9c] sm:$0xe] }
 0x22d   : > { %v14557_v37 = vcombine.low %v592_v15, %v602_v0  ;;  %v20800_v19 = vrot.slane %v7155_v57, 5  ;;  %v20802_v34 = vrot.slane %v7158_v35, 6  ;;  %v7166_v16 = vrot.slane %v7164_v52, 5  ;;  %v298_v35 = vld [vmem:[%s18131_s6 + $0xa0] sm:$0xf] }
 0x22e   : > { %v7169_v50 = vrot.slane %v7167_v29, 6  ;;  %v7124_v39 = vor.u32 %v20744_v45, %v20736_v46  ;;  %v20807_v43 = vor.u32 %v7141_v49, %v7138_v25  ;;  %v20809_v26 = vrot.slane %v7183_v7, 5 }
 0x22f   : > { %16769 = vmatmul.mubr.bf16.gmra.mrb[24].mxu0 %v22369_v30  ;;  %16401 = vmatmul.mubr.bf16.gmra.mrb[4].mxu1 %v14557_v37  ;;  %v20811_v48 = vrot.slane %v7186_v54, 6  ;;  %v20816_v44 = vrot.slane %v7146_v10, 5  ;;  %v20818_v42 = vrot.slane %v7149_v51, 6  ;;  %v20820_v60 = vrot.slane %v7174_v28, 5 }
 0x230   : > { %16772 = vmatprep.mubr.bf16.mxu0 %v22370_v41  ;;  %v604_v5 = vshrl.u32 %v294_v40, 16  ;;  %v20822_v62 = vrot.slane %v7177_v59, 6  ;;  %v7194_v25 = vrot.slane %v7192_v9, 5  ;;  %v7197_v49 = vrot.slane %v7195_v3, 6  ;;  %v15224_v41 = vld [vmem:[%s18131_s6 + $0xa0] sm:$0xf] }
 0x231   : > { %v607_v57 = vshll.u32 %v294_v40, 16  ;;  %v7161_v33 = vor.u32 %v20802_v34, %v20800_v19  ;;  %v20827_v53 = vor.u32 %v7169_v50, %v7166_v16  ;;  %v7202_v10 = vshrl.u32 %v15222_v21, 16  ;;  %v15225_v59 = vld [vmem:[%s18131_s6 + $0xa4] sm:$0x3] }
 0x232   : > { %v606_v52 = vrot.slane %v604_v5, 4  ;;  %v22371_v51 = vcombine.low %v20499_v23, %v20504_v32  ;;  %v7189_v29 = vor.u32 %v20811_v48, %v20809_v26  ;;  %v613_v22 = vshll.u32 %v295_v61, 16 }
 0x233   : > { %v609_v13 = vrot.slane %v607_v57, 5  ;;  %v617_v63 = vshrl.u32 %v295_v61, 16  ;;  %v22372_v30 = vcombine.low %v20508_v31, %v20516_v55  ;;  %v7205_v15 = vshll.u32 %v15222_v21, 16 }
 0x234   : > { %v7211_v7 = vshrl.u32 %v15223_v17, 16  ;;  %v623_v54 = vshll.u32 %v296_v11, 16  ;;  %v628_v40 = vshrl.u32 %v297_v12, 16  ;;  %v615_v23 = vrot.slane %v613_v22, 5 }
 0x235   : > { %v610_v28 = vor.u32 %v609_v13, %v606_v52  ;;  %v619_v32 = vrot.slane %v617_v63, 4  ;;  %v631_v0 = vshll.u32 %v297_v12, 16  ;;  %v7214_v37 = vshll.u32 %v15223_v17, 16 }
 0x236   : > { %v625_v9 = vrot.slane %v623_v54, 5  ;;  %v630_v3 = vrot.slane %v628_v40, 4  ;;  %v637_v19 = vshll.u32 %v298_v35, 16  ;;  %v20840_v34 = vor.u32 %v7197_v49, %v7194_v25  ;;  %v22373_v25 = vld [vmem:[#allocation12_spill] sm:$0xff] }
 0x237   : > { %16773 = vmatmul.mubr.bf16.gmra.mrb[28].mxu0 %v22371_v51  ;;  %v611_v16 = vrot.slane %v610_v28, 4  ;;  %v620_v50 = vor.u32 %v619_v32, %v615_v23  ;;  %v633_v31 = vrot.slane %v631_v0, 5  ;;  %v7204_v55 = vrot.slane %v7202_v10, 5 }
 0x238   : > { %16776 = vmatprep.mubr.bf16.mxu0 %v22372_v30  ;;  %v639_v21 = vrot.slane %v637_v19, 5  ;;  %v641_v61 = vshrl.u32 %v298_v35, 16  ;;  %v647_v26 = vshll.u32 %v299_v36, 16  ;;  %v7207_v48 = vrot.slane %v7205_v15, 6 }
 0x239   : > { %v616_v11 = vsel %vm18147_vm2, %v611_v16, %v615_v23  ;;  %v621_v5 = vrot.slane %v620_v50, 4  ;;  %v634_v12 = vor.u32 %v633_v31, %v630_v3  ;;  %v7213_v57 = vrot.slane %v7211_v7, 5  ;;  %v301_v31 = vld [vmem:[%s18131_s6 + $0xac] sm:$0xf] }
 0x23a   : > { %v7220_v17 = vshrl.u32 %v15224_v41, 16  ;;  %v7223_v52 = vshll.u32 %v15224_v41, 16  ;;  %v643_v51 = vrot.slane %v641_v61, 4  ;;  %v22374_v49 = vcombine.low %v20520_v18, %v22373_v25  ;;  %v302_v61 = vld [vmem:[%s18131_s6 + $0xb0] sm:$0x1] }
 0x23b   : > { %v7216_v13 = vrot.slane %v7214_v37, 6  ;;  %v7230_v22 = vshrl.u32 %v15225_v59, 16  ;;  %v626_v35 = vsel %vm18147_vm2, %v621_v5, %v625_v9  ;;  %v635_v10 = vrot.slane %v634_v12, 4  ;;  %v300_v9 = vld [vmem:[%s18131_s6 + $0xa8] sm:$0xf] }
 0x23c   : > { %v7233_v63 = vshll.u32 %v15225_v59, 16  ;;  %v14558_v36 = vcombine.low %v616_v11, %v626_v35  ;;  %v644_v30 = vor.u32 %v643_v51, %v639_v21  ;;  %v649_v15 = vrot.slane %v647_v26, 5 }
 0x23d   : > { %v7144_v7 = vrot.slane %v20807_v43, 4  ;;  %v7152_v54 = vor.u32 %v20818_v42, %v20816_v44  ;;  %v20853_v18 = vrot.slane %v7161_v33, 4  ;;  %v7180_v40 = vor.u32 %v20822_v62, %v20820_v60  ;;  %v15226_v33 = vld [vmem:[%s18131_s6 + $0xa8] sm:$0xe] }
 0x23e   : > { %v7222_v41 = vrot.slane %v7220_v17, 5  ;;  %v7225_v28 = vrot.slane %v7223_v52, 6  ;;  %16404 = vmatprep.mubr.bf16.mxu1 %v14558_v36  ;;  %v645_v23 = vrot.slane %v644_v30, 4  ;;  %v7172_v32 = vrot.slane %v20827_v53, 4 }
 0x23f   : > { %16777 = vmatmul.mubr.bf16.gmra.mrb[32].mxu0 %v22374_v49  ;;  %v20860_v0 = vrot.slane %v7189_v29, 4  ;;  %v7200_v44 = vrot.slane %v20840_v34, 4  ;;  %v7208_v42 = vor.u32 %v7207_v48, %v7204_v55  ;;  %v7217_v59 = vor.u32 %v7216_v13, %v7213_v57  ;;  %v303_v57 = vld [vmem:[%s18131_s6 + $0xb4] sm:$0xf]  ;;  %v304_v49 = vld [vmem:[%s18131_s6 + $0xb8] sm:$0xf] }
 0x240   : > { %16796 = vmatprep.mubr.bf16.mxu0 %v20585_v20  ;;  %v640_v20 = vsel %vm18147_vm2, %v635_v10, %v639_v21  ;;  %v20864_v37 = vrot.slane %v7230_v22, 5  ;;  %v20866_v60 = vrot.slane %v7233_v63, 6  ;;  %v650_v62 = vsel %vm18147_vm2, %v645_v23, %v649_v15  ;;  %v15228_v10 = vld [vmem:[%s18131_s6 + $0xb0] sm:$0x3] }
 0x241   : > { %v7115_v29 = vsel %vm18582_vm8, %v20740_v38, %v20720_v27  ;;  %v20882_v3 = vsel %vm18582_vm8, %v7116_v4, %v7124_v39  ;;  %v7143_v19 = vsel %vm18582_vm8, %v20795_v24, %v20807_v43  ;;  %v14559_v16 = vcombine.low %v640_v20, %v650_v62  ;;  %v15227_v4 = vld [vmem:[%s18131_s6 + $0xac] sm:$0xf] }
 0x242   : > { %v20890_v50 = vsel %vm18582_vm8, %v7144_v7, %v7152_v54  ;;  %v7171_v46 = vsel %vm18582_vm8, %v20853_v18, %v20827_v53  ;;  %v20896_v45 = vor.u32 %v7225_v28, %v7222_v41  ;;  %v7239_v39 = vshrl.u32 %v15226_v33, 16  ;;  %v15233_v53 = vld [vmem:[%s18131_s6 + $0xc4] sm:$0xf] }
 0x243   : > { %v20903_v55 = vsel %vm18582_vm8, %v7172_v32, %v7180_v40  ;;  %v7199_v21 = vsel %vm18582_vm8, %v20860_v0, %v20840_v34  ;;  %16405 = vmatmul.mubr.bf16.gmra.mrb[8].mxu1 %v14559_v16  ;;  %v652_v26 = vshrl.u32 %v300_v9, 16  ;;  %v655_v48 = vshll.u32 %v300_v9, 16  ;;  %v305_v40 = vld [vmem:[%s18131_s6 + $0xbc] sm:$0x1]  ;;  %v15230_v16 = vld [vmem:[%s18131_s6 + $0xb8] sm:$0xf] }
 0x244   : > { %v20915_v11 = vrot.slane %v7217_v59, 4  ;;  %v7236_v5 = vor.u32 %v20866_v60, %v20864_v37  ;;  %v7242_v12 = vshll.u32 %v15226_v33, 16  ;;  %v7248_v17 = vshrl.u32 %v15227_v4, 16  ;;  %v308_v34 = vld [vmem:[%s18131_s6 + $0xc8] sm:$0x1] }
 0x245   : > { %v654_v52 = vrot.slane %v652_v26, 4  ;;  %v657_v51 = vrot.slane %v655_v48, 5  ;;  %v661_v25 = vshll.u32 %v301_v31, 16  ;;  %v7228_v13 = vrot.slane %v20896_v45, 4 }
 0x246   : > { %v665_v22 = vshrl.u32 %v301_v31, 16  ;;  %v671_v35 = vshll.u32 %v302_v61, 16  ;;  %v7251_v63 = vshll.u32 %v15227_v4, 16  ;;  %v676_v15 = vshrl.u32 %v303_v57, 16 }
 0x247   : > { %16797 = vmatmul.mubr.bf16.vlgmr.msra.gmra.mrb[0].mxu0 %v20587_v47  ;;  %v20913_v47 = vsel %vm18582_vm8, %v7200_v44, %v7208_v42  ;;  %v658_v36 = vor.u32 %v657_v51, %v654_v52  ;;  %v663_v30 = vrot.slane %v661_v25, 5  ;;  %v7244_v7 = vrot.slane %v7242_v12, 6  ;;  %v15229_v42 = vld [vmem:[%s18131_s6 + $0xb4] sm:$0xe] }
 0x248   : > { %16800 = vmatprep.mubr.bf16.mxu0 %v20662_v2  ;;  %v20922_v2 = vrot.slane %v7239_v39, 5  ;;  %v667_v54 = vrot.slane %v665_v22, 4  ;;  %v679_v41 = vshll.u32 %v303_v57, 16  ;;  %v685_v28 = vshll.u32 %v304_v49, 16 }
 0x249   : > { %v7250_v20 = vrot.slane %v7248_v17, 5  ;;  %v659_v23 = vrot.slane %v658_v36, 4  ;;  %v678_v32 = vrot.slane %v676_v15, 4  ;;  %v689_v44 = vshrl.u32 %v304_v49, 16 }
 0x24a   : > { %v668_v33 = vor.u32 %v667_v54, %v663_v30  ;;  %v673_v59 = vrot.slane %v671_v35, 5  ;;  %v681_v37 = vrot.slane %v679_v41, 5  ;;  %v687_v60 = vrot.slane %v685_v28, 5  ;;  %v15231_v35 = vld [vmem:[%s18131_s6 + $0xbc] sm:$0x3] }
 0x24b   : > { %v7253_v62 = vrot.slane %v7251_v63, 6  ;;  %v7258_v9 = vshrl.u32 %v15228_v10, 16  ;;  %v691_v4 = vrot.slane %v689_v44, 4  ;;  %v695_v39 = vshll.u32 %v305_v40, 16 }
 0x24c   : > { %v7261_v31 = vshll.u32 %v15228_v10, 16  ;;  %v664_v61 = vsel %vm18147_vm2, %v659_v23, %v663_v30  ;;  %v669_v26 = vrot.slane %v668_v33, 4  ;;  %v682_v48 = vor.u32 %v681_v37, %v678_v32 }
 0x24d   : > { %v7267_v12 = vshrl.u32 %v15229_v42, 16  ;;  %v7270_v57 = vshll.u32 %v15229_v42, 16  ;;  %v692_v17 = vor.u32 %v691_v4, %v687_v60  ;;  %v697_v52 = vrot.slane %v695_v39, 5 }
 0x24e   : > { %v7276_v51 = vshrl.u32 %v15230_v16, 16  ;;  %v674_v25 = vsel %vm18147_vm2, %v669_v26, %v673_v59  ;;  %v683_v49 = vrot.slane %v682_v48, 4  ;;  %v7237_v22 = vsel %vm18582_vm8, %v7228_v13, %v7236_v5  ;;  %v15235_v26 = vld [vmem:[%s18131_s6 + $0xcc] sm:$0xe] }
 0x24f   : > { %16801 = vmatmul.mubr.bf16.gmra.mrb[4].mxu0 %v20664_v6  ;;  %v7279_v6 = vshll.u32 %v15230_v16, 16  ;;  %v14560_v10 = vcombine.low %v664_v61, %v674_v25  ;;  %v693_v63 = vrot.slane %v692_v17, 4  ;;  %v7245_v36 = vor.u32 %v7244_v7, %v20922_v2  ;;  %v306_v2 = vld [vmem:[%s18131_s6 + $0xc0] sm:$0xf]  ;;  %v15234_v16 = vld [vmem:[%s18131_s6 + $0xc8] sm:$0x3] }
 0x250   : > { %16804 = vmatprep.mubr.bf16.mxu0 %v20730_v14  ;;  %v7227_v14 = vsel %vm18582_vm8, %v20915_v11, %v20896_v45  ;;  %v20942_v30 = vor.u32 %v7253_v62, %v7250_v20  ;;  %v7260_v15 = vrot.slane %v7258_v9, 5  ;;  %v688_v54 = vsel %vm18147_vm2, %v683_v49, %v687_v60  ;;  %v15232_v11 = vld [vmem:[%s18131_s6 + $0xc0] sm:$0xe]  ;;  %v309_v25 = vld [vmem:[%s18131_s6 + $0xcc] sm:$0xf] }
 0x251   : > { %v7263_v40 = vrot.slane %v7261_v31, 6  ;;  %v7269_v41 = vrot.slane %v7267_v12, 5  ;;  %v7272_v28 = vrot.slane %v7270_v57, 6  ;;  %16408 = vmatprep.mubr.bf16.mxu1 %v14560_v10  ;;  %v698_v45 = vsel %vm18147_vm2, %v693_v63, %v697_v52 }
 0x252   : > { %v7278_v5 = vrot.slane %v7276_v51, 5  ;;  %v7281_v13 = vrot.slane %v7279_v6, 6  ;;  %v7286_v23 = vshrl.u32 %v15231_v35, 16  ;;  %v14561_v32 = vcombine.low %v688_v54, %v698_v45 }
 0x253   : > { %v15267_v7 = vcombine.low %v7115_v29, %v20882_v3  ;;  %v15268_v20 = vcombine.low %v7143_v19, %v20890_v50  ;;  %v7289_v44 = vshll.u32 %v15231_v35, 16  ;;  %v20978_v27 = vcombine.low %v7199_v21, %v20913_v47  ;;  %v307_v19 = vld [vmem:[%s18131_s6 + $0xc4] sm:$0xf] }
 0x254   : > { %v20980_v38 = vcombine.low %v7227_v14, %v7237_v22  ;;  %v7246_v24 = vrot.slane %v7245_v36, 4  ;;  %v7256_v43 = vrot.slane %v20942_v30, 4  ;;  %16409 = vmatmul.mubr.bf16.gmra.mrb[12].mxu1 %v14561_v32  ;;  %v7273_v18 = vor.u32 %v7272_v28, %v7269_v41 }
 0x255   : > { %v7295_v29 = vshrl.u32 %v15232_v11, 16  ;;  %v7298_v3 = vshll.u32 %v15232_v11, 16  ;;  %v7264_v50 = vor.u32 %v7263_v40, %v7260_v15  ;;  %v703_v0 = vshll.u32 %v306_v2, 16  ;;  %v310_v15 = vld [vmem:[%s18131_s6 + $0xd0] sm:$0xf] }
 0x256   : > { %v7291_v21 = vrot.slane %v7289_v44, 6  ;;  %v7304_v47 = vshrl.u32 %v15233_v53, 16  ;;  %v7307_v42 = vshll.u32 %v15233_v53, 16  ;;  %v7255_v59 = vsel %vm18582_vm8, %v7246_v24, %v20942_v30 }
 0x257   : > { %16805 = vmatmul.mubr.bf16.gmra.mrb[8].mxu0 %v20785_v8  ;;  %v20969_v8 = vcombine.low %v7171_v46, %v20903_v55  ;;  %v20985_v46 = vor.u32 %v7281_v13, %v7278_v5  ;;  %v7288_v55 = vrot.slane %v7286_v23, 5  ;;  %v705_v37 = vrot.slane %v703_v0, 5  ;;  %v311_v13 = vld [vmem:[%s18131_s6 + $0xd4] sm:$0x1] }
 0x258   : > { %16808 = vmatprep.mubr.bf16.mxu0 %v20793_v58  ;;  %v700_v58 = vshrl.u32 %v306_v2, 16  ;;  %v709_v60 = vshll.u32 %v307_v19, 16  ;;  %v713_v62 = vshrl.u32 %v307_v19, 16  ;;  %v20991_v9 = vrot.slane %v7273_v18, 4  ;;  %v15236_v2 = vld [vmem:[%s18131_s6 + $0xd0] sm:$0xf] }
 0x259   : > { %v7297_v4 = vrot.slane %v7295_v29, 5  ;;  %v7300_v39 = vrot.slane %v7298_v3, 6  ;;  %v719_v31 = vshll.u32 %v308_v34, 16  ;;  %v7265_v61 = vsel %vm18582_vm8, %v7256_v43, %v7264_v50  ;;  %v15238_v18 = vld [vmem:[%s18131_s6 + $0xd8] sm:$0xe] }
 0x25a   : > { %v702_v33 = vrot.slane %v700_v58, 4  ;;  %v711_v12 = vrot.slane %v709_v60, 5  ;;  %v715_v57 = vrot.slane %v713_v62, 4  ;;  %v7284_v17 = vrot.slane %v20985_v46, 4  ;;  %v15239_v19 = vld [vmem:[%s18131_s6 + $0xdc] sm:$0xf] }
 0x25b   : > { %v7292_v52 = vor.u32 %v7291_v21, %v7288_v55  ;;  %v7306_v51 = vrot.slane %v7304_v47, 5  ;;  %v7309_v6 = vrot.slane %v7307_v42, 6  ;;  %v7314_v49 = vshrl.u32 %v15234_v16, 16  ;;  %v15237_v34 = vld [vmem:[%s18131_s6 + $0xd4] sm:$0x3] }
 0x25c   : > { %v706_v48 = vor.u32 %v705_v37, %v702_v33  ;;  %v716_v22 = vor.u32 %v715_v57, %v711_v12  ;;  %v721_v35 = vrot.slane %v719_v31, 5  ;;  %v20999_v10 = vcombine.low %v7255_v59, %v7265_v61  ;;  %v15240_v61 = vld [vmem:[%s18131_s6 + $0xe0] sm:$0x3] }
 0x25d   : > { %v7283_v63 = vsel %vm18582_vm8, %v20991_v9, %v20985_v46  ;;  %v7301_v36 = vor.u32 %v7300_v39, %v7297_v4  ;;  %v7317_v30 = vshll.u32 %v15234_v16, 16  ;;  %v7323_v54 = vshrl.u32 %v15235_v26, 16 }
 0x25e   : > { %v707_v14 = vrot.slane %v706_v48, 4  ;;  %v717_v41 = vrot.slane %v716_v22, 4  ;;  %v724_v28 = vshrl.u32 %v309_v25, 16  ;;  %v21010_v45 = vsel %vm18582_vm8, %v7284_v17, %v7292_v52 }
 0x25f   : > { %16809 = vmatmul.mubr.bf16.gmra.mrb[12].mxu0 %v15267_v7  ;;  %v21012_v11 = vor.u32 %v7309_v6, %v7306_v51  ;;  %v7326_v5 = vshll.u32 %v15235_v26, 16  ;;  %v727_v23 = vshll.u32 %v309_v25, 16  ;;  %v7316_v32 = vrot.slane %v7314_v49, 5  ;;  %v15241_v49 = vld [vmem:[%s18131_s6 + $0xe4] sm:$0xe] }
 0x260   : > { %16812 = vmatprep.mubr.bf16.mxu0 %v15268_v20  ;;  %v712_v40 = vsel %vm18147_vm2, %v707_v14, %v711_v12  ;;  %v722_v7 = vsel %vm18147_vm2, %v717_v41, %v721_v35  ;;  %v726_v20 = vrot.slane %v724_v28, 4  ;;  %v733_v44 = vshll.u32 %v310_v15, 16 }
 0x261   : > { %v21018_v24 = vrot.slane %v7301_v36, 4  ;;  %v7319_v43 = vrot.slane %v7317_v30, 6  ;;  %v14562_v53 = vcombine.low %v712_v40, %v722_v7  ;;  %v729_v29 = vrot.slane %v727_v23, 5  ;;  %v15242_v30 = vld [vmem:[%s18131_s6 + $0xe8] sm:$0xf] }
 0x262   : > { %v7325_v3 = vrot.slane %v7323_v54, 5  ;;  %v735_v58 = vrot.slane %v733_v44, 5  ;;  %v737_v50 = vshrl.u32 %v310_v15, 16  ;;  %v743_v55 = vshll.u32 %v311_v13, 16 }
 0x263   : > { %v7328_v0 = vrot.slane %v7326_v5, 6  ;;  %v7332_v21 = vshrl.u32 %v15236_v2, 16  ;;  %v7335_v47 = vshll.u32 %v15236_v2, 16  ;;  %16412 = vmatprep.mubr.bf16.mxu1 %v14562_v53  ;;  %v730_v42 = vor.u32 %v729_v29, %v726_v20 }
 0x264   : > { %v7312_v33 = vrot.slane %v21012_v11, 4  ;;  %v7351_v59 = vshrl.u32 %v15238_v18, 16  ;;  %v7354_v37 = vshll.u32 %v15238_v18, 16  ;;  %v739_v60 = vrot.slane %v737_v50, 4 }
 0x265   : > { %v7320_v62 = vor.u32 %v7319_v43, %v7316_v32  ;;  %v7360_v16 = vshrl.u32 %v15239_v19, 16  ;;  %v7363_v4 = vshll.u32 %v15239_v19, 16  ;;  %v731_v39 = vrot.slane %v730_v42, 4 }
 0x266   : > { %v7345_v31 = vshll.u32 %v15237_v34, 16  ;;  %v740_v26 = vor.u32 %v739_v60, %v735_v58  ;;  %v745_v48 = vrot.slane %v743_v55, 5  ;;  %v7329_v12 = vor.u32 %v7328_v0, %v7325_v3 }
 0x267   : > { %16813 = vmatmul.mubr.bf16.gmra.mrb[16].mxu0 %v20969_v8  ;;  %v7342_v8 = vshrl.u32 %v15237_v34, 16  ;;  %v7334_v57 = vrot.slane %v7332_v21, 5  ;;  %v7337_v17 = vrot.slane %v7335_v47, 6  ;;  %v7353_v52 = vrot.slane %v7351_v59, 5 }
 0x268   : > { %16816 = vmatprep.mubr.bf16.mxu0 %v20978_v27  ;;  %v7311_v27 = vsel %vm18582_vm8, %v21018_v24, %v21012_v11  ;;  %v7356_v51 = vrot.slane %v7354_v37, 6  ;;  %v736_v6 = vsel %vm18147_vm2, %v731_v39, %v735_v58  ;;  %v741_v25 = vrot.slane %v740_v26, 4  ;;  %v15243_v24 = vld [vmem:[%s18131_s6 + $0xec] sm:$0x3]  ;;  %v17924_v26 = vld [vmem:[%s22292_s2 + $0x10] sm:$0xff]  }
 0x269   : > { %v7362_v14 = vrot.slane %v7360_v16, 5  ;;  %v7365_v22 = vrot.slane %v7363_v4, 6  ;;  %v7370_v35 = vshrl.u32 %v15240_v61, 16  ;;  %v7373_v36 = vshll.u32 %v15240_v61, 16  ;;  %v17923_v61 = vld [vmem:[%s22292_s2 + $0x8] sm:$0xff]  }
 0x26a   : > { %v7321_v15 = vsel %vm18582_vm8, %v7312_v33, %v7320_v62  ;;  %v7344_v54 = vrot.slane %v7342_v8, 5  ;;  %v7347_v40 = vrot.slane %v7345_v31, 6  ;;  %v746_v41 = vsel %vm18147_vm2, %v741_v25, %v745_v48  ;;  %16834 = vmatprep.subr.bf16.mxu1 %v17923_v61  ;;  %v17925_v48 = vld [vmem:[%s22292_s2 + $0x18] sm:$0xff]  }
 0x26b   : > { %v7338_v28 = vor.u32 %v7337_v17, %v7334_v57  ;;  %v14563_v11 = vcombine.low %v736_v6, %v746_v41  ;;  %v7379_v5 = vshrl.u32 %v15241_v49, 16  ;;  %v7382_v13 = vshll.u32 %v15241_v49, 16  ;;  %16835 = vmatpush3.bf16.msra.mxu1 %v17923_v61  ;;  %v17929_v57 = vld [vmem:[%s22292_s2 + $0x38] sm:$0xff]   ;;  %v21084_v17 = vld [vmem:[%s22292_s2 + $0x40] sm:$0xff]  }
 0x26c   : > { %v7388_v23 = vshrl.u32 %v15242_v30, 16  ;;  %v7391_v32 = vshll.u32 %v15242_v30, 16  ;;  %v7357_v2 = vor.u32 %v7356_v51, %v7353_v52  ;;  %v7366_v7 = vor.u32 %v7365_v22, %v7362_v14  ;;  %16836 = vmatprep.subr.bf16.mxu1 %v17924_v26 }
 0x26d   : > { %v7372_v20 = vrot.slane %v7370_v35, 5  ;;  %v7375_v44 = vrot.slane %v7373_v36, 6  ;;  %16413 = vmatmul.mubr.bf16.gmra.mrb[16].mxu1 %v14563_v11  ;;  %v15274_v43 = vcombine.low %v7311_v27, %v7321_v15  ;;  %v7330_v53 = vrot.slane %v7329_v12, 4  ;;  %v17927_v27 = vld [vmem:[%s22292_s2 + $0x28] sm:$0xff]   ;;  %v17928_v12 = vld [vmem:[%s22292_s2 + $0x30] sm:$0xff]  }
 0x26e   : > { %v7340_v18 = vrot.slane %v7338_v28, 4  ;;  %v7348_v29 = vor.u32 %v7347_v40, %v7344_v54  ;;  %v7384_v3 = vrot.slane %v7382_v13, 6  ;;  %v7390_v19 = vrot.slane %v7388_v23, 5  ;;  %v21106_v36 = vld [vmem:[%s22293_s3] ss:$0 sm:$0xff] }
 0x26f   : > { %16817 = vmatmul.mubr.bf16.gmra.mrb[20].mxu0 %v20980_v38  ;;  %v15273_v38 = vcombine.low %v7283_v63, %v21010_v45  ;;  %v7393_v58 = vrot.slane %v7391_v32, 6  ;;  %v7398_v50 = vshrl.u32 %v15243_v24, 16  ;;  %v7401_v55 = vshll.u32 %v15243_v24, 16  ;;  %16837 = vmatpush3.bf16.msra.mxu1 %v17924_v26  ;;  %v8430_v26 = vld [vmem:[#allocation2 + $0x14] sm:$0x1] }
 0x270   : > { %16820 = vmatprep.mubr.bf16.mxu0 %v20999_v10  ;;  %v7381_v10 = vrot.slane %v7379_v5, 5  ;;  %v7358_v34 = vrot.slane %v7357_v2, 4  ;;  %v7368_v0 = vrot.slane %v7366_v7, 4  ;;  %v7376_v21 = vor.u32 %v7375_v44, %v7372_v20  ;;  %16838 = vmatprep.subr.bf16.mxu1 %v17925_v48 }
 0x271   : > { %v7339_v47 = vsel %vm18582_vm8, %v7330_v53, %v7338_v28  ;;  %v7349_v46 = vsel %vm18582_vm8, %v7340_v18, %v7348_v29  ;;  %v7394_v63 = vor.u32 %v7393_v58, %v7390_v19  ;;  %v7400_v45 = vrot.slane %v7398_v50, 5 }
 0x272   : > { %v7385_v9 = vor.u32 %v7384_v3, %v7381_v10  ;;  %v7403_v42 = vrot.slane %v7401_v55, 6  ;;  %v7367_v33 = vsel %vm18582_vm8, %v7358_v34, %v7366_v7  ;;  %v7377_v59 = vsel %vm18582_vm8, %v7368_v0, %v7376_v21 }
 0x273   : > { %v15275_v37 = vcombine.low %v7339_v47, %v7349_v46  ;;  %v15276_v60 = vcombine.low %v7367_v33, %v7377_v59  ;;  %v7396_v16 = vrot.slane %v7394_v63, 4  ;;  %16839 = vmatpush3.bf16.msra.mxu1 %v17925_v48  ;;  %v8426_v46 = vld [vmem:[#allocation2 + $0xc] sm:$0xf] }
 0x274   : > { %v7386_v62 = vrot.slane %v7385_v9, 4  ;;  %v7404_v4 = vor.u32 %v7403_v42, %v7400_v45  ;;  %16840 = vmatprep.subr.bf16.mxu1 %v17926_v56 }
 0x276   : > { %v7395_v39 = vsel %vm18582_vm8, %v7386_v62, %v7394_v63  ;;  %v7405_v8 = vsel %vm18582_vm8, %v7396_v16, %v7404_v4  ;;  %v8417_v62 = vld [vmem:[#allocation2] sm:$0xf] }
 0x277   : > { %16821 = vmatmul.mubr.bf16.gmra.mrb[24].mxu0 %v15273_v38  ;;  %v15277_v31 = vcombine.low %v7395_v39, %v7405_v8  ;;  %16841 = vmatpush3.bf16.msra.mxu1 %v17926_v56 }
 0x278   : > { %16824 = vmatprep.mubr.bf16.mxu0 %v15274_v43  ;;  %16842 = vmatprep.subr.bf16.mxu1 %v17927_v27 }
 0x27b   : > { %16843 = vmatpush3.bf16.msra.mxu1 %v17927_v27 }
 0x27c   : > { %16844 = vmatprep.subr.bf16.mxu1 %v17928_v12 }
 0x27f   : > { %16825 = vmatmul.mubr.bf16.gmra.mrb[28].mxu0 %v15275_v37  ;;  %16845 = vmatpush3.bf16.msra.mxu1 %v17928_v12 }
 0x280   : > { %16828 = vmatprep.mubr.bf16.mxu0 %v15276_v60  ;;  %16846 = vmatprep.subr.bf16.mxu1 %v17929_v57 }
 0x283   : > { %16847 = vmatpush3.bf16.msra.mxu1 %v17929_v57 }
 0x284   : > { %16880 = vmatprep.subr.bf16.mxu1 %v21084_v17 }
 0x287   : > { %16829 = vmatmul.mubr.bf16.gmra.mrb[32].mxu0 %v15277_v31 }
 0x2f2   : > { %v21087_v52 = vpop.f32.mrb[0].mxu1 }
 0x2f3   : > { %v21089_v51 = vpop.f32.mrb[1].mxu1 }
 0x2f4   : > { %v21091_v6 = vpop.f32.mrb[2].mxu1 }
 0x2f5   : > { %v21093_v25 = vpop.f32.mrb[3].mxu1 }
 0x302   : > { %v21095_v49 = vpop.f32.mrb[4].mxu1 }
 0x303   : > { %v21097_v14 = vpop.f32.mrb[5].mxu1 }
 0x304   : > { %v21099_v22 = vpop.f32.mrb[6].mxu1 }
 0x305   : > { %v21101_v35 = vpop.f32.mrb[7].mxu1 }
 0x316   : > { %v21108_v15 = vpop.f32.mrb[8].mxu1 }
 0x317   : > { %v21111_v41 = vpop.f32.mrb[9].mxu1 }
 0x318   : > { %v21114_v5 = vpop.f32.mrb[10].mxu1 }
 0x319   : > { %v21117_v2 = vpop.f32.mrb[11].mxu1 }
 0x31a   : > { %v16798_v30 = vpop.f32.mrb[0].mxu0 }
 0x31b   : > { %v7873_v54 = vadd.f32 %v16798_v30, %v21106_v36  ;;  %v7577_v40 = vpop.f32.mrb[1].mxu0  ;;  %v8423_v30 = vld [vmem:[#allocation2 + $0x8] sm:$0x1] }
 0x31c   : > { %v7871_v28 = vadd.f32 %v21106_v36, %v7577_v40  ;;  %v16799_v11 = vpop.f32.mrb[2].mxu0 }
 0x31d   : > { %v7909_v13 = vmax.f32 %v7873_v54, 0.0  ;;  %v7874_v23 = vadd.f32 %v16799_v11, %v21106_v36  ;;  %v7580_v32 = vpop.f32.mrb[3].mxu0 }
 0x31e   : > { %v7907_v7 = vmax.f32 %v7871_v28, 0.0  ;;  %v7872_v20 = vadd.f32 %v21106_v36, %v7580_v32 }
 0x31f   : > { %v15753_v44 = vpack.c.bf16 %v7909_v13, %v7909_v13  ;;  %v7910_v24 = vmax.f32 %v7874_v23, 0.0 }
 0x320   : > { %v15751_v38 = vpack.c.bf16 %v7907_v7, %v7907_v7  ;;  %v7908_v43 = vmax.f32 %v7872_v20, 0.0 }
 0x321   : > { %v8072_v53 = vshrl.u32 %v15753_v44, 16  ;;  %v15754_v18 = vpack.c.bf16 %v7910_v24, %v7910_v24  ;;  %v8075_v29 = vshll.u32 %v15753_v44, 16 }
 0x322   : > { %v8055_v10 = vshrl.u32 %v15751_v38, 16  ;;  %v8058_v3 = vshll.u32 %v15751_v38, 16  ;;  %v15752_v19 = vpack.c.bf16 %v7908_v43, %v7908_v43  ;;  %v16802_v58 = vpop.f32.mrb[4].mxu0 }
 0x323   : > { %v8074_v50 = vrot.slane %v8072_v53, 7  ;;  %v8080_v55 = vshrl.u32 %v15754_v18, 16  ;;  %v8083_v34 = vshll.u32 %v15754_v18, 16  ;;  %v7877_v0 = vadd.f32 %v16802_v58, %v21106_v36  ;;  %v7593_v21 = vpop.f32.mrb[5].mxu0  ;;  %v8440_v18 = vld [vmem:[#allocation2 + $0x24] sm:$0xf] }
 0x324   : > { %v8057_v9 = vrot.slane %v8055_v10, 7  ;;  %v8063_v63 = vshrl.u32 %v15752_v19, 16  ;;  %v8066_v45 = vshll.u32 %v15752_v19, 16  ;;  %v7875_v42 = vadd.f32 %v21106_v36, %v7593_v21  ;;  %v16803_v33 = vpop.f32.mrb[6].mxu0 }
 0x325   : > { %v8077_v59 = vor.u32 %v8075_v29, %v8074_v50  ;;  %v8078_v37 = vrot.slane %v8074_v50, 4  ;;  %v8082_v16 = vrot.slane %v8080_v55, 7  ;;  %v7913_v4 = vmax.f32 %v7877_v0, 0.0  ;;  %v7596_v39 = vpop.f32.mrb[7].mxu0  ;;  %v8433_v0 = vld [vmem:[#allocation2 + $0x18] sm:$0xf] }
 0x326   : > { %v8060_v8 = vor.u32 %v8058_v3, %v8057_v9  ;;  %v8061_v31 = vrot.slane %v8057_v9, 4  ;;  %v8065_v48 = vrot.slane %v8063_v63, 7  ;;  %v7911_v56 = vmax.f32 %v7875_v42, 0.0 }
 0x327   : > { %v8427_v27 = vsel %vm21123_vm14, %v8077_v59, %v8426_v46  ;;  %v8085_v12 = vor.u32 %v8083_v34, %v8082_v16  ;;  %v8087_v57 = vrot.slane %v8082_v16, 4  ;;  %v15757_v54 = vpack.c.bf16 %v7913_v4, %v7913_v4  ;;  %v21157_v58 = vpop.f32.mrb[12].mxu1 }
 0x328   : > { %8428 = vst [vmem:[#allocation2 + $0xc] sm:$0xf] %v8427_v27  ;;  %v8418_v40 = vsel %vm21123_vm14, %v8060_v8, %v8417_v62  ;;  %v8068_v28 = vor.u32 %v8066_v45, %v8065_v48  ;;  %v8070_v11 = vrot.slane %v8065_v48, 4  ;;  %v15755_v13 = vpack.c.bf16 %v7911_v56, %v7911_v56  ;;  %v21163_v9 = vpop.f32.mrb[13].mxu1 }
 0x329   : > { %8419 = vst [vmem:[#allocation2] sm:$0xf] %v8418_v40  ;;  %v8086_v23 = vsel %vm21136_vm0, %v8078_v37, %v8085_v12  ;;  %v8431_v32 = vsel %vm21130_vm15, %v8087_v57, %v8430_v26  ;;  %v8106_v7 = vshrl.u32 %v15757_v54, 16  ;;  %v8109_v24 = vshll.u32 %v15757_v54, 16  ;;  %v21167_v37 = vpop.f32.mrb[14].mxu1 }
 0x32a   : > { %8429 = vst [vmem:[#allocation2 + $0x10] sm:$0xf] %v8086_v23  ;;  %8432 = vst [vmem:[#allocation2 + $0x14] sm:$0x1] %v8431_v32  ;;  %v8069_v20 = vsel %vm21136_vm0, %v8061_v31, %v8068_v28  ;;  %v8424_v44 = vsel %vm21130_vm15, %v8070_v11, %v8423_v30  ;;  %v8089_v38 = vshrl.u32 %v15755_v13, 16  ;;  %v16806_v43 = vpop.f32.mrb[8].mxu0  ;;  %v7878_v29 = vadd.f32 %v16803_v33, %v21106_v36 }
 0x32b   : > { %8420 = vst [vmem:[#allocation2 + $0x4] sm:$0xf] %v8069_v20  ;;  %8425 = vst [vmem:[#allocation2 + $0x8] sm:$0x1] %v8424_v44  ;;  %v21152_v53 = vrot.slane %v8106_v7, 7  ;;  %v7876_v10 = vadd.f32 %v21106_v36, %v7596_v39  ;;  %v7881_v3 = vadd.f32 %v16806_v43, %v21106_v36  ;;  %v7609_v19 = vpop.f32.mrb[9].mxu0 }
 0x32c   : > { %v18067_v50 = vmov 0   ;;  %v21160_v55 = vrot.slane %v8089_v38, 7  ;;  %v8092_v34 = vshll.u32 %v15755_v13, 16  ;;  %v7879_v21 = vadd.f32 %v21106_v36, %v7609_v19  ;;  %v16807_v46 = vpop.f32.mrb[10].mxu0  ;;  %v21171_v8 = vpop.f32.mrb[15].mxu1 }
 0x32d   : > { %8659 = vst [vmem:[#allocation2 + $0x4] sm:$0xf] %v18067_v50  ;;  %v8111_v63 = vor.u32 %v8109_v24, %v21152_v53  ;;  %v8112_v45 = vrot.slane %v21152_v53, 4  ;;  %v7914_v42 = vmax.f32 %v7878_v29, 0.0  ;;  %v7912_v33 = vmax.f32 %v7876_v10, 0.0  ;;  %v7612_v59 = vpop.f32.mrb[11].mxu0 }
 0x32e   : > { %v8094_v62 = vor.u32 %v8092_v34, %v21160_v55  ;;  %v8095_v16 = vrot.slane %v21160_v55, 4  ;;  %v7917_v4 = vmax.f32 %v7881_v3, 0.0  ;;  %v7915_v39 = vmax.f32 %v7879_v21, 0.0  ;;  %v8444_v24 = vld [vmem:[#allocation2 + $0x2c] sm:$0x1] }
 0x32f   : > { %v8548_v31 = vld [vmem:[#allocation2 + $0xc] sm:$0x1]  ;;  %v8441_v48 = vsel %vm21123_vm14, %v8111_v63, %v8440_v18  ;;  %v15758_v56 = vpack.c.bf16 %v7914_v42, %v7914_v42  ;;  %v15756_v27 = vpack.c.bf16 %v7912_v33, %v7912_v33  ;;  %v7882_v12 = vadd.f32 %v16807_v46, %v21106_v36  ;;  %v8437_v43 = vld [vmem:[#allocation2 + $0x20] sm:$0x1]  ;;  %v8454_v55 = vld [vmem:[#allocation2 + $0x3c] sm:$0xf] }
 0x330   : > { %v8549_v57 = vsel %vm21130_vm15, 0, %v8548_v31  ;;  %v8545_v30 = vld [vmem:[#allocation2] sm:$0x1]  ;;  %8442 = vst [vmem:[#allocation2 + $0x24] sm:$0xf] %v8441_v48  ;;  %v8434_v54 = vsel %vm21123_vm14, %v8094_v62, %v8433_v0  ;;  %v15761_v40 = vpack.c.bf16 %v7917_v4, %v7917_v4  ;;  %v15759_v28 = vpack.c.bf16 %v7915_v39, %v7915_v39 }
 0x331   : > { %8550 = vst [vmem:[#allocation2 + $0xc] sm:$0x1] %v8549_v57  ;;  %v8546_v11 = vsel %vm21130_vm15, 0, %v8545_v30  ;;  %v8603_v13 = vld [vmem:[#allocation2 + $0x14] sm:$0x1]  ;;  %v8114_v23 = vshrl.u32 %v15758_v56, 16  ;;  %v7880_v42 = vadd.f32 %v21106_v36, %v7612_v59 }
 0x332   : > { %8435 = vst [vmem:[#allocation2 + $0x18] sm:$0xf] %v8434_v54  ;;  %v8117_v32 = vshll.u32 %v15758_v56, 16  ;;  %v8097_v7 = vshrl.u32 %v15756_v27, 16  ;;  %8547 = vst [vmem:[#allocation2] sm:$0x1] %v8546_v11 }
 0x333   : > { %v8604_v20 = vsel %vm21175_vm1, 0, %v8603_v13  ;;  %v8600_v44 = vld [vmem:[#allocation2 + $0x8] sm:$0x1]  ;;  %v8100_v38 = vshll.u32 %v15756_v27, 16  ;;  %v8140_v18 = vshrl.u32 %v15761_v40, 16  ;;  %v8143_v29 = vshll.u32 %v15761_v40, 16 }
 0x334   : > { %8658 = vst [vmem:[#allocation2] sm:$0xf] %v18067_v50  ;;  %8605 = vst [vmem:[#allocation2 + $0x14] sm:$0x1] %v8604_v20  ;;  %v8601_v10 = vsel %vm21175_vm1, 0, %v8600_v44  ;;  %v8116_v3 = vrot.slane %v8114_v23, 7 }
 0x335   : > { %v8099_v19 = vrot.slane %v8097_v7, 7  ;;  %v8123_v34 = vshrl.u32 %v15759_v28, 16  ;;  %v16810_v0 = vpop.f32.mrb[12].mxu0  ;;  %8602 = vst [vmem:[#allocation2 + $0x8] sm:$0x1] %v8601_v10  ;;  %v21193_v21 = vrot.slane %v8140_v18, 7 }
 0x336   : > { %v8126_v46 = vshll.u32 %v15759_v28, 16  ;;  %v7918_v63 = vmax.f32 %v7882_v12, 0.0  ;;  %v7625_v33 = vpop.f32.mrb[13].mxu0  ;;  %8660 = vst [vmem:[#allocation2 + $0x8] sm:$0x1] %v18067_v50  ;;  %v8119_v62 = vor.u32 %v8117_v32, %v8116_v3  ;;  %v8121_v4 = vrot.slane %v8116_v3, 4 }
 0x337   : > { %v8102_v39 = vor.u32 %v8100_v38, %v8099_v19  ;;  %v8104_v31 = vrot.slane %v8099_v19, 4  ;;  %v16811_v48 = vpop.f32.mrb[14].mxu0  ;;  %v8145_v56 = vor.u32 %v8143_v29, %v21193_v21  ;;  %v8146_v27 = vrot.slane %v21193_v21, 4  ;;  %v8554_v40 = vld [vmem:[#allocation2 + $0x24] sm:$0x1] }
 0x338   : > { %v21199_v57 = vrot.slane %v8123_v34, 7  ;;  %v15762_v30 = vpack.c.bf16 %v7918_v63, %v7918_v63  ;;  %v7628_v54 = vpop.f32.mrb[15].mxu0  ;;  %v8120_v59 = vsel %vm21136_vm0, %v8112_v45, %v8119_v62  ;;  %v8445_v12 = vsel %vm21130_vm15, %v8121_v4, %v8444_v24  ;;  %v8447_v13 = vld [vmem:[#allocation2 + $0x30] sm:$0xf]  ;;  %v13597_v1 = vld [vmem:[#allocation2 + $0x24] sm:$0xe] }
 0x339   : > { %v8103_v28 = vsel %vm21136_vm0, %v8095_v16, %v8102_v39  ;;  %v8438_v11 = vsel %vm21130_vm15, %v8104_v31, %v8437_v43  ;;  %v8555_v23 = vsel %vm21130_vm15, 0, %v8554_v40  ;;  %v8551_v32 = vld [vmem:[#allocation2 + $0x18] sm:$0x1]  ;;  %8443 = vst [vmem:[#allocation2 + $0x28] sm:$0xf] %v8120_v59  ;;  %v8455_v53 = vsel %vm21123_vm14, %v8145_v56, %v8454_v55  ;;  %v17931_v63 = vld [vmem:[#allocation2 + $0xc] sm:$0xff]  }
 0x33a   : > { %8446 = vst [vmem:[#allocation2 + $0x2c] sm:$0x1] %v8445_v12  ;;  %8436 = vst [vmem:[#allocation2 + $0x1c] sm:$0xf] %v8103_v28  ;;  %v8128_v45 = vor.u32 %v8126_v46, %v21199_v57  ;;  %v8129_v7 = vrot.slane %v21199_v57, 4  ;;  %v8552_v16 = vsel %vm21130_vm15, 0, %v8551_v32  ;;  %v7885_v43 = vadd.f32 %v16810_v0, %v21106_v36 }
 0x33b   : > { %8439 = vst [vmem:[#allocation2 + $0x20] sm:$0x1] %v8438_v11  ;;  %8556 = vst [vmem:[#allocation2 + $0x24] sm:$0x1] %v8555_v23  ;;  %v8148_v20 = vshrl.u32 %v15762_v30, 16  ;;  %v8151_v44 = vshll.u32 %v15762_v30, 16  ;;  %v7883_v18 = vadd.f32 %v21106_v36, %v7625_v33  ;;  %v7886_v29 = vadd.f32 %v16811_v48, %v21106_v36 }
 0x33c   : > { %8456 = vst [vmem:[#allocation2 + $0x3c] sm:$0xf] %v8455_v53  ;;  %v7916_v24 = vmax.f32 %v7880_v42, 0.0  ;;  %8553 = vst [vmem:[#allocation2 + $0x18] sm:$0x1] %v8552_v16  ;;  %v8448_v38 = vsel %vm21123_vm14, %v8128_v45, %v8447_v13  ;;  %v16814_v10 = vpop.f32.mrb[16].mxu0  ;;  %v21225_v34 = vadd.f32 %v21106_v36, %v7628_v54 }
 0x33d   : > { %v17930_v3 = vld [vmem:[#allocation2] sm:$0xff]   ;;  %8449 = vst [vmem:[#allocation2 + $0x30] sm:$0xf] %v8448_v38  ;;  %v8150_v19 = vrot.slane %v8148_v20, 7  ;;  %v17280_v21 = vadd.f32 %v16814_v10, %v21087_v52  ;;  %v7641_v46 = vpop.f32.mrb[17].mxu0  ;;  %v17935_v0 = vld [vmem:[%s22292_s2 + $0x48] sm:$0xff]  }
 0x33e   : > { %v15760_v55 = vpack.c.bf16 %v7916_v24, %v7916_v24  ;;  %v8458_v42 = vld [vmem:[#allocation2 + $0x44] sm:$0x1]  ;;  %v7921_v33 = vmax.f32 %v7885_v43, 0.0  ;;  %v7919_v62 = vmax.f32 %v7883_v18, 0.0  ;;  %v7922_v4 = vmax.f32 %v7886_v29, 0.0  ;;  %v21234_v31 = vpop.f32.mrb[18].mxu0  ;;  %16848 = vmatprep.mubr.bf16.mxu1 %v17930_v3 }
 0x33f   : > { %v21232_v39 = vadd.f32 %v7641_v46, %v21089_v51  ;;  %v8153_v48 = vor.u32 %v8151_v44, %v8150_v19  ;;  %v8155_v56 = vrot.slane %v8150_v19, 4  ;;  %v21236_v54 = vpop.f32.mrb[19].mxu0  ;;  %16849 = vmatmul.mubr.bf16.vlgmr.msra.gmra.mrb[20].mxu1 %v17931_v63  ;;  %v8451_v40 = vld [vmem:[#allocation2 + $0x38] sm:$0x1]  ;;  %v7920_v11 = vmax.f32 %v21225_v34, 0.0  ;;  %v17938_v16 = vld [vmem:[%s22292_s2 + $0x50] sm:$0xff]  }
 0x340   : > { %v8131_v30 = vshrl.u32 %v15760_v55, 16  ;;  %v8134_v52 = vshll.u32 %v15760_v55, 16  ;;  %v15765_v59 = vpack.c.bf16 %v7921_v33, %v7921_v33  ;;  %v15763_v12 = vpack.c.bf16 %v7919_v62, %v7919_v62  ;;  %16881 = vmatpush3.bf16.msra.mxu1 %v21084_v17  ;;  %v8468_v29 = vld [vmem:[#allocation2 + $0x54] sm:$0xf]  ;;  %v21259_v19 = vld [vmem:[%s22292_s2 + $0x58] sm:$0xff]  }
 0x341   : > { %v15766_v28 = vpack.c.bf16 %v7922_v4, %v7922_v4  ;;  %v8609_v51 = vld [vmem:[#allocation2 + $0x2c] sm:$0x1]  ;;  %v8154_v23 = vsel %vm21136_vm0, %v8146_v27, %v8153_v48  ;;  %v8459_v32 = vsel %vm21130_vm15, %v8155_v56, %v8458_v42  ;;  %v21245_v45 = vadd.f32 %v17280_v21, %v21106_v36  ;;  %16882 = vmatprep.subr.bf16.mxu1 %v17935_v0  ;;  %v8461_v46 = vld [vmem:[#allocation2 + $0x48] sm:$0xf]  ;;  %v8472_v56 = vld [vmem:[#allocation2 + $0x5c] sm:$0x1] }
 0x342   : > { %v8606_v13 = vld [vmem:[#allocation2 + $0x20] sm:$0x1]  ;;  %v8133_v53 = vrot.slane %v8131_v30, 7  ;;  %v8610_v17 = vsel %vm21175_vm1, 0, %v8609_v51  ;;  %8457 = vst [vmem:[#allocation2 + $0x40] sm:$0xf] %v8154_v23  ;;  %v15764_v57 = vpack.c.bf16 %v7920_v11, %v7920_v11  ;;  %v7887_v23 = vadd.f32 %v21232_v39, %v21106_v36 }
 0x343   : > { %v8607_v20 = vsel %vm21175_vm1, 0, %v8606_v13  ;;  %v8560_v44 = vld [vmem:[#allocation2 + $0x3c] sm:$0x1]  ;;  %8460 = vst [vmem:[#allocation2 + $0x44] sm:$0x1] %v8459_v32  ;;  %v8174_v27 = vshrl.u32 %v15765_v59, 16 }
 0x344   : > { %v8177_v24 = vshll.u32 %v15765_v59, 16  ;;  %8611 = vst [vmem:[#allocation2 + $0x2c] sm:$0x1] %v8610_v17  ;;  %8608 = vst [vmem:[#allocation2 + $0x20] sm:$0x1] %v8607_v20  ;;  %v8561_v38 = vsel %vm21130_vm15, 0, %v8560_v44  ;;  %v8136_v43 = vor.u32 %v8134_v52, %v8133_v53  ;;  %16883 = vmatpush3.bf16.msra.mxu1 %v17935_v0 }
 0x345   : > { %v8138_v18 = vrot.slane %v8133_v53, 4  ;;  %v8157_v10 = vshrl.u32 %v15763_v12, 16  ;;  %v17933_v3 = vld [vmem:[#allocation2 + $0x18] sm:$0xff]   ;;  %8562 = vst [vmem:[#allocation2 + $0x3c] sm:$0x1] %v8561_v38  ;;  %v8176_v34 = vrot.slane %v8174_v27, 7  ;;  %16884 = vmatprep.subr.bf16.mxu1 %v17938_v16 }
 0x346   : > { %v8557_v55 = vld [vmem:[#allocation2 + $0x30] sm:$0x1]  ;;  %v8160_v21 = vshll.u32 %v15763_v12, 16  ;;  %v8182_v63 = vshrl.u32 %v15766_v28, 16  ;;  %v8185_v42 = vshll.u32 %v15766_v28, 16  ;;  %v8137_v62 = vsel %vm21136_vm0, %v8129_v7, %v8136_v43  ;;  %v16818_v30 = vpop.f32.mrb[20].mxu0  ;;  %16852 = vmatprep.mubr.bf16.mxu1 %v17933_v3 }
 0x347   : > { %v8558_v33 = vsel %vm21130_vm15, 0, %v8557_v55  ;;  %v8452_v4 = vsel %vm21130_vm15, %v8138_v18, %v8451_v40  ;;  %v21269_v48 = vrot.slane %v8157_v10, 7  ;;  %v17934_v52 = vld [vmem:[#allocation2 + $0x24] sm:$0xff]   ;;  %8450 = vst [vmem:[#allocation2 + $0x34] sm:$0xf] %v8137_v62  ;;  %v8179_v0 = vor.u32 %v8177_v24, %v8176_v34  ;;  %v21271_v28 = vpop.f32.mrb[21].mxu0 }
 0x348   : > { %8559 = vst [vmem:[#allocation2 + $0x30] sm:$0x1] %v8558_v33  ;;  %8453 = vst [vmem:[#allocation2 + $0x38] sm:$0x1] %v8452_v4  ;;  %v8180_v59 = vrot.slane %v8176_v34, 4  ;;  %v8184_v12 = vrot.slane %v8182_v63, 7  ;;  %16853 = vmatmul.mubr.bf16.gmra.mrb[24].mxu1 %v17934_v52  ;;  %v17282_v33 = vadd.f32 %v21234_v31, %v21091_v6  ;;  %v17283_v52 = vadd.f32 %v21236_v54, %v21093_v25 }
 0x349   : > { %v21273_v7 = vpop.f32.mrb[16].mxu1  ;;  %v8162_v40 = vor.u32 %v8160_v21, %v21269_v48  ;;  %v8163_v51 = vrot.slane %v21269_v48, 4  ;;  %v7925_v13 = vmax.f32 %v21245_v45, 0.0  ;;  %v21280_v32 = vpop.f32.mrb[22].mxu0  ;;  %v8469_v11 = vsel %vm21123_vm14, %v8179_v0, %v8468_v29  ;;  %16885 = vmatpush3.bf16.msra.mxu1 %v17938_v16  ;;  %v17944_v39 = vld [vmem:[%s22292_s2 + $0x60] sm:$0xff]  }
 0x34a   : > { %v21282_v53 = vpop.f32.mrb[17].mxu1  ;;  %v8187_v17 = vor.u32 %v8185_v42, %v8184_v12  ;;  %v8189_v20 = vrot.slane %v8184_v12, 4  ;;  %v8165_v44 = vshrl.u32 %v15764_v57, 16  ;;  %v21286_v27 = vpop.f32.mrb[23].mxu0  ;;  %v8615_v45 = vld [vmem:[#allocation2 + $0x44] sm:$0x1]  ;;  %16886 = vmatprep.subr.bf16.mxu1 %v21259_v19 }
 0x34b   : > { %v21288_v24 = vpop.f32.mrb[18].mxu1  ;;  %8470 = vst [vmem:[#allocation2 + $0x54] sm:$0xf] %v8469_v11  ;;  %v8462_v38 = vsel %vm21123_vm14, %v8162_v40, %v8461_v46  ;;  %v8168_v43 = vshll.u32 %v15764_v57, 16  ;;  %v15769_v18 = vpack.c.bf16 %v7925_v13, %v7925_v13  ;;  %v7923_v29 = vmax.f32 %v7887_v23, 0.0  ;;  %v21309_v0 = vpop.f32.mrb[24].mxu0 }
 0x34c   : > { %v8616_v10 = vsel %vm21175_vm1, 0, %v8615_v45  ;;  %8463 = vst [vmem:[#allocation2 + $0x48] sm:$0xf] %v8462_v38  ;;  %v8188_v16 = vsel %vm21136_vm0, %v8180_v59, %v8187_v17  ;;  %v8473_v3 = vsel %vm21130_vm15, %v8189_v20, %v8472_v56  ;;  %v8167_v55 = vrot.slane %v8165_v44, 7  ;;  %v21302_v34 = vpop.f32.mrb[19].mxu1  ;;  %v17947_v59 = vld [vmem:[%s22292_s2 + $0x68] sm:$0xff]  }
 0x34d   : > { %8617 = vst [vmem:[#allocation2 + $0x44] sm:$0x1] %v8616_v10  ;;  %8471 = vst [vmem:[#allocation2 + $0x58] sm:$0xf] %v8188_v16  ;;  %v8465_v21 = vld [vmem:[#allocation2 + $0x50] sm:$0x1]  ;;  %v15767_v42 = vpack.c.bf16 %v7923_v29, %v7923_v29  ;;  %v17284_v56 = vadd.f32 %v16818_v30, %v21095_v49  ;;  %16887 = vmatpush3.bf16.msra.mxu1 %v21259_v19  ;;  %v7890_v40 = vadd.f32 %v17282_v33, %v21106_v36 }
 0x34e   : > { %8474 = vst [vmem:[#allocation2 + $0x5c] sm:$0x1] %v8473_v3  ;;  %v8208_v46 = vshrl.u32 %v15769_v18, 16  ;;  %v8211_v63 = vshll.u32 %v15769_v18, 16  ;;  %v8170_v62 = vor.u32 %v8168_v43, %v8167_v55  ;;  %v8172_v4 = vrot.slane %v8167_v55, 4  ;;  %v21318_v13 = vpop.f32.mrb[25].mxu0  ;;  %16888 = vmatprep.subr.bf16.mxu1 %v17944_v39 }
 0x34f   : > { %v8482_v48 = vld [vmem:[#allocation2 + $0x6c] sm:$0xf]  ;;  %v8612_v12 = vld [vmem:[#allocation2 + $0x38] sm:$0x1]  ;;  %v8191_v6 = vshrl.u32 %v15767_v42, 16  ;;  %v8194_v31 = vshll.u32 %v15767_v42, 16  ;;  %v7888_v19 = vadd.f32 %v17283_v52, %v21106_v36  ;;  %v7893_v18 = vadd.f32 %v17284_v56, %v21106_v36 }
 0x350   : > { %v21315_v57 = vrot.slane %v8208_v46, 7  ;;  %v8613_v25 = vsel %vm21175_vm1, 0, %v8612_v12  ;;  %v8171_v49 = vsel %vm21136_vm0, %v8163_v51, %v8170_v62  ;;  %v8466_v54 = vsel %vm21130_vm15, %v8172_v4, %v8465_v21  ;;  %v21327_v30 = vpop.f32.mrb[26].mxu0  ;;  %v17936_v44 = vld [vmem:[#allocation2 + $0x30] sm:$0xff]   ;;  %v8475_v38 = vld [vmem:[#allocation2 + $0x60] sm:$0xf] }
 0x351   : > { %8614 = vst [vmem:[#allocation2 + $0x38] sm:$0x1] %v8613_v25  ;;  %8464 = vst [vmem:[#allocation2 + $0x4c] sm:$0xf] %v8171_v49  ;;  %v21331_v17 = vrot.slane %v8191_v6, 7  ;;  %v7926_v20 = vmax.f32 %v7890_v40, 0.0  ;;  %v17285_v29 = vadd.f32 %v21271_v28, %v21097_v14  ;;  %v17286_v10 = vadd.f32 %v21280_v32, %v21099_v22  ;;  %16889 = vmatpush3.bf16.msra.mxu1 %v17944_v39 }
 0x352   : > { %8467 = vst [vmem:[#allocation2 + $0x50] sm:$0x1] %v8466_v54  ;;  %v8213_v23 = vor.u32 %v8211_v63, %v21315_v57  ;;  %v8214_v11 = vrot.slane %v21315_v57, 4  ;;  %v21333_v45 = vpop.f32.mrb[27].mxu0  ;;  %v8566_v51 = vld [vmem:[#allocation2 + $0x54] sm:$0x1]  ;;  %16856 = vmatprep.mubr.bf16.mxu1 %v17936_v44  ;;  %16890 = vmatprep.subr.bf16.mxu1 %v17947_v59 }
 0x353   : > { %v7924_v43 = vmax.f32 %v7888_v19, 0.0  ;;  %v17937_v16 = vld [vmem:[#allocation2 + $0x3c] sm:$0xff]   ;;  %v8567_v3 = vsel %vm21130_vm15, 0, %v8566_v51  ;;  %v8563_v55 = vld [vmem:[#allocation2 + $0x48] sm:$0x1]  ;;  %v8196_v46 = vor.u32 %v8194_v31, %v21331_v17  ;;  %v8197_v63 = vrot.slane %v21331_v17, 4 }
 0x354   : > { %v8483_v21 = vsel %vm21123_vm14, %v8213_v23, %v8482_v48  ;;  %v17950_v14 = vld [vmem:[%s22292_s2 + $0x70] sm:$0xff]   ;;  %8568 = vst [vmem:[#allocation2 + $0x54] sm:$0x1] %v8567_v3  ;;  %v8564_v22 = vsel %vm21130_vm15, 0, %v8563_v55  ;;  %v15770_v32 = vpack.c.bf16 %v7926_v20, %v7926_v20  ;;  %v7929_v42 = vmax.f32 %v7893_v18, 0.0  ;;  %16857 = vmatmul.mubr.bf16.gmra.mrb[28].mxu1 %v17937_v16  ;;  %v21357_v31 = vpop.f32.mrb[28].mxu0 }
 0x355   : > { %v8621_v28 = vld [vmem:[#allocation2 + $0x5c] sm:$0x1]  ;;  %8484 = vst [vmem:[#allocation2 + $0x6c] sm:$0xf] %v8483_v21  ;;  %v15768_v39 = vpack.c.bf16 %v7924_v43, %v7924_v43  ;;  %8565 = vst [vmem:[#allocation2 + $0x48] sm:$0x1] %v8564_v22  ;;  %v8476_v62 = vsel %vm21123_vm14, %v8196_v46, %v8475_v38  ;;  %v7891_v4 = vadd.f32 %v17285_v29, %v21106_v36  ;;  %16891 = vmatpush3.bf16.msra.mxu1 %v17947_v59 }
 0x356   : > { %v8622_v33 = vsel %vm21175_vm1, 0, %v8621_v28  ;;  %v7894_v48 = vadd.f32 %v17286_v10, %v21106_v36  ;;  %8477 = vst [vmem:[#allocation2 + $0x60] sm:$0xf] %v8476_v62  ;;  %v8216_v52 = vshrl.u32 %v15770_v32, 16  ;;  %v8219_v56 = vshll.u32 %v15770_v32, 16  ;;  %v21361_v23 = vpop.f32.mrb[29].mxu0  ;;  %16892 = vmatprep.subr.bf16.mxu1 %v17950_v14 }
 0x357   : > { %8623 = vst [vmem:[#allocation2 + $0x5c] sm:$0x1] %v8622_v33  ;;  %v8199_v12 = vshrl.u32 %v15768_v39, 16  ;;  %v8202_v6 = vshll.u32 %v15768_v39, 16  ;;  %v8486_v40 = vld [vmem:[#allocation2 + $0x74] sm:$0x1]  ;;  %v15773_v25 = vpack.c.bf16 %v7929_v42, %v7929_v42  ;;  %v17287_v19 = vadd.f32 %v21286_v27, %v21101_v35 }
 0x358   : > { %v7927_v49 = vmax.f32 %v7891_v4, 0.0  ;;  %v7930_v54 = vmax.f32 %v7894_v48, 0.0  ;;  %v17953_v20 = vld [vmem:[%s22292_s2 + $0x78] sm:$0xff]   ;;  %v8218_v51 = vrot.slane %v8216_v52, 7  ;;  %v17288_v59 = vadd.f32 %v21309_v0, %v21108_v15  ;;  %v21370_v18 = vpop.f32.mrb[30].mxu0  ;;  %v21379_v39 = vld [vmem:[%s22292_s2 + $0x80] sm:$0xff]  }
 0x359   : > { %v8618_v44 = vld [vmem:[#allocation2 + $0x50] sm:$0x1]  ;;  %v8201_v38 = vrot.slane %v8199_v12, 7  ;;  %v17289_v43 = vadd.f32 %v21318_v13, %v21111_v41  ;;  %v8242_v27 = vshrl.u32 %v15773_v25, 16  ;;  %v8245_v29 = vshll.u32 %v15773_v25, 16  ;;  %v21374_v16 = vpop.f32.mrb[31].mxu0  ;;  %16893 = vmatpush3.bf16.msra.mxu1 %v17950_v14 }
 0x35a   : > { %v8619_v35 = vsel %vm21175_vm1, 0, %v8618_v44  ;;  %v15771_v10 = vpack.c.bf16 %v7927_v49, %v7927_v49  ;;  %v8221_v3 = vor.u32 %v8219_v56, %v8218_v51  ;;  %v8223_v55 = vrot.slane %v8218_v51, 4  ;;  %v8479_v22 = vld [vmem:[#allocation2 + $0x68] sm:$0x1]  ;;  %v8496_v15 = vld [vmem:[#allocation2 + $0x84] sm:$0xf]  ;;  %16894 = vmatprep.subr.bf16.mxu1 %v17953_v20 }
 0x35b   : > { %8620 = vst [vmem:[#allocation2 + $0x50] sm:$0x1] %v8619_v35  ;;  %v8204_v21 = vor.u32 %v8202_v6, %v8201_v38  ;;  %v8206_v46 = vrot.slane %v8201_v38, 4  ;;  %v8244_v41 = vrot.slane %v8242_v27, 7  ;;  %v15774_v32 = vpack.c.bf16 %v7930_v54, %v7930_v54  ;;  %v17940_v12 = vld [vmem:[#allocation2 + $0x54] sm:$0xff]   ;;  %v21400_v49 = vpop.f32.mrb[32].mxu0 }
 0x35c   : > { %v8572_v0 = vld [vmem:[#allocation2 + $0x6c] sm:$0x1]  ;;  %v8225_v13 = vshrl.u32 %v15771_v10, 16  ;;  %v8228_v28 = vshll.u32 %v15771_v10, 16  ;;  %v8222_v33 = vsel %vm21136_vm0, %v8214_v11, %v8221_v3  ;;  %v8487_v14 = vsel %vm21130_vm15, %v8223_v55, %v8486_v40  ;;  %v8489_v6 = vld [vmem:[#allocation2 + $0x78] sm:$0xf] }
 0x35d   : > { %v8573_v42 = vsel %vm21130_vm15, 0, %v8572_v0  ;;  %v8205_v62 = vsel %vm21136_vm0, %v8197_v63, %v8204_v21  ;;  %v17939_v4 = vld [vmem:[#allocation2 + $0x48] sm:$0xff]   ;;  %v8569_v48 = vld [vmem:[#allocation2 + $0x60] sm:$0x1]  ;;  %8485 = vst [vmem:[#allocation2 + $0x70] sm:$0xf] %v8222_v33  ;;  %v8480_v57 = vsel %vm21130_vm15, %v8206_v46, %v8479_v22  ;;  %v8247_v52 = vor.u32 %v8245_v29, %v8244_v41  ;;  %16895 = vmatpush3.bf16.msra.mxu1 %v17953_v20 }
 0x35e   : > { %8574 = vst [vmem:[#allocation2 + $0x6c] sm:$0x1] %v8573_v42  ;;  %8488 = vst [vmem:[#allocation2 + $0x74] sm:$0x1] %v8487_v14  ;;  %v8248_v56 = vrot.slane %v8244_v41, 4  ;;  %v21395_v11 = vrot.slane %v8225_v13, 7  ;;  %v7892_v25 = vadd.f32 %v17287_v19, %v21106_v36  ;;  %16860 = vmatprep.mubr.bf16.mxu1 %v17939_v4  ;;  %v7897_v38 = vadd.f32 %v17288_v59, %v21106_v36 }
 0x35f   : > { %8478 = vst [vmem:[#allocation2 + $0x64] sm:$0xf] %v8205_v62  ;;  %v8570_v17 = vsel %vm21130_vm15, 0, %v8569_v48  ;;  %8481 = vst [vmem:[#allocation2 + $0x68] sm:$0x1] %v8480_v57  ;;  %v8250_v63 = vshrl.u32 %v15774_v32, 16  ;;  %v8497_v54 = vsel %vm21123_vm14, %v8247_v52, %v8496_v15  ;;  %16861 = vmatmul.mubr.bf16.gmra.mrb[32].mxu1 %v17940_v12  ;;  %16928 = vmatprep.subr.bf16.mxu1 %v21379_v39 }
 0x360   : > { %v8253_v40 = vshll.u32 %v15774_v32, 16  ;;  %8571 = vst [vmem:[#allocation2 + $0x60] sm:$0x1] %v8570_v17  ;;  %v8230_v44 = vor.u32 %v8228_v28, %v21395_v11  ;;  %v8231_v51 = vrot.slane %v21395_v11, 4  ;;  %v21407_v35 = vpop.f32.mrb[33].mxu0  ;;  %v7928_v27 = vmax.f32 %v7892_v25, 0.0 }
 0x361   : > { %8498 = vst [vmem:[#allocation2 + $0x84] sm:$0xf] %v8497_v54  ;;  %v8252_v19 = vrot.slane %v8250_v63, 7  ;;  %v7895_v20 = vadd.f32 %v17289_v43, %v21106_v36  ;;  %v17290_v29 = vadd.f32 %v21327_v30, %v21114_v5  ;;  %v21413_v10 = vpop.f32.mrb[34].mxu0  ;;  %v8500_v55 = vld [vmem:[#allocation2 + $0x8c] sm:$0x1]  ;;  %v17291_v21 = vadd.f32 %v21333_v45, %v21117_v2 }
 0x362   : > { %v8490_v3 = vsel %vm21123_vm14, %v8230_v44, %v8489_v6  ;;  %v7933_v59 = vmax.f32 %v7897_v38, 0.0  ;;  %v17292_v46 = vadd.f32 %v21357_v31, %v21157_v58  ;;  %v21421_v22 = vpop.f32.mrb[35].mxu0  ;;  %v15772_v0 = vpack.c.bf16 %v7928_v27, %v7928_v27  ;;  %v8493_v14 = vld [vmem:[#allocation2 + $0x80] sm:$0x1]  ;;  %v8510_v52 = vld [vmem:[#allocation2 + $0x9c] sm:$0xf] }
 0x363   : > { %8491 = vst [vmem:[#allocation2 + $0x78] sm:$0xf] %v8490_v3  ;;  %v8255_v43 = vor.u32 %v8253_v40, %v8252_v19  ;;  %v8257_v15 = vrot.slane %v8252_v19, 4  ;;  %v7931_v5 = vmax.f32 %v7895_v20, 0.0  ;;  %v7898_v41 = vadd.f32 %v17290_v29, %v21106_v36  ;;  %v9063_v26 = vld [vmem:[#allocation2 + $0x34] sm:$0xf] }
 0x364   : > { %v15777_v30 = vpack.c.bf16 %v7933_v59, %v7933_v59  ;;  %v7896_v13 = vadd.f32 %v17291_v21, %v21106_v36  ;;  %v7901_v28 = vadd.f32 %v17292_v46, %v21106_v36  ;;  %v8233_v45 = vshrl.u32 %v15772_v0, 16 }
 0x365   : > { %v8627_v32 = vld [vmem:[#allocation2 + $0x74] sm:$0x1]  ;;  %v8256_v2 = vsel %vm21136_vm0, %v8248_v56, %v8255_v43  ;;  %v8501_v58 = vsel %vm21130_vm15, %v8257_v15, %v8500_v55  ;;  %v8236_v31 = vshll.u32 %v15772_v0, 16  ;;  %v15775_v48 = vpack.c.bf16 %v7931_v5, %v7931_v5  ;;  %v17943_v20 = vld [vmem:[#allocation2 + $0x6c] sm:$0xff]  }
 0x366   : > { %v8628_v42 = vsel %vm21175_vm1, 0, %v8627_v32  ;;  %v8624_v33 = vld [vmem:[#allocation2 + $0x68] sm:$0x1]  ;;  %8499 = vst [vmem:[#allocation2 + $0x88] sm:$0xf] %v8256_v2  ;;  %v8276_v62 = vshrl.u32 %v15777_v30, 16 }
 0x367   : > { %8502 = vst [vmem:[#allocation2 + $0x8c] sm:$0x1] %v8501_v58  ;;  %v8279_v4 = vshll.u32 %v15777_v30, 16  ;;  %8629 = vst [vmem:[#allocation2 + $0x74] sm:$0x1] %v8628_v42  ;;  %v8625_v36 = vsel %vm21175_vm1, 0, %v8624_v33  ;;  %v17293_v33 = vadd.f32 %v21361_v23, %v21163_v9 }
 0x368   : > { %v8235_v57 = vrot.slane %v8233_v45, 7  ;;  %v7934_v56 = vmax.f32 %v7898_v41, 0.0  ;;  %v7932_v12 = vmax.f32 %v7896_v13, 0.0  ;;  %8626 = vst [vmem:[#allocation2 + $0x68] sm:$0x1] %v8625_v36  ;;  %v8278_v6 = vrot.slane %v8276_v62, 7 }
 0x369   : > { %v8578_v17 = vld [vmem:[#allocation2 + $0x84] sm:$0x1]  ;;  %v8259_v63 = vshrl.u32 %v15775_v48, 16  ;;  %v8262_v40 = vshll.u32 %v15775_v48, 16  ;;  %v7937_v25 = vmax.f32 %v7901_v28, 0.0 }
 0x36a   : > { %v8579_v54 = vsel %vm21130_vm15, 0, %v8578_v17  ;;  %v8238_v44 = vor.u32 %v8236_v31, %v8235_v57  ;;  %v8240_v38 = vrot.slane %v8235_v57, 4  ;;  %v15778_v19 = vpack.c.bf16 %v7934_v56, %v7934_v56  ;;  %v17942_v27 = vld [vmem:[#allocation2 + $0x60] sm:$0xff]   ;;  %v8575_v29 = vld [vmem:[#allocation2 + $0x78] sm:$0x1] }
 0x36b   : > { %8580 = vst [vmem:[#allocation2 + $0x84] sm:$0x1] %v8579_v54  ;;  %v8281_v3 = vor.u32 %v8279_v4, %v8278_v6  ;;  %v8282_v55 = vrot.slane %v8278_v6, 4  ;;  %v8261_v59 = vrot.slane %v8259_v63, 7  ;;  %v15776_v21 = vpack.c.bf16 %v7932_v12, %v7932_v12  ;;  %v8503_v0 = vld [vmem:[#allocation2 + $0x90] sm:$0xf]  ;;  %16864 = vmatprep.mubr.bf16.mxu1 %v17942_v27 }
 0x36c   : > { %v8576_v46 = vsel %vm21130_vm15, 0, %v8575_v29  ;;  %v8239_v43 = vsel %vm21136_vm0, %v8231_v51, %v8238_v44  ;;  %v8494_v15 = vsel %vm21130_vm15, %v8240_v38, %v8493_v14  ;;  %v8284_v5 = vshrl.u32 %v15778_v19, 16  ;;  %16865 = vmatmul.mubr.bf16.gmra.mrb[36].mxu1 %v17943_v20  ;;  %v8514_v42 = vld [vmem:[#allocation2 + $0xa4] sm:$0x1]  ;;  %v8507_v57 = vld [vmem:[#allocation2 + $0x98] sm:$0x1] }
 0x36d   : > { %8577 = vst [vmem:[#allocation2 + $0x78] sm:$0x1] %v8576_v46  ;;  %8492 = vst [vmem:[#allocation2 + $0x7c] sm:$0xf] %v8239_v43  ;;  %v8511_v30 = vsel %vm21123_vm14, %v8281_v3, %v8510_v52  ;;  %v8264_v41 = vor.u32 %v8262_v40, %v8261_v59  ;;  %v8265_v13 = vrot.slane %v8261_v59, 4  ;;  %v8287_v28 = vshll.u32 %v15778_v19, 16 }
 0x36e   : > { %8495 = vst [vmem:[#allocation2 + $0x80] sm:$0x1] %v8494_v15  ;;  %v8633_v11 = vld [vmem:[#allocation2 + $0x8c] sm:$0x1]  ;;  %8512 = vst [vmem:[#allocation2 + $0x9c] sm:$0xf] %v8511_v30  ;;  %v15781_v58 = vpack.c.bf16 %v7937_v25, %v7937_v25  ;;  %v17294_v14 = vadd.f32 %v21370_v18, %v21167_v37  ;;  %v17295_v37 = vadd.f32 %v21374_v16, %v21171_v8 }
 0x36f   : > { %v8286_v32 = vrot.slane %v8284_v5, 7  ;;  %v8267_v51 = vshrl.u32 %v15776_v21, 16  ;;  %v8270_v2 = vshll.u32 %v15776_v21, 16  ;;  %v8634_v45 = vsel %vm21175_vm1, 0, %v8633_v11  ;;  %v21457_v56 = vld [vmem:[%s22293_s3] ss:$0 sm:$0xff] }
 0x370   : > { %v8504_v31 = vsel %vm21123_vm14, %v8264_v41, %v8503_v0  ;;  %8635 = vst [vmem:[#allocation2 + $0x8c] sm:$0x1] %v8634_v45  ;;  %v8310_v36 = vshrl.u32 %v15781_v58, 16  ;;  %v8313_v52 = vshll.u32 %v15781_v58, 16  ;;  %v7899_v12 = vadd.f32 %v21457_v56, %v17293_v33  ;;  %v8524_v40 = vld [vmem:[#allocation2 + $0xb4] sm:$0xf] }
 0x371   : > { %8505 = vst [vmem:[#allocation2 + $0x90] sm:$0xf] %v8504_v31  ;;  %v8289_v62 = vor.u32 %v8287_v28, %v8286_v32  ;;  %v8291_v4 = vrot.slane %v8286_v32, 4  ;;  %v8269_v48 = vrot.slane %v8267_v51, 7  ;;  %v7902_v9 = vadd.f32 %v21457_v56, %v17294_v14  ;;  %v8528_v51 = vld [vmem:[#allocation2 + $0xbc] sm:$0x1] }
 0x372   : > { %v21467_v63 = vrot.slane %v8310_v36, 7  ;;  %v7935_v25 = vmax.f32 %v7899_v12, 0.0  ;;  %v7900_v44 = vadd.f32 %v21457_v56, %v17295_v37  ;;  %v17296_v19 = vadd.f32 %v21400_v49, %v21273_v7  ;;  %v17946_v49 = vld [vmem:[#allocation2 + $0x84] sm:$0xff]  }
 0x373   : > { %v8290_v23 = vsel %vm21136_vm0, %v8282_v55, %v8289_v62  ;;  %v8515_v18 = vsel %vm21130_vm15, %v8291_v4, %v8514_v42  ;;  %v8272_v17 = vor.u32 %v8270_v2, %v8269_v48  ;;  %v8274_v6 = vrot.slane %v8269_v48, 4 }
 0x374   : > { %8513 = vst [vmem:[#allocation2 + $0xa0] sm:$0xf] %v8290_v23  ;;  %8516 = vst [vmem:[#allocation2 + $0xa4] sm:$0x1] %v8515_v18  ;;  %v7938_v54 = vmax.f32 %v7902_v9, 0.0  ;;  %v17297_v27 = vadd.f32 %v21407_v35, %v21282_v53  ;;  %v8315_v3 = vor.u32 %v8313_v52, %v21467_v63  ;;  %v15779_v55 = vpack.c.bf16 %v7935_v25, %v7935_v25  ;;  %v17945_v59 = vld [vmem:[#allocation2 + $0x78] sm:$0xff]  }
 0x375   : > { %v8630_v38 = vld [vmem:[#allocation2 + $0x80] sm:$0x1]  ;;  %v8273_v8 = vsel %vm21136_vm0, %v8265_v13, %v8272_v17  ;;  %v8508_v16 = vsel %vm21130_vm15, %v8274_v6, %v8507_v57  ;;  %v8584_v29 = vld [vmem:[#allocation2 + $0x9c] sm:$0x1]  ;;  %v7936_v43 = vmax.f32 %v7900_v44, 0.0  ;;  %v7905_v7 = vadd.f32 %v21457_v56, %v17296_v19  ;;  %16868 = vmatprep.mubr.bf16.mxu1 %v17945_v59 }
 0x376   : > { %v8631_v20 = vsel %vm21175_vm1, 0, %v8630_v38  ;;  %8506 = vst [vmem:[#allocation2 + $0x94] sm:$0xf] %v8273_v8  ;;  %8509 = vst [vmem:[#allocation2 + $0x98] sm:$0x1] %v8508_v16  ;;  %v8585_v21 = vsel %vm21130_vm15, 0, %v8584_v29  ;;  %v15782_v46 = vpack.c.bf16 %v7938_v54, %v7938_v54  ;;  %v8525_v15 = vsel %vm21123_vm14, %v8315_v3, %v8524_v40  ;;  %16869 = vmatmul.mubr.bf16.gmra.mrb[40].mxu1 %v17946_v49 }
 0x377   : > { %8632 = vst [vmem:[#allocation2 + $0x80] sm:$0x1] %v8631_v20  ;;  %8586 = vst [vmem:[#allocation2 + $0x9c] sm:$0x1] %v8585_v21  ;;  %v8316_v35 = vrot.slane %v21467_v63, 4  ;;  %v8293_v0 = vshrl.u32 %v15779_v55, 16  ;;  %v7903_v5 = vadd.f32 %v21457_v56, %v17297_v27  ;;  %v15780_v11 = vpack.c.bf16 %v7936_v43, %v7936_v43 }
 0x378   : > { %v8581_v53 = vld [vmem:[#allocation2 + $0x90] sm:$0x1]  ;;  %8526 = vst [vmem:[#allocation2 + $0xb4] sm:$0xf] %v8525_v15  ;;  %v8296_v41 = vshll.u32 %v15779_v55, 16  ;;  %v8318_v28 = vshrl.u32 %v15782_v46, 16  ;;  %v17298_v45 = vadd.f32 %v21413_v10, %v21288_v24  ;;  %v17299_v62 = vadd.f32 %v21421_v22, %v21302_v34 }
 0x379   : > { %v8582_v30 = vsel %vm21130_vm15, 0, %v8581_v53  ;;  %v8517_v13 = vld [vmem:[#allocation2 + $0xa8] sm:$0xf]  ;;  %v8295_v32 = vrot.slane %v8293_v0, 7  ;;  %v7941_v2 = vmax.f32 %v7905_v7, 0.0  ;;  %v7939_v58 = vmax.f32 %v7903_v5, 0.0 }
 0x37a   : > { %8583 = vst [vmem:[#allocation2 + $0x90] sm:$0x1] %v8582_v30  ;;  %v8320_v42 = vrot.slane %v8318_v28, 7  ;;  %v8321_v33 = vshll.u32 %v15782_v46, 16  ;;  %v8301_v14 = vshrl.u32 %v15780_v11, 16  ;;  %v8304_v36 = vshll.u32 %v15780_v11, 16 }
 0x37b   : > { %v8639_v31 = vld [vmem:[#allocation2 + $0xa4] sm:$0x1]  ;;  %v8298_v48 = vor.u32 %v8296_v41, %v8295_v32  ;;  %v8521_v57 = vld [vmem:[#allocation2 + $0xb0] sm:$0x1]  ;;  %v15785_v52 = vpack.c.bf16 %v7941_v2, %v7941_v2  ;;  %v15783_v24 = vpack.c.bf16 %v7939_v58, %v7939_v58  ;;  %v8299_v18 = vrot.slane %v8295_v32, 4 }
 0x37c   : > { %v8640_v4 = vsel %vm21175_vm1, 0, %v8639_v31  ;;  %v8323_v9 = vor.u32 %v8321_v33, %v8320_v42  ;;  %v8325_v37 = vrot.slane %v8320_v42, 4  ;;  %v8303_v23 = vrot.slane %v8301_v14, 7  ;;  %v21500_v17 = vld [vmem:[#allocation2 + $0x4] sm:$0xf] }
 0x37d   : > { %8641 = vst [vmem:[#allocation2 + $0xa4] sm:$0x1] %v8640_v4  ;;  %v8636_v12 = vld [vmem:[#allocation2 + $0x98] sm:$0x1]  ;;  %v8518_v34 = vsel %vm21123_vm14, %v8298_v48, %v8517_v13  ;;  %v8344_v22 = vshrl.u32 %v15785_v52, 16  ;;  %v8347_v8 = vshll.u32 %v15785_v52, 16  ;;  %v7906_v19 = vadd.f32 %v21457_v56, %v17298_v45 }
 0x37e   : > { %v8637_v10 = vsel %vm21175_vm1, 0, %v8636_v12  ;;  %8519 = vst [vmem:[#allocation2 + $0xa8] sm:$0xf] %v8518_v34  ;;  %v8324_v6 = vsel %vm21136_vm0, %v8316_v35, %v8323_v9  ;;  %v8529_v63 = vsel %vm21130_vm15, %v8325_v37, %v8528_v51  ;;  %v8306_v40 = vor.u32 %v8304_v36, %v8303_v23  ;;  %v9050_v54 = vld [vmem:[#allocation2] sm:$0xf] }
 0x37f   : > { %8638 = vst [vmem:[#allocation2 + $0x98] sm:$0x1] %v8637_v10  ;;  %v8308_v25 = vrot.slane %v8303_v23, 4  ;;  %v8590_v44 = vld [vmem:[#allocation2 + $0xb4] sm:$0x1]  ;;  %v21506_v38 = vrot.slane %v8344_v22, 7  ;;  %v7904_v55 = vadd.f32 %v21457_v56, %v17299_v62 }
 0x380   : > { %8527 = vst [vmem:[#allocation2 + $0xb8] sm:$0xf] %v8324_v6  ;;  %8530 = vst [vmem:[#allocation2 + $0xbc] sm:$0x1] %v8529_v63  ;;  %v8327_v16 = vshrl.u32 %v15783_v24, 16  ;;  %v8591_v27 = vsel %vm21130_vm15, 0, %v8590_v44  ;;  %v8307_v20 = vsel %vm21136_vm0, %v8299_v18, %v8306_v40 }
 0x381   : > { %v8522_v29 = vsel %vm21130_vm15, %v8308_v25, %v8521_v57  ;;  %v8538_v3 = vld [vmem:[#allocation2 + $0xcc] sm:$0xf]  ;;  %v17948_v59 = vld [vmem:[#allocation2 + $0x90] sm:$0xff]   ;;  %8592 = vst [vmem:[#allocation2 + $0xb4] sm:$0x1] %v8591_v27  ;;  %v8349_v21 = vor.u32 %v8347_v8, %v21506_v38  ;;  %v8330_v43 = vshll.u32 %v15783_v24, 16 }
 0x382   : > { %8520 = vst [vmem:[#allocation2 + $0xac] sm:$0xf] %v8307_v20  ;;  %8523 = vst [vmem:[#allocation2 + $0xb0] sm:$0x1] %v8522_v29  ;;  %v21517_v46 = vrot.slane %v8327_v16, 7  ;;  %v7942_v7 = vmax.f32 %v7906_v19, 0.0  ;;  %16872 = vmatprep.mubr.bf16.mxu1 %v17948_v59 }
 0x383   : > { %v17949_v49 = vld [vmem:[#allocation2 + $0x9c] sm:$0xff]   ;;  %v7940_v35 = vmax.f32 %v7904_v55, 0.0  ;;  %v9099_v15 = vshrl.u32 %v9050_v54, 16  ;;  %v9102_v0 = vshll.u32 %v9050_v54, 16  ;;  %v9108_v5 = vshll.u32 %v21500_v17, 16 }
 0x384   : > { %v8531_v53 = vld [vmem:[#allocation2 + $0xc0] sm:$0xf]  ;;  %v8350_v56 = vrot.slane %v21506_v38, 4  ;;  %v8539_v30 = vsel %vm21123_vm14, %v8349_v21, %v8538_v3  ;;  %v8332_v41 = vor.u32 %v8330_v43, %v21517_v46  ;;  %v15786_v13 = vpack.c.bf16 %v7942_v7, %v7942_v7  ;;  %16873 = vmatmul.mubr.bf16.gmra.mrb[44].mxu1 %v17949_v49  ;;  %v9052_v32 = vld [vmem:[#allocation2 + $0x8] sm:$0x1] }
 0x385   : > { %8540 = vst [vmem:[#allocation2 + $0xcc] sm:$0xf] %v8539_v30  ;;  %v8333_v28 = vrot.slane %v21517_v46, 4  ;;  %v15784_v11 = vpack.c.bf16 %v7940_v35, %v7940_v35  ;;  %v9101_v51 = vrot.slane %v9099_v15, 4  ;;  %v9104_v2 = vrot.slane %v9102_v0, 5 }
 0x386   : > { %v8587_v58 = vld [vmem:[#allocation2 + $0xa8] sm:$0x1]  ;;  %v8532_v45 = vsel %vm21123_vm14, %v8332_v41, %v8531_v53  ;;  %v8352_v31 = vshrl.u32 %v15786_v13, 16  ;;  %v21527_v42 = vrot.slane %v9108_v5, 5  ;;  %v9112_v33 = vshrl.u32 %v21500_v17, 16 }
 0x387   : > { %v8588_v14 = vsel %vm21130_vm15, 0, %v8587_v58  ;;  %v8645_v62 = vld [vmem:[#allocation2 + $0xbc] sm:$0x1]  ;;  %8533 = vst [vmem:[#allocation2 + $0xc0] sm:$0xf] %v8532_v45  ;;  %v8355_v4 = vshll.u32 %v15786_v13, 16  ;;  %v9105_v57 = vor.u32 %v9104_v2, %v9101_v51 }
 0x388   : > { %v8542_v48 = vld [vmem:[#allocation2 + $0xd4] sm:$0x1]  ;;  %v8335_v36 = vshrl.u32 %v15784_v11, 16  ;;  %v9053_v52 = vld [vmem:[#allocation2 + $0xc] sm:$0xf]  ;;  %v8646_v47 = vsel %vm21175_vm1, 0, %v8645_v62 }
 0x389   : > { %8589 = vst [vmem:[#allocation2 + $0xa8] sm:$0x1] %v8588_v14  ;;  %v8354_v12 = vrot.slane %v8352_v31, 7  ;;  %v8535_v9 = vld [vmem:[#allocation2 + $0xc8] sm:$0x1]  ;;  %v9114_v37 = vrot.slane %v9112_v33, 4 }
 0x38a   : > { %v9118_v23 = vshll.u32 %v9052_v32, 16  ;;  %8647 = vst [vmem:[#allocation2 + $0xbc] sm:$0x1] %v8646_v47  ;;  %v8642_v24 = vld [vmem:[#allocation2 + $0xb0] sm:$0x1]  ;;  %v8337_v10 = vrot.slane %v8335_v36, 7 }
 0x38b   : > { %v8338_v18 = vshll.u32 %v15784_v11, 16  ;;  %v8643_v34 = vsel %vm21175_vm1, 0, %v8642_v24  ;;  %v8357_v22 = vor.u32 %v8355_v4, %v8354_v12  ;;  %v8359_v17 = vrot.slane %v8354_v12, 4  ;;  %v9054_v44 = vld [vmem:[#allocation2 + $0x10] sm:$0xf]  ;;  %v17952_v41 = vld [vmem:[#allocation2 + $0xb4] sm:$0xff]  }
 0x38c   : > { %v9106_v6 = vrot.slane %v9105_v57, 4  ;;  %8644 = vst [vmem:[#allocation2 + $0xb0] sm:$0x1] %v8643_v34  ;;  %v8342_v40 = vrot.slane %v8337_v10, 4  ;;  %v9115_v25 = vor.u32 %v9114_v37, %v21527_v42  ;;  %v9120_v54 = vrot.slane %v9118_v23, 5 }
 0x38d   : > { %v8340_v63 = vor.u32 %v8338_v18, %v8337_v10  ;;  %v9055_v38 = vld [vmem:[#allocation2 + $0x14] sm:$0x1]  ;;  %v8596_v8 = vld [vmem:[#allocation2 + $0xcc] sm:$0x1]  ;;  %v8358_v16 = vsel %vm21136_vm0, %v8350_v56, %v8357_v22  ;;  %v8543_v19 = vsel %vm21130_vm15, %v8359_v17, %v8542_v48  ;;  %v9123_v20 = vshrl.u32 %v9053_v52, 16 }
 0x38e   : > { %v9111_v27 = vsel %vm18147_vm2, %v9106_v6, %v21527_v42  ;;  %v9056_v29 = vld [vmem:[#allocation2 + $0x18] sm:$0xf]  ;;  %v8597_v3 = vsel %vm21130_vm15, 0, %v8596_v8  ;;  %8541 = vst [vmem:[#allocation2 + $0xd0] sm:$0xf] %v8358_v16  ;;  %v8536_v59 = vsel %vm21130_vm15, %v8342_v40, %v8535_v9  ;;  %v9116_v21 = vrot.slane %v9115_v25, 4 }
 0x38f   : > { %8544 = vst [vmem:[#allocation2 + $0xd4] sm:$0x1] %v8543_v19  ;;  %v8341_v55 = vsel %vm21136_vm0, %v8333_v28, %v8340_v63  ;;  %v9057_v46 = vld [vmem:[#allocation2 + $0x1c] sm:$0xf]  ;;  %v9058_v43 = vld [vmem:[#allocation2 + $0x20] sm:$0x1] }
 0x390   : > { %8598 = vst [vmem:[#allocation2 + $0xcc] sm:$0x1] %v8597_v3  ;;  %v8593_v7 = vld [vmem:[#allocation2 + $0xc0] sm:$0x1]  ;;  %8663 = vst [vmem:[#allocation2 + $0xd0] sm:$0xf] %v18067_v50  ;;  %v9121_v5 = vsel %vm18147_vm2, %v9116_v21, %v9120_v54 }
 0x391   : > { %8534 = vst [vmem:[#allocation2 + $0xc4] sm:$0xf] %v8341_v55  ;;  %8537 = vst [vmem:[#allocation2 + $0xc8] sm:$0x1] %v8536_v59  ;;  %v9125_v49 = vrot.slane %v9123_v20, 4  ;;  %v9126_v53 = vshll.u32 %v9053_v52, 16  ;;  %v15363_v13 = vcombine.low %v9111_v27, %v9121_v5 }
 0x392   : > { %v9132_v35 = vshll.u32 %v9054_v44, 16  ;;  %v9136_v15 = vshrl.u32 %v9054_v44, 16  ;;  %8662 = vst [vmem:[#allocation2 + $0xcc] sm:$0xf] %v18067_v50  ;;  %v8594_v61 = vsel %vm21130_vm15, 0, %v8593_v7  ;;  %v17951_v0 = vld [vmem:[#allocation2 + $0xa8] sm:$0xff]  }
 0x393   : > { %v9142_v56 = vshll.u32 %v9055_v38, 16  ;;  %v9147_v30 = vshrl.u32 %v9056_v29, 16  ;;  %8595 = vst [vmem:[#allocation2 + $0xc0] sm:$0x1] %v8594_v61  ;;  %v9128_v28 = vrot.slane %v9126_v53, 5  ;;  %16876 = vmatprep.mubr.bf16.mxu1 %v17951_v0  ;;  %v9150_v45 = vshll.u32 %v9056_v29, 16 }
 0x394   : > { %v9134_v11 = vrot.slane %v9132_v35, 5  ;;  %v9138_v32 = vrot.slane %v9136_v15, 4  ;;  %v9059_v51 = vld [vmem:[#allocation2 + $0x24] sm:$0xf]  ;;  %v9156_v31 = vshll.u32 %v9057_v46, 16  ;;  %16877 = vmatmul.mubr.bf16.gmra.mrb[48].mxu1 %v17952_v41  ;;  %v9160_v33 = vshrl.u32 %v9057_v46, 16 }
 0x395   : > { %v9144_v2 = vrot.slane %v9142_v56, 5  ;;  %v9149_v58 = vrot.slane %v9147_v30, 4  ;;  %v9129_v60 = vor.u32 %v9128_v28, %v9125_v49  ;;  %v9166_v14 = vshll.u32 %v9058_v43, 16  ;;  %v9060_v62 = vld [vmem:[#allocation2 + $0x28] sm:$0xf]  ;;  %16896 = vmatprep.mubr.bf16.mxu1 %v15363_v13 }
 0x396   : > { %v9139_v42 = vor.u32 %v9138_v32, %v9134_v11  ;;  %v9152_v4 = vrot.slane %v9150_v45, 5  ;;  %v9158_v48 = vrot.slane %v9156_v31, 5  ;;  %v9061_v36 = vld [vmem:[#allocation2 + $0x2c] sm:$0x1]  ;;  %v9171_v57 = vshrl.u32 %v9059_v51, 16 }
 0x397   : > { %v9174_v52 = vshll.u32 %v9059_v51, 16  ;;  %v9062_v47 = vld [vmem:[#allocation2 + $0x30] sm:$0xf]  ;;  %v8651_v12 = vld [vmem:[#allocation2 + $0xd4] sm:$0x1]  ;;  %v9130_v9 = vrot.slane %v9129_v60, 4 }
 0x398   : > { %v9140_v37 = vrot.slane %v9139_v42, 4  ;;  %v9162_v23 = vrot.slane %v9160_v33, 4  ;;  %v9168_v24 = vrot.slane %v9166_v14, 5  ;;  %v8652_v10 = vsel %vm21175_vm1, 0, %v8651_v12  ;;  %v8648_v18 = vld [vmem:[#allocation2 + $0xc8] sm:$0x1] }
 0x399   : > { %v9153_v34 = vor.u32 %v9152_v4, %v9149_v58  ;;  %v9173_v22 = vrot.slane %v9171_v57, 4  ;;  %v9176_v17 = vrot.slane %v9174_v52, 5  ;;  %8653 = vst [vmem:[#allocation2 + $0xd4] sm:$0x1] %v8652_v10  ;;  %v8649_v6 = vsel %vm21175_vm1, 0, %v8648_v18  ;;  %v17955_v16 = vld [vmem:[%s22292_s2 + $0x88] sm:$0xff]  }
 0x39a   : > { %v9135_v63 = vsel %vm18147_vm2, %v9130_v9, %v9134_v11  ;;  %v9145_v40 = vsel %vm18147_vm2, %v9140_v37, %v9144_v2  ;;  %v9163_v25 = vor.u32 %v9162_v23, %v9158_v48  ;;  %8664 = vst [vmem:[#allocation2 + $0xd4] sm:$0x1] %v18067_v50  ;;  %8650 = vst [vmem:[#allocation2 + $0xc8] sm:$0x1] %v8649_v6  ;;  %v9180_v8 = vshll.u32 %v9060_v62, 16  ;;  %v17956_v11 = vld [vmem:[%s22292_s2 + $0x90] sm:$0xff]  }
 0x39b   : > { %v15364_v54 = vcombine.low %v9135_v63, %v9145_v40  ;;  %v9154_v44 = vrot.slane %v9153_v34, 4  ;;  %v9177_v38 = vor.u32 %v9176_v17, %v9173_v22  ;;  %v9184_v27 = vshrl.u32 %v9060_v62, 16  ;;  %v9065_v3 = vld [vmem:[#allocation2 + $0x3c] sm:$0xf]  ;;  %v9064_v21 = vld [vmem:[#allocation2 + $0x38] sm:$0x1] }
 0x39c   : > { %v9164_v19 = vrot.slane %v9163_v25, 4  ;;  %v9190_v20 = vshll.u32 %v9061_v36, 16  ;;  %v9195_v29 = vshrl.u32 %v9062_v47, 16  ;;  %v9182_v50 = vrot.slane %v9180_v8, 5  ;;  %v9066_v35 = vld [vmem:[#allocation2 + $0x40] sm:$0xf] }
 0x39d   : > { %v9159_v55 = vsel %vm18147_vm2, %v9154_v44, %v9158_v48  ;;  %v9178_v59 = vrot.slane %v9177_v38, 4  ;;  %v9198_v46 = vshll.u32 %v9062_v47, 16  ;;  %16897 = vmatmul.mubr.bf16.vlgmr.msra.gmra.mrb[20].mxu1 %v15364_v54  ;;  %v9186_v7 = vrot.slane %v9184_v27, 4  ;;  %v9067_v13 = vld [vmem:[#allocation2 + $0x44] sm:$0x1]  ;;  %v17957_v18 = vld [vmem:[%s22292_s2 + $0x98] sm:$0xff]  }
 0x39e   : > { %v9169_v43 = vsel %vm18147_vm2, %v9164_v19, %v9168_v24  ;;  %v9192_v49 = vrot.slane %v9190_v20, 5  ;;  %v9197_v53 = vrot.slane %v9195_v29, 4  ;;  %16929 = vmatpush3.bf16.msra.mxu1 %v21379_v39  ;;  %v9204_v5 = vshll.u32 %v9063_v26, 16  ;;  %v9068_v58 = vld [vmem:[#allocation2 + $0x48] sm:$0xf] }
 0x39f   : > { %v15365_v15 = vcombine.low %v9159_v55, %v9169_v43  ;;  %v9183_v61 = vsel %vm18147_vm2, %v9178_v59, %v9182_v50  ;;  %v9200_v0 = vrot.slane %v9198_v46, 5  ;;  %v9187_v56 = vor.u32 %v9186_v7, %v9182_v50  ;;  %16930 = vmatprep.subr.bf16.mxu1 %v17955_v16  ;;  %v9069_v52 = vld [vmem:[#allocation2 + $0x4c] sm:$0xf]  ;;  %v9070_v24 = vld [vmem:[#allocation2 + $0x50] sm:$0x1]  ;;  %v17958_v55 = vld [vmem:[%s22292_s2 + $0xa0] sm:$0xff]  }
 0x3a0   : > { %v9208_v30 = vshrl.u32 %v9063_v26, 16  ;;  %v9214_v41 = vshll.u32 %v9064_v21, 16  ;;  %v9219_v28 = vshrl.u32 %v9065_v3, 16  ;;  %v9206_v51 = vrot.slane %v9204_v5, 5  ;;  %v9071_v10 = vld [vmem:[#allocation2 + $0x54] sm:$0xf] }
 0x3a1   : > { %16900 = vmatprep.mubr.bf16.mxu1 %v15365_v15  ;;  %v9201_v32 = vor.u32 %v9200_v0, %v9197_v53  ;;  %v9222_v2 = vshll.u32 %v9065_v3, 16  ;;  %v9228_v39 = vshll.u32 %v9066_v35, 16  ;;  %v9188_v45 = vrot.slane %v9187_v56, 4  ;;  %v9073_v3 = vld [vmem:[#allocation2 + $0x5c] sm:$0x1] }
 0x3a2   : > { %v9210_v31 = vrot.slane %v9208_v30, 4  ;;  %v9216_v60 = vrot.slane %v9214_v41, 5  ;;  %v9221_v42 = vrot.slane %v9219_v28, 4  ;;  %16931 = vmatpush3.bf16.msra.mxu1 %v17955_v16  ;;  %v9232_v4 = vshrl.u32 %v9066_v35, 16  ;;  %v9072_v16 = vld [vmem:[#allocation2 + $0x58] sm:$0xf] }
 0x3a3   : > { %v9202_v33 = vrot.slane %v9201_v32, 4  ;;  %v9224_v14 = vrot.slane %v9222_v2, 5  ;;  %v9230_v62 = vrot.slane %v9228_v39, 5  ;;  %v9193_v48 = vsel %vm18147_vm2, %v9188_v45, %v9192_v49  ;;  %16932 = vmatprep.subr.bf16.mxu1 %v17956_v11  ;;  %v9074_v43 = vld [vmem:[#allocation2 + $0x60] sm:$0xf]  ;;  %v17959_v30 = vld [vmem:[%s22292_s2 + $0xa8] sm:$0xff]  }
 0x3a4   : > { %v9211_v36 = vor.u32 %v9210_v31, %v9206_v51  ;;  %v9238_v57 = vshll.u32 %v9067_v13, 16  ;;  %v9243_v47 = vshrl.u32 %v9068_v58, 16  ;;  %v15366_v12 = vcombine.low %v9183_v61, %v9193_v48  ;;  %v9075_v56 = vld [vmem:[#allocation2 + $0x64] sm:$0xf] }
 0x3a5   : > { %v9207_v9 = vsel %vm18147_vm2, %v9202_v33, %v9206_v51  ;;  %v9225_v37 = vor.u32 %v9224_v14, %v9221_v42  ;;  %v9234_v23 = vrot.slane %v9232_v4, 4  ;;  %v9246_v6 = vshll.u32 %v9068_v58, 16  ;;  %v9077_v33 = vld [vmem:[#allocation2 + $0x6c] sm:$0xf]  ;;  %v9078_v14 = vld [vmem:[#allocation2 + $0x70] sm:$0xf] }
 0x3a6   : > { %v9212_v34 = vrot.slane %v9211_v36, 4  ;;  %v9240_v22 = vrot.slane %v9238_v57, 5  ;;  %v9245_v17 = vrot.slane %v9243_v47, 4  ;;  %16901 = vmatmul.mubr.bf16.gmra.mrb[24].mxu1 %v15366_v12  ;;  %v9252_v25 = vshll.u32 %v9069_v52, 16  ;;  %v9079_v57 = vld [vmem:[#allocation2 + $0x74] sm:$0x1] }
 0x3a7   : > { %v9226_v63 = vrot.slane %v9225_v37, 4  ;;  %v9235_v40 = vor.u32 %v9234_v23, %v9230_v62  ;;  %v9256_v54 = vshrl.u32 %v9069_v52, 16  ;;  %v9248_v38 = vrot.slane %v9246_v6, 5  ;;  %16933 = vmatpush3.bf16.msra.mxu1 %v17956_v11  ;;  %v9076_v11 = vld [vmem:[#allocation2 + $0x68] sm:$0x1]  ;;  %v17960_v23 = vld [vmem:[%s22292_s2 + $0xb0] sm:$0xff]  }
 0x3a8   : > { %v9217_v44 = vsel %vm18147_vm2, %v9212_v34, %v9216_v60  ;;  %v9262_v8 = vshll.u32 %v9070_v24, 16  ;;  %v9267_v26 = vshrl.u32 %v9071_v10, 16  ;;  %v9254_v29 = vrot.slane %v9252_v25, 5  ;;  %16934 = vmatprep.subr.bf16.mxu1 %v17957_v18  ;;  %v9080_v37 = vld [vmem:[#allocation2 + $0x78] sm:$0xf] }
 0x3a9   : > { %v15367_v19 = vcombine.low %v9207_v9, %v9217_v44  ;;  %v9231_v27 = vsel %vm18147_vm2, %v9226_v63, %v9230_v62  ;;  %v9236_v20 = vrot.slane %v9235_v40, 4  ;;  %v9249_v59 = vor.u32 %v9248_v38, %v9245_v17  ;;  %v17961_v25 = vld [vmem:[%s22292_s2 + $0xb8] sm:$0xff]  }
 0x3aa   : > { %v9258_v50 = vrot.slane %v9256_v54, 4  ;;  %v9264_v21 = vrot.slane %v9262_v8, 5  ;;  %v9269_v46 = vrot.slane %v9267_v26, 4  ;;  %v9270_v49 = vshll.u32 %v9071_v10, 16 }
 0x3ab   : > { %16904 = vmatprep.mubr.bf16.mxu1 %v15367_v19  ;;  %v9241_v7 = vsel %vm18147_vm2, %v9236_v20, %v9240_v22  ;;  %v9276_v53 = vshll.u32 %v9072_v16, 16  ;;  %v9280_v35 = vshrl.u32 %v9072_v16, 16  ;;  %v9250_v61 = vrot.slane %v9249_v59, 4  ;;  %16935 = vmatpush3.bf16.msra.mxu1 %v17957_v18  ;;  %v9081_v22 = vld [vmem:[#allocation2 + $0x7c] sm:$0xf] }
 0x3ac   : > { %v15368_v15 = vcombine.low %v9231_v27, %v9241_v7  ;;  %v9259_v0 = vor.u32 %v9258_v50, %v9254_v29  ;;  %v9286_v5 = vshll.u32 %v9073_v3, 16  ;;  %v9272_v41 = vrot.slane %v9270_v49, 5  ;;  %16936 = vmatprep.subr.bf16.mxu1 %v17958_v55  ;;  %v9082_v20 = vld [vmem:[#allocation2 + $0x80] sm:$0x1] }
 0x3ad   : > { %v9278_v13 = vrot.slane %v9276_v53, 5  ;;  %v9282_v28 = vrot.slane %v9280_v35, 4  ;;  %v9291_v32 = vshrl.u32 %v9074_v43, 16  ;;  %v9255_v51 = vsel %vm18147_vm2, %v9250_v61, %v9254_v29  ;;  %v9083_v29 = vld [vmem:[#allocation2 + $0x84] sm:$0xf] }
 0x3ae   : > { %v9260_v2 = vrot.slane %v9259_v0, 4  ;;  %v9288_v39 = vrot.slane %v9286_v5, 5  ;;  %v9294_v58 = vshll.u32 %v9074_v43, 16  ;;  %16905 = vmatmul.mubr.bf16.gmra.mrb[28].mxu1 %v15368_v15  ;;  %v9273_v45 = vor.u32 %v9272_v41, %v9269_v46  ;;  %v21618_v0 = vld [vmem:[%s22292_s2 + $0xc0] sm:$0xff]  }
 0x3af   : > { %v9283_v31 = vor.u32 %v9282_v28, %v9278_v13  ;;  %v9293_v60 = vrot.slane %v9291_v32, 4  ;;  %v9300_v42 = vshll.u32 %v9075_v56, 16  ;;  %v9304_v48 = vshrl.u32 %v9075_v56, 16  ;;  %16937 = vmatpush3.bf16.msra.mxu1 %v17958_v55 }
 0x3b0   : > { %v9265_v62 = vsel %vm18147_vm2, %v9260_v2, %v9264_v21  ;;  %v9296_v4 = vrot.slane %v9294_v58, 5  ;;  %v9310_v36 = vshll.u32 %v9076_v11, 16  ;;  %v9274_v47 = vrot.slane %v9273_v45, 4  ;;  %16938 = vmatprep.subr.bf16.mxu1 %v17959_v30  ;;  %v9084_v21 = vld [vmem:[#allocation2 + $0x88] sm:$0xf] }
 0x3b1   : > { %v15369_v52 = vcombine.low %v9255_v51, %v9265_v62  ;;  %v9284_v12 = vrot.slane %v9283_v31, 4  ;;  %v9302_v9 = vrot.slane %v9300_v42, 5  ;;  %v9306_v10 = vrot.slane %v9304_v48, 4  ;;  %v9086_v2 = vld [vmem:[#allocation2 + $0x90] sm:$0xf] }
 0x3b2   : > { %v9297_v24 = vor.u32 %v9296_v4, %v9293_v60  ;;  %v9312_v18 = vrot.slane %v9310_v36, 5  ;;  %v9315_v34 = vshrl.u32 %v9077_v33, 16  ;;  %v9279_v17 = vsel %vm18147_vm2, %v9274_v47, %v9278_v13  ;;  %v9085_v13 = vld [vmem:[#allocation2 + $0x8c] sm:$0x1]  ;;  %v9087_v60 = vld [vmem:[#allocation2 + $0x94] sm:$0xf] }
 0x3b3   : > { %16908 = vmatprep.mubr.bf16.mxu1 %v15369_v52  ;;  %v9289_v6 = vsel %vm18147_vm2, %v9284_v12, %v9288_v39  ;;  %v9318_v63 = vshll.u32 %v9077_v33, 16  ;;  %v9324_v40 = vshll.u32 %v9078_v14, 16  ;;  %v9307_v38 = vor.u32 %v9306_v10, %v9302_v9  ;;  %16939 = vmatpush3.bf16.msra.mxu1 %v17959_v30  ;;  %v9088_v52 = vld [vmem:[#allocation2 + $0x98] sm:$0x1] }
 0x3b4   : > { %v15370_v54 = vcombine.low %v9279_v17, %v9289_v6  ;;  %v9298_v44 = vrot.slane %v9297_v24, 4  ;;  %v9317_v8 = vrot.slane %v9315_v34, 4  ;;  %v9328_v19 = vshrl.u32 %v9078_v14, 16  ;;  %16940 = vmatprep.subr.bf16.mxu1 %v17960_v23 }
 0x3b5   : > { %v9320_v16 = vrot.slane %v9318_v63, 5  ;;  %v9326_v26 = vrot.slane %v9324_v40, 5  ;;  %v9334_v27 = vshll.u32 %v9079_v57, 16  ;;  %v9308_v55 = vrot.slane %v9307_v38, 4 }
 0x3b6   : > { %v9303_v3 = vsel %vm18147_vm2, %v9298_v44, %v9302_v9  ;;  %v9339_v59 = vshrl.u32 %v9080_v37, 16  ;;  %v9342_v50 = vshll.u32 %v9080_v37, 16  ;;  %16909 = vmatmul.mubr.bf16.gmra.mrb[32].mxu1 %v15370_v54  ;;  %v9330_v43 = vrot.slane %v9328_v19, 4 }
 0x3b7   : > { %v9321_v46 = vor.u32 %v9320_v16, %v9317_v8  ;;  %v9336_v7 = vrot.slane %v9334_v27, 5  ;;  %v9348_v49 = vshll.u32 %v9081_v22, 16  ;;  %v9313_v53 = vsel %vm18147_vm2, %v9308_v55, %v9312_v18  ;;  %16941 = vmatpush3.bf16.msra.mxu1 %v17960_v23  ;;  %v9089_v23 = vld [vmem:[#allocation2 + $0x9c] sm:$0xf]  ;;  %v9091_v27 = vld [vmem:[#allocation2 + $0xa4] sm:$0x1] }
 0x3b8   : > { %v9341_v35 = vrot.slane %v9339_v59, 4  ;;  %v9344_v15 = vrot.slane %v9342_v50, 5  ;;  %v9352_v61 = vshrl.u32 %v9081_v22, 16  ;;  %v15371_v5 = vcombine.low %v9303_v3, %v9313_v53  ;;  %16942 = vmatprep.subr.bf16.mxu1 %v17961_v25  ;;  %v9090_v22 = vld [vmem:[#allocation2 + $0xa0] sm:$0xf] }
 0x3b9   : > { %v9322_v56 = vrot.slane %v9321_v46, 4  ;;  %v9331_v30 = vor.u32 %v9330_v43, %v9326_v26  ;;  %v9350_v41 = vrot.slane %v9348_v49, 5  ;;  %v9358_v32 = vshll.u32 %v9082_v20, 16  ;;  %v9092_v20 = vld [vmem:[#allocation2 + $0xa8] sm:$0xf] }
 0x3ba   : > { %v9345_v28 = vor.u32 %v9344_v15, %v9341_v35  ;;  %v9354_v11 = vrot.slane %v9352_v61, 4  ;;  %v9363_v51 = vshrl.u32 %v9083_v29, 16  ;;  %16912 = vmatprep.mubr.bf16.mxu1 %v15371_v5  ;;  %v9366_v45 = vshll.u32 %v9083_v29, 16  ;;  %v9093_v50 = vld [vmem:[#allocation2 + $0xac] sm:$0xf] }
 0x3bb   : > { %v9327_v39 = vsel %vm18147_vm2, %v9322_v56, %v9326_v26  ;;  %v9332_v58 = vrot.slane %v9331_v30, 4  ;;  %v9372_v31 = vshll.u32 %v9084_v21, 16  ;;  %v9360_v14 = vrot.slane %v9358_v32, 5  ;;  %16943 = vmatpush3.bf16.msra.mxu1 %v17961_v25 }
 0x3bc   : > { %v9346_v42 = vrot.slane %v9345_v28, 4  ;;  %v9355_v33 = vor.u32 %v9354_v11, %v9350_v41  ;;  %v9365_v62 = vrot.slane %v9363_v51, 4  ;;  %v9368_v48 = vrot.slane %v9366_v45, 5  ;;  %16976 = vmatprep.subr.bf16.mxu1 %v21618_v0 }
 0x3bd   : > { %v9337_v4 = vsel %vm18147_vm2, %v9332_v58, %v9336_v7  ;;  %v9374_v36 = vrot.slane %v9372_v31, 5  ;;  %v9376_v57 = vshrl.u32 %v9084_v21, 16  ;;  %v9382_v37 = vshll.u32 %v9085_v13, 16 }
 0x3be   : > { %v15372_v47 = vcombine.low %v9327_v39, %v9337_v4  ;;  %v9351_v12 = vsel %vm18147_vm2, %v9346_v42, %v9350_v41  ;;  %v9356_v9 = vrot.slane %v9355_v33, 4  ;;  %v9369_v24 = vor.u32 %v9368_v48, %v9365_v62  ;;  %v9095_v41 = vld [vmem:[#allocation2 + $0xb4] sm:$0xf]  ;;  %v9094_v39 = vld [vmem:[#allocation2 + $0xb0] sm:$0x1] }
 0x3bf   : > { %v9378_v10 = vrot.slane %v9376_v57, 4  ;;  %v9387_v18 = vshrl.u32 %v9086_v2, 16  ;;  %v9390_v34 = vshll.u32 %v9086_v2, 16  ;;  %v9384_v6 = vrot.slane %v9382_v37, 5 }
 0x3c0   : > { %16913 = vmatmul.mubr.bf16.gmra.mrb[36].mxu1 %v15372_v47  ;;  %v9361_v17 = vsel %vm18147_vm2, %v9356_v9, %v9360_v14  ;;  %v9396_v63 = vshll.u32 %v9087_v60, 16  ;;  %v9400_v40 = vshrl.u32 %v9087_v60, 16  ;;  %v9370_v54 = vrot.slane %v9369_v24, 4  ;;  %v9096_v14 = vld [vmem:[#allocation2 + $0xb8] sm:$0xf] }
 0x3c1   : > { %v15373_v25 = vcombine.low %v9351_v12, %v9361_v17  ;;  %v9379_v44 = vor.u32 %v9378_v10, %v9374_v36  ;;  %v9389_v38 = vrot.slane %v9387_v18, 4  ;;  %v9392_v8 = vrot.slane %v9390_v34, 5  ;;  %v9868_v9 = vld [vmem:[#allocation2] sm:$0xe]  ;;  %v9097_v24 = vld [vmem:[#allocation2 + $0xbc] sm:$0x1] }
 0x3c2   : > { %v9398_v16 = vrot.slane %v9396_v63, 5  ;;  %v9402_v26 = vrot.slane %v9400_v40, 4  ;;  %v9406_v19 = vshll.u32 %v9088_v52, 16  ;;  %v9375_v29 = vsel %vm18147_vm2, %v9370_v54, %v9374_v36  ;;  %v9869_v63 = vld [vmem:[#allocation2 + $0x4] sm:$0xf] }
 0x3c3   : > { %16916 = vmatprep.mubr.bf16.mxu1 %v15373_v25  ;;  %v9380_v3 = vrot.slane %v9379_v44, 4  ;;  %v9411_v55 = vshrl.u32 %v9089_v23, 16  ;;  %v9414_v59 = vshll.u32 %v9089_v23, 16  ;;  %v9393_v21 = vor.u32 %v9392_v8, %v9389_v38  ;;  %v9870_v38 = vld [vmem:[#allocation2 + $0x8] sm:$0x1] }
 0x3c4   : > { %v9403_v46 = vor.u32 %v9402_v26, %v9398_v16  ;;  %v9408_v43 = vrot.slane %v9406_v19, 5  ;;  %v9420_v7 = vshll.u32 %v9090_v22, 16  ;;  %v9424_v15 = vshrl.u32 %v9090_v22, 16 }
 0x3c5   : > { %v9385_v49 = vsel %vm18147_vm2, %v9380_v3, %v9384_v6  ;;  %v9413_v53 = vrot.slane %v9411_v55, 4  ;;  %v9416_v35 = vrot.slane %v9414_v59, 5  ;;  %v9394_v5 = vrot.slane %v9393_v21, 4 }
 0x3c6   : > { %v15374_v61 = vcombine.low %v9375_v29, %v9385_v49  ;;  %v9404_v56 = vrot.slane %v9403_v46, 4  ;;  %v9422_v30 = vrot.slane %v9420_v7, 5  ;;  %v9426_v28 = vrot.slane %v9424_v15, 4 }
 0x3c7   : > { %v9417_v13 = vor.u32 %v9416_v35, %v9413_v53  ;;  %v9430_v11 = vshll.u32 %v9091_v27, 16  ;;  %v9435_v32 = vshrl.u32 %v9092_v20, 16  ;;  %v9399_v51 = vsel %vm18147_vm2, %v9394_v5, %v9398_v16  ;;  %v9872_v53 = vld [vmem:[#allocation2 + $0x10] sm:$0xf] }
 0x3c8   : > { %16917 = vmatmul.mubr.bf16.gmra.mrb[40].mxu1 %v15374_v61  ;;  %v9409_v2 = vsel %vm18147_vm2, %v9404_v56, %v9408_v43  ;;  %v9438_v58 = vshll.u32 %v9092_v20, 16  ;;  %v9444_v45 = vshll.u32 %v9093_v50, 16  ;;  %v9427_v42 = vor.u32 %v9426_v28, %v9422_v30  ;;  %v9875_v61 = vld [vmem:[#allocation2 + $0x1c] sm:$0xf] }
 0x3c9   : > { %v15375_v31 = vcombine.low %v9399_v51, %v9409_v2  ;;  %v9418_v60 = vrot.slane %v9417_v13, 4  ;;  %v9432_v33 = vrot.slane %v9430_v11, 5  ;;  %v9437_v62 = vrot.slane %v9435_v32, 4  ;;  %v9876_v11 = vld [vmem:[#allocation2 + $0x20] sm:$0x1] }
 0x3ca   : > { %v9440_v4 = vrot.slane %v9438_v58, 5  ;;  %v9446_v48 = vrot.slane %v9444_v45, 5  ;;  %v9448_v36 = vshrl.u32 %v9093_v50, 16  ;;  %v9428_v52 = vrot.slane %v9427_v42, 4  ;;  %v9878_v42 = vld [vmem:[#allocation2 + $0x28] sm:$0xf] }
 0x3cb   : > { %16920 = vmatprep.mubr.bf16.mxu1 %v15375_v31  ;;  %v9423_v57 = vsel %vm18147_vm2, %v9418_v60, %v9422_v30  ;;  %v9454_v47 = vshll.u32 %v9094_v39, 16  ;;  %v9459_v12 = vshrl.u32 %v9095_v41, 16  ;;  %v9462_v10 = vshll.u32 %v9095_v41, 16  ;;  %v9873_v30 = vld [vmem:[#allocation2 + $0x14] sm:$0x1] }
 0x3cc   : > { %v9441_v37 = vor.u32 %v9440_v4, %v9437_v62  ;;  %v9450_v23 = vrot.slane %v9448_v36, 4  ;;  %v9468_v18 = vshll.u32 %v9096_v14, 16  ;;  %v9433_v34 = vsel %vm18147_vm2, %v9428_v52, %v9432_v33  ;;  %v9871_v39 = vld [vmem:[#allocation2 + $0xc] sm:$0xe]  ;;  %v9874_v31 = vld [vmem:[#allocation2 + $0x18] sm:$0xe] }
 0x3cd   : > { %v9456_v22 = vrot.slane %v9454_v47, 5  ;;  %v9461_v17 = vrot.slane %v9459_v12, 4  ;;  %v9472_v6 = vshrl.u32 %v9096_v14, 16  ;;  %v15376_v40 = vcombine.low %v9423_v57, %v9433_v34  ;;  %v9881_v62 = vld [vmem:[#allocation2 + $0x34] sm:$0xf] }
 0x3ce   : > { %v9442_v25 = vrot.slane %v9441_v37, 4  ;;  %v9451_v54 = vor.u32 %v9450_v23, %v9446_v48  ;;  %v9464_v44 = vrot.slane %v9462_v10, 5  ;;  %v9470_v8 = vrot.slane %v9468_v18, 5  ;;  %v9879_v36 = vld [vmem:[#allocation2 + $0x2c] sm:$0x1] }
 0x3cf   : > { %v9474_v16 = vrot.slane %v9472_v6, 4  ;;  %v9478_v26 = vshll.u32 %v9097_v24, 16  ;;  %v15387_v19 = vrot.slane %v9868_v9, 9  ;;  %v9966_v3 = vrot.slane %v9869_v63, 5  ;;  %v9882_v47 = vld [vmem:[#allocation2 + $0x38] sm:$0x1] }
 0x3d0   : > { %16921 = vmatmul.mubr.bf16.gmra.mrb[44].mxu1 %v15376_v40  ;;  %v9447_v27 = vsel %vm18147_vm2, %v9442_v25, %v9446_v48  ;;  %v9452_v20 = vrot.slane %v9451_v54, 4  ;;  %v9465_v29 = vor.u32 %v9464_v44, %v9461_v17  ;;  %v9969_v50 = vrot.slane %v9870_v38, 5  ;;  %v17963_v37 = vld [vmem:[%s22292_s2 + $0xc8] sm:$0xff]   ;;  %v9877_v18 = vld [vmem:[#allocation2 + $0x24] sm:$0xe]  ;;  %v17964_v40 = vld [vmem:[%s22292_s2 + $0xd0] sm:$0xff]  }
 0x3d1   : > { %v9475_v55 = vor.u32 %v9474_v16, %v9470_v8  ;;  %v9480_v59 = vrot.slane %v9478_v26, 5  ;;  %v9967_v7 = vsel %vm18242_vm5, %v15387_v19, %v9966_v3  ;;  %v9968_v49 = vrot.slane %v9966_v3, 4  ;;  %v9880_v17 = vld [vmem:[#allocation2 + $0x30] sm:$0xe]  ;;  %v9884_v63 = vld [vmem:[#allocation2 + $0x40] sm:$0xf] }
 0x3d2   : > { %v9457_v21 = vsel %vm18147_vm2, %v9452_v20, %v9456_v22  ;;  %v9466_v46 = vrot.slane %v9465_v29, 4  ;;  %v9973_v28 = vrot.slane %v9872_v53, 5  ;;  %v9980_v51 = vrot.slane %v9875_v61, 5  ;;  %v9887_v44 = vld [vmem:[#allocation2 + $0x4c] sm:$0xf]  ;;  %v17965_v3 = vld [vmem:[%s22292_s2 + $0xd8] sm:$0xff]  }
 0x3d3   : > { %v15377_v35 = vcombine.low %v9447_v27, %v9457_v21  ;;  %v9476_v15 = vrot.slane %v9475_v55, 4  ;;  %v9970_v56 = vsel %vm18242_vm5, %v9968_v49, %v9969_v50  ;;  %v9976_v2 = vrot.slane %v9873_v30, 5  ;;  %v9885_v16 = vld [vmem:[#allocation2 + $0x44] sm:$0x1]  ;;  %v9888_v19 = vld [vmem:[#allocation2 + $0x50] sm:$0x1] }
 0x3d4   : > { %v9471_v5 = vsel %vm18147_vm2, %v9466_v46, %v9470_v8  ;;  %v15419_v13 = vcombine.low %v9967_v7, %v9970_v56  ;;  %v9983_v58 = vrot.slane %v9876_v11, 5  ;;  %v9975_v45 = vrot.slane %v9973_v28, 4  ;;  %v9883_v50 = vld [vmem:[#allocation2 + $0x3c] sm:$0xe]  ;;  %v9886_v7 = vld [vmem:[#allocation2 + $0x48] sm:$0xe] }
 0x3d5   : > { %16924 = vmatprep.mubr.bf16.mxu1 %v15377_v35  ;;  %v9481_v41 = vsel %vm18147_vm2, %v9476_v15, %v9480_v59  ;;  %v9982_v60 = vrot.slane %v9980_v51, 4  ;;  %v15388_v33 = vrot.slane %v9871_v39, 9  ;;  %v15389_v4 = vrot.slane %v9874_v31, 9  ;;  %v9890_v53 = vld [vmem:[#allocation2 + $0x58] sm:$0xf]  ;;  %v17966_v35 = vld [vmem:[%s22292_s2 + $0xe0] sm:$0xff]  }
 0x3d6   : > { %v15378_v32 = vcombine.low %v9471_v5, %v9481_v41  ;;  %v9977_v14 = vsel %vm18242_vm5, %v9975_v45, %v9976_v2  ;;  %v9987_v52 = vrot.slane %v9878_v42, 5  ;;  %v9994_v23 = vrot.slane %v9881_v62, 5  ;;  %v9893_v5 = vld [vmem:[#allocation2 + $0x64] sm:$0xf]  ;;  %v9891_v41 = vld [vmem:[#allocation2 + $0x5c] sm:$0x1] }
 0x3d7   : > { %v9984_v48 = vsel %vm18242_vm5, %v9982_v60, %v9983_v58  ;;  %v9974_v57 = vsel %vm18242_vm5, %v15388_v33, %v9973_v28  ;;  %v9981_v9 = vsel %vm18242_vm5, %v15389_v4, %v9980_v51  ;;  %v9990_v10 = vrot.slane %v9879_v36, 5  ;;  %v9894_v11 = vld [vmem:[#allocation2 + $0x68] sm:$0x1]  ;;  %v9889_v31 = vld [vmem:[#allocation2 + $0x54] sm:$0xe] }
 0x3d8   : > { %16925 = vmatmul.mubr.bf16.gmra.mrb[48].mxu1 %v15378_v32  ;;  %v15420_v12 = vcombine.low %v9974_v57, %v9977_v14  ;;  %v15421_v24 = vcombine.low %v9981_v9, %v9984_v48  ;;  %v9997_v34 = vrot.slane %v9882_v47, 5  ;;  %v9989_v22 = vrot.slane %v9987_v52, 4  ;;  %v17967_v39 = vld [vmem:[%s22292_s2 + $0xe8] sm:$0xff]   ;;  %v9892_v33 = vld [vmem:[#allocation2 + $0x60] sm:$0xe]  ;;  %v17968_v4 = vld [vmem:[%s22292_s2 + $0xf0] sm:$0xff]  }
 0x3d9   : > { %16944 = vmatprep.mubr.bf16.mxu1 %v15419_v13  ;;  %v9996_v6 = vrot.slane %v9994_v23, 4  ;;  %v15390_v25 = vrot.slane %v9877_v18, 9  ;;  %v15391_v38 = vrot.slane %v9880_v17, 9  ;;  %v10001_v26 = vrot.slane %v9884_v63, 5  ;;  %v9896_v62 = vld [vmem:[#allocation2 + $0x70] sm:$0xf] }
 0x3da   : > { %v9991_v54 = vsel %vm18242_vm5, %v9989_v22, %v9990_v10  ;;  %v10008_v29 = vrot.slane %v9887_v44, 5  ;;  %v10004_v59 = vrot.slane %v9885_v16, 5  ;;  %v10011_v21 = vrot.slane %v9888_v19, 5  ;;  %v9899_v57 = vld [vmem:[#allocation2 + $0x7c] sm:$0xf] }
 0x3db   : > { %v9998_v8 = vsel %vm18242_vm5, %v9996_v6, %v9997_v34  ;;  %v9995_v20 = vsel %vm18242_vm5, %v15391_v38, %v9994_v23  ;;  %v10003_v46 = vrot.slane %v10001_v26, 4  ;;  %v15392_v15 = vrot.slane %v9883_v50, 9  ;;  %v9900_v23 = vld [vmem:[#allocation2 + $0x80] sm:$0x1]  ;;  %v17969_v34 = vld [vmem:[%s22292_s2 + $0xf8] sm:$0xff]  }
 0x3dc   : > { %v15423_v55 = vcombine.low %v9995_v20, %v9998_v8  ;;  %v10010_v49 = vrot.slane %v10008_v29, 4  ;;  %v15393_v56 = vrot.slane %v9886_v7, 9  ;;  %v10015_v28 = vrot.slane %v9890_v53, 5  ;;  %v9895_v6 = vld [vmem:[#allocation2 + $0x6c] sm:$0xe]  ;;  %v21710_v38 = vld [vmem:[%s22292_s2 + $0x100] sm:$0xff]  }
 0x3dd   : > { %v10005_v61 = vsel %vm18242_vm5, %v10003_v46, %v10004_v59  ;;  %v10002_v13 = vsel %vm18242_vm5, %v15392_v15, %v10001_v26  ;;  %v10022_v2 = vrot.slane %v9893_v5, 5  ;;  %v10018_v45 = vrot.slane %v9891_v41, 5  ;;  %v9902_v44 = vld [vmem:[#allocation2 + $0x88] sm:$0xf]  ;;  %v9901_v7 = vld [vmem:[#allocation2 + $0x84] sm:$0xe] }
 0x3de   : > { %v10012_v30 = vsel %vm18242_vm5, %v10010_v49, %v10011_v21  ;;  %v15424_v32 = vcombine.low %v10002_v13, %v10005_v61  ;;  %v10009_v51 = vsel %vm18242_vm5, %v15393_v56, %v10008_v29  ;;  %v10025_v60 = vrot.slane %v9894_v11, 5  ;;  %v9908_v61 = vld [vmem:[#allocation2 + $0xa0] sm:$0xf] }
 0x3df   : > { %v15425_v58 = vcombine.low %v10009_v51, %v10012_v30  ;;  %v10017_v42 = vrot.slane %v10015_v28, 4  ;;  %v10024_v14 = vrot.slane %v10022_v2, 4  ;;  %v15394_v48 = vrot.slane %v9889_v31, 9  ;;  %v9911_v30 = vld [vmem:[#allocation2 + $0xac] sm:$0xf] }
 0x3e0   : > { %16945 = vmatmul.mubr.bf16.vlgmr.msra.gmra.mrb[20].mxu1 %v15420_v12  ;;  %v9897_v12 = vld [vmem:[#allocation2 + $0x74] sm:$0x1]  ;;  %v10036_v18 = vrot.slane %v9899_v57, 5  ;;  %v10039_v63 = vrot.slane %v9900_v23, 5  ;;  %v15396_v8 = vrot.slane %v9895_v6, 9  ;;  %v10043_v29 = vrot.slane %v9902_v44, 5 }
 0x3e1   : > { %16948 = vmatprep.mubr.bf16.mxu1 %v15421_v24  ;;  %16977 = vmatpush3.bf16.msra.mxu1 %v21618_v0  ;;  %v9988_v0 = vsel %vm18242_vm5, %v15390_v25, %v9987_v52  ;;  %v10019_v36 = vsel %vm18242_vm5, %v10017_v42, %v10018_v45  ;;  %v15395_v52 = vrot.slane %v9892_v33, 9  ;;  %v10026_v47 = vsel %vm18242_vm5, %v10024_v14, %v10025_v60  ;;  %v9898_v25 = vld [vmem:[#allocation2 + $0x78] sm:$0xe]  ;;  %v9912_v51 = vld [vmem:[#allocation2 + $0xb0] sm:$0x1]  ;;  %v17973_v44 = vld [vmem:[#allocation2 + $0x24] sm:$0xff]  }
 0x3e2   : > { %16978 = vmatprep.subr.bf16.mxu1 %v17963_v37  ;;  %v15422_v27 = vcombine.low %v9988_v0, %v9991_v54  ;;  %v10016_v9 = vsel %vm18242_vm5, %v15394_v48, %v10015_v28  ;;  %v10032_v17 = vrot.slane %v9897_v12, 5  ;;  %v10038_v54 = vrot.slane %v10036_v18, 4  ;;  %v9905_v0 = vld [vmem:[#allocation2 + $0x94] sm:$0xf]  ;;  %v9909_v28 = vld [vmem:[#allocation2 + $0xa4] sm:$0x1] }
 0x3e3   : > { %v15426_v24 = vcombine.low %v10016_v9, %v10019_v36  ;;  %v10023_v10 = vsel %vm18242_vm5, %v15395_v52, %v10022_v2  ;;  %v15397_v26 = vrot.slane %v9898_v25, 9  ;;  %v10050_v50 = vrot.slane %v9905_v0, 5  ;;  %v9907_v60 = vld [vmem:[#allocation2 + $0x9c] sm:$0xe]  ;;  %v9910_v14 = vld [vmem:[#allocation2 + $0xa8] sm:$0xe] }
 0x3e4   : > { %v15427_v22 = vcombine.low %v10023_v10, %v10026_v47  ;;  %v10040_v19 = vsel %vm18242_vm5, %v10038_v54, %v10039_v63  ;;  %v10045_v53 = vrot.slane %v10043_v29, 4  ;;  %v15398_v5 = vrot.slane %v9901_v7, 9  ;;  %v9915_v47 = vld [vmem:[#allocation2 + $0xbc] sm:$0x1]  ;;  %v17975_v54 = vld [vmem:[%s22292_s2 + $0x108] sm:$0xff]  }
 0x3e5   : > { %16979 = vmatpush3.bf16.msra.mxu1 %v17963_v37  ;;  %v10029_v37 = vrot.slane %v9896_v62, 5  ;;  %v10037_v59 = vsel %vm18242_vm5, %v15397_v26, %v10036_v18  ;;  %v10052_v15 = vrot.slane %v10050_v50, 4  ;;  %v10060_v31 = vrot.slane %v9909_v28, 5  ;;  %v9913_v18 = vld [vmem:[#allocation2 + $0xb4] sm:$0xe]  ;;  %v17971_v25 = vld [vmem:[#allocation2 + $0x18] sm:$0xff]  }
 0x3e6   : > { %16980 = vmatprep.subr.bf16.mxu1 %v17964_v40  ;;  %v15429_v21 = vcombine.low %v10037_v59, %v10040_v19  ;;  %v10044_v11 = vsel %vm18242_vm5, %v15398_v5, %v10043_v29  ;;  %v10067_v42 = vrot.slane %v9912_v51, 5  ;;  %v15400_v48 = vrot.slane %v9907_v60, 9  ;;  %v17981_v0 = vld [vmem:[%s22292_s2 + $0x118] sm:$0xff]   ;;  %v17977_v19 = vld [vmem:[#allocation2 + $0x48] sm:$0xff]   ;;  %v17990_v29 = vld [vmem:[%s22292_s2 + $0x130] sm:$0xff]  }
 0x3e7   : > { %v10030_v20 = vsel %vm18242_vm5, %v15396_v8, %v10029_v37  ;;  %v15401_v57 = vrot.slane %v9910_v14, 9  ;;  %v10074_v10 = vrot.slane %v9915_v47, 5  ;;  %v17978_v8 = vld [vmem:[%s22292_s2 + $0x110] sm:$0xff]   ;;  %v17976_v26 = vld [vmem:[#allocation2 + $0x3c] sm:$0xff]   ;;  %v17985_v7 = vld [vmem:[#allocation2 + $0x84] sm:$0xff]  }
 0x3e8   : > { %16949 = vmatmul.mubr.bf16.gmra.mrb[24].mxu1 %v15422_v27  ;;  %v9903_v27 = vld [vmem:[#allocation2 + $0x8c] sm:$0x1]  ;;  %v17986_v28 = vld [vmem:[#allocation2 + $0x90] sm:$0xff]   ;;  %v10920_v14 = vld [vmem:[#allocation2 + $0x28] sm:$0xf] }
 0x3e9   : > { %16952 = vmatprep.mubr.bf16.mxu1 %v15423_v55  ;;  %16981 = vmatpush3.bf16.msra.mxu1 %v17964_v40  ;;  %v10031_v40 = vrot.slane %v10029_v37, 4  ;;  %v10046_v46 = vrot.slane %v9903_v27, 5  ;;  %v17987_v27 = vld [vmem:[%s22292_s2 + $0x128] sm:$0xff]   ;;  %v10918_v47 = vld [vmem:[#allocation2 + $0x20] sm:$0x1] }
 0x3ea   : > { %16982 = vmatprep.subr.bf16.mxu1 %v17965_v3  ;;  %v17982_v59 = vld [vmem:[#allocation2 + $0x6c] sm:$0xff]  }
 0x3eb   : > { %v10033_v16 = vsel %vm18242_vm5, %v10031_v40, %v10032_v17  ;;  %v10047_v56 = vsel %vm18242_vm5, %v10045_v53, %v10046_v46  ;;  %v17970_v40 = vld [vmem:[#allocation2 + $0xc] sm:$0xff]   ;;  %v17983_v46 = vld [vmem:[#allocation2 + $0x78] sm:$0xff]  }
 0x3ec   : > { %v15428_v55 = vcombine.low %v10030_v20, %v10033_v16  ;;  %v15430_v2 = vcombine.low %v10044_v11, %v10047_v56  ;;  %v17974_v16 = vld [vmem:[#allocation2 + $0x30] sm:$0xff]   ;;  %v10917_v11 = vld [vmem:[#allocation2 + $0x1c] sm:$0xf] }
 0x3ed   : > { %16983 = vmatpush3.bf16.msra.mxu1 %v17965_v3  ;;  %v9906_v3 = vld [vmem:[#allocation2 + $0x98] sm:$0x1] }
 0x3ee   : > { %16984 = vmatprep.subr.bf16.mxu1 %v17966_v35  ;;  %v10053_v49 = vrot.slane %v9906_v3, 5  ;;  %v17979_v20 = vld [vmem:[#allocation2 + $0x54] sm:$0xff]   ;;  %v17980_v3 = vld [vmem:[#allocation2 + $0x60] sm:$0xff]  }
 0x3f0   : > { %16953 = vmatmul.mubr.bf16.gmra.mrb[28].mxu1 %v15424_v32  ;;  %v10054_v13 = vsel %vm18242_vm5, %v10052_v15, %v10053_v49  ;;  %v10057_v32 = vrot.slane %v9908_v61, 5  ;;  %v10916_v15 = vld [vmem:[#allocation2 + $0x18] sm:$0xf] }
 0x3f1   : > { %16956 = vmatprep.mubr.bf16.mxu1 %v15425_v58  ;;  %16985 = vmatpush3.bf16.msra.mxu1 %v17966_v35  ;;  %v9904_v35 = vld [vmem:[#allocation2 + $0x90] sm:$0xe]  ;;  %v10064_v58 = vrot.slane %v9911_v30, 5 }
 0x3f2   : > { %16986 = vmatprep.subr.bf16.mxu1 %v17967_v39  ;;  %v15399_v41 = vrot.slane %v9904_v35, 9  ;;  %v10059_v33 = vrot.slane %v10057_v32, 4  ;;  %v10058_v12 = vsel %vm18242_vm5, %v15400_v48, %v10057_v32  ;;  %v10914_v35 = vld [vmem:[#allocation2 + $0x10] sm:$0xf]  ;;  %v17988_v32 = vld [vmem:[#allocation2 + $0x9c] sm:$0xff]  }
 0x3f3   : > { %v10066_v62 = vrot.slane %v10064_v58, 4  ;;  %v10065_v23 = vsel %vm18242_vm5, %v15401_v57, %v10064_v58  ;;  %v10971_v56 = vshll.u32 %v10914_v35, 16  ;;  %v10975_v30 = vshrl.u32 %v10914_v35, 16  ;;  %v10922_v57 = vld [vmem:[#allocation2 + $0x30] sm:$0xf] }
 0x3f4   : > { %v10061_v36 = vsel %vm18242_vm5, %v10059_v33, %v10060_v31  ;;  %v10999_v33 = vshrl.u32 %v10917_v11, 16 }
 0x3f5   : > { %16987 = vmatpush3.bf16.msra.mxu1 %v17967_v39  ;;  %v10051_v39 = vsel %vm18242_vm5, %v15399_v41, %v10050_v50  ;;  %v10068_v52 = vsel %vm18242_vm5, %v10066_v62, %v10067_v42  ;;  %v15432_v37 = vcombine.low %v10058_v12, %v10061_v36  ;;  %v21766_v50 = vld [vmem:[%s22292_s2 + $0x140] sm:$0xff]   ;;  %v10986_v41 = vshrl.u32 %v10916_v15, 16 }
 0x3f6   : > { %16988 = vmatprep.subr.bf16.mxu1 %v17968_v4  ;;  %v15431_v45 = vcombine.low %v10051_v39, %v10054_v13  ;;  %v10989_v13 = vshll.u32 %v10916_v15, 16  ;;  %v10915_v39 = vld [vmem:[#allocation2 + $0x14] sm:$0x1]  ;;  %v10973_v58 = vrot.slane %v10971_v56, 5  ;;  %v10995_v42 = vshll.u32 %v10917_v11, 16 }
 0x3f7   : > { %v10988_v31 = vrot.slane %v10986_v41, 4  ;;  %v10981_v36 = vshll.u32 %v10915_v39, 16  ;;  %v10928_v41 = vld [vmem:[#allocation2 + $0x48] sm:$0xf] }
 0x3f8   : > { %16957 = vmatmul.mubr.bf16.gmra.mrb[32].mxu1 %v15426_v24  ;;  %v15433_v24 = vcombine.low %v10065_v23, %v10068_v52  ;;  %v10991_v60 = vrot.slane %v10989_v13, 5  ;;  %v17989_v23 = vld [vmem:[#allocation2 + $0xa8] sm:$0xff]  }
 0x3f9   : > { %16960 = vmatprep.mubr.bf16.mxu1 %v15427_v22  ;;  %16989 = vmatpush3.bf16.msra.mxu1 %v17968_v4  ;;  %v9914_v4 = vld [vmem:[#allocation2 + $0xb8] sm:$0xf]  ;;  %v15402_v22 = vrot.slane %v9913_v18, 9  ;;  %v10921_v18 = vld [vmem:[#allocation2 + $0x2c] sm:$0x1] }
 0x3fa   : > { %16990 = vmatprep.subr.bf16.mxu1 %v17969_v34  ;;  %v10071_v9 = vrot.slane %v9914_v4, 5  ;;  %v10992_v12 = vor.u32 %v10991_v60, %v10988_v31  ;;  %v10931_v60 = vld [vmem:[#allocation2 + $0x54] sm:$0xf] }
 0x3fc   : > { %v10072_v6 = vsel %vm18242_vm5, %v15402_v22, %v10071_v9 }
 0x3fd   : > { %16991 = vmatpush3.bf16.msra.mxu1 %v17969_v34  ;;  %v10073_v34 = vrot.slane %v10071_v9, 4  ;;  %v11019_v9 = vshll.u32 %v10920_v14, 16 }
 0x3fe   : > { %17024 = vmatprep.subr.bf16.mxu1 %v21710_v38 }
 0x3ff   : > { %v10075_v17 = vsel %vm18242_vm5, %v10073_v34, %v10074_v10  ;;  %v11001_v10 = vrot.slane %v10999_v33, 4 }
 0x400   : > { %16961 = vmatmul.mubr.bf16.gmra.mrb[36].mxu1 %v15428_v55  ;;  %v15434_v63 = vcombine.low %v10072_v6, %v10075_v17  ;;  %v17993_v55 = vld [vmem:[%s22292_s2 + $0x138] sm:$0xff]   ;;  %v10923_v17 = vld [vmem:[#allocation2 + $0x34] sm:$0xf]  ;;  %v11034_v6 = vshrl.u32 %v10922_v57, 16 }
 0x401   : > { %16964 = vmatprep.mubr.bf16.mxu1 %v15429_v21  ;;  %v10913_v21 = vld [vmem:[#allocation2 + $0xc] sm:$0xf] }
 0x402   : > { %v10962_v49 = vshrl.u32 %v10913_v21, 16  ;;  %v10965_v53 = vshll.u32 %v10913_v21, 16 }
 0x404   : > { %v10964_v61 = vrot.slane %v10962_v49, 4  ;;  %v10967_v5 = vrot.slane %v10965_v53, 5  ;;  %v10924_v49 = vld [vmem:[#allocation2 + $0x38] sm:$0x1] }
 0x406   : > { %v10968_v51 = vor.u32 %v10967_v5, %v10964_v61 }
 0x408   : > { %16965 = vmatmul.mubr.bf16.gmra.mrb[40].mxu1 %v15430_v2  ;;  %v10919_v2 = vld [vmem:[#allocation2 + $0x24] sm:$0xf]  ;;  %v10969_v48 = vrot.slane %v10968_v51, 4  ;;  %v10929_v51 = vld [vmem:[#allocation2 + $0x4c] sm:$0xf] }
 0x409   : > { %16968 = vmatprep.mubr.bf16.mxu1 %v15431_v45  ;;  %v10977_v45 = vrot.slane %v10975_v30, 4  ;;  %v11010_v62 = vshrl.u32 %v10919_v2, 16  ;;  %v11013_v4 = vshll.u32 %v10919_v2, 16  ;;  %v17992_v2 = vld [vmem:[#allocation2 + $0xc0] sm:$0xff]  }
 0x40b   : > { %v10978_v52 = vor.u32 %v10977_v45, %v10973_v58  ;;  %v11012_v34 = vrot.slane %v11010_v62, 4  ;;  %v11015_v22 = vrot.slane %v11013_v4, 5  ;;  %v11053_v45 = vshll.u32 %v10924_v49, 16 }
 0x40c   : > { %v11082_v4 = vshrl.u32 %v10928_v41, 16 }
 0x410   : > { %16969 = vmatmul.mubr.bf16.gmra.mrb[44].mxu1 %v15432_v37  ;;  %v11023_v37 = vshrl.u32 %v10920_v14, 16 }
 0x411   : > { %16972 = vmatprep.mubr.bf16.mxu1 %v15433_v24  ;;  %v21769_v24 = vrot.slane %v10995_v42, 5  ;;  %v10927_v42 = vld [vmem:[#allocation2 + $0x44] sm:$0x1] }
 0x418   : > { %16973 = vmatmul.mubr.bf16.gmra.mrb[48].mxu1 %v15434_v63  ;;  %v11037_v63 = vshll.u32 %v10922_v57, 16  ;;  %v11091_v57 = vshll.u32 %v10929_v51, 16 }
 0x419   : > { %16992 = vmatprep.mubr.bf16.mxu1 %v17970_v40  ;;  %v17991_v40 = vld [vmem:[#allocation2 + $0xb4] sm:$0xff]  }
 0x41a   : > { %v11039_v21 = vrot.slane %v11037_v63, 5  ;;  %v11084_v63 = vrot.slane %v11082_v4, 4 }
 0x420   : > { %16993 = vmatmul.mubr.bf16.vlgmr.msra.gmra.mrb[20].mxu1 %v17971_v25  ;;  %v10974_v25 = vsel %vm18147_vm2, %v10969_v48, %v10973_v58 }
 0x421   : > { %16996 = vmatprep.mubr.bf16.mxu1 %v17973_v44  ;;  %17025 = vmatpush3.bf16.msra.mxu1 %v21710_v38  ;;  %v17984_v38 = vld [vmem:[%s22292_s2 + $0x120] sm:$0xff]   ;;  %v11005_v44 = vshll.u32 %v10918_v47, 16 }
 0x422   : > { %17026 = vmatprep.subr.bf16.mxu1 %v17975_v54 }
 0x423   : > { %v11007_v56 = vrot.slane %v11005_v44, 5 }
 0x425   : > { %17027 = vmatpush3.bf16.msra.mxu1 %v17975_v54  ;;  %v10983_v54 = vrot.slane %v10981_v36, 5  ;;  %v11085_v36 = vshll.u32 %v10928_v41, 16 }
 0x426   : > { %17028 = vmatprep.subr.bf16.mxu1 %v17978_v8 }
 0x428   : > { %16997 = vmatmul.mubr.bf16.gmra.mrb[24].mxu1 %v17974_v16  ;;  %v10979_v16 = vrot.slane %v10978_v52, 4  ;;  %v11095_v52 = vshrl.u32 %v10929_v51, 16 }
 0x429   : > { %17000 = vmatprep.mubr.bf16.mxu1 %v17976_v26  ;;  %17029 = vmatpush3.bf16.msra.mxu1 %v17978_v8  ;;  %v10925_v8 = vld [vmem:[#allocation2 + $0x3c] sm:$0xf]  ;;  %v21775_v26 = vrot.slane %v11019_v9, 5  ;;  %v10932_v9 = vld [vmem:[#allocation2 + $0x58] sm:$0xf] }
 0x42a   : > { %17030 = vmatprep.subr.bf16.mxu1 %v17981_v0  ;;  %v11061_v53 = vshll.u32 %v10925_v8, 16  ;;  %v11115_v44 = vshll.u32 %v10932_v9, 16 }
 0x42c   : > { %v11063_v33 = vrot.slane %v11061_v53, 5 }
 0x42d   : > { %17031 = vmatpush3.bf16.msra.mxu1 %v17981_v0  ;;  %v21773_v0 = vrot.slane %v10992_v12, 4 }
 0x42e   : > { %17032 = vmatprep.subr.bf16.mxu1 %v17984_v38 }
 0x42f   : > { %v10998_v5 = vsel %vm18147_vm2, %v21773_v0, %v21769_v24 }
 0x430   : > { %17001 = vmatmul.mubr.bf16.gmra.mrb[28].mxu1 %v17977_v19  ;;  %v10926_v19 = vld [vmem:[#allocation2 + $0x40] sm:$0xf] }
 0x431   : > { %17004 = vmatprep.mubr.bf16.mxu1 %v17979_v20  ;;  %17033 = vmatpush3.bf16.msra.mxu1 %v17984_v38  ;;  %v11025_v38 = vrot.slane %v11023_v37, 4  ;;  %v11029_v20 = vshll.u32 %v10921_v18, 16  ;;  %v11067_v35 = vshll.u32 %v10926_v19, 16  ;;  %v11071_v15 = vshrl.u32 %v10926_v19, 16 }
 0x432   : > { %17034 = vmatprep.subr.bf16.mxu1 %v17987_v27  ;;  %v11106_v37 = vshrl.u32 %v10931_v60, 16  ;;  %v11055_v18 = vrot.slane %v11053_v45, 5 }
 0x433   : > { %v11026_v30 = vor.u32 %v11025_v38, %v21775_v26  ;;  %v21787_v14 = vrot.slane %v11067_v35, 5  ;;  %v11073_v62 = vrot.slane %v11071_v15, 4  ;;  %v21809_v15 = vrot.slane %v11115_v44, 5 }
 0x434   : > { %v11108_v0 = vrot.slane %v11106_v37, 4 }
 0x435   : > { %17035 = vmatpush3.bf16.msra.mxu1 %v17987_v27  ;;  %v11002_v27 = vor.u32 %v11001_v10, %v21769_v24  ;;  %v11027_v48 = vrot.slane %v11026_v30, 4 }
 0x436   : > { %17036 = vmatprep.subr.bf16.mxu1 %v17990_v29 }
 0x437   : > { %v11003_v13 = vrot.slane %v11002_v27, 4 }
 0x438   : > { %17005 = vmatmul.mubr.bf16.gmra.mrb[32].mxu1 %v17980_v3  ;;  %v11047_v3 = vshrl.u32 %v10923_v17, 16 }
 0x439   : > { %17008 = vmatprep.mubr.bf16.mxu1 %v17982_v59  ;;  %17037 = vmatpush3.bf16.msra.mxu1 %v17990_v29  ;;  %v11043_v29 = vshll.u32 %v10923_v17, 16  ;;  %v11036_v59 = vrot.slane %v11034_v6, 4  ;;  %v11008_v47 = vsel %vm18147_vm2, %v11003_v13, %v11007_v56  ;;  %v11074_v6 = vor.u32 %v11073_v62, %v21787_v14  ;;  %v10936_v62 = vld [vmem:[#allocation2 + $0x68] sm:$0x1] }
 0x43a   : > { %17038 = vmatprep.subr.bf16.mxu1 %v17993_v55  ;;  %v15500_v19 = vcombine.low %v10998_v5, %v11008_v47  ;;  %v10933_v5 = vld [vmem:[#allocation2 + $0x5c] sm:$0x1] }
 0x43b   : > { %v21785_v11 = vrot.slane %v11043_v29, 5  ;;  %v11040_v58 = vor.u32 %v11039_v21, %v11036_v59 }
 0x43d   : > { %17039 = vmatpush3.bf16.msra.mxu1 %v17993_v55  ;;  %v11016_v55 = vor.u32 %v11015_v22, %v11012_v34  ;;  %v11077_v34 = vshll.u32 %v10927_v42, 16  ;;  %v11041_v22 = vrot.slane %v11040_v58, 4 }
 0x43e   : > { %17072 = vmatprep.subr.bf16.mxu1 %v21766_v50 }
 0x43f   : > { %v11017_v39 = vrot.slane %v11016_v55, 4  ;;  %v11079_v29 = vrot.slane %v11077_v34, 5  ;;  %v11046_v55 = vsel %vm18147_vm2, %v11041_v22, %v21785_v11  ;;  %v10939_v22 = vld [vmem:[#allocation2 + $0x74] sm:$0x1] }
 0x440   : > { %17009 = vmatmul.mubr.bf16.gmra.mrb[36].mxu1 %v17983_v46  ;;  %v11058_v46 = vshrl.u32 %v10925_v8, 16 }
 0x441   : > { %17012 = vmatprep.mubr.bf16.mxu1 %v17985_v7  ;;  %v10984_v7 = vsel %vm18147_vm2, %v10979_v16, %v10983_v54  ;;  %v11022_v24 = vsel %vm18147_vm2, %v11017_v39, %v21775_v26  ;;  %v11097_v54 = vrot.slane %v11095_v52, 4  ;;  %v10930_v16 = vld [vmem:[#allocation2 + $0x50] sm:$0x1]  ;;  %v11119_v26 = vshrl.u32 %v10932_v9, 16  ;;  %v10940_v52 = vld [vmem:[#allocation2 + $0x78] sm:$0xf] }
 0x442   : > { %v15499_v61 = vcombine.low %v10974_v25, %v10984_v7  ;;  %v11060_v31 = vrot.slane %v11058_v46, 4  ;;  %v21798_v25 = vrot.slane %v11091_v57, 5  ;;  %v11075_v46 = vrot.slane %v11074_v6, 4  ;;  %v10935_v7 = vld [vmem:[#allocation2 + $0x64] sm:$0xf] }
 0x443   : > { %v11101_v35 = vshll.u32 %v10930_v16, 16  ;;  %v11121_v30 = vrot.slane %v11119_v26, 4  ;;  %v11143_v51 = vshrl.u32 %v10935_v7, 16  ;;  %v10938_v39 = vld [vmem:[#allocation2 + $0x70] sm:$0xf]  ;;  %v11178_v6 = vshrl.u32 %v10940_v52, 16 }
 0x444   : > { %v11064_v17 = vor.u32 %v11063_v33, %v11060_v31  ;;  %v11098_v53 = vor.u32 %v11097_v54, %v21798_v25  ;;  %v11125_v33 = vshll.u32 %v10933_v5, 16  ;;  %v11163_v9 = vshll.u32 %v10938_v39, 16  ;;  %v10943_v16 = vld [vmem:[#allocation2 + $0x84] sm:$0xf] }
 0x445   : > { %v11103_v42 = vrot.slane %v11101_v35, 5  ;;  %v11145_v47 = vrot.slane %v11143_v51, 4  ;;  %v11167_v37 = vshrl.u32 %v10938_v39, 16 }
 0x446   : > { %v11065_v21 = vrot.slane %v11064_v17, 4  ;;  %v10941_v17 = vld [vmem:[#allocation2 + $0x7c] sm:$0xf]  ;;  %v11127_v54 = vrot.slane %v11125_v33, 5  ;;  %v10945_v33 = vld [vmem:[#allocation2 + $0x8c] sm:$0x1] }
 0x447   : > { %v11169_v26 = vrot.slane %v11167_v37, 4 }
 0x448   : > { %17013 = vmatmul.mubr.bf16.gmra.mrb[40].mxu1 %v17986_v28  ;;  %v11031_v28 = vrot.slane %v11029_v20, 5  ;;  %v17995_v20 = vld [vmem:[%s22292_s2 + $0x148] sm:$0xff]  }
 0x449   : > { %17016 = vmatprep.mubr.bf16.mxu1 %v17988_v32  ;;  %v11049_v32 = vrot.slane %v11047_v3, 4  ;;  %v10934_v3 = vld [vmem:[#allocation2 + $0x60] sm:$0xf] }
 0x44a   : > { %v11032_v10 = vsel %vm18147_vm2, %v11027_v48, %v11031_v28  ;;  %v11130_v41 = vshrl.u32 %v10934_v3, 16  ;;  %v11133_v13 = vshll.u32 %v10934_v3, 16  ;;  %v11122_v48 = vor.u32 %v11121_v30, %v21809_v15 }
 0x44b   : > { %v11050_v12 = vor.u32 %v11049_v32, %v21785_v11  ;;  %v15501_v27 = vcombine.low %v11022_v24, %v11032_v10  ;;  %v17996_v11 = vld [vmem:[%s22292_s2 + $0x150] sm:$0xff]   ;;  %v11139_v32 = vshll.u32 %v10935_v7, 16  ;;  %v11191_v3 = vshrl.u32 %v10941_v17, 16 }
 0x44c   : > { %v11135_v57 = vrot.slane %v11133_v13, 5  ;;  %v11205_v7 = vshll.u32 %v10943_v16, 16  ;;  %v17999_v13 = vld [vmem:[%s22292_s2 + $0x168] sm:$0xff]  }
 0x44d   : > { %v11051_v8 = vrot.slane %v11050_v12, 4  ;;  %v17997_v12 = vld [vmem:[%s22292_s2 + $0x158] sm:$0xff]  }
 0x44f   : > { %v11056_v59 = vsel %vm18147_vm2, %v11051_v8, %v11055_v18  ;;  %v11149_v8 = vshll.u32 %v10936_v62, 16  ;;  %v10947_v62 = vld [vmem:[#allocation2 + $0x94] sm:$0xf] }
 0x450   : > { %17017 = vmatmul.mubr.bf16.gmra.mrb[44].mxu1 %v17989_v23  ;;  %v11109_v23 = vshll.u32 %v10931_v60, 16  ;;  %v15502_v28 = vcombine.low %v11046_v55, %v11056_v59  ;;  %v11099_v60 = vrot.slane %v11098_v53, 4  ;;  %v10944_v55 = vld [vmem:[#allocation2 + $0x88] sm:$0xf]  ;;  %v11180_v59 = vrot.slane %v11178_v6, 4 }
 0x451   : > { %17020 = vmatprep.mubr.bf16.mxu1 %v17991_v40  ;;  %v11087_v40 = vrot.slane %v11085_v36, 5  ;;  %v11132_v36 = vrot.slane %v11130_v41, 4  ;;  %v11215_v30 = vshrl.u32 %v10944_v55, 16  ;;  %v10946_v41 = vld [vmem:[#allocation2 + $0x90] sm:$0xf] }
 0x452   : > { %v11111_v38 = vrot.slane %v11109_v23, 5  ;;  %v11104_v34 = vsel %vm18147_vm2, %v11099_v60, %v11103_v42 }
 0x453   : > { %v11088_v49 = vor.u32 %v11087_v40, %v11084_v63  ;;  %v11181_v63 = vshll.u32 %v10940_v52, 16  ;;  %v11136_v44 = vor.u32 %v11135_v57, %v11132_v36 }
 0x454   : > { %v11112_v56 = vor.u32 %v11111_v38, %v11108_v0  ;;  %v11123_v0 = vrot.slane %v11122_v48, 4  ;;  %v21835_v38 = vrot.slane %v11163_v9, 5  ;;  %v11229_v48 = vshll.u32 %v10946_v41, 16 }
 0x455   : > { %v11089_v31 = vrot.slane %v11088_v49, 4  ;;  %v11137_v35 = vrot.slane %v11136_v44, 4 }
 0x456   : > { %v11113_v4 = vrot.slane %v11112_v56, 4  ;;  %v11128_v53 = vsel %vm18147_vm2, %v11123_v0, %v11127_v54  ;;  %v11170_v5 = vor.u32 %v11169_v26, %v21835_v38  ;;  %v11211_v56 = vshll.u32 %v10944_v55, 16  ;;  %v18001_v0 = vld [vmem:[%s22292_s2 + $0x178] sm:$0xff]  }
 0x457   : > { %v11094_v18 = vsel %vm18147_vm2, %v11089_v31, %v21798_v25  ;;  %v10949_v31 = vld [vmem:[#allocation2 + $0x9c] sm:$0xf]  ;;  %v11231_v6 = vrot.slane %v11229_v48, 5  ;;  %v10948_v55 = vld [vmem:[#allocation2 + $0x98] sm:$0x1] }
 0x458   : > { %17021 = vmatmul.mubr.bf16.gmra.mrb[48].mxu1 %v17992_v2  ;;  %v11070_v2 = vsel %vm18147_vm2, %v11065_v21, %v21787_v14  ;;  %v21821_v14 = vrot.slane %v11139_v32, 5  ;;  %v11118_v40 = vsel %vm18147_vm2, %v11113_v4, %v21809_v15  ;;  %v11183_v21 = vrot.slane %v11181_v63, 5  ;;  %v10942_v32 = vld [vmem:[#allocation2 + $0x80] sm:$0x1] }
 0x459   : > { %17040 = vmatprep.mubr.bf16.mxu1 %v15499_v61  ;;  %v10937_v61 = vld [vmem:[#allocation2 + $0x6c] sm:$0xf]  ;;  %v15504_v49 = vcombine.low %v11094_v18, %v11104_v34  ;;  %v11151_v15 = vrot.slane %v11149_v8, 5  ;;  %v11226_v4 = vshrl.u32 %v10946_v41, 16  ;;  %v11171_v36 = vrot.slane %v11170_v5, 4 }
 0x45a   : > { %v11154_v58 = vshrl.u32 %v10937_v61, 16  ;;  %v11157_v45 = vshll.u32 %v10937_v61, 16  ;;  %v11146_v25 = vor.u32 %v11145_v47, %v21821_v14  ;;  %v15505_v61 = vcombine.low %v11118_v40, %v11128_v53 }
 0x45b   : > { %v11184_v39 = vor.u32 %v11183_v21, %v11180_v59  ;;  %v11142_v60 = vsel %vm18147_vm2, %v11137_v35, %v21821_v14  ;;  %v11197_v57 = vshll.u32 %v10942_v32, 16  ;;  %v21853_v52 = vrot.slane %v11211_v56, 5  ;;  %v21876_v56 = vld [vmem:[%s22292_s2 + $0x180] sm:$0xff]  }
 0x45c   : > { %v11156_v24 = vrot.slane %v11154_v58, 4  ;;  %v11159_v10 = vrot.slane %v11157_v45, 5  ;;  %v11207_v45 = vrot.slane %v11205_v7, 5  ;;  %v11217_v47 = vrot.slane %v11215_v30, 4 }
 0x45d   : > { %v11250_v37 = vshrl.u32 %v10949_v31, 16  ;;  %v11221_v34 = vshll.u32 %v10945_v33, 16  ;;  %v11235_v63 = vshll.u32 %v10947_v62, 16  ;;  %v11239_v40 = vshrl.u32 %v10947_v62, 16 }
 0x45e   : > { %v11199_v8 = vrot.slane %v11197_v57, 5  ;;  %v11245_v30 = vshll.u32 %v10948_v55, 16 }
 0x45f   : > { %v11223_v59 = vrot.slane %v11221_v34, 5  ;;  %v11241_v7 = vrot.slane %v11239_v40, 4  ;;  %v10957_v40 = vld [vmem:[#allocation2 + $0xbc] sm:$0x1] }
 0x460   : > { %17041 = vmatmul.mubr.bf16.vlgmr.msra.gmra.mrb[20].mxu1 %v15500_v19  ;;  %v17998_v19 = vld [vmem:[%s22292_s2 + $0x160] sm:$0xff]   ;;  %v11317_v55 = vshll.u32 %v10957_v40, 16 }
 0x461   : > { %17044 = vmatprep.mubr.bf16.mxu1 %v15501_v27  ;;  %17073 = vmatpush3.bf16.msra.mxu1 %v21766_v50  ;;  %v11080_v50 = vsel %vm18147_vm2, %v11075_v46, %v11079_v29  ;;  %v11160_v27 = vor.u32 %v11159_v10, %v11156_v24  ;;  %v11187_v29 = vshll.u32 %v10941_v17, 16  ;;  %v11202_v46 = vshrl.u32 %v10943_v16, 16 }
 0x462   : > { %17074 = vmatprep.subr.bf16.mxu1 %v17995_v20  ;;  %v15503_v23 = vcombine.low %v11070_v2, %v11080_v50  ;;  %v11193_v2 = vrot.slane %v11191_v3, 4  ;;  %v11185_v10 = vrot.slane %v11184_v39, 4  ;;  %v11228_v17 = vrot.slane %v11226_v4, 4 }
 0x463   : > { %v21846_v51 = vrot.slane %v11187_v29, 5  ;;  %v11204_v58 = vrot.slane %v11202_v46, 4  ;;  %v11218_v16 = vor.u32 %v11217_v47, %v21853_v52  ;;  %v11237_v46 = vrot.slane %v11235_v63, 5 }
 0x464   : > { %v11232_v21 = vor.u32 %v11231_v6, %v11228_v17 }
 0x465   : > { %17075 = vmatpush3.bf16.msra.mxu1 %v17995_v20  ;;  %v11173_v20 = vshll.u32 %v10939_v22, 16  ;;  %v11194_v9 = vor.u32 %v11193_v2, %v21846_v51  ;;  %v11208_v18 = vor.u32 %v11207_v45, %v11204_v58  ;;  %v10950_v22 = vld [vmem:[#allocation2 + $0xa0] sm:$0xf]  ;;  %v11219_v35 = vrot.slane %v11218_v16, 4 }
 0x466   : > { %17076 = vmatprep.subr.bf16.mxu1 %v17996_v11  ;;  %v11259_v26 = vshll.u32 %v10950_v22, 16  ;;  %v11233_v58 = vrot.slane %v11232_v21, 4  ;;  %v11242_v45 = vor.u32 %v11241_v7, %v11237_v46 }
 0x467   : > { %v11175_v50 = vrot.slane %v11173_v20, 5  ;;  %v11190_v20 = vsel %vm18147_vm2, %v11185_v10, %v21846_v51  ;;  %v11195_v29 = vrot.slane %v11194_v9, 4  ;;  %v11209_v3 = vrot.slane %v11208_v18, 4  ;;  %v10954_v18 = vld [vmem:[#allocation2 + $0xb0] sm:$0x1] }
 0x468   : > { %17045 = vmatmul.mubr.bf16.gmra.mrb[24].mxu1 %v15502_v28  ;;  %v11147_v28 = vrot.slane %v11146_v25, 4  ;;  %v11252_v25 = vrot.slane %v11250_v37, 4  ;;  %v11224_v39 = vsel %vm18147_vm2, %v11219_v35, %v11223_v59  ;;  %v10958_v37 = vld [vmem:[#allocation2 + $0xc0] sm:$0xf]  ;;  %v11243_v10 = vrot.slane %v11242_v45, 4 }
 0x469   : > { %17048 = vmatprep.mubr.bf16.mxu1 %v15503_v23  ;;  %17077 = vmatpush3.bf16.msra.mxu1 %v17996_v11  ;;  %v11161_v11 = vrot.slane %v11160_v27, 4  ;;  %v11253_v23 = vshll.u32 %v10949_v31, 16  ;;  %v11176_v24 = vsel %vm18147_vm2, %v11171_v36, %v11175_v50  ;;  %v10952_v27 = vld [vmem:[#allocation2 + $0xa8] sm:$0xf]  ;;  %v11200_v53 = vsel %vm18147_vm2, %v11195_v29, %v11199_v8 }
 0x46a   : > { %17078 = vmatprep.subr.bf16.mxu1 %v17997_v12  ;;  %v11152_v42 = vsel %vm18147_vm2, %v11147_v28, %v11151_v15  ;;  %v10951_v15 = vld [vmem:[#allocation2 + $0xa4] sm:$0x1]  ;;  %v11277_v5 = vshll.u32 %v10952_v27, 16  ;;  %v15508_v32 = vcombine.low %v11190_v20, %v11200_v53  ;;  %v11214_v51 = vsel %vm18147_vm2, %v11209_v3, %v21853_v52 }
 0x46b   : > { %v11166_v14 = vsel %vm18147_vm2, %v11161_v11, %v21835_v38  ;;  %v15506_v54 = vcombine.low %v11142_v60, %v11152_v42  ;;  %v11255_v38 = vrot.slane %v11253_v23, 5  ;;  %v10953_v11 = vld [vmem:[#allocation2 + $0xac] sm:$0xf]  ;;  %v11269_v31 = vshll.u32 %v10951_v15, 16  ;;  %v10956_v60 = vld [vmem:[#allocation2 + $0xb8] sm:$0xf] }
 0x46c   : > { %v15507_v44 = vcombine.low %v11166_v14, %v11176_v24  ;;  %v11279_v33 = vrot.slane %v11277_v5, 5  ;;  %v11283_v62 = vshll.u32 %v10953_v11, 16  ;;  %v11287_v4 = vshrl.u32 %v10953_v11, 16  ;;  %v10960_v5 = vld [vmem:[#allocation2 + $0xc8] sm:$0x1] }
 0x46d   : > { %17079 = vmatpush3.bf16.msra.mxu1 %v17997_v12  ;;  %v18000_v12 = vld [vmem:[%s22292_s2 + $0x170] sm:$0xff]   ;;  %v11256_v41 = vor.u32 %v11255_v38, %v11252_v25  ;;  %v15509_v48 = vcombine.low %v11214_v51, %v11224_v39  ;;  %v11247_v36 = vrot.slane %v11245_v30, 5  ;;  %v11307_v14 = vshll.u32 %v10956_v60, 16  ;;  %v10959_v38 = vld [vmem:[#allocation2 + $0xc4] sm:$0xf] }
 0x46e   : > { %17080 = vmatprep.subr.bf16.mxu1 %v17998_v19  ;;  %v11311_v9 = vshrl.u32 %v10956_v60, 16  ;;  %v11238_v23 = vsel %vm18147_vm2, %v11233_v58, %v11237_v46  ;;  %v11271_v24 = vrot.slane %v11269_v31, 5  ;;  %v11289_v17 = vrot.slane %v11287_v4, 4  ;;  %v11732_v11 = vld [vmem:[#allocation2 + $0x10] sm:$0xf] }
 0x46f   : > { %v11257_v57 = vrot.slane %v11256_v41, 4  ;;  %v11248_v8 = vsel %vm18147_vm2, %v11243_v10, %v11247_v36  ;;  %v11331_v46 = vshll.u32 %v10959_v38, 16  ;;  %v11335_v7 = vshrl.u32 %v10959_v38, 16  ;;  %v11733_v39 = vld [vmem:[#allocation2 + $0x14] sm:$0x1] }
 0x470   : > { %17049 = vmatmul.mubr.bf16.gmra.mrb[28].mxu1 %v15504_v49  ;;  %v10955_v49 = vld [vmem:[#allocation2 + $0xb4] sm:$0xf]  ;;  %v11313_v25 = vrot.slane %v11311_v9, 4  ;;  %v11829_v31 = vrot.slane %v11732_v11, 5  ;;  %v11739_v10 = vld [vmem:[#allocation2 + $0x2c] sm:$0x1] }
 0x471   : > { %17052 = vmatprep.mubr.bf16.mxu1 %v15505_v61  ;;  %17081 = vmatpush3.bf16.msra.mxu1 %v17998_v19  ;;  %v11263_v19 = vshrl.u32 %v10950_v22, 16  ;;  %v11274_v61 = vshrl.u32 %v10952_v27, 16  ;;  %v11298_v2 = vshrl.u32 %v10955_v49, 16  ;;  %v11301_v50 = vshll.u32 %v10955_v49, 16  ;;  %v11744_v38 = vld [vmem:[#allocation2 + $0x40] sm:$0xf] }
 0x472   : > { %17082 = vmatprep.subr.bf16.mxu1 %v17999_v13  ;;  %v11285_v22 = vrot.slane %v11283_v62, 5  ;;  %v11293_v27 = vshll.u32 %v10954_v18, 16  ;;  %v11832_v62 = vrot.slane %v11733_v39, 5  ;;  %v11831_v36 = vrot.slane %v11829_v31, 4  ;;  %v11750_v11 = vld [vmem:[#allocation2 + $0x58] sm:$0xf] }
 0x473   : > { %v11265_v28 = vrot.slane %v11263_v19, 4  ;;  %v11276_v42 = vrot.slane %v11274_v61, 4  ;;  %v11300_v47 = vrot.slane %v11298_v2, 4  ;;  %v11319_v61 = vrot.slane %v11317_v55, 5  ;;  %v11751_v39 = vld [vmem:[#allocation2 + $0x5c] sm:$0x1] }
 0x474   : > { %v11290_v3 = vor.u32 %v11289_v17, %v11285_v22  ;;  %v11295_v35 = vrot.slane %v11293_v27, 5  ;;  %v11833_v9 = vsel %vm18242_vm5, %v11831_v36, %v11832_v62  ;;  %v11846_v40 = vrot.slane %v11739_v10, 5  ;;  %v11742_v27 = vld [vmem:[#allocation2 + $0x38] sm:$0x1]  ;;  %v11746_v62 = vld [vmem:[#allocation2 + $0x48] sm:$0xe] }
 0x475   : > { %17083 = vmatpush3.bf16.msra.mxu1 %v17999_v13  ;;  %v11261_v13 = vrot.slane %v11259_v26, 5  ;;  %v11280_v34 = vor.u32 %v11279_v33, %v11276_v42  ;;  %v15510_v26 = vcombine.low %v11238_v23, %v11248_v8  ;;  %v11749_v36 = vld [vmem:[#allocation2 + $0x54] sm:$0xe] }
 0x476   : > { %17084 = vmatprep.subr.bf16.mxu1 %v18000_v12  ;;  %v11291_v30 = vrot.slane %v11290_v3, 4  ;;  %v11745_v3 = vld [vmem:[#allocation2 + $0x44] sm:$0x1] }
 0x477   : > { %v11266_v52 = vor.u32 %v11265_v28, %v11261_v13  ;;  %v11262_v6 = vsel %vm18147_vm2, %v11257_v57, %v11261_v13  ;;  %v11281_v29 = vrot.slane %v11280_v34, 4  ;;  %v11333_v13 = vrot.slane %v11331_v46, 5  ;;  %v11735_v57 = vld [vmem:[#allocation2 + $0x1c] sm:$0xf] }
 0x478   : > { %17053 = vmatmul.mubr.bf16.gmra.mrb[32].mxu1 %v15506_v54  ;;  %v11322_v54 = vshrl.u32 %v10958_v37, 16  ;;  %v11337_v28 = vrot.slane %v11335_v7, 4  ;;  %v11296_v2 = vsel %vm18147_vm2, %v11291_v30, %v11295_v35  ;;  %v11857_v46 = vrot.slane %v11744_v38, 5  ;;  %v11747_v30 = vld [vmem:[#allocation2 + $0x4c] sm:$0xf] }
 0x479   : > { %17056 = vmatprep.mubr.bf16.mxu1 %v15507_v44  ;;  %17085 = vmatpush3.bf16.msra.mxu1 %v18000_v12  ;;  %v11303_v12 = vrot.slane %v11301_v50, 5  ;;  %v11267_v63 = vrot.slane %v11266_v52, 4  ;;  %v11325_v44 = vshll.u32 %v10958_v37, 16  ;;  %v11286_v15 = vsel %vm18147_vm2, %v11281_v29, %v11285_v22  ;;  %v11736_v37 = vld [vmem:[#allocation2 + $0x20] sm:$0x1] }
 0x47a   : > { %17086 = vmatprep.subr.bf16.mxu1 %v18001_v0  ;;  %v11324_v59 = vrot.slane %v11322_v54, 4  ;;  %v11341_v50 = vshll.u32 %v10960_v5, 16  ;;  %v15512_v58 = vcombine.low %v11286_v15, %v11296_v2  ;;  %v11338_v33 = vor.u32 %v11337_v28, %v11333_v13  ;;  %v11748_v2 = vld [vmem:[#allocation2 + $0x50] sm:$0x1]  ;;  %v11759_v38 = vld [vmem:[#allocation2 + $0x7c] sm:$0xf] }
 0x47b   : > { %v11304_v16 = vor.u32 %v11303_v12, %v11300_v47  ;;  %v11272_v19 = vsel %vm18147_vm2, %v11267_v63, %v11271_v24  ;;  %v11327_v21 = vrot.slane %v11325_v44, 5  ;;  %v11738_v12 = vld [vmem:[#allocation2 + $0x28] sm:$0xf]  ;;  %v11836_v24 = vrot.slane %v11735_v57, 5  ;;  %v11734_v63 = vld [vmem:[#allocation2 + $0x18] sm:$0xe] }
 0x47c   : > { %v15511_v20 = vcombine.low %v11262_v6, %v11272_v19  ;;  %v11343_v4 = vrot.slane %v11341_v50, 5  ;;  %v11339_v47 = vrot.slane %v11338_v33, 4  ;;  %v11843_v22 = vrot.slane %v11738_v12, 5  ;;  %v11737_v44 = vld [vmem:[#allocation2 + $0x24] sm:$0xe] }
 0x47d   : > { %17087 = vmatpush3.bf16.msra.mxu1 %v18001_v0  ;;  %v11309_v0 = vrot.slane %v11307_v14, 5  ;;  %v11305_v49 = vrot.slane %v11304_v16, 4  ;;  %v11328_v41 = vor.u32 %v11327_v21, %v11324_v59  ;;  %v11839_v6 = vrot.slane %v11736_v37, 5  ;;  %v11741_v16 = vld [vmem:[#allocation2 + $0x34] sm:$0xf]  ;;  %v18003_v21 = vld [vmem:[%s22292_s2 + $0x188] sm:$0xff]  }
 0x47e   : > { %17120 = vmatprep.subr.bf16.mxu1 %v21876_v56  ;;  %v11344_v23 = vsel %vm18147_vm2, %v11339_v47, %v11343_v4  ;;  %v11838_v54 = vrot.slane %v11836_v24, 4  ;;  %v11845_v8 = vrot.slane %v11843_v22, 4  ;;  %v11850_v29 = vrot.slane %v11741_v16, 5  ;;  %v18006_v47 = vld [vmem:[%s22292_s2 + $0x1a0] sm:$0xff]  }
 0x47f   : > { %v11314_v53 = vor.u32 %v11313_v25, %v11309_v0  ;;  %v11329_v42 = vrot.slane %v11328_v41, 4  ;;  %v11860_v35 = vrot.slane %v11745_v3, 5  ;;  %v11859_v5 = vrot.slane %v11857_v46, 4  ;;  %v18004_v41 = vld [vmem:[%s22292_s2 + $0x190] sm:$0xff]  }
 0x480   : > { %17057 = vmatmul.mubr.bf16.gmra.mrb[36].mxu1 %v15508_v32  ;;  %v11310_v32 = vsel %vm18147_vm2, %v11305_v49, %v11309_v0  ;;  %v15524_v0 = vrot.slane %v11734_v63, 9  ;;  %v11840_v25 = vsel %vm18242_vm5, %v11838_v54, %v11839_v6  ;;  %v11847_v19 = vsel %vm18242_vm5, %v11845_v8, %v11846_v40  ;;  %v18007_v63 = vld [vmem:[%s22292_s2 + $0x1a8] sm:$0xff]  }
 0x481   : > { %17060 = vmatprep.mubr.bf16.mxu1 %v15509_v48  ;;  %v11315_v51 = vrot.slane %v11314_v53, 4  ;;  %v11731_v48 = vld [vmem:[#allocation2 + $0xc] sm:$0xe]  ;;  %v11334_v52 = vsel %vm18147_vm2, %v11329_v42, %v11333_v13  ;;  %v11853_v49 = vrot.slane %v11742_v27, 5  ;;  %v11740_v53 = vld [vmem:[#allocation2 + $0x30] sm:$0xe] }
 0x482   : > { %v15523_v14 = vrot.slane %v11731_v48, 9  ;;  %v15514_v18 = vcombine.low %v11334_v52, %v11344_v23  ;;  %v11852_v15 = vrot.slane %v11850_v29, 4  ;;  %v15526_v13 = vrot.slane %v11740_v53, 9  ;;  %v11753_v52 = vld [vmem:[#allocation2 + $0x64] sm:$0xf] }
 0x483   : > { %v11320_v45 = vsel %vm18147_vm2, %v11315_v51, %v11319_v61  ;;  %v11743_v61 = vld [vmem:[#allocation2 + $0x3c] sm:$0xe]  ;;  %v11861_v51 = vsel %vm18242_vm5, %v11859_v5, %v11860_v35  ;;  %v11864_v50 = vrot.slane %v11747_v30, 5  ;;  %v11867_v33 = vrot.slane %v11748_v2, 5  ;;  %v11758_v5 = vld [vmem:[#allocation2 + $0x78] sm:$0xe] }
 0x484   : > { %v15513_v60 = vcombine.low %v11310_v32, %v11320_v45  ;;  %v11830_v34 = vsel %vm18242_vm5, %v15523_v14, %v11829_v31  ;;  %v11854_v28 = vsel %vm18242_vm5, %v11852_v15, %v11853_v49  ;;  %v15527_v32 = vrot.slane %v11743_v61, 9  ;;  %v18009_v35 = vld [vmem:[%s22292_s2 + $0x1b8] sm:$0xff]  }
 0x485   : > { %v15555_v17 = vcombine.low %v11830_v34, %v11833_v9  ;;  %v11871_v31 = vrot.slane %v11750_v11, 5  ;;  %v11874_v4 = vrot.slane %v11751_v39, 5  ;;  %v11866_v48 = vrot.slane %v11864_v50, 4  ;;  %v11756_v9 = vld [vmem:[#allocation2 + $0x70] sm:$0xf] }
 0x486   : > { %v11858_v45 = vsel %vm18242_vm5, %v15527_v32, %v11857_v46  ;;  %v15528_v12 = vrot.slane %v11746_v62, 9  ;;  %v15529_v37 = vrot.slane %v11749_v36, 9  ;;  %v11757_v34 = vld [vmem:[#allocation2 + $0x74] sm:$0x1]  ;;  %v11885_v6 = vrot.slane %v11756_v9, 5  ;;  %v21965_v32 = vld [vmem:[%s22292_s2 + $0x1c0] sm:$0xff]  }
 0x487   : > { %v15559_v42 = vcombine.low %v11858_v45, %v11861_v51  ;;  %v11873_v57 = vrot.slane %v11871_v31, 4  ;;  %v11868_v14 = vsel %vm18242_vm5, %v11866_v48, %v11867_v33  ;;  %v11888_v8 = vrot.slane %v11757_v34, 5  ;;  %v11763_v46 = vld [vmem:[#allocation2 + $0x8c] sm:$0x1]  ;;  %v11765_v11 = vld [vmem:[#allocation2 + $0x94] sm:$0xf] }
 0x488   : > { %17061 = vmatmul.mubr.bf16.gmra.mrb[40].mxu1 %v15510_v26  ;;  %v15525_v26 = vrot.slane %v11737_v44, 9  ;;  %v11865_v10 = vsel %vm18242_vm5, %v15528_v12, %v11864_v50  ;;  %v11752_v44 = vld [vmem:[#allocation2 + $0x60] sm:$0xe]  ;;  %v11902_v30 = vrot.slane %v11763_v46, 5  ;;  %v15532_v51 = vrot.slane %v11758_v5, 9 }
 0x489   : > { %17064 = vmatprep.mubr.bf16.mxu1 %v15511_v20  ;;  %v11837_v20 = vsel %vm18242_vm5, %v15524_v0, %v11836_v24  ;;  %v11875_v23 = vsel %vm18242_vm5, %v11873_v57, %v11874_v4  ;;  %v11754_v24 = vld [vmem:[#allocation2 + $0x68] sm:$0x1]  ;;  %v11755_v0 = vld [vmem:[#allocation2 + $0x6c] sm:$0xe]  ;;  %v11764_v36 = vld [vmem:[#allocation2 + $0x90] sm:$0xe] }
 0x48a   : > { %v15556_v55 = vcombine.low %v11837_v20, %v11840_v25  ;;  %v11844_v59 = vsel %vm18242_vm5, %v15525_v26, %v11843_v22  ;;  %v15560_v22 = vcombine.low %v11865_v10, %v11868_v14  ;;  %v11881_v54 = vrot.slane %v11754_v24, 5  ;;  %v18008_v26 = vld [vmem:[%s22292_s2 + $0x1b0] sm:$0xff]   ;;  %v11762_v20 = vld [vmem:[#allocation2 + $0x88] sm:$0xf]  ;;  %v11771_v14 = vld [vmem:[#allocation2 + $0xac] sm:$0xf] }
 0x48b   : > { %v15557_v7 = vcombine.low %v11844_v59, %v11847_v19  ;;  %v11887_v25 = vrot.slane %v11885_v6, 4  ;;  %v15530_v19 = vrot.slane %v11752_v44, 9  ;;  %v11899_v53 = vrot.slane %v11762_v20, 5 }
 0x48c   : > { %v15534_v9 = vrot.slane %v11764_v36, 9  ;;  %v18025_v36 = vld [vmem:[#allocation2 + $0x90] sm:$0xff]  }
 0x48d   : > { %v11889_v3 = vsel %vm18242_vm5, %v11887_v25, %v11888_v8  ;;  %v11770_v8 = vld [vmem:[#allocation2 + $0xa8] sm:$0xe]  ;;  %v11773_v25 = vld [vmem:[#allocation2 + $0xb4] sm:$0xe] }
 0x48e   : > { %v15537_v20 = vrot.slane %v11773_v25, 9 }
 0x490   : > { %17065 = vmatmul.mubr.bf16.gmra.mrb[44].mxu1 %v15512_v58 }
 0x491   : > { %17068 = vmatprep.mubr.bf16.mxu1 %v15513_v60  ;;  %v18005_v60 = vld [vmem:[%s22292_s2 + $0x198] sm:$0xff]  }
 0x498   : > { %17069 = vmatmul.mubr.bf16.gmra.mrb[48].mxu1 %v15514_v18  ;;  %v11878_v18 = vrot.slane %v11753_v52, 5 }
 0x499   : > { %17088 = vmatprep.mubr.bf16.mxu1 %v15555_v17  ;;  %v11872_v17 = vsel %vm18242_vm5, %v15529_v37, %v11871_v31  ;;  %v11906_v31 = vrot.slane %v11765_v11, 5  ;;  %v18013_v11 = vld [vmem:[#allocation2 + $0x30] sm:$0xff]  }
 0x49a   : > { %v15561_v40 = vcombine.low %v11872_v17, %v11875_v23  ;;  %v11880_v16 = vrot.slane %v11878_v18, 4  ;;  %v11879_v59 = vsel %vm18242_vm5, %v15530_v19, %v11878_v18  ;;  %v11774_v23 = vld [vmem:[#allocation2 + $0xb8] sm:$0xf]  ;;  %v11772_v18 = vld [vmem:[#allocation2 + $0xb0] sm:$0x1]  ;;  %v15536_v19 = vrot.slane %v11770_v8, 9 }
 0x49b   : > { %v11908_v52 = vrot.slane %v11906_v31, 4  ;;  %v11907_v34 = vsel %vm18242_vm5, %v15534_v9, %v11906_v31  ;;  %v11775_v17 = vld [vmem:[#allocation2 + $0xbc] sm:$0x1]  ;;  %v11923_v44 = vrot.slane %v11772_v18, 5  ;;  %v18030_v31 = vld [vmem:[%s22292_s2 + $0x1f0] sm:$0xff]  }
 0x49c   : > { %v11882_v27 = vsel %vm18242_vm5, %v11880_v16, %v11881_v54  ;;  %v11930_v16 = vrot.slane %v11775_v17, 5  ;;  %v18026_v18 = vld [vmem:[#allocation2 + $0x9c] sm:$0xff]   ;;  %v12782_v17 = vld [vmem:[#allocation2 + $0x30] sm:$0xf] }
 0x49d   : > { %v12873_v25 = vshrl.u32 %v12782_v17, 16 }
 0x4a0   : > { %17089 = vmatmul.mubr.bf16.vlgmr.msra.gmra.mrb[20].mxu1 %v15556_v55  ;;  %v11760_v55 = vld [vmem:[#allocation2 + $0x80] sm:$0x1] }
 0x4a1   : > { %17092 = vmatprep.mubr.bf16.mxu1 %v15557_v7  ;;  %17121 = vmatpush3.bf16.msra.mxu1 %v21876_v56  ;;  %v11851_v56 = vsel %vm18242_vm5, %v15526_v13, %v11850_v29  ;;  %v15531_v29 = vrot.slane %v11755_v0, 9  ;;  %v15562_v7 = vcombine.low %v11879_v59, %v11882_v27  ;;  %v11895_v61 = vrot.slane %v11760_v55, 5  ;;  %v11761_v13 = vld [vmem:[#allocation2 + $0x84] sm:$0xe] }
 0x4a2   : > { %17122 = vmatprep.subr.bf16.mxu1 %v18003_v21  ;;  %v15558_v58 = vcombine.low %v11851_v56, %v11854_v28  ;;  %v11901_v28 = vrot.slane %v11899_v53, 4  ;;  %v11768_v56 = vld [vmem:[#allocation2 + $0xa0] sm:$0xf]  ;;  %v15533_v50 = vrot.slane %v11761_v13, 9  ;;  %v18011_v13 = vld [vmem:[#allocation2 + $0x24] sm:$0xff]  }
 0x4a3   : > { %v11886_v49 = vsel %vm18242_vm5, %v15531_v29, %v11885_v6  ;;  %v11913_v62 = vrot.slane %v11768_v56, 5  ;;  %v18021_v56 = vld [vmem:[%s22292_s2 + $0x1d8] sm:$0xff]  }
 0x4a4   : > { %v15563_v15 = vcombine.low %v11886_v49, %v11889_v3  ;;  %v11903_v39 = vsel %vm18242_vm5, %v11901_v28, %v11902_v30  ;;  %v11900_v33 = vsel %vm18242_vm5, %v15533_v50, %v11899_v53  ;;  %v11778_v3 = vld [vmem:[#allocation2 + $0xc8] sm:$0x1]  ;;  %v11776_v53 = vld [vmem:[#allocation2 + $0xc0] sm:$0xe] }
 0x4a5   : > { %17123 = vmatpush3.bf16.msra.mxu1 %v18003_v21  ;;  %v11892_v21 = vrot.slane %v11759_v38, 5  ;;  %v15565_v4 = vcombine.low %v11900_v33, %v11903_v39  ;;  %v11915_v12 = vrot.slane %v11913_v62, 4  ;;  %v11937_v49 = vrot.slane %v11778_v3, 5  ;;  %v18015_v28 = vld [vmem:[%s22292_s2 + $0x1c8] sm:$0xff]   ;;  %v18017_v39 = vld [vmem:[#allocation2 + $0x54] sm:$0xff]  }
 0x4a6   : > { %17124 = vmatprep.subr.bf16.mxu1 %v18004_v41  ;;  %v18016_v50 = vld [vmem:[#allocation2 + $0x48] sm:$0xff]   ;;  %v18022_v33 = vld [vmem:[#allocation2 + $0x78] sm:$0xff]  }
 0x4a7   : > { %v11893_v45 = vsel %vm18242_vm5, %v15532_v51, %v11892_v21  ;;  %v18018_v51 = vld [vmem:[%s22292_s2 + $0x1d0] sm:$0xff]  }
 0x4a8   : > { %17093 = vmatmul.mubr.bf16.gmra.mrb[24].mxu1 %v15558_v58  ;;  %v11766_v58 = vld [vmem:[#allocation2 + $0x98] sm:$0x1] }
 0x4a9   : > { %17096 = vmatprep.mubr.bf16.mxu1 %v15559_v42  ;;  %17125 = vmatpush3.bf16.msra.mxu1 %v18004_v41  ;;  %v11894_v41 = vrot.slane %v11892_v21, 4  ;;  %v11909_v48 = vrot.slane %v11766_v58, 5  ;;  %v18027_v58 = vld [vmem:[%s22292_s2 + $0x1e8] sm:$0xff]  }
 0x4aa   : > { %17126 = vmatprep.subr.bf16.mxu1 %v18005_v60 }
 0x4ab   : > { %v11896_v2 = vsel %vm18242_vm5, %v11894_v41, %v11895_v61  ;;  %v11910_v37 = vsel %vm18242_vm5, %v11908_v52, %v11909_v48  ;;  %v18010_v41 = vld [vmem:[#allocation2 + $0x18] sm:$0xff]   ;;  %v18023_v48 = vld [vmem:[#allocation2 + $0x84] sm:$0xff]  }
 0x4ac   : > { %v15564_v42 = vcombine.low %v11893_v45, %v11896_v2  ;;  %v15566_v6 = vcombine.low %v11907_v34, %v11910_v37  ;;  %v18014_v2 = vld [vmem:[#allocation2 + $0x3c] sm:$0xff]   ;;  %v12780_v34 = vld [vmem:[#allocation2 + $0x28] sm:$0xf] }
 0x4ad   : > { %17127 = vmatpush3.bf16.msra.mxu1 %v18005_v60  ;;  %v11769_v60 = vld [vmem:[#allocation2 + $0xa4] sm:$0x1] }
 0x4ae   : > { %17128 = vmatprep.subr.bf16.mxu1 %v18006_v47  ;;  %v11916_v57 = vrot.slane %v11769_v60, 5  ;;  %v18019_v45 = vld [vmem:[#allocation2 + $0x60] sm:$0xff]   ;;  %v18020_v60 = vld [vmem:[#allocation2 + $0x6c] sm:$0xff]  }
 0x4b0   : > { %17097 = vmatmul.mubr.bf16.gmra.mrb[28].mxu1 %v15560_v22  ;;  %v11917_v10 = vsel %vm18242_vm5, %v11915_v12, %v11916_v57  ;;  %v11920_v22 = vrot.slane %v11771_v14, 5  ;;  %v12779_v12 = vld [vmem:[#allocation2 + $0x24] sm:$0xf] }
 0x4b1   : > { %17100 = vmatprep.mubr.bf16.mxu1 %v15561_v40  ;;  %17129 = vmatpush3.bf16.msra.mxu1 %v18006_v47  ;;  %v11767_v47 = vld [vmem:[#allocation2 + $0x9c] sm:$0xe]  ;;  %v11927_v40 = vrot.slane %v11774_v23, 5 }
 0x4b2   : > { %17130 = vmatprep.subr.bf16.mxu1 %v18007_v63  ;;  %v15535_v24 = vrot.slane %v11767_v47, 9  ;;  %v11922_v0 = vrot.slane %v11920_v22, 4  ;;  %v11921_v55 = vsel %vm18242_vm5, %v15536_v19, %v11920_v22  ;;  %v12777_v47 = vld [vmem:[#allocation2 + $0x1c] sm:$0xf]  ;;  %v18028_v22 = vld [vmem:[#allocation2 + $0xa8] sm:$0xff]  }
 0x4b3   : > { %v11929_v38 = vrot.slane %v11927_v40, 4  ;;  %v11928_v46 = vsel %vm18242_vm5, %v15537_v20, %v11927_v40  ;;  %v12834_v37 = vshll.u32 %v12777_v47, 16  ;;  %v12838_v23 = vshrl.u32 %v12777_v47, 16  ;;  %v12785_v20 = vld [vmem:[#allocation2 + $0x3c] sm:$0xf] }
 0x4b4   : > { %v11924_v27 = vsel %vm18242_vm5, %v11922_v0, %v11923_v44  ;;  %v12862_v0 = vshrl.u32 %v12780_v34, 16 }
 0x4b5   : > { %17131 = vmatpush3.bf16.msra.mxu1 %v18007_v63  ;;  %v11914_v63 = vsel %vm18242_vm5, %v15535_v24, %v11913_v62  ;;  %v11931_v29 = vsel %vm18242_vm5, %v11929_v38, %v11930_v16  ;;  %v15568_v21 = vcombine.low %v11921_v55, %v11924_v27  ;;  %v22021_v62 = vld [vmem:[%s22292_s2 + $0x200] sm:$0xff]   ;;  %v12849_v24 = vshrl.u32 %v12779_v12, 16  ;;  %v12781_v55 = vld [vmem:[#allocation2 + $0x2c] sm:$0x1] }
 0x4b6   : > { %17132 = vmatprep.subr.bf16.mxu1 %v18008_v26  ;;  %v15567_v54 = vcombine.low %v11914_v63, %v11917_v10  ;;  %v12852_v10 = vshll.u32 %v12779_v12, 16  ;;  %v22024_v63 = vrot.slane %v12834_v37, 5  ;;  %v12840_v40 = vrot.slane %v12838_v23, 4 }
 0x4b7   : > { %v12851_v44 = vrot.slane %v12849_v24, 4  ;;  %v12858_v16 = vshll.u32 %v12780_v34, 16  ;;  %v12876_v38 = vshll.u32 %v12782_v17, 16 }
 0x4b8   : > { %17101 = vmatmul.mubr.bf16.gmra.mrb[32].mxu1 %v15562_v7  ;;  %v15569_v7 = vcombine.low %v11928_v46, %v11931_v29  ;;  %v12854_v8 = vrot.slane %v12852_v10, 5  ;;  %v12786_v29 = vld [vmem:[#allocation2 + $0x40] sm:$0xf]  ;;  %v12841_v3 = vor.u32 %v12840_v40, %v22024_v63  ;;  %v12864_v46 = vrot.slane %v12862_v0, 4 }
 0x4b9   : > { %17104 = vmatprep.mubr.bf16.mxu1 %v15563_v15  ;;  %17133 = vmatpush3.bf16.msra.mxu1 %v18008_v26  ;;  %v11777_v26 = vld [vmem:[#allocation2 + $0xc4] sm:$0xf]  ;;  %v15538_v15 = vrot.slane %v11776_v53, 9 }
 0x4ba   : > { %17134 = vmatprep.subr.bf16.mxu1 %v18009_v35  ;;  %v11934_v59 = vrot.slane %v11777_v26, 5  ;;  %v12783_v26 = vld [vmem:[#allocation2 + $0x34] sm:$0xf]  ;;  %v18031_v53 = vld [vmem:[#allocation2 + $0xc0] sm:$0xff]  }
 0x4bc   : > { %v11935_v5 = vsel %vm18242_vm5, %v15538_v15, %v11934_v59  ;;  %v12878_v15 = vrot.slane %v12876_v38, 5 }
 0x4bd   : > { %17135 = vmatpush3.bf16.msra.mxu1 %v18009_v35  ;;  %v11936_v35 = vrot.slane %v11934_v59, 4  ;;  %v12855_v59 = vor.u32 %v12854_v8, %v12851_v44 }
 0x4be   : > { %17168 = vmatprep.subr.bf16.mxu1 %v21965_v32 }
 0x4bf   : > { %v11938_v61 = vsel %vm18242_vm5, %v11936_v35, %v11937_v49  ;;  %v18029_v49 = vld [vmem:[#allocation2 + $0xb4] sm:$0xff]   ;;  %v12875_v35 = vrot.slane %v12873_v25, 4  ;;  %v12794_v25 = vld [vmem:[#allocation2 + $0x60] sm:$0xf] }
 0x4c0   : > { %17105 = vmatmul.mubr.bf16.gmra.mrb[36].mxu1 %v15564_v42  ;;  %v15570_v30 = vcombine.low %v11935_v5, %v11938_v61  ;;  %v18033_v42 = vld [vmem:[%s22292_s2 + $0x1f8] sm:$0xff]   ;;  %v12882_v61 = vshll.u32 %v12783_v26, 16  ;;  %v12886_v5 = vshrl.u32 %v12783_v26, 16  ;;  %v12790_v26 = vld [vmem:[#allocation2 + $0x50] sm:$0x1] }
 0x4c1   : > { %17108 = vmatprep.mubr.bf16.mxu1 %v15565_v4  ;;  %v12776_v4 = vld [vmem:[#allocation2 + $0x18] sm:$0xf] }
 0x4c2   : > { %v12825_v57 = vshrl.u32 %v12776_v4, 16  ;;  %v12828_v52 = vshll.u32 %v12776_v4, 16 }
 0x4c4   : > { %v12827_v14 = vrot.slane %v12825_v57, 4  ;;  %v12830_v9 = vrot.slane %v12828_v52, 5 }
 0x4c8   : > { %17109 = vmatmul.mubr.bf16.gmra.mrb[40].mxu1 %v15566_v6  ;;  %v12831_v6 = vor.u32 %v12830_v9, %v12827_v14  ;;  %v18032_v14 = vld [vmem:[#allocation2 + $0xcc] sm:$0xff]  }
 0x4c9   : > { %17112 = vmatprep.mubr.bf16.mxu1 %v15567_v54  ;;  %v12778_v54 = vld [vmem:[#allocation2 + $0x20] sm:$0x1] }
 0x4ca   : > { %v12832_v19 = vrot.slane %v12831_v6, 4  ;;  %v12844_v27 = vshll.u32 %v12778_v54, 16  ;;  %v12792_v54 = vld [vmem:[#allocation2 + $0x58] sm:$0xf] }
 0x4d0   : > { %17113 = vmatmul.mubr.bf16.gmra.mrb[44].mxu1 %v15568_v21  ;;  %v22027_v21 = vrot.slane %v12858_v16, 5 }
 0x4d1   : > { %17116 = vmatprep.mubr.bf16.mxu1 %v15569_v7  ;;  %v12788_v7 = vld [vmem:[#allocation2 + $0x48] sm:$0xf] }
 0x4d8   : > { %17117 = vmatmul.mubr.bf16.gmra.mrb[48].mxu1 %v15570_v30  ;;  %v12784_v30 = vld [vmem:[#allocation2 + $0x38] sm:$0x1] }
 0x4d9   : > { %17136 = vmatprep.mubr.bf16.mxu1 %v18010_v41  ;;  %v12897_v41 = vshrl.u32 %v12785_v20, 16  ;;  %v12892_v4 = vshll.u32 %v12784_v30, 16 }
 0x4db   : > { %v12899_v57 = vrot.slane %v12897_v41, 4  ;;  %v12894_v8 = vrot.slane %v12892_v4, 5 }
 0x4e0   : > { %17137 = vmatmul.mubr.bf16.vlgmr.msra.gmra.mrb[20].mxu1 %v18011_v13  ;;  %v12900_v13 = vshll.u32 %v12785_v20, 16 }
 0x4e1   : > { %17140 = vmatprep.mubr.bf16.mxu1 %v18013_v11  ;;  %17169 = vmatpush3.bf16.msra.mxu1 %v21965_v32  ;;  %v18024_v32 = vld [vmem:[%s22292_s2 + $0x1e0] sm:$0xff]   ;;  %v12910_v11 = vshrl.u32 %v12786_v29, 16 }
 0x4e2   : > { %17170 = vmatprep.subr.bf16.mxu1 %v18015_v28  ;;  %v12902_v52 = vrot.slane %v12900_v13, 5 }
 0x4e3   : > { %v12912_v12 = vrot.slane %v12910_v11, 4  ;;  %v12793_v11 = vld [vmem:[#allocation2 + $0x5c] sm:$0x1] }
 0x4e4   : > { %v12903_v16 = vor.u32 %v12902_v52, %v12899_v57 }
 0x4e5   : > { %17171 = vmatpush3.bf16.msra.mxu1 %v18015_v28  ;;  %v12906_v28 = vshll.u32 %v12786_v29, 16 }
 0x4e6   : > { %17172 = vmatprep.subr.bf16.mxu1 %v18018_v51  ;;  %v12904_v41 = vrot.slane %v12903_v16, 4 }
 0x4e7   : > { %v22035_v47 = vrot.slane %v12906_v28, 5 }
 0x4e8   : > { %17141 = vmatmul.mubr.bf16.gmra.mrb[24].mxu1 %v18014_v2  ;;  %v12868_v2 = vshll.u32 %v12781_v55, 16  ;;  %v12954_v55 = vshll.u32 %v12792_v54, 16 }
 0x4e9   : > { %17144 = vmatprep.mubr.bf16.mxu1 %v18016_v50  ;;  %17173 = vmatpush3.bf16.msra.mxu1 %v18018_v51  ;;  %v12846_v51 = vrot.slane %v12844_v27, 5  ;;  %v12924_v50 = vshll.u32 %v12788_v7, 16  ;;  %v12913_v38 = vor.u32 %v12912_v12, %v22035_v47  ;;  %v12909_v57 = vsel %vm18147_vm2, %v12904_v41, %v22035_v47 }
 0x4ea   : > { %17174 = vmatprep.subr.bf16.mxu1 %v18021_v56 }
 0x4eb   : > { %v12926_v37 = vrot.slane %v12924_v50, 5  ;;  %v12914_v13 = vrot.slane %v12913_v38, 4  ;;  %v22054_v50 = vrot.slane %v12954_v55, 5 }
 0x4ed   : > { %17175 = vmatpush3.bf16.msra.mxu1 %v18021_v56  ;;  %v12921_v56 = vshrl.u32 %v12788_v7, 16  ;;  %v12969_v7 = vshrl.u32 %v12794_v25, 16 }
 0x4ee   : > { %17176 = vmatprep.subr.bf16.mxu1 %v18024_v32 }
 0x4ef   : > { %v12923_v9 = vrot.slane %v12921_v56, 4 }
 0x4f0   : > { %17145 = vmatmul.mubr.bf16.gmra.mrb[28].mxu1 %v18017_v39  ;;  %v12842_v39 = vrot.slane %v12841_v3, 4 }
 0x4f1   : > { %17148 = vmatprep.mubr.bf16.mxu1 %v18019_v45  ;;  %17177 = vmatpush3.bf16.msra.mxu1 %v18024_v32  ;;  %v12837_v32 = vsel %vm18147_vm2, %v12832_v19, %v22024_v63  ;;  %v12865_v45 = vor.u32 %v12864_v46, %v22027_v21  ;;  %v12927_v19 = vor.u32 %v12926_v37, %v12923_v9  ;;  %v12800_v9 = vld [vmem:[#allocation2 + $0x78] sm:$0xf] }
 0x4f2   : > { %17178 = vmatprep.subr.bf16.mxu1 %v18027_v58  ;;  %v12847_v10 = vsel %vm18147_vm2, %v12842_v39, %v12846_v51  ;;  %v12797_v51 = vld [vmem:[#allocation2 + $0x6c] sm:$0xf]  ;;  %v12798_v39 = vld [vmem:[#allocation2 + $0x70] sm:$0xf] }
 0x4f3   : > { %v15635_v17 = vcombine.low %v12837_v32, %v12847_v10  ;;  %v12866_v63 = vrot.slane %v12865_v45, 4  ;;  %v12971_v45 = vrot.slane %v12969_v7, 4  ;;  %v13006_v10 = vshrl.u32 %v12798_v39, 16 }
 0x4f5   : > { %17179 = vmatpush3.bf16.msra.mxu1 %v18027_v58  ;;  %v12856_v58 = vrot.slane %v12855_v59, 4  ;;  %v12958_v59 = vshrl.u32 %v12792_v54, 16  ;;  %v13017_v54 = vshrl.u32 %v12800_v9, 16 }
 0x4f6   : > { %17180 = vmatprep.subr.bf16.mxu1 %v18030_v31 }
 0x4f7   : > { %v12861_v6 = vsel %vm18147_vm2, %v12856_v58, %v22027_v21  ;;  %v12960_v32 = vrot.slane %v12958_v59, 4  ;;  %v18035_v58 = vld [vmem:[%s22292_s2 + $0x208] sm:$0xff]  }
 0x4f8   : > { %17149 = vmatmul.mubr.bf16.gmra.mrb[32].mxu1 %v18020_v60  ;;  %v12879_v60 = vor.u32 %v12878_v15, %v12875_v35 }
 0x4f9   : > { %17152 = vmatprep.mubr.bf16.mxu1 %v18022_v33  ;;  %17181 = vmatpush3.bf16.msra.mxu1 %v18030_v31  ;;  %v12789_v31 = vld [vmem:[#allocation2 + $0x4c] sm:$0xf]  ;;  %v12888_v33 = vrot.slane %v12886_v5, 4  ;;  %v12795_v5 = vld [vmem:[#allocation2 + $0x64] sm:$0xf] }
 0x4fa   : > { %17182 = vmatprep.subr.bf16.mxu1 %v18033_v42  ;;  %v12930_v23 = vshll.u32 %v12789_v31, 16  ;;  %v12934_v24 = vshrl.u32 %v12789_v31, 16  ;;  %v12880_v44 = vrot.slane %v12879_v60, 4  ;;  %v12978_v60 = vshll.u32 %v12795_v5, 16 }
 0x4fc   : > { %v22044_v27 = vrot.slane %v12930_v23, 5  ;;  %v12936_v20 = vrot.slane %v12934_v24, 4  ;;  %v12961_v23 = vor.u32 %v12960_v32, %v22054_v50  ;;  %v13002_v24 = vshll.u32 %v12798_v39, 16  ;;  %v18038_v39 = vld [vmem:[%s22292_s2 + $0x220] sm:$0xff]  }
 0x4fd   : > { %17183 = vmatpush3.bf16.msra.mxu1 %v18033_v42  ;;  %v22033_v42 = vrot.slane %v12882_v61, 5  ;;  %v12940_v61 = vshll.u32 %v12790_v26, 16 }
 0x4fe   : > { %17216 = vmatprep.subr.bf16.mxu1 %v22021_v62  ;;  %v12937_v28 = vor.u32 %v12936_v20, %v22044_v27  ;;  %v13008_v20 = vrot.slane %v13006_v10, 4  ;;  %v12962_v55 = vrot.slane %v12961_v23, 4 }
 0x4ff   : > { %v12889_v40 = vor.u32 %v12888_v33, %v22033_v42  ;;  %v12885_v35 = vsel %vm18147_vm2, %v12880_v44, %v22033_v42  ;;  %v12982_v42 = vshrl.u32 %v12795_v5, 16  ;;  %v12942_v4 = vrot.slane %v12940_v61, 5 }
 0x500   : > { %17153 = vmatmul.mubr.bf16.gmra.mrb[36].mxu1 %v18023_v48  ;;  %v12791_v48 = vld [vmem:[#allocation2 + $0x54] sm:$0xf]  ;;  %v12938_v12 = vrot.slane %v12937_v28, 4  ;;  %v13020_v44 = vshll.u32 %v12800_v9, 16 }
 0x501   : > { %17156 = vmatprep.mubr.bf16.mxu1 %v18025_v36  ;;  %v12787_v36 = vld [vmem:[#allocation2 + $0x44] sm:$0x1]  ;;  %v12945_v34 = vshrl.u32 %v12791_v48, 16  ;;  %v12890_v46 = vrot.slane %v12889_v40, 4 }
 0x502   : > { %v12916_v0 = vshll.u32 %v12787_v36, 16  ;;  %v12996_v36 = vshll.u32 %v12797_v51, 16  ;;  %v12943_v38 = vsel %vm18147_vm2, %v12938_v12, %v12942_v4  ;;  %v12807_v4 = vld [vmem:[#allocation2 + $0x94] sm:$0xf]  ;;  %v12809_v12 = vld [vmem:[#allocation2 + $0x9c] sm:$0xf] }
 0x503   : > { %v12947_v29 = vrot.slane %v12945_v34, 4  ;;  %v12895_v30 = vsel %vm18147_vm2, %v12890_v46, %v12894_v8  ;;  %v18036_v34 = vld [vmem:[%s22292_s2 + $0x210] sm:$0xff]   ;;  %v12803_v46 = vld [vmem:[#allocation2 + $0x84] sm:$0xf] }
 0x504   : > { %v12918_v15 = vrot.slane %v12916_v0, 5  ;;  %v15637_v33 = vcombine.low %v12885_v35, %v12895_v30  ;;  %v12998_v40 = vrot.slane %v12996_v36, 5  ;;  %v13022_v35 = vrot.slane %v13020_v44, 5  ;;  %v12802_v30 = vld [vmem:[#allocation2 + $0x80] sm:$0x1] }
 0x506   : > { %v12919_v52 = vsel %vm18147_vm2, %v12914_v13, %v12918_v15  ;;  %v12806_v15 = vld [vmem:[#allocation2 + $0x90] sm:$0xf] }
 0x507   : > { %v15638_v8 = vcombine.low %v12909_v57, %v12919_v52 }
 0x508   : > { %17157 = vmatmul.mubr.bf16.gmra.mrb[40].mxu1 %v18026_v18  ;;  %v12870_v18 = vrot.slane %v12868_v2, 5  ;;  %v12928_v2 = vrot.slane %v12927_v19, 4  ;;  %v12799_v19 = vld [vmem:[#allocation2 + $0x74] sm:$0x1] }
 0x509   : > { %17160 = vmatprep.mubr.bf16.mxu1 %v18028_v22  ;;  %v12948_v22 = vshll.u32 %v12791_v48, 16  ;;  %v12993_v48 = vshrl.u32 %v12797_v51, 16  ;;  %v13012_v5 = vshll.u32 %v12799_v19, 16  ;;  %v12804_v51 = vld [vmem:[#allocation2 + $0x88] sm:$0xf] }
 0x50a   : > { %v12871_v21 = vsel %vm18147_vm2, %v12866_v63, %v12870_v18  ;;  %v12933_v37 = vsel %vm18147_vm2, %v12928_v2, %v22044_v27  ;;  %v12801_v18 = vld [vmem:[#allocation2 + $0x7c] sm:$0xf]  ;;  %v22076_v27 = vrot.slane %v13002_v24, 5  ;;  %v13041_v2 = vshrl.u32 %v12803_v46, 16  ;;  %v12810_v24 = vld [vmem:[#allocation2 + $0xa0] sm:$0xf] }
 0x50b   : > { %v12950_v3 = vrot.slane %v12948_v22, 5  ;;  %v12796_v22 = vld [vmem:[#allocation2 + $0x68] sm:$0x1]  ;;  %v12995_v63 = vrot.slane %v12993_v48, 4  ;;  %v13026_v0 = vshll.u32 %v12801_v18, 16  ;;  %v13014_v48 = vrot.slane %v13012_v5, 5 }
 0x50c   : > { %v12988_v26 = vshll.u32 %v12796_v22, 16  ;;  %v13050_v57 = vshll.u32 %v12804_v51, 16  ;;  %v13054_v52 = vshrl.u32 %v12804_v51, 16  ;;  %v18039_v22 = vld [vmem:[%s22292_s2 + $0x228] sm:$0xff]   ;;  %v13098_v19 = vshll.u32 %v12810_v24, 16 }
 0x50d   : > { %v12951_v56 = vor.u32 %v12950_v3, %v12947_v29  ;;  %v15639_v29 = vcombine.low %v12933_v37, %v12943_v38  ;;  %v22087_v41 = vrot.slane %v13026_v0, 5  ;;  %v13043_v37 = vrot.slane %v13041_v2, 4  ;;  %v12812_v0 = vld [vmem:[#allocation2 + $0xa8] sm:$0xf]  ;;  %v12813_v5 = vld [vmem:[#allocation2 + $0xac] sm:$0xf] }
 0x50e   : > { %v12990_v28 = vrot.slane %v12988_v26, 5  ;;  %v13089_v38 = vshrl.u32 %v12809_v12, 16  ;;  %v13092_v26 = vshll.u32 %v12809_v12, 16 }
 0x50f   : > { %v12952_v47 = vrot.slane %v12951_v56, 4  ;;  %v13044_v56 = vshll.u32 %v12803_v46, 16 }
 0x510   : > { %17161 = vmatmul.mubr.bf16.gmra.mrb[44].mxu1 %v18029_v49  ;;  %v12972_v49 = vshll.u32 %v12794_v25, 16  ;;  %v13030_v25 = vshrl.u32 %v12801_v18, 16 }
 0x511   : > { %17164 = vmatprep.mubr.bf16.mxu1 %v18031_v53  ;;  %v15636_v53 = vcombine.low %v12861_v6, %v12871_v21  ;;  %v22072_v6 = vrot.slane %v12978_v60, 5  ;;  %v12957_v3 = vsel %vm18147_vm2, %v12952_v47, %v22054_v50  ;;  %v18037_v21 = vld [vmem:[%s22292_s2 + $0x218] sm:$0xff]   ;;  %v13046_v23 = vrot.slane %v13044_v56, 5 }
 0x512   : > { %v12974_v31 = vrot.slane %v12972_v49, 5  ;;  %v12999_v49 = vor.u32 %v12998_v40, %v12995_v63  ;;  %v13032_v13 = vrot.slane %v13030_v25, 4  ;;  %v13074_v47 = vshll.u32 %v12807_v4, 16  ;;  %v12805_v40 = vld [vmem:[#allocation2 + $0x8c] sm:$0x1] }
 0x513   : > { %v12808_v25 = vld [vmem:[#allocation2 + $0x98] sm:$0x1]  ;;  %v13060_v46 = vshll.u32 %v12805_v40, 16 }
 0x514   : > { %v13000_v60 = vrot.slane %v12999_v49, 4  ;;  %v13033_v36 = vor.u32 %v13032_v13, %v22087_v41  ;;  %v13116_v49 = vshll.u32 %v12812_v0, 16  ;;  %v13094_v13 = vrot.slane %v13092_v26, 5  ;;  %v12821_v26 = vld [vmem:[#allocation2 + $0xcc] sm:$0xf] }
 0x516   : > { %v13034_v44 = vrot.slane %v13033_v36, 4 }
 0x518   : > { %17165 = vmatmul.mubr.bf16.gmra.mrb[48].mxu1 %v18032_v14  ;;  %v12964_v14 = vshll.u32 %v12793_v11, 16  ;;  %v13009_v11 = vor.u32 %v13008_v20, %v22076_v27  ;;  %v13102_v20 = vshrl.u32 %v12810_v24, 16 }
 0x519   : > { %17184 = vmatprep.mubr.bf16.mxu1 %v15635_v17  ;;  %v12975_v17 = vor.u32 %v12974_v31, %v12971_v45  ;;  %v13068_v45 = vshll.u32 %v12806_v15, 16 }
 0x51a   : > { %v12966_v16 = vrot.slane %v12964_v14, 5  ;;  %v13010_v9 = vrot.slane %v13009_v11, 4  ;;  %v13104_v11 = vrot.slane %v13102_v20, 4 }
 0x51b   : > { %v12976_v59 = vrot.slane %v12975_v17, 4  ;;  %v13070_v18 = vrot.slane %v13068_v45, 5  ;;  %v13122_v45 = vshll.u32 %v12813_v5, 16 }
 0x51c   : > { %v12967_v61 = vsel %vm18147_vm2, %v12962_v55, %v12966_v16  ;;  %v13056_v16 = vrot.slane %v13054_v52, 4  ;;  %v12818_v52 = vld [vmem:[#allocation2 + $0xc0] sm:$0xf] }
 0x51d   : > { %v15640_v50 = vcombine.low %v12957_v3, %v12967_v61  ;;  %v12981_v32 = vsel %vm18147_vm2, %v12976_v59, %v22072_v6  ;;  %v22109_v3 = vrot.slane %v13074_v47, 5  ;;  %v18040_v59 = vld [vmem:[%s22292_s2 + $0x230] sm:$0xff]   ;;  %v13084_v61 = vshll.u32 %v12808_v25, 16  ;;  %v12816_v47 = vld [vmem:[#allocation2 + $0xb8] sm:$0xf] }
 0x520   : > { %17185 = vmatmul.mubr.bf16.vlgmr.msra.gmra.mrb[20].mxu1 %v15636_v53  ;;  %v13019_v53 = vrot.slane %v13017_v54, 4  ;;  %v13015_v54 = vsel %vm18147_vm2, %v13010_v9, %v13014_v48 }
 0x521   : > { %17188 = vmatprep.mubr.bf16.mxu1 %v15637_v33  ;;  %17217 = vmatpush3.bf16.msra.mxu1 %v22021_v62  ;;  %v12984_v62 = vrot.slane %v12982_v42, 4  ;;  %v13036_v33 = vshll.u32 %v12802_v30, 16  ;;  %v13091_v30 = vrot.slane %v13089_v38, 4  ;;  %v13146_v38 = vshll.u32 %v12816_v47, 16 }
 0x522   : > { %17218 = vmatprep.subr.bf16.mxu1 %v18035_v58  ;;  %v13023_v42 = vor.u32 %v13022_v35, %v13019_v53 }
 0x523   : > { %v12985_v7 = vor.u32 %v12984_v62, %v22072_v6  ;;  %v13005_v6 = vsel %vm18147_vm2, %v13000_v60, %v22076_v27  ;;  %v13038_v63 = vrot.slane %v13036_v33, 5  ;;  %v13047_v27 = vor.u32 %v13046_v23, %v13043_v37  ;;  %v12815_v60 = vld [vmem:[#allocation2 + $0xb4] sm:$0xf]  ;;  %v12814_v37 = vld [vmem:[#allocation2 + $0xb0] sm:$0x1] }
 0x524   : > { %v13024_v62 = vrot.slane %v13023_v42, 4  ;;  %v15642_v53 = vcombine.low %v13005_v6, %v13015_v54  ;;  %v13062_v42 = vrot.slane %v13060_v46, 5  ;;  %v13086_v33 = vrot.slane %v13084_v61, 5 }
 0x525   : > { %17219 = vmatpush3.bf16.msra.mxu1 %v18035_v58  ;;  %v13065_v58 = vshrl.u32 %v12806_v15, 16  ;;  %v12986_v31 = vrot.slane %v12985_v7, 4  ;;  %v13113_v7 = vshrl.u32 %v12812_v0, 16  ;;  %v13039_v35 = vsel %vm18147_vm2, %v13034_v44, %v13038_v63 }
 0x526   : > { %17220 = vmatprep.subr.bf16.mxu1 %v18036_v34  ;;  %v13048_v2 = vrot.slane %v13047_v27, 4  ;;  %v13095_v48 = vor.u32 %v13094_v13, %v13091_v30  ;;  %v13137_v23 = vshrl.u32 %v12815_v60, 16  ;;  %v13161_v6 = vshrl.u32 %v12818_v52, 16 }
 0x527   : > { %v12991_v14 = vsel %vm18147_vm2, %v12986_v31, %v12990_v28  ;;  %v13067_v10 = vrot.slane %v13065_v58, 4  ;;  %v22120_v28 = vrot.slane %v13098_v19, 5  ;;  %v13118_v58 = vrot.slane %v13116_v49, 5  ;;  %v12822_v19 = vld [vmem:[#allocation2 + $0xd0] sm:$0xf] }
 0x528   : > { %17189 = vmatmul.mubr.bf16.gmra.mrb[24].mxu1 %v15638_v8  ;;  %v15641_v17 = vcombine.low %v12981_v32, %v12991_v14  ;;  %v22107_v8 = vrot.slane %v13050_v57, 5  ;;  %v18041_v32 = vld [vmem:[%s22292_s2 + $0x238] sm:$0xff]   ;;  %v13126_v31 = vshrl.u32 %v12813_v5, 16  ;;  %v13096_v63 = vrot.slane %v13095_v48, 4  ;;  %v12823_v48 = vld [vmem:[#allocation2 + $0xd4] sm:$0x1] }
 0x529   : > { %17192 = vmatprep.mubr.bf16.mxu1 %v15639_v29  ;;  %17221 = vmatpush3.bf16.msra.mxu1 %v18036_v34  ;;  %v13078_v34 = vshrl.u32 %v12807_v4, 16  ;;  %v13071_v29 = vor.u32 %v13070_v18, %v13067_v10  ;;  %v13105_v36 = vor.u32 %v13104_v11, %v22120_v28  ;;  %v13124_v10 = vrot.slane %v13122_v45, 5 }
 0x52a   : > { %17222 = vmatprep.subr.bf16.mxu1 %v18037_v21  ;;  %v13057_v15 = vor.u32 %v13056_v16, %v22107_v8  ;;  %v13053_v12 = vsel %vm18147_vm2, %v13048_v2, %v22107_v8  ;;  %v13128_v18 = vrot.slane %v13126_v31, 4  ;;  %v13132_v44 = vshll.u32 %v12814_v37, 16  ;;  %v12819_v8 = vld [vmem:[#allocation2 + $0xc4] sm:$0xf] }
 0x52b   : > { %v13080_v55 = vrot.slane %v13078_v34, 4  ;;  %v13140_v34 = vshll.u32 %v12815_v60, 16  ;;  %v13106_v40 = vrot.slane %v13105_v36, 4  ;;  %v13139_v25 = vrot.slane %v13137_v23, 4 }
 0x52c   : > { %v13058_v4 = vrot.slane %v13057_v15, 4  ;;  %v13129_v27 = vor.u32 %v13128_v18, %v13124_v10  ;;  %v13170_v46 = vshll.u32 %v12819_v8, 16  ;;  %v13185_v49 = vshrl.u32 %v12821_v26, 16 }
 0x52d   : > { %17223 = vmatpush3.bf16.msra.mxu1 %v18037_v21  ;;  %v13029_v21 = vsel %vm18147_vm2, %v13024_v62, %v22087_v41  ;;  %v13072_v41 = vrot.slane %v13071_v29, 4  ;;  %v13081_v56 = vor.u32 %v13080_v55, %v22109_v3  ;;  %v13164_v62 = vshll.u32 %v12818_v52, 16  ;;  %v12817_v55 = vld [vmem:[#allocation2 + $0xbc] sm:$0x1] }
 0x52e   : > { %17224 = vmatprep.subr.bf16.mxu1 %v18038_v39  ;;  %v15643_v51 = vcombine.low %v13029_v21, %v13039_v35  ;;  %v13142_v29 = vrot.slane %v13140_v34, 5  ;;  %v13194_v35 = vshll.u32 %v12822_v19, 16  ;;  %v13198_v15 = vshrl.u32 %v12822_v19, 16  ;;  %v13595_v34 = vld [vmem:[#allocation2 + $0x1c] sm:$0xf] }
 0x52f   : > { %v13077_v14 = vsel %vm18147_vm2, %v13072_v41, %v22109_v3  ;;  %v13082_v9 = vrot.slane %v13081_v56, 4  ;;  %v13150_v3 = vshrl.u32 %v12816_v47, 16  ;;  %v13166_v21 = vrot.slane %v13164_v62, 5  ;;  %v12820_v56 = vld [vmem:[#allocation2 + $0xc8] sm:$0x1] }
 0x530   : > { %17193 = vmatmul.mubr.bf16.gmra.mrb[28].mxu1 %v15640_v50  ;;  %v12811_v50 = vld [vmem:[#allocation2 + $0xa4] sm:$0x1]  ;;  %v13101_v61 = vsel %vm18147_vm2, %v13096_v63, %v22120_v28  ;;  %v13134_v30 = vrot.slane %v13132_v44, 5  ;;  %v13148_v13 = vrot.slane %v13146_v38, 5  ;;  %v13156_v41 = vshll.u32 %v12817_v55, 16 }
 0x531   : > { %17196 = vmatprep.mubr.bf16.mxu1 %v15641_v17  ;;  %17225 = vmatpush3.bf16.msra.mxu1 %v18038_v39  ;;  %v13115_v39 = vrot.slane %v13113_v7, 4  ;;  %v13108_v57 = vshll.u32 %v12811_v50, 16  ;;  %v13087_v17 = vsel %vm18147_vm2, %v13082_v9, %v13086_v33  ;;  %v13174_v7 = vshrl.u32 %v12819_v8, 16  ;;  %v13594_v19 = vld [vmem:[#allocation2 + $0x18] sm:$0xe] }
 0x532   : > { %17226 = vmatprep.subr.bf16.mxu1 %v18039_v22  ;;  %v15645_v0 = vcombine.low %v13077_v14, %v13087_v17  ;;  %v13152_v2 = vrot.slane %v13150_v3, 4  ;;  %v13130_v50 = vrot.slane %v13129_v27, 4  ;;  %v13187_v45 = vrot.slane %v13185_v49, 4  ;;  %v13598_v27 = vld [vmem:[#allocation2 + $0x28] sm:$0xf] }
 0x533   : > { %v13119_v24 = vor.u32 %v13118_v58, %v13115_v39  ;;  %v13110_v54 = vrot.slane %v13108_v57, 5  ;;  %v13172_v39 = vrot.slane %v13170_v46, 5  ;;  %v13176_v58 = vrot.slane %v13174_v7, 4  ;;  %v13602_v7 = vld [vmem:[#allocation2 + $0x38] sm:$0x1] }
 0x534   : > { %v13196_v60 = vrot.slane %v13194_v35, 5  ;;  %v13200_v28 = vrot.slane %v13198_v15, 4  ;;  %v13135_v33 = vsel %vm18147_vm2, %v13130_v50, %v13134_v30  ;;  %v13153_v52 = vor.u32 %v13152_v2, %v13148_v13  ;;  %v13600_v30 = vld [vmem:[#allocation2 + $0x30] sm:$0xe] }
 0x535   : > { %17227 = vmatpush3.bf16.msra.mxu1 %v18039_v22  ;;  %v13063_v22 = vsel %vm18147_vm2, %v13058_v4, %v13062_v42  ;;  %v13120_v20 = vrot.slane %v13119_v24, 4  ;;  %v13111_v5 = vsel %vm18147_vm2, %v13106_v40, %v13110_v54  ;;  %v13180_v4 = vshll.u32 %v12820_v56, 16  ;;  %v13596_v54 = vld [vmem:[#allocation2 + $0x20] sm:$0x1] }
 0x536   : > { %17228 = vmatprep.subr.bf16.mxu1 %v18040_v59  ;;  %v15644_v16 = vcombine.low %v13053_v12, %v13063_v22  ;;  %v15646_v42 = vcombine.low %v13101_v61, %v13111_v5  ;;  %v13177_v14 = vor.u32 %v13176_v58, %v13172_v39  ;;  %v13158_v9 = vrot.slane %v13156_v41, 5  ;;  %v13607_v41 = vld [vmem:[#allocation2 + $0x4c] sm:$0xf] }
 0x537   : > { %v13125_v11 = vsel %vm18147_vm2, %v13120_v20, %v13124_v10  ;;  %v13201_v23 = vor.u32 %v13200_v28, %v13196_v60  ;;  %v13204_v24 = vshll.u32 %v12823_v48, 16  ;;  %v13182_v10 = vrot.slane %v13180_v4, 5  ;;  %v13603_v4 = vld [vmem:[#allocation2 + $0x3c] sm:$0xe] }
 0x538   : > { %17197 = vmatmul.mubr.bf16.gmra.mrb[32].mxu1 %v15642_v53  ;;  %v13188_v53 = vshll.u32 %v12821_v26, 16  ;;  %v15647_v36 = vcombine.low %v13125_v11, %v13135_v33  ;;  %v13154_v47 = vrot.slane %v13153_v52, 4  ;;  %v13178_v17 = vrot.slane %v13177_v14, 4  ;;  %v13604_v11 = vld [vmem:[#allocation2 + $0x40] sm:$0xf] }
 0x539   : > { %17200 = vmatprep.mubr.bf16.mxu1 %v15643_v51  ;;  %17229 = vmatpush3.bf16.msra.mxu1 %v18040_v59  ;;  %v13163_v59 = vrot.slane %v13161_v6, 4  ;;  %v13143_v51 = vor.u32 %v13142_v29, %v13139_v25  ;;  %v13202_v63 = vrot.slane %v13201_v23, 4  ;;  %v13206_v40 = vrot.slane %v13204_v24, 5  ;;  %v13601_v29 = vld [vmem:[#allocation2 + $0x34] sm:$0xf] }
 0x53a   : > { %17230 = vmatprep.subr.bf16.mxu1 %v18041_v32  ;;  %v13190_v31 = vrot.slane %v13188_v53, 5  ;;  %v13159_v6 = vsel %vm18147_vm2, %v13154_v47, %v13158_v9  ;;  %v13183_v8 = vsel %vm18147_vm2, %v13178_v17, %v13182_v10  ;;  %v13695_v25 = vrot.slane %v13596_v54, 5  ;;  %v13611_v10 = vld [vmem:[#allocation2 + $0x5c] sm:$0x1] }
 0x53b   : > { %v13144_v57 = vrot.slane %v13143_v51, 4  ;;  %v13207_v26 = vsel %vm18147_vm2, %v13202_v63, %v13206_v40  ;;  %v15659_v55 = vrot.slane %v13594_v19, 9  ;;  %v13699_v46 = vrot.slane %v13598_v27, 5  ;;  %v13609_v40 = vld [vmem:[#allocation2 + $0x54] sm:$0xe] }
 0x53c   : > { %v13191_v37 = vor.u32 %v13190_v31, %v13187_v45  ;;  %v13706_v53 = vrot.slane %v13601_v29, 5  ;;  %v13709_v61 = vrot.slane %v13602_v7, 5  ;;  %v15660_v51 = vrot.slane %v13597_v1, 9  ;;  %v13608_v45 = vld [vmem:[#allocation2 + $0x50] sm:$0x1] }
 0x53d   : > { %17231 = vmatpush3.bf16.msra.mxu1 %v18041_v32  ;;  %v13167_v32 = vor.u32 %v13166_v21, %v13163_v59  ;;  %v13149_v18 = vsel %vm18147_vm2, %v13144_v57, %v13148_v13  ;;  %v13599_v21 = vld [vmem:[#allocation2 + $0x2c] sm:$0x1]  ;;  %v13701_v5 = vrot.slane %v13699_v46, 4  ;;  %v15661_v56 = vrot.slane %v13600_v30, 9  ;;  %v13606_v57 = vld [vmem:[#allocation2 + $0x48] sm:$0xe] }
 0x53e   : > { %v13192_v62 = vrot.slane %v13191_v37, 4  ;;  %v15648_v44 = vcombine.low %v13149_v18, %v13159_v6  ;;  %v13702_v15 = vrot.slane %v13599_v21, 5  ;;  %v13708_v13 = vrot.slane %v13706_v53, 4  ;;  %v13613_v37 = vld [vmem:[#allocation2 + $0x64] sm:$0xf] }
 0x53f   : > { %v13168_v12 = vrot.slane %v13167_v32, 4  ;;  %v13605_v32 = vld [vmem:[#allocation2 + $0x44] sm:$0x1]  ;;  %v13713_v58 = vrot.slane %v13604_v11, 5  ;;  %v13720_v28 = vrot.slane %v13607_v41, 5  ;;  %v13723_v48 = vrot.slane %v13608_v45, 5 }
 0x540   : > { %17201 = vmatmul.mubr.bf16.gmra.mrb[36].mxu1 %v15644_v16  ;;  %v13692_v16 = vrot.slane %v13595_v34, 5  ;;  %v13197_v38 = vsel %vm18147_vm2, %v13192_v62, %v13196_v60  ;;  %v13703_v2 = vsel %vm18242_vm5, %v13701_v5, %v13702_v15  ;;  %v13710_v50 = vsel %vm18242_vm5, %v13708_v13, %v13709_v61  ;;  %v13614_v34 = vld [vmem:[#allocation2 + $0x68] sm:$0x1]  ;;  %v13617_v27 = vld [vmem:[#allocation2 + $0x74] sm:$0x1] }
 0x541   : > { %17204 = vmatprep.mubr.bf16.mxu1 %v15645_v0  ;;  %v13173_v22 = vsel %vm18147_vm2, %v13168_v12, %v13172_v39  ;;  %v15650_v3 = vcombine.low %v13197_v38, %v13207_v26  ;;  %v13700_v39 = vsel %vm18242_vm5, %v15660_v51, %v13699_v46  ;;  %v13707_v60 = vsel %vm18242_vm5, %v15661_v56, %v13706_v53  ;;  %v13610_v12 = vld [vmem:[#allocation2 + $0x58] sm:$0xf]  ;;  %v13619_v26 = vld [vmem:[#allocation2 + $0x7c] sm:$0xf]  ;;  %v13615_v53 = vld [vmem:[#allocation2 + $0x6c] sm:$0xe] }
 0x542   : > { %v15649_v0 = vcombine.low %v13173_v22, %v13183_v8  ;;  %v13694_v20 = vrot.slane %v13692_v16, 4  ;;  %v13693_v49 = vsel %vm18242_vm5, %v15659_v55, %v13692_v16  ;;  %v15692_v31 = vcombine.low %v13700_v39, %v13703_v2  ;;  %v13612_v8 = vld [vmem:[#allocation2 + $0x60] sm:$0xe]  ;;  %v13620_v55 = vld [vmem:[#allocation2 + $0x80] sm:$0x1] }
 0x543   : > { %v13716_v33 = vrot.slane %v13605_v32, 5  ;;  %v13722_v52 = vrot.slane %v13720_v28, 4  ;;  %v15662_v14 = vrot.slane %v13603_v4, 9  ;;  %v15663_v23 = vrot.slane %v13606_v57, 9  ;;  %v13618_v1 = vld [vmem:[#allocation2 + $0x78] sm:$0xe] }
 0x544   : > { %v13696_v59 = vsel %vm18242_vm5, %v13694_v20, %v13695_v25  ;;  %v13727_v47 = vrot.slane %v13610_v12, 5  ;;  %v13734_v6 = vrot.slane %v13613_v37, 5  ;;  %v13730_v63 = vrot.slane %v13611_v10, 5  ;;  %v13622_v5 = vld [vmem:[#allocation2 + $0x88] sm:$0xf] }
 0x545   : > { %v15691_v35 = vcombine.low %v13693_v49, %v13696_v59  ;;  %v13724_v24 = vsel %vm18242_vm5, %v13722_v52, %v13723_v48  ;;  %v13714_v18 = vsel %vm18242_vm5, %v15662_v14, %v13713_v58  ;;  %v13721_v17 = vsel %vm18242_vm5, %v15663_v23, %v13720_v28  ;;  %v13625_v11 = vld [vmem:[#allocation2 + $0x94] sm:$0xf]  ;;  %v13623_v41 = vld [vmem:[#allocation2 + $0x8c] sm:$0x1]  ;;  %v13626_v32 = vld [vmem:[#allocation2 + $0x98] sm:$0x1] }
 0x546   : > { %v15695_v62 = vcombine.low %v13721_v17, %v13724_v24  ;;  %v13737_v54 = vrot.slane %v13614_v34, 5  ;;  %v13736_v16 = vrot.slane %v13734_v6, 4  ;;  %v15664_v25 = vrot.slane %v13609_v40, 9  ;;  %v13621_v28 = vld [vmem:[#allocation2 + $0x84] sm:$0xe] }
 0x547   : > { %v15665_v19 = vrot.slane %v13612_v8, 9  ;;  %v13748_v46 = vrot.slane %v13619_v26, 5  ;;  %v13744_v49 = vrot.slane %v13617_v27, 5  ;;  %v15666_v30 = vrot.slane %v13615_v53, 9  ;;  %v13624_v4 = vld [vmem:[#allocation2 + $0x90] sm:$0xe] }
 0x548   : > { %17205 = vmatmul.mubr.bf16.gmra.mrb[40].mxu1 %v15646_v42  ;;  %v15693_v42 = vcombine.low %v13707_v60, %v13710_v50  ;;  %v13738_v20 = vsel %vm18242_vm5, %v13736_v16, %v13737_v54  ;;  %v13728_v29 = vsel %vm18242_vm5, %v15664_v25, %v13727_v47  ;;  %v15667_v51 = vrot.slane %v13618_v1, 9  ;;  %v13631_v12 = vld [vmem:[#allocation2 + $0xac] sm:$0xf]  ;;  %v13629_v37 = vld [vmem:[#allocation2 + $0xa4] sm:$0x1] }
 0x549   : > { %17208 = vmatprep.mubr.bf16.mxu1 %v15647_v36  ;;  %v13715_v36 = vrot.slane %v13713_v58, 4  ;;  %v13735_v21 = vsel %vm18242_vm5, %v15665_v19, %v13734_v6  ;;  %v13750_v61 = vrot.slane %v13748_v46, 4  ;;  %v13755_v50 = vrot.slane %v13622_v5, 5  ;;  %v13632_v10 = vld [vmem:[#allocation2 + $0xb0] sm:$0x1] }
 0x54a   : > { %v15697_v7 = vcombine.low %v13735_v21, %v13738_v20  ;;  %v13749_v58 = vsel %vm18242_vm5, %v15667_v51, %v13748_v46  ;;  %v13762_v45 = vrot.slane %v13625_v11, 5  ;;  %v13758_v60 = vrot.slane %v13623_v41, 5  ;;  %v13627_v6 = vld [vmem:[#allocation2 + $0x9c] sm:$0xe]  ;;  %v13630_v40 = vld [vmem:[#allocation2 + $0xa8] sm:$0xe] }
 0x54b   : > { %v13717_v9 = vsel %vm18242_vm5, %v13715_v36, %v13716_v33  ;;  %v13757_v33 = vrot.slane %v13755_v50, 4  ;;  %v13628_v36 = vld [vmem:[#allocation2 + $0xa0] sm:$0xf]  ;;  %v15668_v57 = vrot.slane %v13621_v28, 9  ;;  %v15669_v14 = vrot.slane %v13624_v4, 9 }
 0x54c   : > { %v15694_v22 = vcombine.low %v13714_v18, %v13717_v9  ;;  %v13764_v48 = vrot.slane %v13762_v45, 4  ;;  %v13769_v24 = vrot.slane %v13628_v36, 5  ;;  %v13776_v34 = vrot.slane %v13631_v12, 5  ;;  %v13635_v26 = vld [vmem:[#allocation2 + $0xbc] sm:$0x1] }
 0x54d   : > { %v13759_v52 = vsel %vm18242_vm5, %v13757_v33, %v13758_v60  ;;  %v13756_v23 = vsel %vm18242_vm5, %v15668_v57, %v13755_v50  ;;  %v13772_v17 = vrot.slane %v13629_v37, 5  ;;  %v15670_v8 = vrot.slane %v13627_v6, 9  ;;  %v13638_v27 = vld [vmem:[#allocation2 + $0xc8] sm:$0x1]  ;;  %v13641_v5 = vld [vmem:[#allocation2 + $0xd4] sm:$0x1] }
 0x54e   : > { %v15700_v18 = vcombine.low %v13756_v23, %v13759_v52  ;;  %v13778_v54 = vrot.slane %v13776_v34, 4  ;;  %v15671_v25 = vrot.slane %v13630_v40, 9  ;;  %v13786_v46 = vrot.slane %v13635_v26, 5  ;;  %v22225_v28 = vld [vmem:[%s22294_s4] ss:$0 sm:$0xff] }
 0x54f   : > { %v13770_v19 = vsel %vm18242_vm5, %v15670_v8, %v13769_v24  ;;  %v13800_v50 = vrot.slane %v13641_v5, 5 }
 0x550   : > { %17209 = vmatmul.mubr.bf16.gmra.mrb[44].mxu1 %v15648_v44  ;;  %v13729_v44 = vrot.slane %v13727_v47, 4  ;;  %v13763_v47 = vsel %vm18242_vm5, %v15669_v14, %v13762_v45 }
 0x551   : > { %17212 = vmatprep.mubr.bf16.mxu1 %v15649_v0  ;;  %v13616_v0 = vld [vmem:[#allocation2 + $0x70] sm:$0xf] }
 0x552   : > { %v13731_v38 = vsel %vm18242_vm5, %v13729_v44, %v13730_v63  ;;  %v13771_v63 = vrot.slane %v13769_v24, 4  ;;  %v13634_v44 = vld [vmem:[#allocation2 + $0xb8] sm:$0xf] }
 0x553   : > { %v15696_v59 = vcombine.low %v13728_v29, %v13731_v38  ;;  %v13783_v20 = vrot.slane %v13634_v44, 5 }
 0x554   : > { %v13773_v16 = vsel %vm18242_vm5, %v13771_v63, %v13772_v17 }
 0x555   : > { %v15702_v29 = vcombine.low %v13770_v19, %v13773_v16  ;;  %v13785_v53 = vrot.slane %v13783_v20, 4 }
 0x558   : > { %17213 = vmatmul.mubr.bf16.gmra.mrb[48].mxu1 %v15650_v3  ;;  %v13741_v3 = vrot.slane %v13616_v0, 5  ;;  %v13637_v0 = vld [vmem:[#allocation2 + $0xc4] sm:$0xf] }
 0x559   : > { %17232 = vmatprep.mubr.bf16.mxu1 %v15691_v35  ;;  %v13751_v35 = vrot.slane %v13620_v55, 5  ;;  %v13790_v55 = vrot.slane %v13637_v0, 5 }
 0x55a   : > { %v13743_v15 = vrot.slane %v13741_v3, 4  ;;  %v13742_v56 = vsel %vm18242_vm5, %v15666_v30, %v13741_v3  ;;  %v13777_v3 = vsel %vm18242_vm5, %v15671_v25, %v13776_v34 }
 0x55b   : > { %v13752_v2 = vsel %vm18242_vm5, %v13750_v61, %v13751_v35  ;;  %v13636_v35 = vld [vmem:[#allocation2 + $0xc0] sm:$0xe]  ;;  %v13792_v1 = vrot.slane %v13790_v55, 4  ;;  %v13639_v61 = vld [vmem:[#allocation2 + $0xcc] sm:$0xe] }
 0x55c   : > { %v13745_v13 = vsel %vm18242_vm5, %v13743_v15, %v13744_v49  ;;  %v13793_v49 = vrot.slane %v13638_v27, 5  ;;  %v15673_v11 = vrot.slane %v13636_v35, 9  ;;  %v15674_v41 = vrot.slane %v13639_v61, 9 }
 0x55d   : > { %v15698_v39 = vcombine.low %v13742_v56, %v13745_v13  ;;  %v13787_v13 = vsel %vm18242_vm5, %v13785_v53, %v13786_v46 }
 0x55e   : > { %v13794_v51 = vsel %vm18242_vm5, %v13792_v1, %v13793_v49 }
 0x560   : > { %17233 = vmatmul.mubr.bf16.vlgmr.msra.gmra.mrb[20].mxu1 %v15692_v31  ;;  %v15699_v31 = vcombine.low %v13749_v58, %v13752_v2 }
 0x561   : > { %17236 = vmatprep.mubr.bf16.mxu1 %v15693_v42  ;;  %v13765_v42 = vrot.slane %v13626_v32, 5 }
 0x563   : > { %v13766_v9 = vsel %vm18242_vm5, %v13764_v48, %v13765_v42 }
 0x568   : > { %17237 = vmatmul.mubr.bf16.gmra.mrb[24].mxu1 %v15694_v22  ;;  %v15701_v22 = vcombine.low %v13763_v47, %v13766_v9 }
 0x569   : > { %17240 = vmatprep.mubr.bf16.mxu1 %v15695_v62  ;;  %v13779_v62 = vrot.slane %v13632_v10, 5 }
 0x56b   : > { %v13780_v38 = vsel %vm18242_vm5, %v13778_v54, %v13779_v62 }
 0x56c   : > { %v15703_v21 = vcombine.low %v13777_v3, %v13780_v38 }
 0x570   : > { %17241 = vmatmul.mubr.bf16.gmra.mrb[28].mxu1 %v15696_v59  ;;  %v13640_v59 = vld [vmem:[#allocation2 + $0xd0] sm:$0xf] }
 0x571   : > { %17244 = vmatprep.mubr.bf16.mxu1 %v15697_v7  ;;  %v13633_v7 = vld [vmem:[#allocation2 + $0xb4] sm:$0xe]  ;;  %v13797_v15 = vrot.slane %v13640_v59, 5 }
 0x572   : > { %v15672_v30 = vrot.slane %v13633_v7, 9 }
 0x573   : > { %v13799_v56 = vrot.slane %v13797_v15, 4  ;;  %v13798_v45 = vsel %vm18242_vm5, %v15674_v41, %v13797_v15 }
 0x574   : > { %v13784_v2 = vsel %vm18242_vm5, %v15672_v30, %v13783_v20 }
 0x575   : > { %v15704_v32 = vcombine.low %v13784_v2, %v13787_v13 }
 0x578   : > { %17245 = vmatmul.mubr.bf16.gmra.mrb[32].mxu1 %v15698_v39  ;;  %v13791_v39 = vsel %vm18242_vm5, %v15673_v11, %v13790_v55 }
 0x579   : > { %17248 = vmatprep.mubr.bf16.mxu1 %v15699_v31  ;;  %v15705_v58 = vcombine.low %v13791_v39, %v13794_v51  ;;  %v13801_v31 = vsel %vm18242_vm5, %v13799_v56, %v13800_v50 }
 0x57a   : > { %v15706_v60 = vcombine.low %v13798_v45, %v13801_v31 }
 0x580   : > { %17249 = vmatmul.mubr.bf16.gmra.mrb[36].mxu1 %v15700_v18 }
 0x581   : > { %17252 = vmatprep.mubr.bf16.mxu1 %v15701_v22 }
 0x588   : > { %17253 = vmatmul.mubr.bf16.gmra.mrb[40].mxu1 %v15702_v29 }
 0x589   : > { %17256 = vmatprep.mubr.bf16.mxu1 %v15703_v21 }
 0x590   : > { %17257 = vmatmul.mubr.bf16.gmra.mrb[44].mxu1 %v15704_v32 }
 0x591   : > { %17260 = vmatprep.mubr.bf16.mxu1 %v15705_v58 }
 0x598   : > { %17261 = vmatmul.mubr.bf16.gmra.mrb[48].mxu1 %v15706_v60 }
 0x633   : > { %v17234_v42 = vpop.f32.mrb[20].mxu1 }
 0x634   : > { %v14229_v33 = vadd.f32 %v17234_v42, %v22225_v28  ;;  %v13965_v4 = vpop.f32.mrb[21].mxu1 }
 0x635   : > { %v14227_v48 = vadd.f32 %v22225_v28, %v13965_v4  ;;  %v17235_v36 = vpop.f32.mrb[22].mxu1 }
 0x636   : > { %v14230_v57 = vadd.f32 %v17235_v36, %v22225_v28  ;;  %v13968_v52 = vpop.f32.mrb[23].mxu1  ;;  %v14261_v12 = vmax.f32 %v14229_v33, 0.0 }
 0x637   : > { %v14228_v43 = vadd.f32 %v22225_v28, %v13968_v52  ;;  %v14259_v9 = vmax.f32 %v14227_v48, 0.0 }
 0x638   : > { %v14262_v14 = vmax.f32 %v14230_v57, 0.0 }
 0x639   : > { %v14260_v37 = vmax.f32 %v14228_v43, 0.0 }
 0x63a   : > { %v15827_v23 = vpack.c.bf16 %v14262_v14, %v14261_v12 }
 0x63b   : > { %v15822_v24 = vpack.c.bf16 %v14260_v37, %v14259_v9  ;;  %v17238_v10 = vpop.f32.mrb[24].mxu1 }
 0x63c   : > { %15899 = vst [vmem:[%s22235_s10 + $0x8] sm:$0xff] %v15827_v23   ;;  %v14233_v18 = vadd.f32 %v17238_v10, %v22225_v28  ;;  %v13981_v47 = vpop.f32.mrb[25].mxu1 }
 0x63d   : > { %15823 = vst [vmem:[%s22235_s10] sm:$0xff] %v15822_v24   ;;  %v14231_v34 = vadd.f32 %v22225_v28, %v13981_v47  ;;  %v17239_v22 = vpop.f32.mrb[26].mxu1 }
 0x63e   : > { %v14234_v17 = vadd.f32 %v17239_v22, %v22225_v28  ;;  %v13984_v6 = vpop.f32.mrb[27].mxu1  ;;  %v14265_v63 = vmax.f32 %v14233_v18, 0.0 }
 0x63f   : > { %v14232_v62 = vadd.f32 %v22225_v28, %v13984_v6  ;;  %v14263_v54 = vmax.f32 %v14231_v34, 0.0 }
 0x640   : > { %v14266_v40 = vmax.f32 %v14234_v17, 0.0 }
 0x641   : > { %v14264_v44 = vmax.f32 %v14232_v62, 0.0 }
 0x642   : > { %v15837_v8 = vpack.c.bf16 %v14266_v40, %v14265_v63 }
 0x643   : > { %v15832_v16 = vpack.c.bf16 %v14264_v44, %v14263_v54  ;;  %v17242_v0 = vpop.f32.mrb[28].mxu1 }
 0x644   : > { %15901 = vst [vmem:[%s22235_s10 + $0x18] sm:$0xff] %v15837_v8   ;;  %v14237_v25 = vadd.f32 %v17242_v0, %v22225_v28  ;;  %v13997_v38 = vpop.f32.mrb[29].mxu1 }
 0x645   : > { %15900 = vst [vmem:[%s22235_s10 + $0x10] sm:$0xff] %v15832_v16   ;;  %v14235_v26 = vadd.f32 %v22225_v28, %v13997_v38  ;;  %v17243_v19 = vpop.f32.mrb[30].mxu1 }
 0x646   : > { %v14238_v20 = vadd.f32 %v17243_v19, %v22225_v28  ;;  %v14000_v27 = vpop.f32.mrb[31].mxu1  ;;  %v14269_v3 = vmax.f32 %v14237_v25, 0.0 }
 0x647   : > { %v14236_v29 = vadd.f32 %v22225_v28, %v14000_v27  ;;  %v14267_v59 = vmax.f32 %v14235_v26, 0.0 }
 0x648   : > { %v14270_v55 = vmax.f32 %v14238_v20, 0.0 }
 0x649   : > { %v14268_v21 = vmax.f32 %v14236_v29, 0.0 }
 0x64a   : > { %v15847_v46 = vpack.c.bf16 %v14270_v55, %v14269_v3 }
 0x64b   : > { %v15842_v7 = vpack.c.bf16 %v14268_v21, %v14267_v59  ;;  %v17246_v49 = vpop.f32.mrb[32].mxu1 }
 0x64c   : > { %15903 = vst [vmem:[%s22235_s10 + $0x28] sm:$0xff] %v15847_v46   ;;  %v14241_v53 = vadd.f32 %v17246_v49, %v22225_v28  ;;  %v14013_v35 = vpop.f32.mrb[33].mxu1 }
 0x64d   : > { %15902 = vst [vmem:[%s22235_s10 + $0x20] sm:$0xff] %v15842_v7   ;;  %v14239_v15 = vadd.f32 %v22225_v28, %v14013_v35  ;;  %v17247_v1 = vpop.f32.mrb[34].mxu1 }
 0x64e   : > { %v14242_v61 = vadd.f32 %v17247_v1, %v22225_v28  ;;  %v14016_v5 = vpop.f32.mrb[35].mxu1  ;;  %v14273_v13 = vmax.f32 %v14241_v53, 0.0 }
 0x64f   : > { %v14240_v30 = vadd.f32 %v22225_v28, %v14016_v5  ;;  %v14271_v51 = vmax.f32 %v14239_v15, 0.0 }
 0x650   : > { %v14274_v11 = vmax.f32 %v14242_v61, 0.0 }
 0x651   : > { %v14272_v2 = vmax.f32 %v14240_v30, 0.0 }
 0x652   : > { %v15857_v41 = vpack.c.bf16 %v14274_v11, %v14273_v13 }
 0x653   : > { %v15852_v56 = vpack.c.bf16 %v14272_v2, %v14271_v51  ;;  %v17250_v50 = vpop.f32.mrb[36].mxu1 }
 0x654   : > { %15905 = vst [vmem:[%s22235_s10 + $0x38] sm:$0xff] %v15857_v41   ;;  %v14245_v32 = vadd.f32 %v17250_v50, %v22225_v28  ;;  %v14029_v39 = vpop.f32.mrb[37].mxu1 }
 0x655   : > { %15904 = vst [vmem:[%s22235_s10 + $0x30] sm:$0xff] %v15852_v56   ;;  %v14243_v58 = vadd.f32 %v22225_v28, %v14029_v39  ;;  %v17251_v45 = vpop.f32.mrb[38].mxu1 }
 0x656   : > { %v14246_v31 = vadd.f32 %v17251_v45, %v22225_v28  ;;  %v14032_v60 = vpop.f32.mrb[39].mxu1  ;;  %v14277_v33 = vmax.f32 %v14245_v32, 0.0 }
 0x657   : > { %v14244_v42 = vadd.f32 %v22225_v28, %v14032_v60  ;;  %v14275_v48 = vmax.f32 %v14243_v58, 0.0 }
 0x658   : > { %v14278_v4 = vmax.f32 %v14246_v31, 0.0 }
 0x659   : > { %v14276_v36 = vmax.f32 %v14244_v42, 0.0 }
 0x65a   : > { %v15867_v57 = vpack.c.bf16 %v14278_v4, %v14277_v33 }
 0x65b   : > { %v15862_v52 = vpack.c.bf16 %v14276_v36, %v14275_v48  ;;  %v17254_v43 = vpop.f32.mrb[40].mxu1 }
 0x65c   : > { %15907 = vst [vmem:[%s22235_s10 + $0x48] sm:$0xff] %v15867_v57   ;;  %v14249_v12 = vadd.f32 %v17254_v43, %v22225_v28  ;;  %v14045_v14 = vpop.f32.mrb[41].mxu1 }
 0x65d   : > { %15906 = vst [vmem:[%s22235_s10 + $0x40] sm:$0xff] %v15862_v52   ;;  %v14247_v9 = vadd.f32 %v22225_v28, %v14045_v14  ;;  %v17255_v37 = vpop.f32.mrb[42].mxu1 }
 0x65e   : > { %v14250_v23 = vadd.f32 %v17255_v37, %v22225_v28  ;;  %v14048_v24 = vpop.f32.mrb[43].mxu1  ;;  %v14281_v18 = vmax.f32 %v14249_v12, 0.0 }
 0x65f   : > { %v14248_v10 = vadd.f32 %v22225_v28, %v14048_v24  ;;  %v14279_v34 = vmax.f32 %v14247_v9, 0.0 }
 0x660   : > { %v14282_v47 = vmax.f32 %v14250_v23, 0.0 }
 0x661   : > { %v14280_v22 = vmax.f32 %v14248_v10, 0.0 }
 0x662   : > { %v15877_v17 = vpack.c.bf16 %v14282_v47, %v14281_v18 }
 0x663   : > { %v15872_v6 = vpack.c.bf16 %v14280_v22, %v14279_v34  ;;  %v17258_v62 = vpop.f32.mrb[44].mxu1 }
 0x664   : > { %15909 = vst [vmem:[%s22235_s10 + $0x58] sm:$0xff] %v15877_v17   ;;  %v14253_v63 = vadd.f32 %v17258_v62, %v22225_v28  ;;  %v14061_v40 = vpop.f32.mrb[45].mxu1 }
 0x665   : > { %15908 = vst [vmem:[%s22235_s10 + $0x50] sm:$0xff] %v15872_v6   ;;  %v14251_v54 = vadd.f32 %v22225_v28, %v14061_v40  ;;  %v17259_v44 = vpop.f32.mrb[46].mxu1 }
 0x666   : > { %v14254_v8 = vadd.f32 %v17259_v44, %v22225_v28  ;;  %v14064_v16 = vpop.f32.mrb[47].mxu1  ;;  %v14285_v25 = vmax.f32 %v14253_v63, 0.0 }
 0x667   : > { %v14252_v0 = vadd.f32 %v22225_v28, %v14064_v16  ;;  %v14283_v26 = vmax.f32 %v14251_v54, 0.0 }
 0x668   : > { %v14286_v38 = vmax.f32 %v14254_v8, 0.0 }
 0x669   : > { %v14284_v19 = vmax.f32 %v14252_v0, 0.0 }
 0x66a   : > { %v15887_v20 = vpack.c.bf16 %v14286_v38, %v14285_v25 }
 0x66b   : > { %v15882_v27 = vpack.c.bf16 %v14284_v19, %v14283_v26  ;;  %v17262_v29 = vpop.f32.mrb[48].mxu1 }
 0x66c   : > { %15911 = vst [vmem:[%s22235_s10 + $0x68] sm:$0xff] %v15887_v20   ;;  %v14257_v3 = vadd.f32 %v17262_v29, %v22225_v28  ;;  %v14077_v55 = vpop.f32.mrb[49].mxu1 }
 0x66d   : > { %15910 = vst [vmem:[%s22235_s10 + $0x60] sm:$0xff] %v15882_v27   ;;  %v14255_v59 = vadd.f32 %v22225_v28, %v14077_v55  ;;  %v17263_v21 = vpop.f32.mrb[50].mxu1 }
 0x66e   : > { %v14258_v46 = vadd.f32 %v17263_v21, %v22225_v28  ;;  %v14080_v7 = vpop.f32.mrb[51].mxu1  ;;  %v14289_v53 = vmax.f32 %v14257_v3, 0.0 }
 0x66f   : > { %v14256_v49 = vadd.f32 %v22225_v28, %v14080_v7  ;;  %v14287_v15 = vmax.f32 %v14255_v59, 0.0 }
 0x670   : > { %v14290_v35 = vmax.f32 %v14258_v46, 0.0 }
 0x671   : > { %v14288_v1 = vmax.f32 %v14256_v49, 0.0 }
 0x672   : > { %v15897_v61 = vpack.c.bf16 %v14290_v35, %v14289_v53 }
 0x673   : > { %v15892_v5 = vpack.c.bf16 %v14288_v1, %v14287_v15 }
 0x674   : > { %15913 = vst [vmem:[%s22235_s10 + $0x78] sm:$0xff] %v15897_v61  }
 0x675   : > { %15912 = vst [vmem:[%s22235_s10 + $0x70] sm:$0xff] %v15892_v5  }
 0x676 PF: > { %s15_s20 = sadd.s32 1, %s18065_s20   ;;  %s22384_s18 = smov %s18061_s19 }
 0x677   : > { %p12_p5 = scmp.ge.s32.totalorder %s15_s20, 4   ;;  %s22385_s19 = smov %s22387_s21 }
 0x679   :  { %14 = sbr.rel (!%p12_p5) target bundleno = 2 (0x2), region = 95 }

</bundles_post_ra>
